<compile_context>
chip_gen: v5e
topology: v5e:2x2
jax: 0.10.0
libtpu: 0.0.40
codegen_flags: <defaults>
</compile_context>

<pallas_src>
import jax
import jax.numpy as jnp
from jax.experimental import pallas as pl
from jax.experimental.pallas import tpu as pltpu

IN_FEATURES = 6400
HIDDEN_SIZE = 200
OUT_FEATURES = 3

HIDDEN_PAD = 256   # 200 -> 2 full 128-lane tiles
OUT_PAD = 128      # 3   -> 1 full lane tile (lane-dense output stores)
NEG_INF = -1e30    # finite "minus infinity" for masked padded logits (no NaN risk)
SUB = 16           # bf16 sublane packing: keep batch tiles 16-aligned


def _mlp_kernel(x_ref, w1_ref, b1_ref, w2_ref, b2_ref, o_ref):
    # hidden = relu(x @ W1 + b1): bf16 operands on the MXU, f32 accumulation.
    h = jnp.dot(x_ref[...], w1_ref[...], preferred_element_type=jnp.float32)
    h = jnp.maximum(h + b1_ref[...], 0.0)            # padded hidden cols: relu(0+0)=0

    # logits = h @ W2 + b2 ; padded output lanes: zero weights, bias = -1e30.
    logits = jnp.dot(h.astype(jnp.bfloat16), w2_ref[...],
                     preferred_element_type=jnp.float32)
    logits = logits + b2_ref[...]

    # numerically stable softmax over the lane axis (padded lanes -> exp == 0).
    m = jnp.max(logits, axis=-1, keepdims=True)
    e = jnp.exp(logits - m)
    denom = jnp.sum(e, axis=-1, keepdims=True)
    o_ref[...] = e / denom    # exact divide: kernel is DMA-bound, this is free


def pad_params(w1, b1, w2, b2):
    """Pad ONCE at init (not per forward). W1/W2 in bf16, biases in f32.
    Hidden padded 200->256 with zeros; output padded 3->128, padded lanes get
    zero weights and a -1e30 bias so they vanish in the softmax."""
    w1p = (jnp.zeros((IN_FEATURES, HIDDEN_PAD), jnp.bfloat16)
           .at[:, :HIDDEN_SIZE].set(w1.astype(jnp.bfloat16)))
    b1p = (jnp.zeros((1, HIDDEN_PAD), jnp.float32)
           .at[:, :HIDDEN_SIZE].set(b1.reshape(1, -1).astype(jnp.float32)))
    w2p = (jnp.zeros((HIDDEN_PAD, OUT_PAD), jnp.bfloat16)
           .at[:HIDDEN_SIZE, :OUT_FEATURES].set(w2.astype(jnp.bfloat16)))
    b2p = (jnp.full((1, OUT_PAD), NEG_INF, jnp.float32)
           .at[:, :OUT_FEATURES].set(b2.reshape(1, -1).astype(jnp.float32)))
    return w1p, b1p, w2p, b2p


def _hw_config():
    """(default tile_b, vmem_limit_bytes, x buffer count) based on VMEM capacity."""
    try:
        vmem = int(getattr(pltpu.get_tpu_info(), "vmem_capacity_bytes", 64 << 20))
    except Exception:
        vmem = 64 << 20                      # conservative (v7x-sized) fallback
    if vmem >= (100 << 20):                  # v5e / v6e: 128 MiB VMEM
        return 1024, 100 << 20, 2
    return 512, 48 << 20, 3                  # v7x: 64 MiB per TensorCore


def net_forward(x, padded_params, *, tile_b=None):
    """x: any shape reshapeable to (-1, 6400). Returns (B, 3) f32 softmax probs."""
    w1p, b1p, w2p, b2p = padded_params
    # TODO(synk): ideally the caller hands x over already in bf16 / uint8 so this
    # widen/cast pass disappears entirely; the kernel streams bf16 either way.
    x2d = x.reshape(-1, IN_FEATURES).astype(jnp.bfloat16)
    B = x2d.shape[0]

    dflt_tile, vmem_limit, x_bufs = _hw_config()
    tile_b = dflt_tile if tile_b is None else tile_b

    # 16-aligned batch tile (bf16 packing), never bigger than the padded batch; when
    # the batch allows, keep >=2 grid steps so v7x's two TensorCores both get work.
    b_aligned = ((B + SUB - 1) // SUB) * SUB
    if b_aligned >= 2 * SUB:
        cap = ((b_aligned // 2 + SUB - 1) // SUB) * SUB
    else:
        cap = b_aligned
    tile_b = max(SUB, min(tile_b, cap))
    b_pad = ((B + tile_b - 1) // tile_b) * tile_b
    if b_pad != B:
        x2d = jnp.pad(x2d, ((0, b_pad - B), (0, 0)))
    grid = (b_pad // tile_b,)

    flops = 2 * b_pad * IN_FEATURES * HIDDEN_PAD + 2 * b_pad * HIDDEN_PAD * OUT_PAD
    bytes_accessed = (2 * b_pad * IN_FEATURES            # bf16 x stream
                      + 2 * IN_FEATURES * HIDDEN_PAD     # bf16 W1 (resident)
                      + 2 * HIDDEN_PAD * OUT_PAD         # bf16 W2
                      + 4 * (HIDDEN_PAD + OUT_PAD)       # f32 biases
                      + 4 * b_pad * OUT_PAD)             # f32 output

    def build_specs(use_pipeline_mode):
        def spec(shape, index_map, bufs):
            if use_pipeline_mode and bufs is not None:
                return pl.BlockSpec(shape, index_map, pipeline_mode=pl.Buffered(bufs))
            return pl.BlockSpec(shape, index_map)
        in_specs = [
            spec((tile_b, IN_FEATURES), lambda i: (i, 0), x_bufs),      # x stream
            spec((IN_FEATURES, HIDDEN_PAD), lambda i: (0, 0), 1),       # W1 resident
            spec((1, HIDDEN_PAD), lambda i: (0, 0), 1),                 # b1 resident
            spec((HIDDEN_PAD, OUT_PAD), lambda i: (0, 0), 1),           # W2 resident
            spec((1, OUT_PAD), lambda i: (0, 0), 1),                    # b2 resident
        ]
        out_spec = pl.BlockSpec((tile_b, OUT_PAD), lambda i: (i, 0))
        return in_specs, out_spec

    last_err = None
    # Try single/deep-buffered specs first; fall back to default double-buffering
    # if this JAX build rejects pipeline_mode. Correctness is identical either way.
    for use_pm in (True, False):
        in_specs, out_spec = build_specs(use_pm)
        try:
            out = pl.pallas_call(
                _mlp_kernel,
                out_shape=jax.ShapeDtypeStruct((b_pad, OUT_PAD), jnp.float32),
                grid_spec=pltpu.PrefetchScalarGridSpec(
                    num_scalar_prefetch=0,
                    grid=grid,
                    in_specs=in_specs,
                    out_specs=out_spec,
                ),
                compiler_params=pltpu.CompilerParams(
                    dimension_semantics=("parallel",),   # shard batch tiles across TCs
                    vmem_limit_bytes=vmem_limit,
                ),
                cost_estimate=pl.CostEstimate(
                    flops=flops,
                    transcendentals=b_pad * OUT_PAD,
                    bytes_accessed=bytes_accessed,
                ),
            )(x2d, w1p, b1p, w2p, b2p)
            return out[:B, :OUT_FEATURES]
        except Exception as e:  # noqa: BLE001 - retry once with plain BlockSpecs
            last_err = e
    raise last_err


def net_reference(x, w1, b1, w2, b2):
    """Pure-JAX f32 reference of the PyTorch forward."""
    x2d = x.reshape(-1, IN_FEATURES).astype(jnp.float32)
    h = jnp.maximum(x2d @ w1 + b1, 0.0)
    logits = h @ w2 + b2
    return jax.nn.softmax(logits, axis=1)


def init_params(key):
    """Matches the PyTorch module's _layer_init intent: xavier_uniform weights,
    constant 0.1 biases. Weights stored (in, out)."""
    k1, k2 = jax.random.split(key)

    def xavier_uniform(k, fan_in, fan_out):
        limit = (6.0 / (fan_in + fan_out)) ** 0.5
        return jax.random.uniform(
            k, (fan_in, fan_out), dtype=jnp.float32, minval=-limit, maxval=limit
        )

    w1 = xavier_uniform(k1, IN_FEATURES, HIDDEN_SIZE)
    b1 = jnp.full((1, HIDDEN_SIZE), 0.1, dtype=jnp.float32)
    w2 = xavier_uniform(k2, HIDDEN_SIZE, OUT_FEATURES)
    b2 = jnp.full((1, OUT_FEATURES), 0.1, dtype=jnp.float32)
    return w1, b1, w2, b2


if __name__ == "__main__":
    key = jax.random.PRNGKey(0)
    k_x, k_p = jax.random.split(key)

    # Pong-style input: batch of 2 preprocessed 80x80 frames -> flattened 6400.
    x = jax.random.uniform(k_x, (2, 80, 80), dtype=jnp.float32)
    w1, b1, w2, b2 = init_params(k_p)
    padded = pad_params(w1, b1, w2, b2)   # pad once at init, reuse every forward

    out = net_forward(x, padded)
    out = jax.block_until_ready(out)

    # Sanity: shape (2, 3), rows sum to 1 (exact divide), matches f32 reference to
    # bf16-matmul tolerance.
    ref = net_reference(x, w1, b1, w2, b2)
    assert out.shape == (2, OUT_FEATURES)
    assert bool(jnp.allclose(jnp.sum(out, axis=1), 1.0, atol=1e-3))
    assert bool(jnp.allclose(out, ref, atol=2e-2))

    print("KERNEL_OK")
</pallas_src>

<mosaic_0001>
module attributes {stable_mosaic.version = 11 : i64} {
  func.func @_mlp_kernel(%arg0: i32, %arg1: memref<16x6400xbf16, #tpu.memory_space<vmem>>, %arg2: memref<6400x256xbf16, #tpu.memory_space<vmem>>, %arg3: memref<1x256xf32, #tpu.memory_space<vmem>>, %arg4: memref<256x128xbf16, #tpu.memory_space<vmem>>, %arg5: memref<1x128xf32, #tpu.memory_space<vmem>>, %arg6: memref<16x128xf32, #tpu.memory_space<vmem>>) attributes {dimension_semantics = [#tpu.dimension_semantics<parallel>], iteration_bounds = array<i64: 1>, scalar_prefetch = 0 : i64, scratch_operands = 0 : i64, tpu.core_type = #tpu.core_type<tc>, window_params = [{transform_indices = @transform_0, window_bounds = array<i64: 16, 6400>}, {pipeline_mode = #tpu.pipeline_mode<synchronous>, transform_indices = @transform_1, window_bounds = array<i64: 6400, 256>}, {pipeline_mode = #tpu.pipeline_mode<synchronous>, transform_indices = @transform_2, window_bounds = array<i64: 1, 256>}, {pipeline_mode = #tpu.pipeline_mode<synchronous>, transform_indices = @transform_3, window_bounds = array<i64: 256, 128>}, {pipeline_mode = #tpu.pipeline_mode<synchronous>, transform_indices = @transform_4, window_bounds = array<i64: 1, 128>}, {transform_indices = @transform_5, window_bounds = array<i64: 16, 128>}]} {
    %c0 = arith.constant 0 : index
    %c0_0 = arith.constant 0 : index
    %0 = vector.load %arg1[%c0, %c0_0] : memref<16x6400xbf16, #tpu.memory_space<vmem>>, vector<16x6400xbf16>
    %c0_1 = arith.constant 0 : index
    %c0_2 = arith.constant 0 : index
    %1 = vector.load %arg2[%c0_1, %c0_2] : memref<6400x256xbf16, #tpu.memory_space<vmem>>, vector<6400x256xbf16>
    %cst = arith.constant dense<0.000000e+00> : vector<16x256xf32>
    %2 = tpu.matmul %0, %1, %cst {dimension_numbers = #tpu.dot_dimension_numbers<[1], [0], [0], [1], [0, 0, 1, 1], [], []>} : vector<16x6400xbf16>, vector<6400x256xbf16>, vector<16x256xf32> -> vector<16x256xf32>
    %c0_3 = arith.constant 0 : index
    %c0_4 = arith.constant 0 : index
    %3 = vector.load %arg3[%c0_3, %c0_4] : memref<1x256xf32, #tpu.memory_space<vmem>>, vector<1x256xf32>
    %4 = vector.broadcast %3 : vector<1x256xf32> to vector<16x256xf32>
    %5 = arith.addf %2, %4 : vector<16x256xf32>
    %cst_5 = arith.constant 0.000000e+00 : f32
    %6 = vector.broadcast %cst_5 : f32 to vector<16x256xf32>
    %7 = arith.maximumf %5, %6 : vector<16x256xf32>
    %8 = arith.truncf %7 : vector<16x256xf32> to vector<16x256xbf16>
    %c0_6 = arith.constant 0 : index
    %c0_7 = arith.constant 0 : index
    %9 = vector.load %arg4[%c0_6, %c0_7] : memref<256x128xbf16, #tpu.memory_space<vmem>>, vector<256x128xbf16>
    %cst_8 = arith.constant dense<0.000000e+00> : vector<16x128xf32>
    %10 = tpu.matmul %8, %9, %cst_8 {dimension_numbers = #tpu.dot_dimension_numbers<[1], [0], [0], [1], [0, 0, 1, 1], [], []>} : vector<16x256xbf16>, vector<256x128xbf16>, vector<16x128xf32> -> vector<16x128xf32>
    %c0_9 = arith.constant 0 : index
    %c0_10 = arith.constant 0 : index
    %11 = vector.load %arg5[%c0_9, %c0_10] : memref<1x128xf32, #tpu.memory_space<vmem>>, vector<1x128xf32>
    %12 = vector.broadcast %11 : vector<1x128xf32> to vector<16x128xf32>
    %13 = arith.addf %10, %12 : vector<16x128xf32>
    %cst_11 = arith.constant dense<0xFF800000> : vector<16xf32>
    %14 = vector.multi_reduction <maximumf>, %13, %cst_11 [1] : vector<16x128xf32> to vector<16xf32>
    %15 = vector.shape_cast %14 : vector<16xf32> to vector<16x1xf32>
    %16 = vector.broadcast %15 : vector<16x1xf32> to vector<16x128xf32>
    %17 = arith.subf %13, %16 : vector<16x128xf32>
    %18 = math.exp %17 : vector<16x128xf32>
    %cst_12 = arith.constant dense<0.000000e+00> : vector<16xf32>
    %19 = vector.multi_reduction <add>, %18, %cst_12 [1] : vector<16x128xf32> to vector<16xf32>
    %20 = vector.shape_cast %19 : vector<16xf32> to vector<16x1xf32>
    %21 = vector.broadcast %20 : vector<16x1xf32> to vector<16x128xf32>
    %22 = arith.divf %18, %21 : vector<16x128xf32>
    %c0_13 = arith.constant 0 : index
    %c0_14 = arith.constant 0 : index
    %23 = vector.load %arg6[%c0_13, %c0_14] : memref<16x128xf32, #tpu.memory_space<vmem>>, vector<16x128xf32>
    tpu.vector_store %arg6[%c0_13, %c0_14], %22 {strides = array<i32>} : memref<16x128xf32, #tpu.memory_space<vmem>>, vector<16x128xf32>,
    return
  }
  func.func @transform_0(%arg0: i32) -> (i32, i32) {
    %c0_i32 = arith.constant 0 : i32
    %c0_i32_0 = arith.constant 0 : i32
    return %arg0, %c0_i32 : i32, i32
  }
  func.func @transform_1(%arg0: i32) -> (i32, i32) {
    %c0_i32 = arith.constant 0 : i32
    %c0_i32_0 = arith.constant 0 : i32
    %c0_i32_1 = arith.constant 0 : i32
    return %c0_i32, %c0_i32_0 : i32, i32
  }
  func.func @transform_2(%arg0: i32) -> (i32, i32) {
    %c0_i32 = arith.constant 0 : i32
    %c0_i32_0 = arith.constant 0 : i32
    %c0_i32_1 = arith.constant 0 : i32
    return %c0_i32, %c0_i32_0 : i32, i32
  }
  func.func @transform_3(%arg0: i32) -> (i32, i32) {
    %c0_i32 = arith.constant 0 : i32
    %c0_i32_0 = arith.constant 0 : i32
    %c0_i32_1 = arith.constant 0 : i32
    return %c0_i32, %c0_i32_0 : i32, i32
  }
  func.func @transform_4(%arg0: i32) -> (i32, i32) {
    %c0_i32 = arith.constant 0 : i32
    %c0_i32_0 = arith.constant 0 : i32
    %c0_i32_1 = arith.constant 0 : i32
    return %c0_i32, %c0_i32_0 : i32, i32
  }
  func.func @transform_5(%arg0: i32) -> (i32, i32) {
    %c0_i32 = arith.constant 0 : i32
    %c0_i32_0 = arith.constant 0 : i32
    return %arg0, %c0_i32 : i32, i32
  }
}

</mosaic_0001>

<bundles_post_ra>
// kernel: tpu_custom_call.1
= control target key start
LH: loop header
LB: loop body
LE: loop exit
PB: predicated region body
PF: predicated region fallthrough
CT: control target
= control target key end

     0   :  { %10 = vsyncpa [#allocation3], 0  ;;  %s11837_s0 = inlined_call_operand.hbm [shape: bf16[16,6400], index: 0, kind: input, shape index: {}]   ;;  %s11838_s1 = inlined_call_operand.hbm [shape: bf16[6400,256], index: 1, kind: input, shape index: {}]   ;;  %s11839_s2 = inlined_call_operand.hbm [shape: f32[1,256], index: 2, kind: input, shape index: {}]   ;;  %s11840_s3 = inlined_call_operand.hbm [shape: bf16[256,128], index: 3, kind: input, shape index: {}]   ;;  %s11841_s4 = inlined_call_operand.hbm [shape: f32[1,128], index: 4, kind: input, shape index: {}]   ;;  %s11842_s5 = inlined_call_operand.hbm [shape: f32[16,128], index: 5, kind: output, shape index: {}]  }
   0x1   :  { %11 = vsyncpa [#allocation6], 0 }
   0x2   :  { %12 = vsyncpa [#allocation9], 0  ;;  %s31_s20 = sshll.u32 %s11838_s1, 4  ;;  %s32_s20 = int_to_ptr.hbm [resolvable:$true] %s31_s20 }
   0x3   :  { %13 = vsyncpa [#allocation4], 0  ;;  %s11338_s21 = smov [#allocation5]   ;;  %s55_s25 = sshll.u32 %s11840_s3, 4  ;;  %s56_s25 = int_to_ptr.hbm [resolvable:$true] %s55_s25 }
   0x4   :  { %s33_s22 = sshll.u32 %s11338_s21, 4  ;;  %s11339_s26 = smov 128   ;;  %s34_s22 = int_to_ptr.vmem [resolvable:$true] %s33_s22 }
   0x5   :  { %s11340_s27 = smov 8   ;;  %s11341_s28 = smov [#allocation8]  }
   0x6   :  { %39 = dma.hbm_to_vmem [thread:$0]  %s32_s20, 102400, %s34_s22, [#allocation6], %s11339_s26, %s11339_s26, %s11340_s27  }
   0x7   :  { %s57_s29 = sshll.u32 %s11341_s28, 4  ;;  %s11342_s1 = smov 64   ;;  %s58_s29 = int_to_ptr.vmem [resolvable:$true] %s57_s29 }
   0x8   :  { %s11343_s30 = smov 4   ;;  %s18_s8 = sshll.u32 %s11837_s0, 4  ;;  %s19_s8 = int_to_ptr.hbm [resolvable:$true] %s18_s8 }
   0x9   :  { %63 = dma.hbm_to_vmem [thread:$0]  %s56_s25, 2048, %s58_s29, [#allocation9], %s11342_s1, %s11342_s1, %s11343_s30  }
   0xa   :  { %s11344_s9 = smov [#allocation2]   ;;  %s45_s12 = sshll.u32 %s11839_s2, 4  ;;  %s46_s12 = int_to_ptr.hbm [resolvable:$true] %s45_s12 }
   0xb   :  { %s20_s3 = sshll.u32 %s11344_s9, 4  ;;  %s11345_s13 = smov 3200   ;;  %s21_s3 = int_to_ptr.vmem [resolvable:$true] %s20_s3 }
   0xc   :  { %s11346_s14 = smov 200   ;;  %s11347_s15 = smov [#allocation7]  }
   0xd   :  { %26 = dma.hbm_to_vmem [thread:$0]  %s19_s8, 6400, %s21_s3, [#allocation3], %s11345_s13, %s11345_s13, %s11346_s14  }
   0xe   :  { %s47_s16 = sshll.u32 %s11347_s15, 4  ;;  %s69_s19 = sshll.u32 %s11841_s4, 4  ;;  %s48_s16 = int_to_ptr.vmem [resolvable:$true] %s47_s16  ;;  %s70_s19 = int_to_ptr.hbm [resolvable:$true] %s69_s19 }
   0xf   :  { %50 = dma.hbm_to_vmem [thread:$0]  %s46_s12, 32, %s48_s16, [#allocation6]  }
  0x10   :  { %s11348_s0 = smov [#allocation10]  }
  0x11   :  { %s71_s20 = sshll.u32 %s11348_s0, 4  ;;  %s72_s20 = int_to_ptr.vmem [resolvable:$true] %s71_s20 }
  0x12   :  { %74 = dma.hbm_to_vmem [thread:$0]  %s70_s19, 16, %s72_s20, [#allocation9]  }
  0x13   :  { %11330 = dma.done.wait [#allocation3], 6400  }
  0x14   :  { %11331 = vsyncadd [#allocation3], 4294960896 }
  0x15   :  { %11332 = dma.done.wait [#allocation6], 102432  }
  0x16   :  { %11333 = vsyncadd [#allocation6], 4294864864 }
  0x17   :  { %11334 = dma.done.wait [#allocation9], 2064  }
  0x18   :  { %11335 = vsyncadd [#allocation9], 4294965232  ;;  %v7092_v0 = vld [vmem:[#allocation5 + $0x70] sm:$0xf]  ;;  %v10363_v1 = vld [vmem:[#allocation5 + $0x74] sm:$0xf0] }
  0x19   :  { %v7156_v2 = vld [vmem:[#allocation5 + $0xf0] sm:$0xf]  ;;  %v7093_v3 = vor.u32 %v10363_v1, %v7092_v0  ;;  %v10379_v4 = vld [vmem:[#allocation5 + $0xf4] sm:$0xf0]  ;;  %v7084_v11 = vld [vmem:[#allocation5 + $0x60] sm:$0xf] }
  0x1a   :  { %v7220_v5 = vld [vmem:[#allocation5 + $0x170] sm:$0xf]  ;;  %v10395_v6 = vld [vmem:[#allocation5 + $0x174] sm:$0xf0]  ;;  %v7157_v7 = vor.u32 %v10379_v4, %v7156_v2  ;;  %v10361_v13 = vld [vmem:[#allocation5 + $0x64] sm:$0xf0] }
  0x1b   :  { %v7221_v8 = vor.u32 %v10395_v6, %v7220_v5  ;;  %v7284_v9 = vld [vmem:[#allocation5 + $0x1f0] sm:$0xf]  ;;  %v10411_v10 = vld [vmem:[#allocation5 + $0x1f4] sm:$0xf0]  ;;  %5201 = vmatpush.bf16.msra.mxu0 %v7093_v3  ;;  %v7148_v14 = vld [vmem:[#allocation5 + $0xe0] sm:$0xf]  ;;  %v7085_v16 = vor.u32 %v10361_v13, %v7084_v11 }
  0x1c   :  { %v7285_v12 = vor.u32 %v10411_v10, %v7284_v9  ;;  %v10377_v15 = vld [vmem:[#allocation5 + $0xe4] sm:$0xf0]  ;;  %5215 = vmatpush.bf16.msra.mxu1 %v7157_v7  ;;  %v7212_v18 = vld [vmem:[#allocation5 + $0x160] sm:$0xf]  ;;  %v7076_v23 = vld [vmem:[#allocation5 + $0x50] sm:$0xf] }
  0x1d   :  { %5229 = vmatpush.bf16.msra.mxu2 %v7221_v8  ;;  %v7149_v17 = vor.u32 %v10377_v15, %v7148_v14  ;;  %v10393_v19 = vld [vmem:[#allocation5 + $0x164] sm:$0xf0]  ;;  %v7276_v20 = vld [vmem:[#allocation5 + $0x1e0] sm:$0xf]  ;;  %v10359_v24 = vld [vmem:[#allocation5 + $0x54] sm:$0xf0] }
  0x1e   :  { %5243 = vmatpush.bf16.msra.mxu3 %v7285_v12  ;;  %v7213_v21 = vor.u32 %v10393_v19, %v7212_v18  ;;  %v10409_v22 = vld [vmem:[#allocation5 + $0x1e4] sm:$0xf0]  ;;  %v7140_v26 = vld [vmem:[#allocation5 + $0xd0] sm:$0xf]  ;;  %v10375_v27 = vld [vmem:[#allocation5 + $0xd4] sm:$0xf0]  ;;  %v7077_v29 = vor.u32 %v10359_v24, %v7076_v23 }
  0x1f   :  { %v7277_v25 = vor.u32 %v10409_v22, %v7276_v20  ;;  %v7204_v28 = vld [vmem:[#allocation5 + $0x150] sm:$0xf]  ;;  %5202 = vmatpush.bf16.msra.mxu0 %v7085_v16  ;;  %v10391_v30 = vld [vmem:[#allocation5 + $0x154] sm:$0xf0]  ;;  %v7141_v33 = vor.u32 %v10375_v27, %v7140_v26  ;;  %v7068_v35 = vld [vmem:[#allocation5 + $0x40] sm:$0xf] }
  0x20   :  { %v7268_v31 = vld [vmem:[#allocation5 + $0x1d0] sm:$0xf]  ;;  %v10407_v32 = vld [vmem:[#allocation5 + $0x1d4] sm:$0xf0]  ;;  %5216 = vmatpush.bf16.msra.mxu1 %v7149_v17  ;;  %v7205_v34 = vor.u32 %v10391_v30, %v7204_v28  ;;  %v10357_v36 = vld [vmem:[#allocation5 + $0x44] sm:$0xf0] }
  0x21   :  { %5230 = vmatpush.bf16.msra.mxu2 %v7213_v21  ;;  %v7132_v37 = vld [vmem:[#allocation5 + $0xc0] sm:$0xf]  ;;  %v7269_v38 = vor.u32 %v10407_v32, %v7268_v31  ;;  %v10373_v39 = vld [vmem:[#allocation5 + $0xc4] sm:$0xf0]  ;;  %v7069_v44 = vor.u32 %v10357_v36, %v7068_v35  ;;  %v7060_v47 = vld [vmem:[#allocation5 + $0x30] sm:$0xf] }
  0x22   :  { %5244 = vmatpush.bf16.msra.mxu3 %v7277_v25  ;;  %v7196_v40 = vld [vmem:[#allocation5 + $0x140] sm:$0xf]  ;;  %v10389_v41 = vld [vmem:[#allocation5 + $0x144] sm:$0xf0]  ;;  %v7133_v45 = vor.u32 %v10373_v39, %v7132_v37  ;;  %v10355_v48 = vld [vmem:[#allocation5 + $0x34] sm:$0xf0] }
  0x23   :  { %v7260_v42 = vld [vmem:[#allocation5 + $0x1c0] sm:$0xf]  ;;  %v10405_v43 = vld [vmem:[#allocation5 + $0x1c4] sm:$0xf0]  ;;  %5203 = vmatpush.bf16.msra.mxu0 %v7077_v29  ;;  %v7197_v46 = vor.u32 %v10389_v41, %v7196_v40  ;;  %v7124_v49 = vld [vmem:[#allocation5 + $0xb0] sm:$0xf]  ;;  %v7061_v56 = vor.u32 %v10355_v48, %v7060_v47 }
  0x24   :  { %5217 = vmatpush.bf16.msra.mxu1 %v7141_v33  ;;  %v7261_v50 = vor.u32 %v10405_v43, %v7260_v42  ;;  %v10371_v51 = vld [vmem:[#allocation5 + $0xb4] sm:$0xf0]  ;;  %v7188_v52 = vld [vmem:[#allocation5 + $0x130] sm:$0xf]  ;;  %v7052_v59 = vld [vmem:[#allocation5 + $0x20] sm:$0xf] }
  0x25   :  { %5231 = vmatpush.bf16.msra.mxu2 %v7205_v34  ;;  %v10387_v53 = vld [vmem:[#allocation5 + $0x134] sm:$0xf0]  ;;  %v7252_v54 = vld [vmem:[#allocation5 + $0x1b0] sm:$0xf]  ;;  %v7125_v57 = vor.u32 %v10371_v51, %v7124_v49  ;;  %v10353_v60 = vld [vmem:[#allocation5 + $0x24] sm:$0xf0] }
  0x26   :  { %5245 = vmatpush.bf16.msra.mxu3 %v7269_v38  ;;  %v10403_v55 = vld [vmem:[#allocation5 + $0x1b4] sm:$0xf0]  ;;  %v7189_v58 = vor.u32 %v10387_v53, %v7188_v52  ;;  %v7116_v61 = vld [vmem:[#allocation5 + $0xa0] sm:$0xf]  ;;  %v10369_v63 = vld [vmem:[#allocation5 + $0xa4] sm:$0xf0]  ;;  %v7053_v4 = vor.u32 %v10353_v60, %v7052_v59 }
  0x27   :  { %5204 = vmatpush.bf16.msra.mxu0 %v7069_v44  ;;  %v7253_v62 = vor.u32 %v10403_v55, %v7252_v54  ;;  %v7180_v0 = vld [vmem:[#allocation5 + $0x120] sm:$0xf]  ;;  %v10385_v1 = vld [vmem:[#allocation5 + $0x124] sm:$0xf0]  ;;  %v7117_v5 = vor.u32 %v10369_v63, %v7116_v61  ;;  %v7044_v7 = vld [vmem:[#allocation5 + $0x10] sm:$0xf] }
  0x28   :  { %5218 = vmatpush.bf16.msra.mxu1 %v7133_v45  ;;  %v7244_v2 = vld [vmem:[#allocation5 + $0x1a0] sm:$0xf]  ;;  %v10401_v3 = vld [vmem:[#allocation5 + $0x1a4] sm:$0xf0]  ;;  %v7181_v6 = vor.u32 %v10385_v1, %v7180_v0  ;;  %v10351_v8 = vld [vmem:[#allocation5 + $0x14] sm:$0xf0] }
  0x29   :  { %5232 = vmatpush.bf16.msra.mxu2 %v7197_v46  ;;  %v7108_v9 = vld [vmem:[#allocation5 + $0x90] sm:$0xf]  ;;  %v7245_v10 = vor.u32 %v10401_v3, %v7244_v2  ;;  %v10367_v11 = vld [vmem:[#allocation5 + $0x94] sm:$0xf0]  ;;  %v7045_v16 = vor.u32 %v10351_v8, %v7044_v7  ;;  %v7036_v17 = vld [vmem:[#allocation5] sm:$0xf] }
  0x2a   :  { %5246 = vmatpush.bf16.msra.mxu3 %v7261_v50  ;;  %v7172_v12 = vld [vmem:[#allocation5 + $0x110] sm:$0xf]  ;;  %v10383_v13 = vld [vmem:[#allocation5 + $0x114] sm:$0xf0]  ;;  %v10349_v18 = vld [vmem:[#allocation5 + $0x4] sm:$0xf0]  ;;  %v7109_v19 = vor.u32 %v10367_v11, %v7108_v9 }
  0x2b   :  { %5205 = vmatpush.bf16.msra.mxu0 %v7061_v56  ;;  %v7236_v14 = vld [vmem:[#allocation5 + $0x190] sm:$0xf]  ;;  %v10399_v15 = vld [vmem:[#allocation5 + $0x194] sm:$0xf0]  ;;  %v7173_v20 = vor.u32 %v10383_v13, %v7172_v12  ;;  %v7100_v21 = vld [vmem:[#allocation5 + $0x80] sm:$0xf]  ;;  %v7037_v31 = vor.u32 %v10349_v18, %v7036_v17 }
  0x2c   :  { %5219 = vmatpush.bf16.msra.mxu1 %v7125_v57  ;;  %v10365_v22 = vld [vmem:[#allocation5 + $0x84] sm:$0xf0]  ;;  %v7164_v23 = vld [vmem:[#allocation5 + $0x100] sm:$0xf]  ;;  %v7237_v24 = vor.u32 %v10399_v15, %v7236_v14  ;;  %v7348_v28 = vld [vmem:[#allocation5 + $0x270] sm:$0xf] }
  0x2d   :  { %5233 = vmatpush.bf16.msra.mxu2 %v7189_v58  ;;  %v10381_v25 = vld [vmem:[#allocation5 + $0x104] sm:$0xf0]  ;;  %v7228_v26 = vld [vmem:[#allocation5 + $0x180] sm:$0xf]  ;;  %v10427_v29 = vld [vmem:[#allocation5 + $0x274] sm:$0xf0]  ;;  %v7101_v35 = vor.u32 %v10365_v22, %v7100_v21 }
  0x2e   :  { %5247 = vmatpush.bf16.msra.mxu3 %v7253_v62  ;;  %v10397_v27 = vld [vmem:[#allocation5 + $0x184] sm:$0xf0]  ;;  %v7412_v30 = vld [vmem:[#allocation5 + $0x2f0] sm:$0xf]  ;;  %v10443_v32 = vld [vmem:[#allocation5 + $0x2f4] sm:$0xf0]  ;;  %v7165_v36 = vor.u32 %v10381_v25, %v7164_v23  ;;  %v7349_v40 = vor.u32 %v10427_v29, %v7348_v28 }
  0x2f   :  { %5206 = vmatpush.bf16.msra.mxu0 %v7053_v4  ;;  %v7476_v33 = vld [vmem:[#allocation5 + $0x370] sm:$0xf]  ;;  %v10459_v34 = vld [vmem:[#allocation5 + $0x374] sm:$0xf0]  ;;  %v7229_v39 = vor.u32 %v10397_v27, %v7228_v26  ;;  %v7340_v41 = vld [vmem:[#allocation5 + $0x260] sm:$0xf]  ;;  %v7413_v43 = vor.u32 %v10443_v32, %v7412_v30 }
  0x30   :  { %5220 = vmatpush.bf16.msra.mxu1 %v7117_v5  ;;  %v7540_v37 = vld [vmem:[#allocation5 + $0x3f0] sm:$0xf]  ;;  %v10475_v38 = vld [vmem:[#allocation5 + $0x3f4] sm:$0xf0]  ;;  %v10425_v42 = vld [vmem:[#allocation5 + $0x264] sm:$0xf0]  ;;  %v7477_v44 = vor.u32 %v10459_v34, %v7476_v33 }
  0x31   :  { %5234 = vmatpush.bf16.msra.mxu2 %v7181_v6  ;;  %v7404_v45 = vld [vmem:[#allocation5 + $0x2e0] sm:$0xf]  ;;  %v10441_v46 = vld [vmem:[#allocation5 + $0x2e4] sm:$0xf0]  ;;  %v7541_v48 = vor.u32 %v10475_v38, %v7540_v37  ;;  %v6836_v52 = vld [vmem:[#allocation2] sm:$0xf]  ;;  %v7341_v55 = vor.u32 %v10425_v42, %v7340_v41 }
  0x32   :  { %5248 = vmatpush.bf16.msra.mxu3 %v7245_v10  ;;  %v7468_v47 = vld [vmem:[#allocation5 + $0x360] sm:$0xf]  ;;  %v10457_v49 = vld [vmem:[#allocation5 + $0x364] sm:$0xf0]  ;;  %v10323_v53 = vld [vmem:[#allocation2 + $0xc4] sm:$0xf0]  ;;  %v7405_v60 = vor.u32 %v10441_v46, %v7404_v45 }
  0x33   :  { %5207 = vmatpush.bf16.msra.mxu0 %v7045_v16  ;;  %v7532_v50 = vld [vmem:[#allocation5 + $0x3e0] sm:$0xf]  ;;  %v10473_v51 = vld [vmem:[#allocation5 + $0x3e4] sm:$0xf0]  ;;  %v6844_v54 = vld [vmem:[#allocation2 + $0x8] sm:$0xf]  ;;  %v11398_v58 = vor.u32 %v10323_v53, %v6836_v52  ;;  %v7469_v61 = vor.u32 %v10457_v49, %v7468_v47 }
  0x34   :  { %5221 = vmatpush.bf16.msra.mxu1 %v7109_v19  ;;  %v7332_v56 = vld [vmem:[#allocation5 + $0x250] sm:$0xf]  ;;  %v10423_v57 = vld [vmem:[#allocation5 + $0x254] sm:$0xf0]  ;;  %v10324_v59 = vld [vmem:[#allocation2 + $0xcc] sm:$0xf0]  ;;  %v7533_v2 = vor.u32 %v10473_v51, %v7532_v50 }
  0x35   :  { %5235 = vmatpush.bf16.msra.mxu2 %v7173_v20  ;;  %v7396_v62 = vld [vmem:[#allocation5 + $0x2d0] sm:$0xf]  ;;  %v10439_v63 = vld [vmem:[#allocation5 + $0x2d4] sm:$0xf0]  ;;  %v11400_v1 = vor.u32 %v10324_v59, %v6844_v54  ;;  %v10298_v6 = vld [vmem:[#allocation2 + $0x4] sm:$0xf]  ;;  %v7333_v9 = vor.u32 %v10423_v57, %v7332_v56 }
  0x36   :  { %5249 = vmatpush.bf16.msra.mxu3 %v7237_v24  ;;  %v7460_v0 = vld [vmem:[#allocation5 + $0x350] sm:$0xf]  ;;  %v10455_v3 = vld [vmem:[#allocation5 + $0x354] sm:$0xf0]  ;;  %v6838_v7 = vld [vmem:[#allocation2 + $0xc8] sm:$0xf0]  ;;  %v7397_v12 = vor.u32 %v10439_v63, %v7396_v62 }
  0x37   :  { %5208 = vmatpush.bf16.msra.mxu0 %v7037_v31  ;;  %v7524_v4 = vld [vmem:[#allocation5 + $0x3d0] sm:$0xf]  ;;  %v10471_v5 = vld [vmem:[#allocation5 + $0x3d4] sm:$0xf0]  ;;  %v10299_v8 = vld [vmem:[#allocation2 + $0xc] sm:$0xf]  ;;  %v11404_v10 = vor.u32 %v10298_v6, %v6838_v7  ;;  %v7461_v13 = vor.u32 %v10455_v3, %v7460_v0 }
  0x38   :  { %5222 = vmatpush.bf16.msra.mxu1 %v7101_v35  ;;  %v6846_v11 = vld [vmem:[#allocation2 + $0xd0] sm:$0xf0]  ;;  %v7324_v14 = vld [vmem:[#allocation5 + $0x240] sm:$0xf]  ;;  %v10421_v15 = vld [vmem:[#allocation5 + $0x244] sm:$0xf0]  ;;  %v7525_v18 = vor.u32 %v10471_v5, %v7524_v4 }
  0x39   :  { %5236 = vmatpush.bf16.msra.mxu2 %v7165_v36  ;;  %v7388_v16 = vld [vmem:[#allocation5 + $0x2c0] sm:$0xf]  ;;  %v11406_v17 = vor.u32 %v10299_v8, %v6846_v11  ;;  %v10437_v19 = vld [vmem:[#allocation5 + $0x2c4] sm:$0xf0]  ;;  %v7325_v24 = vor.u32 %v10421_v15, %v7324_v14  ;;  %v7316_v27 = vld [vmem:[#allocation5 + $0x230] sm:$0xf] }
  0x3a   :  { %5250 = vmatpush.bf16.msra.mxu3 %v7229_v39  ;;  %5209 = vmatmul.bf16.vlgmr.msra.gmra.mxu0 %v11398_v58  ;;  %v7452_v20 = vld [vmem:[#allocation5 + $0x340] sm:$0xf]  ;;  %v10453_v21 = vld [vmem:[#allocation5 + $0x344] sm:$0xf0]  ;;  %v7389_v25 = vor.u32 %v10437_v19, %v7388_v16  ;;  %v10419_v28 = vld [vmem:[#allocation5 + $0x234] sm:$0xf0] }
  0x3b   :  { %5257 = vmatpush.bf16.msrb.mxu0 %v7349_v40  ;;  %5223 = vmatmul.bf16.vlgmr.msra.gmra.mxu1 %v11404_v10  ;;  %v7516_v22 = vld [vmem:[#allocation5 + $0x3c0] sm:$0xf]  ;;  %v10469_v23 = vld [vmem:[#allocation5 + $0x3c4] sm:$0xf0]  ;;  %v7453_v26 = vor.u32 %v10453_v21, %v7452_v20  ;;  %v7380_v29 = vld [vmem:[#allocation5 + $0x2b0] sm:$0xf]  ;;  %v7317_v36 = vor.u32 %v10419_v28, %v7316_v27 }
  0x3c   :  { %5271 = vmatpush.bf16.msrb.mxu1 %v7413_v43  ;;  %5237 = vmatmul.bf16.vlgmr.msra.gmra.mxu2 %v11400_v1  ;;  %v7517_v30 = vor.u32 %v10469_v23, %v7516_v22  ;;  %v10435_v31 = vld [vmem:[#allocation5 + $0x2b4] sm:$0xf0]  ;;  %v7444_v32 = vld [vmem:[#allocation5 + $0x330] sm:$0xf]  ;;  %v7308_v39 = vld [vmem:[#allocation5 + $0x220] sm:$0xf] }
  0x3d   :  { %5285 = vmatpush.bf16.msrb.mxu2 %v7477_v44  ;;  %5251 = vmatmul.bf16.vlgmr.msra.gmra.mxu3 %v11406_v17  ;;  %v10451_v33 = vld [vmem:[#allocation5 + $0x334] sm:$0xf0]  ;;  %v7508_v34 = vld [vmem:[#allocation5 + $0x3b0] sm:$0xf]  ;;  %v7381_v37 = vor.u32 %v10435_v31, %v7380_v29  ;;  %v10417_v40 = vld [vmem:[#allocation5 + $0x224] sm:$0xf0] }
  0x3e   :  { %5299 = vmatpush.bf16.msrb.mxu3 %v7541_v48  ;;  %v10467_v35 = vld [vmem:[#allocation5 + $0x3b4] sm:$0xf0]  ;;  %v7445_v38 = vor.u32 %v10451_v33, %v7444_v32  ;;  %v7372_v41 = vld [vmem:[#allocation5 + $0x2a0] sm:$0xf]  ;;  %v10433_v43 = vld [vmem:[#allocation5 + $0x2a4] sm:$0xf0]  ;;  %v7309_v48 = vor.u32 %v10417_v40, %v7308_v39 }
  0x3f   :  { %5258 = vmatpush.bf16.msrb.mxu0 %v7341_v55  ;;  %v7509_v42 = vor.u32 %v10467_v35, %v7508_v34  ;;  %v7436_v44 = vld [vmem:[#allocation5 + $0x320] sm:$0xf]  ;;  %v10449_v45 = vld [vmem:[#allocation5 + $0x324] sm:$0xf0]  ;;  %v7300_v49 = vld [vmem:[#allocation5 + $0x210] sm:$0xf]  ;;  %v7373_v50 = vor.u32 %v10433_v43, %v7372_v41 }
  0x40   :  { %5272 = vmatpush.bf16.msrb.mxu1 %v7405_v60  ;;  %v7500_v46 = vld [vmem:[#allocation5 + $0x3a0] sm:$0xf]  ;;  %v10465_v47 = vld [vmem:[#allocation5 + $0x3a4] sm:$0xf0]  ;;  %v7437_v51 = vor.u32 %v10449_v45, %v7436_v44  ;;  %v10415_v52 = vld [vmem:[#allocation5 + $0x214] sm:$0xf0] }
  0x41   :  { %5286 = vmatpush.bf16.msrb.mxu2 %v7469_v61  ;;  %v7364_v53 = vld [vmem:[#allocation5 + $0x290] sm:$0xf]  ;;  %v10431_v54 = vld [vmem:[#allocation5 + $0x294] sm:$0xf0]  ;;  %v7501_v55 = vor.u32 %v10465_v47, %v7500_v46  ;;  %v7292_v61 = vld [vmem:[#allocation5 + $0x200] sm:$0xf]  ;;  %v7301_v63 = vor.u32 %v10415_v52, %v7300_v49 }
  0x42   :  { %5300 = vmatpush.bf16.msrb.mxu3 %v7533_v2  ;;  %v7428_v56 = vld [vmem:[#allocation5 + $0x310] sm:$0xf]  ;;  %v10447_v57 = vld [vmem:[#allocation5 + $0x314] sm:$0xf0]  ;;  %v10413_v62 = vld [vmem:[#allocation5 + $0x204] sm:$0xf0]  ;;  %v7365_v5 = vor.u32 %v10431_v54, %v7364_v53 }
  0x43   :  { %5259 = vmatpush.bf16.msrb.mxu0 %v7333_v9  ;;  %v7492_v59 = vld [vmem:[#allocation5 + $0x390] sm:$0xf]  ;;  %v10463_v60 = vld [vmem:[#allocation5 + $0x394] sm:$0xf0]  ;;  %v7356_v0 = vld [vmem:[#allocation5 + $0x280] sm:$0xf]  ;;  %v7429_v6 = vor.u32 %v10447_v57, %v7428_v56  ;;  %v7293_v19 = vor.u32 %v10413_v62, %v7292_v61 }
  0x44   :  { %5273 = vmatpush.bf16.msrb.mxu1 %v7397_v12  ;;  %v10429_v2 = vld [vmem:[#allocation5 + $0x284] sm:$0xf0]  ;;  %v7420_v3 = vld [vmem:[#allocation5 + $0x300] sm:$0xf]  ;;  %v7604_v9 = vld [vmem:[#allocation5 + $0x470] sm:$0xf]  ;;  %v7493_v11 = vor.u32 %v10463_v60, %v7492_v59 }
  0x45   :  { %5287 = vmatpush.bf16.msrb.mxu2 %v7461_v13  ;;  %v10445_v4 = vld [vmem:[#allocation5 + $0x304] sm:$0xf0]  ;;  %v7484_v7 = vld [vmem:[#allocation5 + $0x380] sm:$0xf]  ;;  %v10491_v12 = vld [vmem:[#allocation5 + $0x474] sm:$0xf0]  ;;  %v7357_v23 = vor.u32 %v10429_v2, %v7356_v0 }
  0x46   :  { %5301 = vmatpush.bf16.msrb.mxu3 %v7525_v18  ;;  %v10461_v8 = vld [vmem:[#allocation5 + $0x384] sm:$0xf0]  ;;  %v7668_v13 = vld [vmem:[#allocation5 + $0x4f0] sm:$0xf]  ;;  %v10507_v14 = vld [vmem:[#allocation5 + $0x4f4] sm:$0xf0]  ;;  %v7605_v29 = vor.u32 %v10491_v12, %v7604_v9 }
  0x47   :  { %5260 = vmatpush.bf16.msrb.mxu0 %v7325_v24  ;;  %v7732_v15 = vld [vmem:[#allocation5 + $0x570] sm:$0xf]  ;;  %v10523_v16 = vld [vmem:[#allocation5 + $0x574] sm:$0xf0]  ;;  %v6852_v21 = vld [vmem:[#allocation2 + $0x10] sm:$0xf]  ;;  %v7421_v24 = vor.u32 %v10445_v4, %v7420_v3  ;;  %v7485_v28 = vor.u32 %v10461_v8, %v7484_v7  ;;  %v7669_v33 = vor.u32 %v10507_v14, %v7668_v13 }
  0x48   :  { %5274 = vmatpush.bf16.msrb.mxu1 %v7389_v25  ;;  %v7796_v18 = vld [vmem:[#allocation5 + $0x5f0] sm:$0xf]  ;;  %v10539_v20 = vld [vmem:[#allocation5 + $0x5f4] sm:$0xf0]  ;;  %v10325_v22 = vld [vmem:[#allocation2 + $0xd4] sm:$0xf0]  ;;  %v7733_v34 = vor.u32 %v10523_v16, %v7732_v15 }
  0x49   :  { %5288 = vmatpush.bf16.msrb.mxu2 %v7453_v26  ;;  %v6860_v25 = vld [vmem:[#allocation2 + $0x18] sm:$0xf]  ;;  %v10326_v26 = vld [vmem:[#allocation2 + $0xdc] sm:$0xf0]  ;;  %v10300_v27 = vld [vmem:[#allocation2 + $0x14] sm:$0xf]  ;;  %v11410_v39 = vor.u32 %v10325_v22, %v6852_v21 }
  0x4a   :  { %5302 = vmatpush.bf16.msrb.mxu3 %v7517_v30  ;;  %v6854_v30 = vld [vmem:[#allocation2 + $0xd8] sm:$0xf0]  ;;  %v6862_v32 = vld [vmem:[#allocation2 + $0xe0] sm:$0xf0]  ;;  %v7596_v35 = vld [vmem:[#allocation5 + $0x460] sm:$0xf]  ;;  %v11412_v43 = vor.u32 %v10326_v26, %v6860_v25 }
  0x4b   :  { %5261 = vmatpush.bf16.msrb.mxu0 %v7317_v36  ;;  %v10301_v31 = vld [vmem:[#allocation2 + $0x1c] sm:$0xf]  ;;  %v10489_v36 = vld [vmem:[#allocation5 + $0x464] sm:$0xf0]  ;;  %v7724_v41 = vld [vmem:[#allocation5 + $0x560] sm:$0xf]  ;;  %v11414_v44 = vor.u32 %v10300_v27, %v6854_v30 }
  0x4c   :  { %5275 = vmatpush.bf16.msrb.mxu1 %v7381_v37  ;;  %v7660_v37 = vld [vmem:[#allocation5 + $0x4e0] sm:$0xf]  ;;  %v10505_v40 = vld [vmem:[#allocation5 + $0x4e4] sm:$0xf0]  ;;  %v11416_v47 = vor.u32 %v10301_v31, %v6862_v32  ;;  %v10487_v52 = vld [vmem:[#allocation5 + $0x454] sm:$0xf0] }
  0x4d   :  { %5289 = vmatpush.bf16.msrb.mxu2 %v7445_v38  ;;  %v7797_v38 = vor.u32 %v10539_v20, %v7796_v18  ;;  %v7788_v45 = vld [vmem:[#allocation5 + $0x5e0] sm:$0xf]  ;;  %v10537_v46 = vld [vmem:[#allocation5 + $0x5e4] sm:$0xf0]  ;;  %v7661_v49 = vor.u32 %v10505_v40, %v7660_v37  ;;  %v7652_v53 = vld [vmem:[#allocation5 + $0x4d0] sm:$0xf] }
  0x4e   :  { %5303 = vmatpush.bf16.msrb.mxu3 %v7509_v42  ;;  %v10521_v42 = vld [vmem:[#allocation5 + $0x564] sm:$0xf0]  ;;  %v7789_v54 = vor.u32 %v10537_v46, %v7788_v45  ;;  %v7716_v56 = vld [vmem:[#allocation5 + $0x550] sm:$0xf]  ;;  %v10519_v57 = vld [vmem:[#allocation5 + $0x554] sm:$0xf0] }
  0x4f   :  { %5262 = vmatpush.bf16.msrb.mxu0 %v7309_v48  ;;  %v7597_v48 = vor.u32 %v10489_v36, %v7596_v35  ;;  %v7780_v59 = vld [vmem:[#allocation5 + $0x5d0] sm:$0xf]  ;;  %v10535_v60 = vld [vmem:[#allocation5 + $0x5d4] sm:$0xf0]  ;;  %v7580_v0 = vld [vmem:[#allocation5 + $0x440] sm:$0xf] }
  0x50   :  { %5276 = vmatpush.bf16.msrb.mxu1 %v7373_v50  ;;  %v7725_v50 = vor.u32 %v10521_v42, %v7724_v41  ;;  %v10485_v2 = vld [vmem:[#allocation5 + $0x444] sm:$0xf0]  ;;  %v7644_v3 = vld [vmem:[#allocation5 + $0x4c0] sm:$0xf]  ;;  %v7781_v4 = vor.u32 %v10535_v60, %v7780_v59  ;;  %v7572_v14 = vld [vmem:[#allocation5 + $0x430] sm:$0xf] }
  0x51   :  { %5290 = vmatpush.bf16.msrb.mxu2 %v7437_v51  ;;  %v7588_v51 = vld [vmem:[#allocation5 + $0x450] sm:$0xf]  ;;  %v10517_v7 = vld [vmem:[#allocation5 + $0x544] sm:$0xf0]  ;;  %v7772_v8 = vld [vmem:[#allocation5 + $0x5c0] sm:$0xf] }
  0x52   :  { %5304 = vmatpush.bf16.msrb.mxu3 %v7501_v55  ;;  %v10503_v55 = vld [vmem:[#allocation5 + $0x4d4] sm:$0xf0]  ;;  %v7589_v61 = vor.u32 %v10487_v52, %v7588_v51  ;;  %v10533_v9 = vld [vmem:[#allocation5 + $0x5c4] sm:$0xf0]  ;;  %v7636_v16 = vld [vmem:[#allocation5 + $0x4b0] sm:$0xf] }
  0x53   :  { %5263 = vmatpush.bf16.msrb.mxu0 %v7301_v63  ;;  %v7653_v62 = vor.u32 %v10503_v55, %v7652_v53  ;;  %v7717_v63 = vor.u32 %v10519_v57, %v7716_v56  ;;  %v10483_v15 = vld [vmem:[#allocation5 + $0x434] sm:$0xf0]  ;;  %v7773_v18 = vor.u32 %v10533_v9, %v7772_v8  ;;  %v7700_v20 = vld [vmem:[#allocation5 + $0x530] sm:$0xf]  ;;  %v7564_v27 = vld [vmem:[#allocation5 + $0x420] sm:$0xf] }
  0x54   :  { %5277 = vmatpush.bf16.msrb.mxu1 %v7365_v5  ;;  %v10501_v5 = vld [vmem:[#allocation5 + $0x4c4] sm:$0xf0]  ;;  %v10515_v21 = vld [vmem:[#allocation5 + $0x534] sm:$0xf0]  ;;  %v7764_v22 = vld [vmem:[#allocation5 + $0x5b0] sm:$0xf] }
  0x55   :  { %5291 = vmatpush.bf16.msrb.mxu2 %v7429_v6  ;;  %v7708_v6 = vld [vmem:[#allocation5 + $0x540] sm:$0xf]  ;;  %v7645_v12 = vor.u32 %v10501_v5, %v7644_v3  ;;  %v7701_v26 = vor.u32 %v10515_v21, %v7700_v20  ;;  %v10497_v31 = vld [vmem:[#allocation5 + $0x4a4] sm:$0xf0]  ;;  %v7556_v37 = vld [vmem:[#allocation5 + $0x410] sm:$0xf] }
  0x56   :  { %5305 = vmatpush.bf16.msrb.mxu3 %v7493_v11  ;;  %v7581_v11 = vor.u32 %v10485_v2, %v7580_v0  ;;  %v7709_v13 = vor.u32 %v10517_v7, %v7708_v6  ;;  %v7692_v32 = vld [vmem:[#allocation5 + $0x520] sm:$0xf]  ;;  %v10529_v35 = vld [vmem:[#allocation5 + $0x5a4] sm:$0xf0]  ;;  %v10479_v41 = vld [vmem:[#allocation5 + $0x414] sm:$0xf0] }
  0x57   :  { %5264 = vmatpush.bf16.msrb.mxu0 %v7293_v19  ;;  %v10499_v19 = vld [vmem:[#allocation5 + $0x4b4] sm:$0xf0]  ;;  %v7620_v42 = vld [vmem:[#allocation5 + $0x490] sm:$0xf]  ;;  %v7548_v52 = vld [vmem:[#allocation5 + $0x400] sm:$0xf] }
  0x58   :  { %5278 = vmatpush.bf16.msrb.mxu1 %v7357_v23  ;;  %v10531_v23 = vld [vmem:[#allocation5 + $0x5b4] sm:$0xf0]  ;;  %v7637_v25 = vor.u32 %v10499_v19, %v7636_v16  ;;  %v10477_v53 = vld [vmem:[#allocation5 + $0x404] sm:$0xf0]  ;;  %v7612_v55 = vld [vmem:[#allocation5 + $0x480] sm:$0xf] }
  0x59   :  { %5292 = vmatpush.bf16.msrb.mxu2 %v7421_v24  ;;  %v7573_v24 = vor.u32 %v10483_v15, %v7572_v14  ;;  %v7765_v30 = vor.u32 %v10531_v23, %v7764_v22  ;;  %v10495_v45 = vld [vmem:[#allocation5 + $0x494] sm:$0xf0]  ;;  %v10493_v56 = vld [vmem:[#allocation5 + $0x484] sm:$0xf0]  ;;  %v7676_v57 = vld [vmem:[#allocation5 + $0x500] sm:$0xf]  ;;  %v7549_v9 = vor.u32 %v10477_v53, %v7548_v52 }
  0x5a   :  { %5306 = vmatpush.bf16.msrb.mxu3 %v7485_v28  ;;  %5265 = vmatmul.bf16.vlgmr.msrb.gmra.mxu0 %v11410_v39  ;;  %v10481_v28 = vld [vmem:[#allocation5 + $0x424] sm:$0xf0]  ;;  %v10527_v51 = vld [vmem:[#allocation5 + $0x594] sm:$0xf0]  ;;  %v7621_v60 = vor.u32 %v10495_v45, %v7620_v42  ;;  %v7860_v0 = vld [vmem:[#allocation5 + $0x670] sm:$0xf]  ;;  %v7613_v14 = vor.u32 %v10493_v56, %v7612_v55 }
  0x5b   :  { %5313 = vmatpush.bf16.msra.mxu0 %v7605_v29  ;;  %5279 = vmatmul.bf16.vlgmr.msrb.gmra.mxu1 %v11414_v44  ;;  %v7628_v29 = vld [vmem:[#allocation5 + $0x4a0] sm:$0xf]  ;;  %v7565_v36 = vor.u32 %v10481_v28, %v7564_v27  ;;  %v10509_v59 = vld [vmem:[#allocation5 + $0x504] sm:$0xf0]  ;;  %v10555_v3 = vld [vmem:[#allocation5 + $0x674] sm:$0xf0] }
  0x5c   :  { %5327 = vmatpush.bf16.msra.mxu1 %v7669_v33  ;;  %5293 = vmatmul.bf16.vlgmr.msrb.gmra.mxu2 %v11412_v43  ;;  %v10513_v33 = vld [vmem:[#allocation5 + $0x524] sm:$0xf0]  ;;  %v10571_v5 = vld [vmem:[#allocation5 + $0x6f4] sm:$0xf0]  ;;  %v7988_v6 = vld [vmem:[#allocation5 + $0x770] sm:$0xf]  ;;  %v7677_v15 = vor.u32 %v10509_v59, %v7676_v57  ;;  %v7861_v21 = vor.u32 %v10555_v3, %v7860_v0 }
  0x5d   :  { %5341 = vmatpush.bf16.msra.mxu2 %v7733_v34  ;;  %5307 = vmatmul.bf16.vlgmr.msrb.gmra.mxu3 %v11416_v47  ;;  %v7756_v34 = vld [vmem:[#allocation5 + $0x5a0] sm:$0xf]  ;;  %v7693_v40 = vor.u32 %v10513_v33, %v7692_v32  ;;  %v10587_v7 = vld [vmem:[#allocation5 + $0x774] sm:$0xf0]  ;;  %v8052_v8 = vld [vmem:[#allocation5 + $0x7f0] sm:$0xf] }
  0x5e   :  { %5355 = vmatpush.bf16.msra.mxu3 %v7797_v38  ;;  %v7629_v38 = vor.u32 %v10497_v31, %v7628_v29  ;;  %v7757_v46 = vor.u32 %v10529_v35, %v7756_v34  ;;  %v6876_v16 = vld [vmem:[#allocation2 + $0x28] sm:$0xf]  ;;  %v10302_v19 = vld [vmem:[#allocation2 + $0x24] sm:$0xf]  ;;  %v6870_v22 = vld [vmem:[#allocation2 + $0xe8] sm:$0xf0] }
  0x5f   :  { %5314 = vmatpush.bf16.msra.mxu0 %v7597_v48  ;;  %v7684_v48 = vld [vmem:[#allocation5 + $0x510] sm:$0xf]  ;;  %v10303_v23 = vld [vmem:[#allocation2 + $0x2c] sm:$0xf]  ;;  %v7852_v27 = vld [vmem:[#allocation5 + $0x660] sm:$0xf] }
  0x60   :  { %5328 = vmatpush.bf16.msra.mxu1 %v7661_v49  ;;  %v10511_v49 = vld [vmem:[#allocation5 + $0x514] sm:$0xf0]  ;;  %v10553_v28 = vld [vmem:[#allocation5 + $0x664] sm:$0xf0]  ;;  %v7916_v29 = vld [vmem:[#allocation5 + $0x6e0] sm:$0xf] }
  0x61   :  { %5342 = vmatpush.bf16.msra.mxu2 %v7725_v50  ;;  %v7748_v50 = vld [vmem:[#allocation5 + $0x590] sm:$0xf]  ;;  %v10569_v32 = vld [vmem:[#allocation5 + $0x6e4] sm:$0xf0]  ;;  %v7980_v33 = vld [vmem:[#allocation5 + $0x760] sm:$0xf] }
  0x62   :  { %5356 = vmatpush.bf16.msra.mxu3 %v7789_v54  ;;  %v7557_v54 = vor.u32 %v10479_v41, %v7556_v37  ;;  %v7749_v2 = vor.u32 %v10527_v51, %v7748_v50  ;;  %v10585_v34 = vld [vmem:[#allocation5 + $0x764] sm:$0xf0]  ;;  %v8044_v37 = vld [vmem:[#allocation5 + $0x7e0] sm:$0xf]  ;;  %v7853_v41 = vor.u32 %v10553_v28, %v7852_v27  ;;  %v7917_v42 = vor.u32 %v10569_v32, %v7916_v29  ;;  %v10567_v51 = vld [vmem:[#allocation5 + $0x6d4] sm:$0xf0] }
  0x63   :  { %5315 = vmatpush.bf16.msra.mxu0 %v7589_v61  ;;  %v7685_v61 = vor.u32 %v10511_v49, %v7684_v48  ;;  %v7981_v45 = vor.u32 %v10585_v34, %v7980_v33  ;;  %v10551_v48 = vld [vmem:[#allocation5 + $0x654] sm:$0xf0]  ;;  %v7908_v49 = vld [vmem:[#allocation5 + $0x6d0] sm:$0xf]  ;;  %v10565_v0 = vld [vmem:[#allocation5 + $0x6c4] sm:$0xf0] }
  0x64   :  { %5329 = vmatpush.bf16.msra.mxu1 %v7653_v62  ;;  %v7740_v62 = vld [vmem:[#allocation5 + $0x580] sm:$0xf]  ;;  %v7972_v52 = vld [vmem:[#allocation5 + $0x750] sm:$0xf]  ;;  %v10583_v53 = vld [vmem:[#allocation5 + $0x754] sm:$0xf0]  ;;  %v7909_v57 = vor.u32 %v10567_v51, %v7908_v49 }
  0x65   :  { %5343 = vmatpush.bf16.msra.mxu2 %v7717_v63  ;;  %v10525_v63 = vld [vmem:[#allocation5 + $0x584] sm:$0xf0]  ;;  %v10599_v55 = vld [vmem:[#allocation5 + $0x7d4] sm:$0xf0]  ;;  %v7973_v59 = vor.u32 %v10583_v53, %v7972_v52  ;;  %v7948_v28 = vld [vmem:[#allocation5 + $0x720] sm:$0xf] }
  0x66   :  { %5357 = vmatpush.bf16.msra.mxu3 %v7781_v4  ;;  %v7924_v4 = vld [vmem:[#allocation5 + $0x6f0] sm:$0xf]  ;;  %v7741_v20 = vor.u32 %v10525_v63, %v7740_v62  ;;  %v7900_v62 = vld [vmem:[#allocation5 + $0x6c0] sm:$0xf]  ;;  %v10581_v3 = vld [vmem:[#allocation5 + $0x744] sm:$0xf0] }
  0x67   :  { %5316 = vmatpush.bf16.msra.mxu0 %v7581_v11  ;;  %v10603_v11 = vld [vmem:[#allocation5 + $0x7f4] sm:$0xf0]  ;;  %v10561_v27 = vld [vmem:[#allocation5 + $0x6a4] sm:$0xf0]  ;;  %v7812_v34 = vld [vmem:[#allocation5 + $0x610] sm:$0xf] }
  0x68   :  { %5330 = vmatpush.bf16.msra.mxu1 %v7645_v12  ;;  %v6868_v12 = vld [vmem:[#allocation2 + $0x20] sm:$0xf]  ;;  %v10577_v29 = vld [vmem:[#allocation5 + $0x724] sm:$0xf0]  ;;  %v10575_v49 = vld [vmem:[#allocation5 + $0x714] sm:$0xf0] }
  0x69   :  { %5344 = vmatpush.bf16.msra.mxu2 %v7709_v13  ;;  %v10327_v13 = vld [vmem:[#allocation2 + $0xe4] sm:$0xf0]  ;;  %v10593_v32 = vld [vmem:[#allocation5 + $0x7a4] sm:$0xf0]  ;;  %v7804_v52 = vld [vmem:[#allocation5 + $0x600] sm:$0xf] }
  0x6a   :  { %5358 = vmatpush.bf16.msra.mxu3 %v7773_v18  ;;  %v10328_v18 = vld [vmem:[#allocation2 + $0xec] sm:$0xf0]  ;;  %v11422_v31 = vor.u32 %v10327_v13, %v6868_v12  ;;  %v7892_v12 = vld [vmem:[#allocation5 + $0x6b0] sm:$0xf]  ;;  %v10591_v51 = vld [vmem:[#allocation5 + $0x794] sm:$0xf0] }
  0x6b   :  { %5317 = vmatpush.bf16.msra.mxu0 %v7573_v24  ;;  %v6878_v24 = vld [vmem:[#allocation2 + $0xf0] sm:$0xf0]  ;;  %v11424_v35 = vor.u32 %v10328_v18, %v6876_v16  ;;  %v10579_v16 = vld [vmem:[#allocation5 + $0x734] sm:$0xf0]  ;;  %v8020_v18 = vld [vmem:[#allocation5 + $0x7b0] sm:$0xf] }
  0x6c   :  { %5331 = vmatpush.bf16.msra.mxu1 %v7637_v25  ;;  %v7925_v25 = vor.u32 %v10571_v5, %v7924_v4  ;;  %v8028_v4 = vld [vmem:[#allocation5 + $0x7c0] sm:$0xf]  ;;  %v10597_v5 = vld [vmem:[#allocation5 + $0x7c4] sm:$0xf0]  ;;  %s11349_s2 = smov [#allocation11]   ;;  %s6819_s23 = sshll.u32 %s11842_s5, 4  ;;  %s6820_s23 = int_to_ptr.hbm [resolvable:$true] %s6819_s23 }
  0x6d   :  { %5345 = vmatpush.bf16.msra.mxu2 %v7701_v26  ;;  %v7989_v26 = vor.u32 %v10587_v7, %v7988_v6  ;;  %v7901_v7 = vor.u32 %v10565_v0, %v7900_v62  ;;  %v8029_v13 = vor.u32 %v10597_v5, %v8028_v4  ;;  %v10541_v53 = vld [vmem:[#allocation5 + $0x604] sm:$0xf0]  ;;  %v7996_v62 = vld [vmem:[#allocation5 + $0x780] sm:$0xf]  ;;  %v8116_v0 = vld [vmem:[#allocation5 + $0x870] sm:$0xf] }
  0x6e   :  { %5359 = vmatpush.bf16.msra.mxu3 %v7765_v30  ;;  %v8053_v30 = vor.u32 %v10603_v11, %v8052_v8  ;;  %v10547_v11 = vld [vmem:[#allocation5 + $0x634] sm:$0xf0]  ;;  %v8180_v4 = vld [vmem:[#allocation5 + $0x8f0] sm:$0xf]  ;;  %s6817_s4 = sshll.u32 %s11349_s2, 4  ;;  %s6818_s4 = int_to_ptr.vmem [resolvable:$true] %s6817_s4 }
  0x6f   :  { %5318 = vmatpush.bf16.msra.mxu0 %v7565_v36  ;;  %v11426_v36 = vor.u32 %v10302_v19, %v6870_v22  ;;  %v10595_v19 = vld [vmem:[#allocation5 + $0x7b4] sm:$0xf0] }
  0x70   :  { %5332 = vmatpush.bf16.msra.mxu1 %v7629_v38  ;;  %v10601_v38 = vld [vmem:[#allocation5 + $0x7e4] sm:$0xf0]  ;;  %v10635_v5 = vld [vmem:[#allocation5 + $0x8f4] sm:$0xf0] }
  0x71   :  { %5346 = vmatpush.bf16.msra.mxu2 %v7693_v40  ;;  %v11428_v40 = vor.u32 %v10303_v23, %v6878_v24  ;;  %v8045_v50 = vor.u32 %v10601_v38, %v8044_v37  ;;  %v7820_v23 = vld [vmem:[#allocation5 + $0x620] sm:$0xf]  ;;  %v10545_v24 = vld [vmem:[#allocation5 + $0x624] sm:$0xf0]  ;;  %v10543_v37 = vld [vmem:[#allocation5 + $0x614] sm:$0xf0] }
  0x72   :  { %5360 = vmatpush.bf16.msra.mxu3 %v7757_v46  ;;  %v7844_v46 = vld [vmem:[#allocation5 + $0x650] sm:$0xf]  ;;  %v7821_v33 = vor.u32 %v10545_v24, %v7820_v23  ;;  %v10305_v23 = vld [vmem:[#allocation2 + $0x3c] sm:$0xf]  ;;  %v6894_v24 = vld [vmem:[#allocation2 + $0x100] sm:$0xf0] }
  0x73   :  { %5319 = vmatpush.bf16.msra.mxu0 %v7557_v54  ;;  %v8036_v54 = vld [vmem:[#allocation5 + $0x7d0] sm:$0xf]  ;;  %v7845_v56 = vor.u32 %v10551_v48, %v7844_v46 }
  0x74   :  { %5333 = vmatpush.bf16.msra.mxu1 %v7621_v60  ;;  %v7836_v60 = vld [vmem:[#allocation5 + $0x640] sm:$0xf]  ;;  %v8037_v63 = vor.u32 %v10599_v55, %v8036_v54  ;;  %v7940_v46 = vld [vmem:[#allocation5 + $0x710] sm:$0xf]  ;;  %v7813_v54 = vor.u32 %v10543_v37, %v7812_v34  ;;  %v10649_v37 = vld [vmem:[#allocation5 + $0x964] sm:$0xf0] }
  0x75   :  { %5347 = vmatpush.bf16.msra.mxu2 %v7685_v61  ;;  %v10549_v61 = vld [vmem:[#allocation5 + $0x644] sm:$0xf0]  ;;  %v7868_v55 = vld [vmem:[#allocation5 + $0x680] sm:$0xf] }
  0x76   :  { %5361 = vmatpush.bf16.msra.mxu3 %v7749_v2  ;;  %v7964_v2 = vld [vmem:[#allocation5 + $0x740] sm:$0xf]  ;;  %v7837_v6 = vor.u32 %v10549_v61, %v7836_v60  ;;  %v7941_v61 = vor.u32 %v10575_v49, %v7940_v46  ;;  %v11440_v46 = vor.u32 %v10305_v23, %v6894_v24  ;;  %v10659_v23 = vld [vmem:[#allocation5 + $0x9b4] sm:$0xf0] }
  0x77   :  { %5320 = vmatpush.bf16.msra.mxu0 %v7549_v9  ;;  %v7965_v8 = vor.u32 %v10581_v3, %v7964_v2  ;;  %v7828_v9 = vld [vmem:[#allocation5 + $0x630] sm:$0xf]  ;;  %v10619_v3 = vld [vmem:[#allocation5 + $0x874] sm:$0xf0]  ;;  %v8236_v34 = vld [vmem:[#allocation5 + $0x960] sm:$0xf] }
  0x78   :  { %5334 = vmatpush.bf16.msra.mxu1 %v7613_v14  ;;  %v10563_v14 = vld [vmem:[#allocation5 + $0x6b4] sm:$0xf0] }
  0x79   :  { %5348 = vmatpush.bf16.msra.mxu2 %v7677_v15  ;;  %v7956_v15 = vld [vmem:[#allocation5 + $0x730] sm:$0xf] }
  0x7a   :  { %5362 = vmatpush.bf16.msra.mxu3 %v7741_v20  ;;  %5321 = vmatmul.bf16.vlgmr.msra.gmra.mxu0 %v11422_v31  ;;  %v7829_v20 = vor.u32 %v10547_v11, %v7828_v9  ;;  %v7957_v22 = vor.u32 %v10579_v16, %v7956_v15  ;;  %v7805_v9 = vor.u32 %v10541_v53, %v7804_v52  ;;  %v10667_v11 = vld [vmem:[#allocation5 + $0x9f4] sm:$0xf0]  ;;  %v6892_v16 = vld [vmem:[#allocation2 + $0x38] sm:$0xf]  ;;  %v8164_v53 = vld [vmem:[#allocation5 + $0x8d0] sm:$0xf] }
  0x7b   :  { %5369 = vmatpush.bf16.msrb.mxu0 %v7861_v21  ;;  %5335 = vmatmul.bf16.vlgmr.msra.gmra.mxu1 %v11426_v36  ;;  %v7893_v21 = vor.u32 %v10563_v14, %v7892_v12  ;;  %v6884_v12 = vld [vmem:[#allocation2 + $0x30] sm:$0xf]  ;;  %v10615_v52 = vld [vmem:[#allocation5 + $0x854] sm:$0xf0] }
  0x7c   :  { %5383 = vmatpush.bf16.msrb.mxu1 %v7925_v25  ;;  %5349 = vmatmul.bf16.vlgmr.msra.gmra.mxu2 %v11424_v35  ;;  %v7884_v25 = vld [vmem:[#allocation5 + $0x6a0] sm:$0xf] }
  0x7d   :  { %5397 = vmatpush.bf16.msrb.mxu2 %v7989_v26  ;;  %5363 = vmatmul.bf16.vlgmr.msra.gmra.mxu3 %v11428_v40  ;;  %v8021_v26 = vor.u32 %v10595_v19, %v8020_v18  ;;  %v7885_v38 = vor.u32 %v10561_v27, %v7884_v25  ;;  %v10330_v18 = vld [vmem:[#allocation2 + $0xfc] sm:$0xf0]  ;;  %v10304_v19 = vld [vmem:[#allocation2 + $0x34] sm:$0xf]  ;;  %v8181_v25 = vor.u32 %v10635_v5, %v8180_v4  ;;  %v8108_v27 = vld [vmem:[#allocation5 + $0x860] sm:$0xf] }
  0x7e   :  { %5411 = vmatpush.bf16.msrb.mxu3 %v8053_v30  ;;  %v8012_v30 = vld [vmem:[#allocation5 + $0x7a0] sm:$0xf]  ;;  %v10629_v5 = vld [vmem:[#allocation5 + $0x8c4] sm:$0xf0] }
  0x7f   :  { %5370 = vmatpush.bf16.msrb.mxu0 %v7853_v41  ;;  %v7949_v41 = vor.u32 %v10577_v29, %v7948_v28  ;;  %v8013_v48 = vor.u32 %v10593_v32, %v8012_v30  ;;  %v10617_v28 = vld [vmem:[#allocation5 + $0x864] sm:$0xf0]  ;;  %v8172_v29 = vld [vmem:[#allocation5 + $0x8e0] sm:$0xf] }
  0x80   :  { %5384 = vmatpush.bf16.msrb.mxu1 %v7917_v42  ;;  %v7876_v42 = vld [vmem:[#allocation5 + $0x690] sm:$0xf] }
  0x81   :  { %5398 = vmatpush.bf16.msrb.mxu2 %v7981_v45  ;;  %v10559_v45 = vld [vmem:[#allocation5 + $0x694] sm:$0xf0] }
  0x82   :  { %5412 = vmatpush.bf16.msrb.mxu3 %v8045_v50  ;;  %v8004_v50 = vld [vmem:[#allocation5 + $0x790] sm:$0xf]  ;;  %v7877_v60 = vor.u32 %v10559_v45, %v7876_v42  ;;  %v8300_v42 = vld [vmem:[#allocation5 + $0x9e0] sm:$0xf]  ;;  %v10665_v45 = vld [vmem:[#allocation5 + $0x9e4] sm:$0xf0] }
  0x83   :  { %5371 = vmatpush.bf16.msrb.mxu0 %v7845_v56  ;;  %v10557_v56 = vld [vmem:[#allocation5 + $0x684] sm:$0xf0]  ;;  %v8005_v2 = vor.u32 %v10591_v51, %v8004_v50  ;;  %v8237_v50 = vor.u32 %v10649_v37, %v8236_v34  ;;  %v8100_v51 = vld [vmem:[#allocation5 + $0x850] sm:$0xf]  ;;  %v8204_v34 = vld [vmem:[#allocation5 + $0x920] sm:$0xf] }
  0x84   :  { %5385 = vmatpush.bf16.msrb.mxu1 %v7909_v57  ;;  %v7932_v57 = vld [vmem:[#allocation5 + $0x700] sm:$0xf]  ;;  %v7869_v14 = vor.u32 %v10557_v56, %v7868_v55  ;;  %v10631_v55 = vld [vmem:[#allocation5 + $0x8d4] sm:$0xf0]  ;;  %v8228_v56 = vld [vmem:[#allocation5 + $0x950] sm:$0xf] }
  0x85   :  { %5399 = vmatpush.bf16.msrb.mxu2 %v7973_v59  ;;  %v10573_v59 = vld [vmem:[#allocation5 + $0x704] sm:$0xf0] }
  0x86   :  { %5413 = vmatpush.bf16.msrb.mxu3 %v8037_v63  ;;  %v10589_v63 = vld [vmem:[#allocation5 + $0x784] sm:$0xf0]  ;;  %v7933_v15 = vor.u32 %v10573_v59, %v7932_v57  ;;  %v10647_v57 = vld [vmem:[#allocation5 + $0x954] sm:$0xf0]  ;;  %v8292_v59 = vld [vmem:[#allocation5 + $0x9d0] sm:$0xf] }
  0x87   :  { %5372 = vmatpush.bf16.msrb.mxu0 %v7837_v6  ;;  %v8244_v6 = vld [vmem:[#allocation5 + $0x970] sm:$0xf]  ;;  %v10641_v37 = vld [vmem:[#allocation5 + $0x924] sm:$0xf0] }
  0x88   :  { %5386 = vmatpush.bf16.msrb.mxu1 %v7901_v7  ;;  %v10651_v7 = vld [vmem:[#allocation5 + $0x974] sm:$0xf0] }
  0x89   :  { %5400 = vmatpush.bf16.msrb.mxu2 %v7965_v8  ;;  %v8308_v8 = vld [vmem:[#allocation5 + $0x9f0] sm:$0xf] }
  0x8a   :  { %5414 = vmatpush.bf16.msrb.mxu3 %v8029_v13  ;;  %v10329_v13 = vld [vmem:[#allocation2 + $0xf4] sm:$0xf0]  ;;  %v8309_v30 = vor.u32 %v10667_v11, %v8308_v8  ;;  %v8284_v8 = vld [vmem:[#allocation5 + $0x9c0] sm:$0xf] }
  0x8b   :  { %5373 = vmatpush.bf16.msrb.mxu0 %v7829_v20  ;;  %v7997_v20 = vor.u32 %v10589_v63, %v7996_v62  ;;  %v11434_v32 = vor.u32 %v10329_v13, %v6884_v12  ;;  %v8165_v62 = vor.u32 %v10631_v55, %v8164_v53  ;;  %v8229_v63 = vor.u32 %v10647_v57, %v8228_v56  ;;  %v8132_v53 = vld [vmem:[#allocation5 + $0x890] sm:$0xf]  ;;  %v10639_v57 = vld [vmem:[#allocation5 + $0x914] sm:$0xf0] }
  0x8c   :  { %5387 = vmatpush.bf16.msrb.mxu1 %v7893_v21  ;;  %v8117_v21 = vor.u32 %v10619_v3, %v8116_v0  ;;  %v8092_v0 = vld [vmem:[#allocation5 + $0x840] sm:$0xf]  ;;  %v8196_v56 = vld [vmem:[#allocation5 + $0x910] sm:$0xf] }
  0x8d   :  { %5401 = vmatpush.bf16.msrb.mxu2 %v7957_v22  ;;  %v6886_v22 = vld [vmem:[#allocation2 + $0xf8] sm:$0xf0]  ;;  %v8156_v3 = vld [vmem:[#allocation5 + $0x8c0] sm:$0xf] }
  0x8e   :  { %5415 = vmatpush.bf16.msrb.mxu3 %v8021_v26  ;;  %v8245_v26 = vor.u32 %v10651_v7, %v8244_v6  ;;  %v8220_v6 = vld [vmem:[#allocation5 + $0x940] sm:$0xf]  ;;  %v10645_v7 = vld [vmem:[#allocation5 + $0x944] sm:$0xf0]  ;;  %v8157_v12 = vor.u32 %v10629_v5, %v8156_v3 }
  0x8f   :  { %5374 = vmatpush.bf16.msrb.mxu0 %v7821_v33  ;;  %v10633_v33 = vld [vmem:[#allocation5 + $0x8e4] sm:$0xf0]  ;;  %v8221_v13 = vor.u32 %v10645_v7, %v8220_v6  ;;  %v8188_v3 = vld [vmem:[#allocation5 + $0x900] sm:$0xf]  ;;  %v8197_v6 = vor.u32 %v10639_v57, %v8196_v56 }
  0x90   :  { %5388 = vmatpush.bf16.msrb.mxu1 %v7885_v38  ;;  %v11436_v38 = vor.u32 %v10330_v18, %v6892_v16  ;;  %v8173_v49 = vor.u32 %v10633_v33, %v8172_v29  ;;  %v8148_v16 = vld [vmem:[#allocation5 + $0x8b0] sm:$0xf]  ;;  %v8140_v29 = vld [vmem:[#allocation5 + $0x8a0] sm:$0xf]  ;;  %v10625_v33 = vld [vmem:[#allocation5 + $0x8a4] sm:$0xf0] }
  0x91   :  { %5402 = vmatpush.bf16.msrb.mxu2 %v7949_v41  ;;  %v11438_v41 = vor.u32 %v10304_v19, %v6886_v22  ;;  %v10627_v19 = vld [vmem:[#allocation5 + $0x8b4] sm:$0xf0]  ;;  %v8276_v22 = vld [vmem:[#allocation5 + $0x9b0] sm:$0xf]  ;;  %v8252_v7 = vld [vmem:[#allocation5 + $0x980] sm:$0xf] }
  0x92   :  { %5416 = vmatpush.bf16.msrb.mxu3 %v8013_v48  ;;  %v8109_v48 = vor.u32 %v10617_v28, %v8108_v27  ;;  %v8076_v27 = vld [vmem:[#allocation5 + $0x820] sm:$0xf]  ;;  %v10609_v28 = vld [vmem:[#allocation5 + $0x824] sm:$0xf0] }
  0x93   :  { %5375 = vmatpush.bf16.msrb.mxu0 %v7813_v54  ;;  %v8301_v54 = vor.u32 %v10665_v45, %v8300_v42  ;;  %v8268_v42 = vld [vmem:[#allocation5 + $0x9a0] sm:$0xf]  ;;  %v10657_v45 = vld [vmem:[#allocation5 + $0x9a4] sm:$0xf0] }
  0x94   :  { %5389 = vmatpush.bf16.msrb.mxu1 %v7877_v60  ;;  %v10663_v60 = vld [vmem:[#allocation5 + $0x9d4] sm:$0xf0]  ;;  %v8269_v55 = vor.u32 %v10657_v45, %v8268_v42  ;;  %v8364_v45 = vld [vmem:[#allocation5 + $0xa60] sm:$0xf] }
  0x95   :  { %5403 = vmatpush.bf16.msrb.mxu2 %v7941_v61  ;;  %v8101_v61 = vor.u32 %v10615_v52, %v8100_v51  ;;  %v8293_v4 = vor.u32 %v10663_v60, %v8292_v59  ;;  %v8205_v51 = vor.u32 %v10641_v37, %v8204_v34  ;;  %v10607_v52 = vld [vmem:[#allocation5 + $0x814] sm:$0xf0]  ;;  %v8260_v59 = vld [vmem:[#allocation5 + $0x990] sm:$0xf]  ;;  %v6910_v34 = vld [vmem:[#allocation2 + $0x110] sm:$0xf0] }
  0x96   :  { %5417 = vmatpush.bf16.msrb.mxu3 %v8005_v2  ;;  %v10613_v2 = vld [vmem:[#allocation5 + $0x844] sm:$0xf0]  ;;  %v10655_v60 = vld [vmem:[#allocation5 + $0x994] sm:$0xf0]  ;;  %v8556_v57 = vld [vmem:[#allocation5 + $0xbe0] sm:$0xf] }
  0x97   :  { %5376 = vmatpush.bf16.msrb.mxu0 %v7805_v9  ;;  %v10661_v9 = vld [vmem:[#allocation5 + $0x9c4] sm:$0xf0]  ;;  %v8093_v11 = vor.u32 %v10613_v2, %v8092_v0  ;;  %v8124_v0 = vld [vmem:[#allocation5 + $0x880] sm:$0xf] }
  0x98   :  { %5390 = vmatpush.bf16.msrb.mxu1 %v7869_v14  ;;  %v8084_v14 = vld [vmem:[#allocation5 + $0x830] sm:$0xf]  ;;  %v8285_v18 = vor.u32 %v10661_v9, %v8284_v8  ;;  %v10621_v2 = vld [vmem:[#allocation5 + $0x884] sm:$0xf0] }
  0x99   :  { %5404 = vmatpush.bf16.msrb.mxu2 %v7933_v15  ;;  %v10611_v15 = vld [vmem:[#allocation5 + $0x834] sm:$0xf0]  ;;  %v10653_v8 = vld [vmem:[#allocation5 + $0x984] sm:$0xf0]  ;;  %v8372_v9 = vld [vmem:[#allocation5 + $0xa70] sm:$0xf] }
  0x9a   :  { %5418 = vmatpush.bf16.msrb.mxu3 %v7997_v20  ;;  %5377 = vmatmul.bf16.vlgmr.msrb.gmra.mxu0 %v11434_v32  ;;  %v8212_v20 = vld [vmem:[#allocation5 + $0x930] sm:$0xf]  ;;  %v8085_v24 = vor.u32 %v10611_v15, %v8084_v14  ;;  %v10699_v14 = vld [vmem:[#allocation5 + $0xaf4] sm:$0xf0] }
  0x9b   :  { %5425 = vmatpush.bf16.msra.mxu0 %v8117_v21  ;;  %5391 = vmatmul.bf16.vlgmr.msrb.gmra.mxu1 %v11438_v41  ;;  %v10643_v21 = vld [vmem:[#allocation5 + $0x934] sm:$0xf0]  ;;  %v8500_v15 = vld [vmem:[#allocation5 + $0xb70] sm:$0xf] }
  0x9c   :  { %5439 = vmatpush.bf16.msra.mxu1 %v8181_v25  ;;  %5405 = vmatmul.bf16.vlgmr.msrb.gmra.mxu2 %v11436_v38  ;;  %v8149_v25 = vor.u32 %v10627_v19, %v8148_v16  ;;  %v10715_v16 = vld [vmem:[#allocation5 + $0xb74] sm:$0xf0] }
  0x9d   :  { %5453 = vmatpush.bf16.msra.mxu2 %v8245_v26  ;;  %5419 = vmatmul.bf16.vlgmr.msrb.gmra.mxu3 %v11440_v46  ;;  %v8213_v26 = vor.u32 %v10643_v21, %v8212_v20  ;;  %v10731_v20 = vld [vmem:[#allocation5 + $0xbf4] sm:$0xf0]  ;;  %v6900_v21 = vld [vmem:[#allocation2 + $0x40] sm:$0xf]  ;;  %v8501_v42 = vor.u32 %v10715_v16, %v8500_v15  ;;  %v8348_v16 = vld [vmem:[#allocation5 + $0xa40] sm:$0xf] }
  0x9e   :  { %5467 = vmatpush.bf16.msra.mxu3 %v8309_v30  ;;  %v8277_v30 = vor.u32 %v10659_v23, %v8276_v22  ;;  %v10331_v22 = vld [vmem:[#allocation2 + $0x104] sm:$0xf0]  ;;  %v8125_v23 = vor.u32 %v10621_v2, %v8124_v0 }
  0x9f   :  { %5426 = vmatpush.bf16.msra.mxu0 %v8109_v48  ;;  %v8077_v48 = vor.u32 %v10609_v28, %v8076_v27  ;;  %v10306_v27 = vld [vmem:[#allocation2 + $0x44] sm:$0xf]  ;;  %v8253_v28 = vor.u32 %v10653_v8, %v8252_v7  ;;  %v10679_v2 = vld [vmem:[#allocation5 + $0xa54] sm:$0xf0]  ;;  %v8484_v7 = vld [vmem:[#allocation5 + $0xb50] sm:$0xf] }
  0xa0   :  { %5440 = vmatpush.bf16.msra.mxu1 %v8173_v49  ;;  %v8068_v49 = vld [vmem:[#allocation5 + $0x810] sm:$0xf]  ;;  %v10711_v8 = vld [vmem:[#allocation5 + $0xb54] sm:$0xf0] }
  0xa1   :  { %5454 = vmatpush.bf16.msra.mxu2 %v8237_v50  ;;  %v8141_v50 = vor.u32 %v10625_v33, %v8140_v29  ;;  %v10307_v33 = vld [vmem:[#allocation2 + $0x4c] sm:$0xf]  ;;  %v8485_v15 = vor.u32 %v10711_v8, %v8484_v7  ;;  %v8524_v8 = vld [vmem:[#allocation5 + $0xba0] sm:$0xf] }
  0xa2   :  { %5468 = vmatpush.bf16.msra.mxu3 %v8301_v54  ;;  %v10623_v54 = vld [vmem:[#allocation5 + $0x894] sm:$0xf0] }
  0xa3   :  { %5427 = vmatpush.bf16.msra.mxu0 %v8101_v61  ;;  %v8060_v61 = vld [vmem:[#allocation5 + $0x800] sm:$0xf]  ;;  %v8133_v5 = vor.u32 %v10623_v54, %v8132_v53  ;;  %v10713_v54 = vld [vmem:[#allocation5 + $0xb64] sm:$0xf0] }
  0xa4   :  { %5441 = vmatpush.bf16.msra.mxu1 %v8165_v62  ;;  %v10605_v62 = vld [vmem:[#allocation5 + $0x804] sm:$0xf0]  ;;  %v8492_v53 = vld [vmem:[#allocation5 + $0xb60] sm:$0xf] }
  0xa5   :  { %5455 = vmatpush.bf16.msra.mxu2 %v8229_v63  ;;  %v8069_v63 = vor.u32 %v10607_v52, %v8068_v49  ;;  %v8061_v19 = vor.u32 %v10605_v62, %v8060_v61  ;;  %v8428_v49 = vld [vmem:[#allocation5 + $0xae0] sm:$0xf]  ;;  %v10697_v52 = vld [vmem:[#allocation5 + $0xae4] sm:$0xf0]  ;;  %v8356_v62 = vld [vmem:[#allocation5 + $0xa50] sm:$0xf]  ;;  %v8493_v0 = vor.u32 %v10713_v54, %v8492_v53 }
  0xa6   :  { %5469 = vmatpush.bf16.msra.mxu3 %v8293_v4  ;;  %v10637_v4 = vld [vmem:[#allocation5 + $0x904] sm:$0xf0] }
  0xa7   :  { %5428 = vmatpush.bf16.msra.mxu0 %v8093_v11  ;;  %v8261_v11 = vor.u32 %v10655_v60, %v8260_v59  ;;  %v10729_v59 = vld [vmem:[#allocation5 + $0xbe4] sm:$0xf0]  ;;  %v11452_v60 = vor.u32 %v10307_v33, %v6910_v34  ;;  %v8340_v33 = vld [vmem:[#allocation5 + $0xa30] sm:$0xf]  ;;  %v10675_v34 = vld [vmem:[#allocation5 + $0xa34] sm:$0xf0] }
  0xa8   :  { %5442 = vmatpush.bf16.msra.mxu1 %v8157_v12  ;;  %v10683_v12 = vld [vmem:[#allocation5 + $0xa74] sm:$0xf0]  ;;  %v8341_v54 = vor.u32 %v10675_v34, %v8340_v33  ;;  %v8380_v33 = vld [vmem:[#allocation5 + $0xa80] sm:$0xf]  ;;  %v10685_v34 = vld [vmem:[#allocation5 + $0xa84] sm:$0xf0] }
  0xa9   :  { %5456 = vmatpush.bf16.msra.mxu2 %v8221_v13  ;;  %v8436_v13 = vld [vmem:[#allocation5 + $0xaf0] sm:$0xf]  ;;  %v8373_v29 = vor.u32 %v10683_v12, %v8372_v9  ;;  %v8357_v12 = vor.u32 %v10679_v2, %v8356_v62  ;;  %v8332_v62 = vld [vmem:[#allocation5 + $0xa20] sm:$0xf] }
  0xaa   :  { %5470 = vmatpush.bf16.msra.mxu3 %v8285_v18  ;;  %v8564_v18 = vld [vmem:[#allocation5 + $0xbf0] sm:$0xf]  ;;  %v8437_v37 = vor.u32 %v10699_v14, %v8436_v13 }
  0xab   :  { %5429 = vmatpush.bf16.msra.mxu0 %v8085_v24  ;;  %v8189_v24 = vor.u32 %v10637_v4, %v8188_v3  ;;  %v8420_v3 = vld [vmem:[#allocation5 + $0xad0] sm:$0xf]  ;;  %v11454_v4 = vld [vmem:[#allocation7] sm:$0x3] }
  0xac   :  { %5443 = vmatpush.bf16.msra.mxu1 %v8149_v25  ;;  %v6908_v25 = vld [vmem:[#allocation2 + $0x48] sm:$0xf]  ;;  %11869 = vst [vmem:[#allocation16_spill] sm:$0xff] %v11454_v4  ;;  %v8548_v9 = vld [vmem:[#allocation5 + $0xbd0] sm:$0xf]  ;;  %v11843_v13 = vperm.slane %v11454_v4, 0 }
  0xad   :  { %5457 = vmatpush.bf16.msra.mxu2 %v8213_v26  ;;  %v10332_v26 = vld [vmem:[#allocation2 + $0x10c] sm:$0xf0] }
  0xae   :  { %5471 = vmatpush.bf16.msra.mxu3 %v8277_v30  ;;  %v6902_v30 = vld [vmem:[#allocation2 + $0x108] sm:$0xf0] }
  0xaf   :  { %5430 = vmatpush.bf16.msra.mxu0 %v8077_v48  ;;  %v10681_v48 = vld [vmem:[#allocation5 + $0xa64] sm:$0xf0]  ;;  %v11450_v56 = vor.u32 %v10306_v27, %v6902_v30 }
  0xb0   :  { %5444 = vmatpush.bf16.msra.mxu1 %v8141_v50  ;;  %v8565_v50 = vor.u32 %v10731_v20, %v8564_v18  ;;  %v8365_v61 = vor.u32 %v10681_v48, %v8364_v45  ;;  %v10677_v18 = vld [vmem:[#allocation5 + $0xa44] sm:$0xf0]  ;;  %v10691_v45 = vld [vmem:[#allocation5 + $0xab4] sm:$0xf0]  ;;  %v8468_v48 = vld [vmem:[#allocation5 + $0xb30] sm:$0xf] }
  0xb1   :  { %5458 = vmatpush.bf16.msra.mxu2 %v8205_v51  ;;  %v11446_v51 = vor.u32 %v10331_v22, %v6900_v21  ;;  %v10693_v21 = vld [vmem:[#allocation5 + $0xac4] sm:$0xf0]  ;;  %v8476_v22 = vld [vmem:[#allocation5 + $0xb40] sm:$0xf]  ;;  %v8349_v27 = vor.u32 %v10677_v18, %v8348_v16  ;;  %v10671_v18 = vld [vmem:[#allocation5 + $0xa14] sm:$0xf0] }
  0xb2   :  { %5472 = vmatpush.bf16.msra.mxu3 %v8269_v55  ;;  %v11448_v55 = vor.u32 %v10332_v26, %v6908_v25  ;;  %v10725_v25 = vld [vmem:[#allocation5 + $0xbc4] sm:$0xf0] }
  0xb3   :  { %5431 = vmatpush.bf16.msra.mxu0 %v8069_v63  ;;  %v8429_v63 = vor.u32 %v10697_v52, %v8428_v49  ;;  %v10707_v49 = vld [vmem:[#allocation5 + $0xb34] sm:$0xf0] }
  0xb4   :  { %5445 = vmatpush.bf16.msra.mxu1 %v8133_v5  ;;  %v8557_v5 = vor.u32 %v10729_v59, %v8556_v57  ;;  %v10723_v52 = vld [vmem:[#allocation5 + $0xbb4] sm:$0xf0] }
  0xb5   :  { %5459 = vmatpush.bf16.msra.mxu2 %v8197_v6  ;;  %v10695_v6 = vld [vmem:[#allocation5 + $0xad4] sm:$0xf0] }
  0xb6   :  { %5473 = vmatpush.bf16.msra.mxu3 %v8261_v11  ;;  %v10727_v11 = vld [vmem:[#allocation5 + $0xbd4] sm:$0xf0]  ;;  %v8421_v14 = vor.u32 %v10695_v6, %v8420_v3  ;;  %v10689_v3 = vld [vmem:[#allocation5 + $0xaa4] sm:$0xf0] }
  0xb7   :  { %5432 = vmatpush.bf16.msra.mxu0 %v8061_v19  ;;  %v8412_v19 = vld [vmem:[#allocation5 + $0xac0] sm:$0xf]  ;;  %v8549_v20 = vor.u32 %v10727_v11, %v8548_v9  ;;  %v5210_v26 = vpop.f32.mrf.mxu0  ;;  %v10705_v6 = vld [vmem:[#allocation5 + $0xb24] sm:$0xf0] }
  0xb8   :  { %5446 = vmatpush.bf16.msra.mxu1 %v8125_v23  ;;  %v10709_v23 = vld [vmem:[#allocation5 + $0xb44] sm:$0xf0]  ;;  %v5224_v53 = vpop.f32.mrf.mxu1 }
  0xb9   :  { %5460 = vmatpush.bf16.msra.mxu2 %v8189_v24  ;;  %v8540_v24 = vld [vmem:[#allocation5 + $0xbc0] sm:$0xf]  ;;  %v8477_v30 = vor.u32 %v10709_v23, %v8476_v22  ;;  %v10721_v9 = vld [vmem:[#allocation5 + $0xba4] sm:$0xf0]  ;;  %v8452_v22 = vld [vmem:[#allocation5 + $0xb10] sm:$0xf] }
  0xba   :  { %5474 = vmatpush.bf16.msra.mxu3 %v8253_v28  ;;  %5433 = vmatmul.bf16.vlgmr.msra.gmra.mxu0 %v11446_v51  ;;  %v5211_v28 = vadd.f32 %v5210_v26, %v11843_v13  ;;  %v10703_v23 = vld [vmem:[#allocation5 + $0xb14] sm:$0xf0] }
  0xbb   :  { %5481 = vmatpush.bf16.msrb.mxu0 %v8373_v29  ;;  %5447 = vmatmul.bf16.vlgmr.msra.gmra.mxu1 %v11450_v56  ;;  %v8413_v29 = vor.u32 %v10693_v21, %v8412_v19  ;;  %v8388_v19 = vld [vmem:[#allocation5 + $0xa90] sm:$0xf]  ;;  %v8525_v21 = vor.u32 %v10721_v9, %v8524_v8  ;;  %v10719_v26 = vld [vmem:[#allocation5 + $0xb94] sm:$0xf0]  ;;  %v6924_v8 = vld [vmem:[#allocation2 + $0x58] sm:$0xf] }
  0xbc   :  { %5495 = vmatpush.bf16.msrb.mxu1 %v8437_v37  ;;  %5461 = vmatmul.bf16.vlgmr.msra.gmra.mxu2 %v11448_v55  ;;  %v8404_v37 = vld [vmem:[#allocation5 + $0xab0] sm:$0xf]  ;;  %v5225_v57 = vadd.f32 %v5224_v53, %v5211_v28  ;;  %v10669_v28 = vld [vmem:[#allocation5 + $0xa04] sm:$0xf0] }
  0xbd   :  { %5509 = vmatpush.bf16.msrb.mxu2 %v8501_v42  ;;  %5475 = vmatmul.bf16.vlgmr.msra.gmra.mxu3 %v11452_v60  ;;  %v8541_v42 = vor.u32 %v10725_v25, %v8540_v24  ;;  %v8405_v59 = vor.u32 %v10691_v45, %v8404_v37  ;;  %v8516_v24 = vld [vmem:[#allocation5 + $0xb90] sm:$0xf]  ;;  %v8444_v37 = vld [vmem:[#allocation5 + $0xb00] sm:$0xf] }
  0xbe   :  { %5523 = vmatpush.bf16.msrb.mxu3 %v8565_v50  ;;  %v8532_v50 = vld [vmem:[#allocation5 + $0xbb0] sm:$0xf]  ;;  %v8517_v53 = vor.u32 %v10719_v26, %v8516_v24  ;;  %v8684_v24 = vld [vmem:[#allocation5 + $0xce0] sm:$0xf] }
  0xbf   :  { %5482 = vmatpush.bf16.msrb.mxu0 %v8365_v61  ;;  %v8469_v61 = vor.u32 %v10707_v49, %v8468_v48  ;;  %v8533_v2 = vor.u32 %v10723_v52, %v8532_v50  ;;  %v5238_v7 = vpop.f32.mrf.mxu2  ;;  %v8453_v48 = vor.u32 %v10703_v23, %v8452_v22  ;;  %v8508_v49 = vld [vmem:[#allocation5 + $0xb80] sm:$0xf]  ;;  %v10717_v50 = vld [vmem:[#allocation5 + $0xb84] sm:$0xf0]  ;;  %v8628_v52 = vld [vmem:[#allocation5 + $0xc70] sm:$0xf] }
  0xc0   :  { %5496 = vmatpush.bf16.msrb.mxu1 %v8429_v63  ;;  %v10673_v63 = vld [vmem:[#allocation5 + $0xa24] sm:$0xf0]  ;;  %v5239_v11 = vadd.f32 %v5238_v7, %v5225_v57  ;;  %v5252_v25 = vpop.f32.mrf.mxu3  ;;  %v8692_v57 = vld [vmem:[#allocation5 + $0xcf0] sm:$0xf]  ;;  %v8620_v22 = vld [vmem:[#allocation5 + $0xc60] sm:$0xf] }
  0xc1   :  { %5510 = vmatpush.bf16.msrb.mxu2 %v8493_v0  ;;  %v8396_v0 = vld [vmem:[#allocation5 + $0xaa0] sm:$0xf]  ;;  %v10334_v9 = vld [vmem:[#allocation2 + $0x11c] sm:$0xf0]  ;;  %v10745_v23 = vld [vmem:[#allocation5 + $0xc64] sm:$0xf0] }
  0xc2   :  { %5524 = vmatpush.bf16.msrb.mxu3 %v8557_v5  ;;  %v8460_v5 = vld [vmem:[#allocation5 + $0xb20] sm:$0xf] }
  0xc3   :  { %5483 = vmatpush.bf16.msrb.mxu0 %v8357_v12  ;;  %v8333_v12 = vor.u32 %v10673_v63, %v8332_v62  ;;  %v8461_v16 = vor.u32 %v10705_v6, %v8460_v5  ;;  %v10779_v62 = vld [vmem:[#allocation5 + $0xd74] sm:$0xf0]  ;;  %v8820_v63 = vld [vmem:[#allocation5 + $0xdf0] sm:$0xf]  ;;  %v10333_v5 = vld [vmem:[#allocation2 + $0x114] sm:$0xf0]  ;;  %v8381_v6 = vor.u32 %v10685_v34, %v8380_v33  ;;  %v11469_v33 = vor.u32 %v10334_v9, %v6924_v8 }
  0xc4   :  { %5497 = vmatpush.bf16.msrb.mxu1 %v8421_v14  ;;  %v8324_v14 = vld [vmem:[#allocation5 + $0xa10] sm:$0xf]  ;;  %v8604_v8 = vld [vmem:[#allocation5 + $0xc40] sm:$0xf]  ;;  %v10741_v9 = vld [vmem:[#allocation5 + $0xc44] sm:$0xf0] }
  0xc5   :  { %5511 = vmatpush.bf16.msrb.mxu2 %v8485_v15  ;;  %v8397_v15 = vor.u32 %v10689_v3, %v8396_v0  ;;  %v6916_v3 = vld [vmem:[#allocation2 + $0x50] sm:$0xf] }
  0xc6   :  { %5525 = vmatpush.bf16.msrb.mxu3 %v8549_v20  ;;  %v10687_v20 = vld [vmem:[#allocation5 + $0xa94] sm:$0xf0]  ;;  %v11467_v26 = vor.u32 %v10333_v5, %v6916_v3 }
  0xc7   :  { %5484 = vmatpush.bf16.msrb.mxu0 %v8349_v27  ;;  %v8316_v27 = vld [vmem:[#allocation5 + $0xa00] sm:$0xf]  ;;  %v8389_v45 = vor.u32 %v10687_v20, %v8388_v19  ;;  %v11481_v5 = vpop.f32.mrf.mxu2 }
  0xc8   :  { %5498 = vmatpush.bf16.msrb.mxu1 %v8413_v29  ;;  %v11463_v29 = vadd.f32 %v5252_v25, %v5239_v11  ;;  %v8317_v0 = vor.u32 %v10669_v28, %v8316_v27  ;;  %v10308_v11 = vld [vmem:[#allocation2 + $0x54] sm:$0xf]  ;;  %v10761_v27 = vld [vmem:[#allocation5 + $0xce4] sm:$0xf0]  ;;  %v8748_v28 = vld [vmem:[#allocation5 + $0xd60] sm:$0xf] }
  0xc9   :  { %5512 = vmatpush.bf16.msrb.mxu2 %v8477_v30  ;;  %v8325_v30 = vor.u32 %v10671_v18, %v8324_v14  ;;  %v6926_v18 = vld [vmem:[#allocation2 + $0x120] sm:$0xf0]  ;;  %11872 = vst [vmem:[#allocation19_spill] sm:$0xff] %v11481_v5 }
  0xca   :  { %5526 = vmatpush.bf16.msrb.mxu3 %v8541_v42  ;;  %v10701_v42 = vld [vmem:[#allocation5 + $0xb04] sm:$0xf0] }
  0xcb   :  { %5485 = vmatpush.bf16.msrb.mxu0 %v8341_v54  ;;  %v10747_v54 = vld [vmem:[#allocation5 + $0xc74] sm:$0xf0]  ;;  %v8445_v7 = vor.u32 %v10701_v42, %v8444_v37  ;;  %v8812_v37 = vld [vmem:[#allocation5 + $0xde0] sm:$0xf]  ;;  %v10793_v42 = vld [vmem:[#allocation5 + $0xde4] sm:$0xf0] }
  0xcc   :  { %5499 = vmatpush.bf16.msrb.mxu1 %v8405_v59  ;;  %v10763_v59 = vld [vmem:[#allocation5 + $0xcf4] sm:$0xf0]  ;;  %v8629_v14 = vor.u32 %v10747_v54, %v8628_v52 }
  0xcd   :  { %5513 = vmatpush.bf16.msrb.mxu2 %v8469_v61  ;;  %v8756_v61 = vld [vmem:[#allocation5 + $0xd70] sm:$0xf]  ;;  %v8693_v19 = vor.u32 %v10763_v59, %v8692_v57  ;;  %v10743_v54 = vld [vmem:[#allocation5 + $0xc54] sm:$0xf0]  ;;  %v8813_v59 = vor.u32 %v10793_v42, %v8812_v37 }
  0xce   :  { %5527 = vmatpush.bf16.msrb.mxu3 %v8533_v2  ;;  %v10795_v2 = vld [vmem:[#allocation5 + $0xdf4] sm:$0xf0]  ;;  %v8757_v20 = vor.u32 %v10779_v62, %v8756_v61  ;;  %v8676_v57 = vld [vmem:[#allocation5 + $0xcd0] sm:$0xf] }
  0xcf   :  { %5486 = vmatpush.bf16.msrb.mxu0 %v8333_v12  ;;  %v8509_v12 = vor.u32 %v10717_v50, %v8508_v49  ;;  %v8821_v25 = vor.u32 %v10795_v2, %v8820_v63  ;;  %v8621_v49 = vor.u32 %v10745_v23, %v8620_v22  ;;  %v8685_v50 = vor.u32 %v10761_v27, %v8684_v24  ;;  %v10759_v61 = vld [vmem:[#allocation5 + $0xcd4] sm:$0xf0]  ;;  %v8740_v62 = vld [vmem:[#allocation5 + $0xd50] sm:$0xf]  ;;  %v10789_v22 = vld [vmem:[#allocation5 + $0xdc4] sm:$0xf0] }
  0xd0   :  { %5500 = vmatpush.bf16.msrb.mxu1 %v8397_v15  ;;  %v6918_v15 = vld [vmem:[#allocation2 + $0x118] sm:$0xf0]  ;;  %v10775_v63 = vld [vmem:[#allocation5 + $0xd54] sm:$0xf0]  ;;  %v8605_v24 = vor.u32 %v10741_v9, %v8604_v8  ;;  %v8660_v42 = vld [vmem:[#allocation5 + $0xcb0] sm:$0xf] }
  0xd1   :  { %5514 = vmatpush.bf16.msrb.mxu2 %v8461_v16  ;;  %v10309_v16 = vld [vmem:[#allocation2 + $0x5c] sm:$0xf]  ;;  %v11471_v34 = vor.u32 %v10308_v11, %v6918_v15  ;;  %v10791_v2 = vld [vmem:[#allocation5 + $0xdd4] sm:$0xf0]  ;;  %v8668_v11 = vld [vmem:[#allocation5 + $0xcc0] sm:$0xf] }
  0xd2   :  { %5528 = vmatpush.bf16.msrb.mxu3 %v8525_v21  ;;  %v11465_v21 = vpop.f32.mrf.mxu0  ;;  %v10757_v15 = vld [vmem:[#allocation5 + $0xcc4] sm:$0xf0]  ;;  %v10739_v37 = vld [vmem:[#allocation5 + $0xc34] sm:$0xf0]  ;;  %v8716_v8 = vld [vmem:[#allocation5 + $0xd20] sm:$0xf] }
  0xd3   :  { %5487 = vmatpush.bf16.msrb.mxu0 %v8325_v30  ;;  %11870 = vst [vmem:[#allocation17_spill] sm:$0xff] %v11465_v21  ;;  %v10777_v30 = vld [vmem:[#allocation5 + $0xd64] sm:$0xf0] }
  0xd4   :  { %5501 = vmatpush.bf16.msrb.mxu1 %v8389_v45  ;;  %v11473_v45 = vpop.f32.mrf.mxu1  ;;  %v8749_v52 = vor.u32 %v10777_v30, %v8748_v28  ;;  %v8596_v30 = vld [vmem:[#allocation5 + $0xc30] sm:$0xf]  ;;  %v10769_v9 = vld [vmem:[#allocation5 + $0xd24] sm:$0xf0] }
  0xd5   :  { %5515 = vmatpush.bf16.msrb.mxu2 %v8453_v48  ;;  %11871 = vst [vmem:[#allocation18_spill] sm:$0xff] %v11473_v45  ;;  %v11475_v48 = vor.u32 %v10309_v16, %v6926_v18  ;;  %v8732_v16 = vld [vmem:[#allocation5 + $0xd40] sm:$0xf]  ;;  %v10773_v18 = vld [vmem:[#allocation5 + $0xd44] sm:$0xf0] }
  0xd6   :  { %5529 = vmatpush.bf16.msrb.mxu3 %v8517_v53  ;;  %v8612_v53 = vld [vmem:[#allocation5 + $0xc50] sm:$0xf]  ;;  %v8733_v27 = vor.u32 %v10773_v18, %v8732_v16  ;;  %v6958_v45 = vld [vmem:[#allocation2 + $0x140] sm:$0xf0] }
  0xd7   :  { %5488 = vmatpush.bf16.msrb.mxu0 %v8317_v0  ;;  %v8804_v0 = vld [vmem:[#allocation5 + $0xdd0] sm:$0xf]  ;;  %v8613_v3 = vor.u32 %v10743_v54, %v8612_v53  ;;  %v10771_v54 = vld [vmem:[#allocation5 + $0xd34] sm:$0xf0] }
  0xd8   :  { %5502 = vmatpush.bf16.msrb.mxu1 %v8381_v6  ;;  %v8677_v6 = vor.u32 %v10759_v61, %v8676_v57  ;;  %v8724_v53 = vld [vmem:[#allocation5 + $0xd30] sm:$0xf]  ;;  %v8597_v61 = vor.u32 %v10739_v37, %v8596_v30  ;;  %v10767_v37 = vld [vmem:[#allocation5 + $0xd14] sm:$0xf0] }
  0xd9   :  { %5516 = vmatpush.bf16.msrb.mxu2 %v8445_v7  ;;  %v8741_v7 = vor.u32 %v10775_v63, %v8740_v62  ;;  %v8788_v57 = vld [vmem:[#allocation5 + $0xdb0] sm:$0xf]  ;;  %v8725_v62 = vor.u32 %v10771_v54, %v8724_v53  ;;  %v8588_v63 = vld [vmem:[#allocation5 + $0xc20] sm:$0xf] }
  0xda   :  { %5530 = vmatpush.bf16.msrb.mxu3 %v8509_v12  ;;  %5489 = vmatmul.bf16.vlgmr.msrb.gmra.mxu0 %v11467_v26  ;;  %v8805_v12 = vor.u32 %v10791_v2, %v8804_v0  ;;  %v10737_v0 = vld [vmem:[#allocation5 + $0xc24] sm:$0xf0]  ;;  %v8652_v2 = vld [vmem:[#allocation5 + $0xca0] sm:$0xf]  ;;  %v8708_v30 = vld [vmem:[#allocation5 + $0xd10] sm:$0xf] }
  0xdb   :  { %5537 = vmatpush.bf16.msra.mxu0 %v8629_v14  ;;  %5503 = vmatmul.bf16.vlgmr.msrb.gmra.mxu1 %v11471_v34  ;;  %v11483_v14 = vpop.f32.mrf.mxu3  ;;  %v8589_v18 = vor.u32 %v10737_v0, %v8588_v63  ;;  %v8636_v54 = vld [vmem:[#allocation5 + $0xc80] sm:$0xf]  ;;  %v10781_v0 = vld [vmem:[#allocation5 + $0xd84] sm:$0xf0] }
  0xdc   :  { %5551 = vmatpush.bf16.msra.mxu1 %v8693_v19  ;;  %5517 = vmatmul.bf16.vlgmr.msrb.gmra.mxu2 %v11469_v33  ;;  %11873 = vst [vmem:[#allocation20_spill] sm:$0xff] %v11483_v14  ;;  %v5266_v19 = vpop.f32.mrf.mxu0  ;;  %v5280_v28 = vpop.f32.mrf.mxu1  ;;  %v8764_v63 = vld [vmem:[#allocation5 + $0xd80] sm:$0xf] }
  0xdd   :  { %5565 = vmatpush.bf16.msra.mxu2 %v8757_v20  ;;  %5531 = vmatmul.bf16.vlgmr.msrb.gmra.mxu3 %v11475_v48  ;;  %v8796_v20 = vld [vmem:[#allocation5 + $0xdc0] sm:$0xf]  ;;  %v5267_v23 = vadd.f32 %v5266_v19, %v11463_v29  ;;  %v8580_v19 = vld [vmem:[#allocation5 + $0xc10] sm:$0xf] }
  0xde   :  { %5579 = vmatpush.bf16.msra.mxu3 %v8821_v25  ;;  %v8669_v25 = vor.u32 %v10757_v15, %v8668_v11  ;;  %v10785_v15 = vld [vmem:[#allocation5 + $0xda4] sm:$0xf0] }
  0xdf   :  { %5538 = vmatpush.bf16.msra.mxu0 %v8621_v49  ;;  %v8797_v49 = vor.u32 %v10789_v22, %v8796_v20 }
  0xe0   :  { %5552 = vmatpush.bf16.msra.mxu1 %v8685_v50  ;;  %v5281_v50 = vadd.f32 %v5280_v28, %v5267_v23  ;;  %v8717_v23 = vor.u32 %v10769_v9, %v8716_v8  ;;  %v10827_v8 = vld [vmem:[#allocation5 + $0xef4] sm:$0xf0]  ;;  %v9012_v9 = vld [vmem:[#allocation5 + $0xf70] sm:$0xf] }
  0xe1   :  { %5566 = vmatpush.bf16.msra.mxu2 %v8749_v52  ;;  %v10755_v52 = vld [vmem:[#allocation5 + $0xcb4] sm:$0xf0] }
  0xe2   :  { %5580 = vmatpush.bf16.msra.mxu3 %v8813_v59  ;;  %v10787_v59 = vld [vmem:[#allocation5 + $0xdb4] sm:$0xf0]  ;;  %v8661_v29 = vor.u32 %v10755_v52, %v8660_v42  ;;  %v8772_v42 = vld [vmem:[#allocation5 + $0xd90] sm:$0xf]  ;;  %v10733_v52 = vld [vmem:[#allocation5 + $0xc04] sm:$0xf0] }
  0xe3   :  { %5539 = vmatpush.bf16.msra.mxu0 %v8613_v3  ;;  %v8789_v3 = vor.u32 %v10787_v59, %v8788_v57  ;;  %v5308_v16 = vpop.f32.mrf.mxu3  ;;  %v10749_v57 = vld [vmem:[#allocation5 + $0xc84] sm:$0xf0]  ;;  %v8700_v59 = vld [vmem:[#allocation5 + $0xd00] sm:$0xf] }
  0xe4   :  { %5553 = vmatpush.bf16.msra.mxu1 %v8677_v6  ;;  %v5294_v6 = vpop.f32.mrf.mxu2 }
  0xe5   :  { %5567 = vmatpush.bf16.msra.mxu2 %v8741_v7  ;;  %v10753_v7 = vld [vmem:[#allocation5 + $0xca4] sm:$0xf0]  ;;  %v5295_v11 = vadd.f32 %v5294_v6, %v5281_v50  ;;  %v8572_v50 = vld [vmem:[#allocation5 + $0xc00] sm:$0xf]  ;;  %v10811_v6 = vld [vmem:[#allocation5 + $0xe74] sm:$0xf0] }
  0xe6   :  { %5581 = vmatpush.bf16.msra.mxu3 %v8805_v12  ;;  %v8780_v12 = vld [vmem:[#allocation5 + $0xda0] sm:$0xf]  ;;  %v8653_v22 = vor.u32 %v10753_v7, %v8652_v2  ;;  %v8884_v2 = vld [vmem:[#allocation5 + $0xe70] sm:$0xf] }
  0xe7   :  { %5540 = vmatpush.bf16.msra.mxu0 %v8605_v24  ;;  %v11486_v20 = vadd.f32 %v5308_v16, %v5295_v11  ;;  %v10735_v24 = vld [vmem:[#allocation5 + $0xc14] sm:$0xf0]  ;;  %v8781_v28 = vor.u32 %v10785_v15, %v8780_v12  ;;  %v8948_v7 = vld [vmem:[#allocation5 + $0xef0] sm:$0xf]  ;;  %v8573_v15 = vor.u32 %v10733_v52, %v8572_v50  ;;  %v10809_v50 = vld [vmem:[#allocation5 + $0xe64] sm:$0xf0] }
  0xe8   :  { %5554 = vmatpush.bf16.msra.mxu1 %v8669_v25  ;;  %v8644_v25 = vld [vmem:[#allocation5 + $0xc90] sm:$0xf]  ;;  %v8581_v53 = vor.u32 %v10735_v24, %v8580_v19  ;;  %v10843_v11 = vld [vmem:[#allocation5 + $0xf74] sm:$0xf0]  ;;  %v8949_v13 = vor.u32 %v10827_v8, %v8948_v7  ;;  %v8940_v52 = vld [vmem:[#allocation5 + $0xee0] sm:$0xf] }
  0xe9   :  { %5568 = vmatpush.bf16.msra.mxu2 %v8733_v27  ;;  %v10751_v27 = vld [vmem:[#allocation5 + $0xc94] sm:$0xf0]  ;;  %v9076_v12 = vld [vmem:[#allocation5 + $0xff0] sm:$0xf]  ;;  %v9013_v14 = vor.u32 %v10843_v11, %v9012_v9 }
  0xea   :  { %5582 = vmatpush.bf16.msra.mxu3 %v8797_v49  ;;  %v10783_v49 = vld [vmem:[#allocation5 + $0xd94] sm:$0xf0]  ;;  %v8868_v11 = vld [vmem:[#allocation5 + $0xe50] sm:$0xf] }
  0xeb   :  { %5541 = vmatpush.bf16.msra.mxu0 %v8597_v61  ;;  %v10765_v61 = vld [vmem:[#allocation5 + $0xd04] sm:$0xf0]  ;;  %v10859_v16 = vld [vmem:[#allocation5 + $0xff4] sm:$0xf0] }
  0xec   :  { %5555 = vmatpush.bf16.msra.mxu1 %v8661_v29  ;;  %v8645_v29 = vor.u32 %v10751_v27, %v8644_v25  ;;  %v10335_v19 = vld [vmem:[#allocation2 + $0x124] sm:$0xf0]  ;;  %v10336_v25 = vld [vmem:[#allocation2 + $0x12c] sm:$0xf0]  ;;  %v10310_v27 = vld [vmem:[#allocation2 + $0x64] sm:$0xf]  ;;  %v9077_v5 = vor.u32 %v10859_v16, %v9076_v12 }
  0xed   :  { %5569 = vmatpush.bf16.msra.mxu2 %v8725_v62  ;;  %v8709_v62 = vor.u32 %v10767_v37, %v8708_v30  ;;  %v6940_v24 = vld [vmem:[#allocation2 + $0x68] sm:$0xf]  ;;  %v8885_v30 = vor.u32 %v10811_v6, %v8884_v2  ;;  %v6934_v37 = vld [vmem:[#allocation2 + $0x128] sm:$0xf0]  ;;  %v10857_v2 = vld [vmem:[#allocation5 + $0xfe4] sm:$0xf0] }
  0xee   :  { %5583 = vmatpush.bf16.msra.mxu3 %v8789_v3  ;;  %v8773_v3 = vor.u32 %v10783_v49, %v8772_v42  ;;  %v10311_v42 = vld [vmem:[#allocation2 + $0x6c] sm:$0xf]  ;;  %v6942_v49 = vld [vmem:[#allocation2 + $0x130] sm:$0xf0]  ;;  %v10807_v12 = vld [vmem:[#allocation5 + $0xe54] sm:$0xf0] }
  0xef   :  { %5542 = vmatpush.bf16.msra.mxu0 %v8589_v18  ;;  %v6932_v18 = vld [vmem:[#allocation2 + $0x60] sm:$0xf]  ;;  %v11498_v6 = vor.u32 %v10311_v42, %v6942_v49  ;;  %v10821_v42 = vld [vmem:[#allocation5 + $0xec4] sm:$0xf0]  ;;  %v8988_v49 = vld [vmem:[#allocation5 + $0xf40] sm:$0xf] }
  0xf0   :  { %5556 = vmatpush.bf16.msra.mxu1 %v8653_v22  ;;  %v8637_v22 = vor.u32 %v10749_v57, %v8636_v54  ;;  %v10825_v54 = vld [vmem:[#allocation5 + $0xee4] sm:$0xf0]  ;;  %v9004_v57 = vld [vmem:[#allocation5 + $0xf60] sm:$0xf] }
  0xf1   :  { %5570 = vmatpush.bf16.msra.mxu2 %v8717_v23  ;;  %v8701_v23 = vor.u32 %v10765_v61, %v8700_v59  ;;  %v10841_v59 = vld [vmem:[#allocation5 + $0xf64] sm:$0xf0]  ;;  %v11490_v61 = vpop.f32.mrf.mxu0  ;;  %11876 = vst [vmem:[#allocation23_spill] sm:$0xff] %v11498_v6  ;;  %v8941_v8 = vor.u32 %v10825_v54, %v8940_v52  ;;  %v9052_v54 = vld [vmem:[#allocation5 + $0xfc0] sm:$0xf] }
  0xf2   :  { %5584 = vmatpush.bf16.msra.mxu3 %v8781_v28  ;;  %v8765_v28 = vor.u32 %v10781_v0, %v8764_v63  ;;  %11874 = vst [vmem:[#allocation21_spill] sm:$0xff] %v11490_v61  ;;  %v11494_v63 = vor.u32 %v10310_v27, %v6934_v37  ;;  %v9068_v0 = vld [vmem:[#allocation5 + $0xfe0] sm:$0xf]  ;;  %v9005_v9 = vor.u32 %v10841_v59, %v9004_v57  ;;  %v10805_v27 = vld [vmem:[#allocation5 + $0xe44] sm:$0xf0] }
  0xf3   :  { %5543 = vmatpush.bf16.msra.mxu0 %v8581_v53  ;;  %v8876_v53 = vld [vmem:[#allocation5 + $0xe60] sm:$0xf]  ;;  %v9069_v16 = vor.u32 %v10857_v2, %v9068_v0  ;;  %v10853_v57 = vld [vmem:[#allocation5 + $0xfc4] sm:$0xf0] }
  0xf4   :  { %5557 = vmatpush.bf16.msra.mxu1 %v8645_v29  ;;  %v11488_v29 = vor.u32 %v10335_v19, %v6932_v18  ;;  %v8877_v7 = vor.u32 %v10809_v50, %v8876_v53  ;;  %v10823_v18 = vld [vmem:[#allocation5 + $0xed4] sm:$0xf0]  ;;  %v8996_v19 = vld [vmem:[#allocation5 + $0xf50] sm:$0xf]  ;;  %v10837_v53 = vld [vmem:[#allocation5 + $0xf44] sm:$0xf0]  ;;  %v11506_v50 = vpop.f32.mrf.mxu3 }
  0xf5   :  { %5571 = vmatpush.bf16.msra.mxu2 %v8709_v62  ;;  %v11492_v62 = vor.u32 %v10336_v25, %v6940_v24  ;;  %v10855_v24 = vld [vmem:[#allocation5 + $0xfd4] sm:$0xf0]  ;;  %v8860_v25 = vld [vmem:[#allocation5 + $0xe40] sm:$0xf]  ;;  %11878 = vst [vmem:[#allocation25_spill] sm:$0xff] %v11506_v50 }
  0xf6   :  { %5585 = vmatpush.bf16.msra.mxu3 %v8773_v3  ;;  %v11496_v3 = vpop.f32.mrf.mxu1  ;;  %v8861_v0 = vor.u32 %v10805_v27, %v8860_v25  ;;  %v10801_v25 = vld [vmem:[#allocation5 + $0xe24] sm:$0xf0]  ;;  %v8908_v27 = vld [vmem:[#allocation5 + $0xea0] sm:$0xf]  ;;  %v9268_v50 = vld [vmem:[#allocation5 + $0x1170] sm:$0xf] }
  0xf7   :  { %5544 = vmatpush.bf16.msra.mxu0 %v8573_v15  ;;  %11875 = vst [vmem:[#allocation22_spill] sm:$0xff] %v11496_v3  ;;  %v8932_v15 = vld [vmem:[#allocation5 + $0xed0] sm:$0xf]  ;;  %v6948_v3 = vld [vmem:[#allocation2 + $0x70] sm:$0xf] }
  0xf8   :  { %5558 = vmatpush.bf16.msra.mxu1 %v8637_v22  ;;  %v10839_v22 = vld [vmem:[#allocation5 + $0xf54] sm:$0xf0]  ;;  %v10337_v61 = vld [vmem:[#allocation2 + $0x134] sm:$0xf0] }
  0xf9   :  { %5572 = vmatpush.bf16.msra.mxu2 %v8701_v23  ;;  %v9060_v23 = vld [vmem:[#allocation5 + $0xfd0] sm:$0xf]  ;;  %v5322_v52 = vpop.f32.mrf.mxu0 }
  0xfa   :  { %5586 = vmatpush.bf16.msra.mxu3 %v8765_v28  ;;  %5545 = vmatmul.bf16.vlgmr.msra.gmra.mxu0 %v11488_v29  ;;  %v8924_v28 = vld [vmem:[#allocation5 + $0xec0] sm:$0xf]  ;;  %v9061_v37 = vor.u32 %v10855_v24, %v9060_v23  ;;  %v5323_v59 = vadd.f32 %v5322_v52, %v11486_v20  ;;  %v9044_v23 = vld [vmem:[#allocation5 + $0xfb0] sm:$0xf]  ;;  %v10851_v24 = vld [vmem:[#allocation5 + $0xfb4] sm:$0xf0] }
  0xfb   :  { %5593 = vmatpush.bf16.msrb.mxu0 %v8885_v30  ;;  %5559 = vmatmul.bf16.vlgmr.msra.gmra.mxu1 %v11494_v63  ;;  %v11504_v30 = vpop.f32.mrf.mxu2 }
  0xfc   :  { %5607 = vmatpush.bf16.msrb.mxu1 %v8949_v13  ;;  %5573 = vmatmul.bf16.vlgmr.msra.gmra.mxu2 %v11492_v62  ;;  %v8869_v13 = vor.u32 %v10807_v12, %v8868_v11  ;;  %11877 = vst [vmem:[#allocation24_spill] sm:$0xff] %v11504_v30  ;;  %v10803_v11 = vld [vmem:[#allocation5 + $0xe34] sm:$0xf0]  ;;  %v8916_v12 = vld [vmem:[#allocation5 + $0xeb0] sm:$0xf] }
  0xfd   :  { %5621 = vmatpush.bf16.msrb.mxu2 %v9013_v14  ;;  %5587 = vmatmul.bf16.vlgmr.msra.gmra.mxu3 %v11498_v6  ;;  %v8933_v14 = vor.u32 %v10823_v18, %v8932_v15  ;;  %v9053_v15 = vor.u32 %v10853_v57, %v9052_v54  ;;  %v10819_v18 = vld [vmem:[#allocation5 + $0xeb4] sm:$0xf0]  ;;  %v9036_v57 = vld [vmem:[#allocation5 + $0xfa0] sm:$0xf] }
  0xfe   :  { %5635 = vmatpush.bf16.msrb.mxu3 %v9077_v5  ;;  %v8997_v5 = vor.u32 %v10839_v22, %v8996_v19  ;;  %v5336_v2 = vpop.f32.mrf.mxu1  ;;  %v8980_v19 = vld [vmem:[#allocation5 + $0xf30] sm:$0xf]  ;;  %v10835_v22 = vld [vmem:[#allocation5 + $0xf34] sm:$0xf0]  ;;  %v8917_v20 = vor.u32 %v10819_v18, %v8916_v12 }
  0xff   :  { %5594 = vmatpush.bf16.msrb.mxu0 %v8877_v7  ;;  %v8925_v7 = vor.u32 %v10821_v42, %v8924_v28  ;;  %v9045_v28 = vor.u32 %v10851_v24, %v9044_v23  ;;  %v8900_v12 = vld [vmem:[#allocation5 + $0xe90] sm:$0xf]  ;;  %v10847_v23 = vld [vmem:[#allocation5 + $0xf94] sm:$0xf0]  ;;  %v8828_v24 = vld [vmem:[#allocation5 + $0xe00] sm:$0xf] }
 0x100   :  { %5608 = vmatpush.bf16.msrb.mxu1 %v8941_v8  ;;  %v8989_v8 = vor.u32 %v10837_v53, %v8988_v49  ;;  %v8972_v49 = vld [vmem:[#allocation5 + $0xf20] sm:$0xf]  ;;  %v10833_v53 = vld [vmem:[#allocation5 + $0xf24] sm:$0xf0]  ;;  %v5364_v54 = vpop.f32.mrf.mxu3  ;;  %v10907_v30 = vld [vmem:[#allocation5 + $0x1174] sm:$0xf0] }
 0x101   :  { %5622 = vmatpush.bf16.msrb.mxu2 %v9005_v9  ;;  %v8852_v9 = vld [vmem:[#allocation5 + $0xe30] sm:$0xf]  ;;  %v9269_v4 = vor.u32 %v10907_v30, %v9268_v50  ;;  %v10921_v30 = vld [vmem:[#allocation5 + $0x11e4] sm:$0xf0] }
 0x102   :  { %5636 = vmatpush.bf16.msrb.mxu3 %v9069_v16  ;;  %v5337_v16 = vadd.f32 %v5336_v2, %v5323_v59  ;;  %v10849_v59 = vld [vmem:[#allocation5 + $0xfa4] sm:$0xf0]  ;;  %v8836_v2 = vld [vmem:[#allocation5 + $0xe10] sm:$0xf] }
 0x103   :  { %5595 = vmatpush.bf16.msrb.mxu0 %v8869_v13  ;;  %v8853_v13 = vor.u32 %v10803_v11, %v8852_v9  ;;  %v5350_v42 = vpop.f32.mrf.mxu2  ;;  %v8973_v9 = vor.u32 %v10833_v53, %v8972_v49  ;;  %v10799_v11 = vld [vmem:[#allocation5 + $0xe14] sm:$0xf0]  ;;  %v9037_v18 = vor.u32 %v10849_v59, %v9036_v57  ;;  %v9020_v49 = vld [vmem:[#allocation5 + $0xf80] sm:$0xf]  ;;  %v10845_v53 = vld [vmem:[#allocation5 + $0xf84] sm:$0xf0] }
 0x104   :  { %5609 = vmatpush.bf16.msrb.mxu1 %v8933_v14  ;;  %v8981_v14 = vor.u32 %v10835_v22, %v8980_v19  ;;  %v5351_v52 = vadd.f32 %v5350_v42, %v5337_v16  ;;  %v8964_v19 = vld [vmem:[#allocation5 + $0xf10] sm:$0xf]  ;;  %v10831_v22 = vld [vmem:[#allocation5 + $0xf14] sm:$0xf0]  ;;  %v10797_v42 = vld [vmem:[#allocation5 + $0xe04] sm:$0xf0] }
 0x105   :  { %5623 = vmatpush.bf16.msrb.mxu2 %v8997_v5  ;;  %v8844_v5 = vld [vmem:[#allocation5 + $0xe20] sm:$0xf]  ;;  %v9028_v16 = vld [vmem:[#allocation5 + $0xf90] sm:$0xf]  ;;  %v10891_v59 = vld [vmem:[#allocation5 + $0x10f4] sm:$0xf0] }
 0x106   :  { %5637 = vmatpush.bf16.msrb.mxu3 %v9061_v37  ;;  %v10817_v37 = vld [vmem:[#allocation5 + $0xea4] sm:$0xf0]  ;;  %v9204_v57 = vld [vmem:[#allocation5 + $0x10f0] sm:$0xf]  ;;  %v11519_v50 = vpop.f32.mrf.mxu1 }
 0x107   :  { %5596 = vmatpush.bf16.msrb.mxu0 %v8861_v0  ;;  %v8845_v0 = vor.u32 %v10801_v25, %v8844_v5  ;;  %v8892_v5 = vld [vmem:[#allocation5 + $0xe80] sm:$0xf]  ;;  %v10829_v25 = vld [vmem:[#allocation5 + $0xf04] sm:$0xf0]  ;;  %v9205_v21 = vor.u32 %v10891_v59, %v9204_v57  ;;  %11883 = vst [vmem:[#allocation30_spill] sm:$0xff] %v11519_v50 }
 0x108   :  { %5610 = vmatpush.bf16.msrb.mxu1 %v8925_v7  ;;  %v11509_v7 = vadd.f32 %v5364_v54, %v5351_v52  ;;  %v9029_v52 = vor.u32 %v10847_v23, %v9028_v16  ;;  %v10875_v54 = vld [vmem:[#allocation5 + $0x1074] sm:$0xf0]  ;;  %v6950_v16 = vld [vmem:[#allocation2 + $0x138] sm:$0xf0]  ;;  %v9188_v59 = vld [vmem:[#allocation5 + $0x10d0] sm:$0xf] }
 0x109   :  { %5624 = vmatpush.bf16.msrb.mxu2 %v8989_v8  ;;  %v8909_v8 = vor.u32 %v10817_v37, %v8908_v27  ;;  %v8965_v37 = vor.u32 %v10831_v22, %v8964_v19  ;;  %v10312_v19 = vld [vmem:[#allocation2 + $0x74] sm:$0xf]  ;;  %v10313_v23 = vld [vmem:[#allocation2 + $0x7c] sm:$0xf]  ;;  %v10871_v57 = vld [vmem:[#allocation5 + $0x1054] sm:$0xf0] }
 0x10a   :  { %5638 = vmatpush.bf16.msrb.mxu3 %v9053_v15  ;;  %v10815_v15 = vld [vmem:[#allocation5 + $0xe94] sm:$0xf0]  ;;  %v6964_v50 = vld [vmem:[#allocation2 + $0x80] sm:$0xf] }
 0x10b   :  { %5597 = vmatpush.bf16.msrb.mxu0 %v8853_v13  ;;  %v8837_v13 = vor.u32 %v10799_v11, %v8836_v2  ;;  %v8901_v27 = vor.u32 %v10815_v15, %v8900_v12  ;;  %v8829_v2 = vor.u32 %v10797_v42, %v8828_v24  ;;  %v10923_v11 = vld [vmem:[#allocation5 + $0x11f4] sm:$0xf0]  ;;  %v6956_v12 = vld [vmem:[#allocation2 + $0x78] sm:$0xf]  ;;  %v10338_v15 = vld [vmem:[#allocation2 + $0x13c] sm:$0xf0] }
 0x10c   :  { %5611 = vmatpush.bf16.msrb.mxu1 %v8917_v20  ;;  %v10813_v20 = vld [vmem:[#allocation5 + $0xe84] sm:$0xf0]  ;;  %v9196_v42 = vld [vmem:[#allocation5 + $0x10e0] sm:$0xf] }
 0x10d   :  { %5625 = vmatpush.bf16.msrb.mxu2 %v8981_v14  ;;  %v8956_v14 = vld [vmem:[#allocation5 + $0xf00] sm:$0xf]  ;;  %v10873_v24 = vld [vmem:[#allocation5 + $0x1064] sm:$0xf0] }
 0x10e   :  { %5639 = vmatpush.bf16.msrb.mxu3 %v9045_v28  ;;  %v9140_v28 = vld [vmem:[#allocation5 + $0x1070] sm:$0xf] }
 0x10f   :  { %5598 = vmatpush.bf16.msrb.mxu0 %v8845_v0  ;;  %v9332_v0 = vld [vmem:[#allocation5 + $0x11f0] sm:$0xf]  ;;  %v9141_v22 = vor.u32 %v10875_v54, %v9140_v28  ;;  %v11521_v28 = vor.u32 %v10313_v23, %v6958_v45  ;;  %v9244_v23 = vld [vmem:[#allocation5 + $0x1140] sm:$0xf] }
 0x110   :  { %5612 = vmatpush.bf16.msrb.mxu1 %v8909_v8  ;;  %v8893_v8 = vor.u32 %v10813_v20, %v8892_v5  ;;  %v9333_v6 = vor.u32 %v10923_v11, %v9332_v0  ;;  %v10889_v5 = vld [vmem:[#allocation5 + $0x10e4] sm:$0xf0]  ;;  %v9260_v20 = vld [vmem:[#allocation5 + $0x1160] sm:$0xf]  ;;  %v9124_v54 = vld [vmem:[#allocation5 + $0x1050] sm:$0xf] }
 0x111   :  { %5626 = vmatpush.bf16.msrb.mxu2 %v8973_v9  ;;  %v8957_v9 = vor.u32 %v10829_v25, %v8956_v14  ;;  %v10905_v14 = vld [vmem:[#allocation5 + $0x1164] sm:$0xf0]  ;;  %v11513_v25 = vpop.f32.mrf.mxu0  ;;  %11884 = vst [vmem:[#allocation31_spill] sm:$0xff] %v11521_v28  ;;  %v9252_v11 = vld [vmem:[#allocation5 + $0x1150] sm:$0xf] }
 0x112   :  { %5640 = vmatpush.bf16.msrb.mxu3 %v9037_v18  ;;  %v9021_v18 = vor.u32 %v10845_v53, %v9020_v49  ;;  %11880 = vst [vmem:[#allocation27_spill] sm:$0xff] %v11513_v25  ;;  %v11517_v49 = vor.u32 %v10312_v19, %v6950_v16  ;;  %v9324_v53 = vld [vmem:[#allocation5 + $0x11e0] sm:$0xf]  ;;  %v9316_v45 = vld [vmem:[#allocation5 + $0x11d0] sm:$0xf] }
 0x113   :  { %5599 = vmatpush.bf16.msrb.mxu0 %v8837_v13  ;;  %v9132_v13 = vld [vmem:[#allocation5 + $0x1060] sm:$0xf]  ;;  %v9325_v0 = vor.u32 %v10921_v30, %v9324_v53  ;;  %v10885_v16 = vld [vmem:[#allocation5 + $0x10c4] sm:$0xf0]  ;;  %v10339_v25 = vld [vmem:[#allocation2 + $0x144] sm:$0xf0] }
 0x114   :  { %5613 = vmatpush.bf16.msrb.mxu1 %v8901_v27  ;;  %v11511_v27 = vor.u32 %v10337_v61, %v6948_v3  ;;  %11882 = vst [vmem:[#allocation29_spill] sm:$0xff] %v11517_v49  ;;  %v9133_v61 = vor.u32 %v10873_v24, %v9132_v13  ;;  %v9197_v3 = vor.u32 %v10889_v5, %v9196_v42  ;;  %v9180_v19 = vld [vmem:[#allocation5 + $0x10c0] sm:$0xf]  ;;  %v10901_v13 = vld [vmem:[#allocation5 + $0x1144] sm:$0xf0]  ;;  %v11529_v24 = vpop.f32.mrf.mxu3 }
 0x115   :  { %5627 = vmatpush.bf16.msrb.mxu2 %v8965_v37  ;;  %v11515_v37 = vor.u32 %v10338_v15, %v6956_v12  ;;  %v9116_v12 = vld [vmem:[#allocation5 + $0x1040] sm:$0xf]  ;;  %v10869_v15 = vld [vmem:[#allocation5 + $0x1044] sm:$0xf0]  ;;  %11886 = vst [vmem:[#allocation33_spill] sm:$0xff] %v11529_v24 }
 0x116   :  { %5641 = vmatpush.bf16.msrb.mxu3 %v9029_v52  ;;  %11879 = vst [vmem:[#allocation26_spill] sm:$0xff] %v11511_v27  ;;  %v9261_v52 = vor.u32 %v10905_v14, %v9260_v20  ;;  %v9308_v5 = vld [vmem:[#allocation5 + $0x11c0] sm:$0xf]  ;;  %v10917_v20 = vld [vmem:[#allocation5 + $0x11c4] sm:$0xf0]  ;;  %v9117_v53 = vor.u32 %v10869_v15, %v9116_v12 }
 0x117   :  { %5600 = vmatpush.bf16.msrb.mxu0 %v8829_v2  ;;  %11881 = vst [vmem:[#allocation28_spill] sm:$0xff] %v11515_v37  ;;  %v10887_v2 = vld [vmem:[#allocation5 + $0x10d4] sm:$0xf0]  ;;  %v10865_v12 = vld [vmem:[#allocation5 + $0x1024] sm:$0xf0] }
 0x118   :  { %5614 = vmatpush.bf16.msrb.mxu1 %v8893_v8  ;;  %v10903_v8 = vld [vmem:[#allocation5 + $0x1154] sm:$0xf0]  ;;  %v5392_v30 = vpop.f32.mrf.mxu1  ;;  %v9164_v15 = vld [vmem:[#allocation5 + $0x10a0] sm:$0xf]  ;;  %v9524_v24 = vld [vmem:[#allocation5 + $0x1370] sm:$0xf] }
 0x119   :  { %5628 = vmatpush.bf16.msrb.mxu2 %v8957_v9  ;;  %v10919_v9 = vld [vmem:[#allocation5 + $0x11d4] sm:$0xf0]  ;;  %v5378_v42 = vpop.f32.mrf.mxu0 }
 0x11a   :  { %5642 = vmatpush.bf16.msrb.mxu3 %v9021_v18  ;;  %5601 = vmatmul.bf16.vlgmr.msrb.gmra.mxu0 %v11511_v27  ;;  %v11527_v18 = vpop.f32.mrf.mxu2  ;;  %v5379_v14 = vadd.f32 %v5378_v42, %v11509_v7 }
 0x11b   :  { %5649 = vmatpush.bf16.msra.mxu0 %v9141_v22  ;;  %5615 = vmatmul.bf16.vlgmr.msrb.gmra.mxu1 %v11517_v49  ;;  %11885 = vst [vmem:[#allocation32_spill] sm:$0xff] %v11527_v18  ;;  %v9317_v22 = vor.u32 %v10919_v9, %v9316_v45  ;;  %v9300_v45 = vld [vmem:[#allocation5 + $0x11b0] sm:$0xf]  ;;  %v10915_v9 = vld [vmem:[#allocation5 + $0x11b4] sm:$0xf0] }
 0x11c   :  { %5663 = vmatpush.bf16.msra.mxu1 %v9205_v21  ;;  %5629 = vmatmul.bf16.vlgmr.msrb.gmra.mxu2 %v11515_v37  ;;  %v9189_v21 = vor.u32 %v10887_v2, %v9188_v59  ;;  %v9309_v59 = vor.u32 %v10917_v20, %v9308_v5  ;;  %v10883_v2 = vld [vmem:[#allocation5 + $0x10b4] sm:$0xf0]  ;;  %v9292_v20 = vld [vmem:[#allocation5 + $0x11a0] sm:$0xf] }
 0x11d   :  { %5677 = vmatpush.bf16.msra.mxu2 %v9269_v4  ;;  %5643 = vmatmul.bf16.vlgmr.msrb.gmra.mxu3 %v11521_v28  ;;  %v9125_v4 = vor.u32 %v10871_v57, %v9124_v54  ;;  %v10867_v54 = vld [vmem:[#allocation5 + $0x1034] sm:$0xf0]  ;;  %v9172_v57 = vld [vmem:[#allocation5 + $0x10b0] sm:$0xf]  ;;  %v6974_v28 = vld [vmem:[#allocation2 + $0x150] sm:$0xf0] }
 0x11e   :  { %5691 = vmatpush.bf16.msra.mxu3 %v9333_v6  ;;  %v9253_v6 = vor.u32 %v10903_v8, %v9252_v11  ;;  %v9236_v11 = vld [vmem:[#allocation5 + $0x1130] sm:$0xf]  ;;  %v10899_v8 = vld [vmem:[#allocation5 + $0x1134] sm:$0xf0]  ;;  %v9173_v7 = vor.u32 %v10883_v2, %v9172_v57 }
 0x11f   :  { %5650 = vmatpush.bf16.msra.mxu0 %v9133_v61  ;;  %v9181_v61 = vor.u32 %v10885_v16, %v9180_v19  ;;  %v9301_v19 = vor.u32 %v10915_v9, %v9300_v45  ;;  %v9156_v57 = vld [vmem:[#allocation5 + $0x1090] sm:$0xf]  ;;  %v10911_v45 = vld [vmem:[#allocation5 + $0x1194] sm:$0xf0]  ;;  %v9084_v9 = vld [vmem:[#allocation5 + $0x1000] sm:$0xf] }
 0x120   :  { %5664 = vmatpush.bf16.msra.mxu1 %v9197_v3  ;;  %v9245_v3 = vor.u32 %v10901_v13, %v9244_v23  ;;  %v9228_v23 = vld [vmem:[#allocation5 + $0x1120] sm:$0xf]  ;;  %v10897_v13 = vld [vmem:[#allocation5 + $0x1124] sm:$0xf0]  ;;  %v5420_v5 = vpop.f32.mrf.mxu3  ;;  %v10971_v18 = vld [vmem:[#allocation5 + $0x1374] sm:$0xf0] }
 0x121   :  { %5678 = vmatpush.bf16.msra.mxu2 %v9261_v52  ;;  %v9108_v52 = vld [vmem:[#allocation5 + $0x1030] sm:$0xf]  ;;  %v9525_v49 = vor.u32 %v10971_v18, %v9524_v24  ;;  %v10985_v18 = vld [vmem:[#allocation5 + $0x13e4] sm:$0xf0]  ;;  %v11542_v24 = vpop.f32.mrf.mxu1 }
 0x122   :  { %5692 = vmatpush.bf16.msra.mxu3 %v9325_v0  ;;  %v5393_v0 = vadd.f32 %v5392_v30, %v5379_v14  ;;  %v5406_v16 = vpop.f32.mrf.mxu2  ;;  %v10913_v14 = vld [vmem:[#allocation5 + $0x11a4] sm:$0xf0]  ;;  %v9092_v30 = vld [vmem:[#allocation5 + $0x1010] sm:$0xf]  ;;  %11891 = vst [vmem:[#allocation38_spill] sm:$0xff] %v11542_v24 }
 0x123   :  { %5651 = vmatpush.bf16.msra.mxu0 %v9125_v4  ;;  %v9109_v4 = vor.u32 %v10867_v54, %v9108_v52  ;;  %v9229_v52 = vor.u32 %v10897_v13, %v9228_v23  ;;  %v10863_v54 = vld [vmem:[#allocation5 + $0x1014] sm:$0xf0]  ;;  %v9293_v2 = vor.u32 %v10913_v14, %v9292_v20  ;;  %v9276_v23 = vld [vmem:[#allocation5 + $0x1180] sm:$0xf]  ;;  %v10909_v13 = vld [vmem:[#allocation5 + $0x1184] sm:$0xf0] }
 0x124   :  { %5665 = vmatpush.bf16.msra.mxu1 %v9189_v21  ;;  %v9237_v21 = vor.u32 %v10899_v8, %v9236_v11  ;;  %v5407_v42 = vadd.f32 %v5406_v16, %v5393_v0  ;;  %v9220_v11 = vld [vmem:[#allocation5 + $0x1110] sm:$0xf]  ;;  %v10895_v8 = vld [vmem:[#allocation5 + $0x1114] sm:$0xf0]  ;;  %v10861_v16 = vld [vmem:[#allocation5 + $0x1004] sm:$0xf0] }
 0x125   :  { %5679 = vmatpush.bf16.msra.mxu2 %v9253_v6  ;;  %v9100_v6 = vld [vmem:[#allocation5 + $0x1020] sm:$0xf]  ;;  %v9284_v0 = vld [vmem:[#allocation5 + $0x1190] sm:$0xf]  ;;  %v10955_v14 = vld [vmem:[#allocation5 + $0x12f4] sm:$0xf0] }
 0x126   :  { %5693 = vmatpush.bf16.msra.mxu3 %v9317_v22  ;;  %v10881_v22 = vld [vmem:[#allocation5 + $0x10a4] sm:$0xf0]  ;;  %v9460_v20 = vld [vmem:[#allocation5 + $0x12f0] sm:$0xf]  ;;  %v6990_v24 = vld [vmem:[#allocation2 + $0x160] sm:$0xf0] }
 0x127   :  { %5652 = vmatpush.bf16.msra.mxu0 %v9117_v53  ;;  %v9101_v53 = vor.u32 %v10865_v12, %v9100_v6  ;;  %v9148_v6 = vld [vmem:[#allocation5 + $0x1080] sm:$0xf]  ;;  %v10893_v12 = vld [vmem:[#allocation5 + $0x1104] sm:$0xf0]  ;;  %v9461_v37 = vor.u32 %v10955_v14, %v9460_v20  ;;  %v10935_v20 = vld [vmem:[#allocation5 + $0x1254] sm:$0xf0] }
 0x128   :  { %5666 = vmatpush.bf16.msra.mxu1 %v9181_v61  ;;  %v11532_v61 = vadd.f32 %v5420_v5, %v5407_v42  ;;  %v9285_v42 = vor.u32 %v10911_v45, %v9284_v0  ;;  %v10939_v5 = vld [vmem:[#allocation5 + $0x1274] sm:$0xf0]  ;;  %v6966_v0 = vld [vmem:[#allocation2 + $0x148] sm:$0xf0]  ;;  %v9444_v14 = vld [vmem:[#allocation5 + $0x12d0] sm:$0xf] }
 0x129   :  { %5680 = vmatpush.bf16.msra.mxu2 %v9245_v3  ;;  %v9165_v3 = vor.u32 %v10881_v22, %v9164_v15  ;;  %v9221_v22 = vor.u32 %v10895_v8, %v9220_v11  ;;  %v10314_v11 = vld [vmem:[#allocation2 + $0x84] sm:$0xf]  ;;  %v10315_v45 = vld [vmem:[#allocation2 + $0x8c] sm:$0xf] }
 0x12a   :  { %5694 = vmatpush.bf16.msra.mxu3 %v9309_v59  ;;  %v10879_v59 = vld [vmem:[#allocation5 + $0x1094] sm:$0xf0] }
 0x12b   :  { %5653 = vmatpush.bf16.msra.mxu0 %v9109_v4  ;;  %v9093_v4 = vor.u32 %v10863_v54, %v9092_v30  ;;  %v9157_v15 = vor.u32 %v10879_v59, %v9156_v57  ;;  %v9085_v30 = vor.u32 %v10861_v16, %v9084_v9  ;;  %v10987_v54 = vld [vmem:[#allocation5 + $0x13f4] sm:$0xf0]  ;;  %v10340_v59 = vld [vmem:[#allocation2 + $0x14c] sm:$0xf0]  ;;  %v10937_v9 = vld [vmem:[#allocation5 + $0x1264] sm:$0xf0] }
 0x12c   :  { %5667 = vmatpush.bf16.msra.mxu1 %v9173_v7  ;;  %v10877_v7 = vld [vmem:[#allocation5 + $0x1084] sm:$0xf0]  ;;  %v6972_v57 = vld [vmem:[#allocation2 + $0x88] sm:$0xf]  ;;  %v9452_v16 = vld [vmem:[#allocation5 + $0x12e0] sm:$0xf] }
 0x12d   :  { %5681 = vmatpush.bf16.msra.mxu2 %v9237_v21  ;;  %v9212_v21 = vld [vmem:[#allocation5 + $0x1100] sm:$0xf] }
 0x12e   :  { %5695 = vmatpush.bf16.msra.mxu3 %v9301_v19  ;;  %v9396_v19 = vld [vmem:[#allocation5 + $0x1270] sm:$0xf] }
 0x12f   :  { %5654 = vmatpush.bf16.msra.mxu0 %v9101_v53  ;;  %v9588_v53 = vld [vmem:[#allocation5 + $0x13f0] sm:$0xf]  ;;  %v9397_v8 = vor.u32 %v10939_v5, %v9396_v19  ;;  %v11544_v19 = vor.u32 %v10315_v45, %v6974_v28  ;;  %v9500_v45 = vld [vmem:[#allocation5 + $0x1340] sm:$0xf] }
 0x130   :  { %5668 = vmatpush.bf16.msra.mxu1 %v9165_v3  ;;  %v9149_v3 = vor.u32 %v10877_v7, %v9148_v6  ;;  %v9589_v27 = vor.u32 %v10987_v54, %v9588_v53  ;;  %v10953_v6 = vld [vmem:[#allocation5 + $0x12e4] sm:$0xf0]  ;;  %v9516_v7 = vld [vmem:[#allocation5 + $0x1360] sm:$0xf]  ;;  %v9380_v5 = vld [vmem:[#allocation5 + $0x1250] sm:$0xf] }
 0x131   :  { %5682 = vmatpush.bf16.msra.mxu2 %v9229_v52  ;;  %v9213_v52 = vor.u32 %v10893_v12, %v9212_v21  ;;  %v10969_v21 = vld [vmem:[#allocation5 + $0x1364] sm:$0xf0]  ;;  %v11536_v12 = vpop.f32.mrf.mxu0  ;;  %11892 = vst [vmem:[#allocation39_spill] sm:$0xff] %v11544_v19  ;;  %v9508_v54 = vld [vmem:[#allocation5 + $0x1350] sm:$0xf] }
 0x132   :  { %5696 = vmatpush.bf16.msra.mxu3 %v9293_v2  ;;  %v9277_v2 = vor.u32 %v10909_v13, %v9276_v23  ;;  %11888 = vst [vmem:[#allocation35_spill] sm:$0xff] %v11536_v12  ;;  %v11540_v23 = vor.u32 %v10314_v11, %v6966_v0  ;;  %v9580_v13 = vld [vmem:[#allocation5 + $0x13e0] sm:$0xf]  ;;  %v9572_v28 = vld [vmem:[#allocation5 + $0x13d0] sm:$0xf] }
 0x133   :  { %5655 = vmatpush.bf16.msra.mxu0 %v9093_v4  ;;  %v9388_v4 = vld [vmem:[#allocation5 + $0x1260] sm:$0xf]  ;;  %v9581_v53 = vor.u32 %v10985_v18, %v9580_v13  ;;  %v10949_v0 = vld [vmem:[#allocation5 + $0x12c4] sm:$0xf0] }
 0x134   :  { %5669 = vmatpush.bf16.msra.mxu1 %v9157_v15  ;;  %v11534_v15 = vor.u32 %v10339_v25, %v6964_v50  ;;  %11890 = vst [vmem:[#allocation37_spill] sm:$0xff] %v11540_v23  ;;  %v9389_v25 = vor.u32 %v10937_v9, %v9388_v4  ;;  %v9453_v50 = vor.u32 %v10953_v6, %v9452_v16  ;;  %v9436_v11 = vld [vmem:[#allocation5 + $0x12c0] sm:$0xf]  ;;  %v10965_v4 = vld [vmem:[#allocation5 + $0x1344] sm:$0xf0]  ;;  %v11552_v9 = vpop.f32.mrf.mxu3 }
 0x135   :  { %5683 = vmatpush.bf16.msra.mxu2 %v9221_v22  ;;  %v11538_v22 = vor.u32 %v10340_v59, %v6972_v57  ;;  %v9372_v57 = vld [vmem:[#allocation5 + $0x1240] sm:$0xf]  ;;  %v10933_v59 = vld [vmem:[#allocation5 + $0x1244] sm:$0xf0]  ;;  %11894 = vst [vmem:[#allocation41_spill] sm:$0xff] %v11552_v9 }
 0x136   :  { %5697 = vmatpush.bf16.msra.mxu3 %v9285_v42  ;;  %11887 = vst [vmem:[#allocation34_spill] sm:$0xff] %v11534_v15  ;;  %v9517_v42 = vor.u32 %v10969_v21, %v9516_v7  ;;  %v9564_v6 = vld [vmem:[#allocation5 + $0x13c0] sm:$0xf]  ;;  %v10981_v7 = vld [vmem:[#allocation5 + $0x13c4] sm:$0xf0]  ;;  %v9373_v13 = vor.u32 %v10933_v59, %v9372_v57 }
 0x137   :  { %5656 = vmatpush.bf16.msra.mxu0 %v9085_v30  ;;  %11889 = vst [vmem:[#allocation36_spill] sm:$0xff] %v11538_v22  ;;  %v10951_v30 = vld [vmem:[#allocation5 + $0x12d4] sm:$0xf0]  ;;  %v10929_v57 = vld [vmem:[#allocation5 + $0x1224] sm:$0xf0] }
 0x138   :  { %5670 = vmatpush.bf16.msra.mxu1 %v9149_v3  ;;  %v10967_v3 = vld [vmem:[#allocation5 + $0x1354] sm:$0xf0]  ;;  %v5448_v18 = vpop.f32.mrf.mxu1  ;;  %v9420_v59 = vld [vmem:[#allocation5 + $0x12a0] sm:$0xf]  ;;  %v9780_v9 = vld [vmem:[#allocation5 + $0x1570] sm:$0xf] }
 0x139   :  { %5684 = vmatpush.bf16.msra.mxu2 %v9213_v52  ;;  %v10983_v52 = vld [vmem:[#allocation5 + $0x13d4] sm:$0xf0]  ;;  %v5434_v16 = vpop.f32.mrf.mxu0 }
 0x13a   :  { %5698 = vmatpush.bf16.msra.mxu3 %v9277_v2  ;;  %5657 = vmatmul.bf16.vlgmr.msra.gmra.mxu0 %v11534_v15  ;;  %v11550_v2 = vpop.f32.mrf.mxu2  ;;  %v5435_v21 = vadd.f32 %v5434_v16, %v11532_v61 }
 0x13b   :  { %5705 = vmatpush.bf16.msrb.mxu0 %v9397_v8  ;;  %5671 = vmatmul.bf16.vlgmr.msra.gmra.mxu1 %v11540_v23  ;;  %11893 = vst [vmem:[#allocation40_spill] sm:$0xff] %v11550_v2  ;;  %v9573_v8 = vor.u32 %v10983_v52, %v9572_v28  ;;  %v9556_v28 = vld [vmem:[#allocation5 + $0x13b0] sm:$0xf]  ;;  %v10979_v52 = vld [vmem:[#allocation5 + $0x13b4] sm:$0xf0] }
 0x13c   :  { %5719 = vmatpush.bf16.msrb.mxu1 %v9461_v37  ;;  %5685 = vmatmul.bf16.vlgmr.msra.gmra.mxu2 %v11538_v22  ;;  %v9381_v37 = vor.u32 %v10935_v20, %v9380_v5  ;;  %v10931_v5 = vld [vmem:[#allocation5 + $0x1234] sm:$0xf0]  ;;  %v9428_v20 = vld [vmem:[#allocation5 + $0x12b0] sm:$0xf]  ;;  %v10341_v22 = vld [vmem:[#allocation2 + $0x154] sm:$0xf0] }
 0x13d   :  { %5733 = vmatpush.bf16.msrb.mxu2 %v9525_v49  ;;  %5699 = vmatmul.bf16.vlgmr.msra.gmra.mxu3 %v11544_v19  ;;  %v9445_v49 = vor.u32 %v10951_v30, %v9444_v14  ;;  %v9565_v14 = vor.u32 %v10981_v7, %v9564_v6  ;;  %v10947_v30 = vld [vmem:[#allocation5 + $0x12b4] sm:$0xf0]  ;;  %v9548_v7 = vld [vmem:[#allocation5 + $0x13a0] sm:$0xf] }
 0x13e   :  { %5747 = vmatpush.bf16.msrb.mxu3 %v9589_v27  ;;  %v9509_v27 = vor.u32 %v10967_v3, %v9508_v54  ;;  %v9492_v54 = vld [vmem:[#allocation5 + $0x1330] sm:$0xf]  ;;  %v10963_v3 = vld [vmem:[#allocation5 + $0x1334] sm:$0xf0]  ;;  %v9429_v61 = vor.u32 %v10947_v30, %v9428_v20  ;;  %v6980_v19 = vld [vmem:[#allocation2 + $0x90] sm:$0xf] }
 0x13f   :  { %5706 = vmatpush.bf16.msrb.mxu0 %v9389_v25  ;;  %v9437_v25 = vor.u32 %v10949_v0, %v9436_v11  ;;  %v9557_v11 = vor.u32 %v10979_v52, %v9556_v28  ;;  %v9412_v20 = vld [vmem:[#allocation5 + $0x1290] sm:$0xf]  ;;  %v10975_v28 = vld [vmem:[#allocation5 + $0x1394] sm:$0xf0]  ;;  %v9340_v52 = vld [vmem:[#allocation5 + $0x1200] sm:$0xf] }
 0x140   :  { %5720 = vmatpush.bf16.msrb.mxu1 %v9453_v50  ;;  %v9501_v50 = vor.u32 %v10965_v4, %v9500_v45  ;;  %v9484_v45 = vld [vmem:[#allocation5 + $0x1320] sm:$0xf]  ;;  %v10961_v4 = vld [vmem:[#allocation5 + $0x1324] sm:$0xf0]  ;;  %v5476_v6 = vpop.f32.mrf.mxu3  ;;  %v11035_v2 = vld [vmem:[#allocation5 + $0x1574] sm:$0xf0] }
 0x141   :  { %5734 = vmatpush.bf16.msrb.mxu2 %v9517_v42  ;;  %v9364_v42 = vld [vmem:[#allocation5 + $0x1230] sm:$0xf]  ;;  %v9781_v23 = vor.u32 %v11035_v2, %v9780_v9  ;;  %v11049_v2 = vld [vmem:[#allocation5 + $0x15e4] sm:$0xf0]  ;;  %v11565_v9 = vpop.f32.mrf.mxu1 }
 0x142   :  { %5748 = vmatpush.bf16.msrb.mxu3 %v9581_v53  ;;  %v5449_v53 = vadd.f32 %v5448_v18, %v5435_v21  ;;  %v5462_v0 = vpop.f32.mrf.mxu2  ;;  %v10977_v21 = vld [vmem:[#allocation5 + $0x13a4] sm:$0xf0]  ;;  %v9348_v18 = vld [vmem:[#allocation5 + $0x1210] sm:$0xf]  ;;  %11899 = vst [vmem:[#allocation46_spill] sm:$0xff] %v11565_v9 }
 0x143   :  { %5707 = vmatpush.bf16.msrb.mxu0 %v9381_v37  ;;  %v9365_v37 = vor.u32 %v10931_v5, %v9364_v42  ;;  %v9485_v42 = vor.u32 %v10961_v4, %v9484_v45  ;;  %v10927_v5 = vld [vmem:[#allocation5 + $0x1214] sm:$0xf0]  ;;  %v9549_v30 = vor.u32 %v10977_v21, %v9548_v7  ;;  %v9532_v45 = vld [vmem:[#allocation5 + $0x1380] sm:$0xf]  ;;  %v10973_v4 = vld [vmem:[#allocation5 + $0x1384] sm:$0xf0] }
 0x144   :  { %5721 = vmatpush.bf16.msrb.mxu1 %v9445_v49  ;;  %v9493_v49 = vor.u32 %v10963_v3, %v9492_v54  ;;  %v5463_v16 = vadd.f32 %v5462_v0, %v5449_v53  ;;  %v9476_v54 = vld [vmem:[#allocation5 + $0x1310] sm:$0xf]  ;;  %v10959_v3 = vld [vmem:[#allocation5 + $0x1314] sm:$0xf0]  ;;  %v10925_v0 = vld [vmem:[#allocation5 + $0x1204] sm:$0xf0] }
 0x145   :  { %5735 = vmatpush.bf16.msrb.mxu2 %v9509_v27  ;;  %v9356_v27 = vld [vmem:[#allocation5 + $0x1220] sm:$0xf]  ;;  %v9540_v53 = vld [vmem:[#allocation5 + $0x1390] sm:$0xf]  ;;  %v11019_v21 = vld [vmem:[#allocation5 + $0x14f4] sm:$0xf0] }
 0x146   :  { %5749 = vmatpush.bf16.msrb.mxu3 %v9573_v8  ;;  %v10945_v8 = vld [vmem:[#allocation5 + $0x12a4] sm:$0xf0]  ;;  %v9716_v7 = vld [vmem:[#allocation5 + $0x14f0] sm:$0xf]  ;;  %v7006_v9 = vld [vmem:[#allocation2 + $0x170] sm:$0xf0] }
 0x147   :  { %5708 = vmatpush.bf16.msrb.mxu0 %v9373_v13  ;;  %v9357_v13 = vor.u32 %v10929_v57, %v9356_v27  ;;  %v9404_v27 = vld [vmem:[#allocation5 + $0x1280] sm:$0xf]  ;;  %v10957_v57 = vld [vmem:[#allocation5 + $0x1304] sm:$0xf0]  ;;  %v9717_v12 = vor.u32 %v11019_v21, %v9716_v7  ;;  %v10999_v7 = vld [vmem:[#allocation5 + $0x1454] sm:$0xf0] }
 0x148   :  { %5722 = vmatpush.bf16.msrb.mxu1 %v9437_v25  ;;  %v11555_v25 = vadd.f32 %v5476_v6, %v5463_v16  ;;  %v9541_v16 = vor.u32 %v10975_v28, %v9540_v53  ;;  %v11003_v6 = vld [vmem:[#allocation5 + $0x1474] sm:$0xf0]  ;;  %v6982_v53 = vld [vmem:[#allocation2 + $0x158] sm:$0xf0]  ;;  %v9700_v21 = vld [vmem:[#allocation5 + $0x14d0] sm:$0xf] }
 0x149   :  { %5736 = vmatpush.bf16.msrb.mxu2 %v9501_v50  ;;  %v9421_v50 = vor.u32 %v10945_v8, %v9420_v59  ;;  %v9477_v8 = vor.u32 %v10959_v3, %v9476_v54  ;;  %v10316_v54 = vld [vmem:[#allocation2 + $0x94] sm:$0xf]  ;;  %v10317_v28 = vld [vmem:[#allocation2 + $0x9c] sm:$0xf] }
 0x14a   :  { %5750 = vmatpush.bf16.msrb.mxu3 %v9565_v14  ;;  %v10943_v14 = vld [vmem:[#allocation5 + $0x1294] sm:$0xf0] }
 0x14b   :  { %5709 = vmatpush.bf16.msrb.mxu0 %v9365_v37  ;;  %v9349_v37 = vor.u32 %v10927_v5, %v9348_v18  ;;  %v9413_v59 = vor.u32 %v10943_v14, %v9412_v20  ;;  %v9341_v18 = vor.u32 %v10925_v0, %v9340_v52  ;;  %v11051_v5 = vld [vmem:[#allocation5 + $0x15f4] sm:$0xf0]  ;;  %v6988_v20 = vld [vmem:[#allocation2 + $0x98] sm:$0xf]  ;;  %v10342_v14 = vld [vmem:[#allocation2 + $0x15c] sm:$0xf0] }
 0x14c   :  { %5723 = vmatpush.bf16.msrb.mxu1 %v9429_v61  ;;  %v10941_v61 = vld [vmem:[#allocation5 + $0x1284] sm:$0xf0]  ;;  %v9708_v0 = vld [vmem:[#allocation5 + $0x14e0] sm:$0xf] }
 0x14d   :  { %5737 = vmatpush.bf16.msrb.mxu2 %v9493_v49  ;;  %v9468_v49 = vld [vmem:[#allocation5 + $0x1300] sm:$0xf]  ;;  %v11001_v52 = vld [vmem:[#allocation5 + $0x1464] sm:$0xf0] }
 0x14e   :  { %5751 = vmatpush.bf16.msrb.mxu3 %v9557_v11  ;;  %v9652_v11 = vld [vmem:[#allocation5 + $0x1470] sm:$0xf] }
 0x14f   :  { %5710 = vmatpush.bf16.msrb.mxu0 %v9357_v13  ;;  %v9844_v13 = vld [vmem:[#allocation5 + $0x15f0] sm:$0xf]  ;;  %v9653_v3 = vor.u32 %v11003_v6, %v9652_v11  ;;  %v11567_v11 = vor.u32 %v10317_v28, %v6990_v24  ;;  %v9756_v28 = vld [vmem:[#allocation5 + $0x1540] sm:$0xf] }
 0x150   :  { %5724 = vmatpush.bf16.msrb.mxu1 %v9421_v50  ;;  %v9405_v50 = vor.u32 %v10941_v61, %v9404_v27  ;;  %v9845_v15 = vor.u32 %v11051_v5, %v9844_v13  ;;  %v11017_v27 = vld [vmem:[#allocation5 + $0x14e4] sm:$0xf0]  ;;  %v9772_v61 = vld [vmem:[#allocation5 + $0x1560] sm:$0xf]  ;;  %v9636_v6 = vld [vmem:[#allocation5 + $0x1450] sm:$0xf] }
 0x151   :  { %5738 = vmatpush.bf16.msrb.mxu2 %v9485_v42  ;;  %v9469_v42 = vor.u32 %v10957_v57, %v9468_v49  ;;  %v11033_v49 = vld [vmem:[#allocation5 + $0x1564] sm:$0xf0]  ;;  %v11559_v57 = vpop.f32.mrf.mxu0  ;;  %11900 = vst [vmem:[#allocation47_spill] sm:$0xff] %v11567_v11  ;;  %v9764_v5 = vld [vmem:[#allocation5 + $0x1550] sm:$0xf] }
 0x152   :  { %5752 = vmatpush.bf16.msrb.mxu3 %v9549_v30  ;;  %v9533_v30 = vor.u32 %v10973_v4, %v9532_v45  ;;  %11896 = vst [vmem:[#allocation43_spill] sm:$0xff] %v11559_v57  ;;  %v11563_v45 = vor.u32 %v10316_v54, %v6982_v53  ;;  %v9836_v4 = vld [vmem:[#allocation5 + $0x15e0] sm:$0xf]  ;;  %v9828_v24 = vld [vmem:[#allocation5 + $0x15d0] sm:$0xf] }
 0x153   :  { %5711 = vmatpush.bf16.msrb.mxu0 %v9349_v37  ;;  %v9644_v37 = vld [vmem:[#allocation5 + $0x1460] sm:$0xf]  ;;  %v9837_v13 = vor.u32 %v11049_v2, %v9836_v4  ;;  %v11013_v53 = vld [vmem:[#allocation5 + $0x14c4] sm:$0xf0] }
 0x154   :  { %5725 = vmatpush.bf16.msrb.mxu1 %v9413_v59  ;;  %v11557_v59 = vor.u32 %v10341_v22, %v6980_v19  ;;  %11898 = vst [vmem:[#allocation45_spill] sm:$0xff] %v11563_v45  ;;  %v9645_v22 = vor.u32 %v11001_v52, %v9644_v37  ;;  %v9709_v19 = vor.u32 %v11017_v27, %v9708_v0  ;;  %v9692_v54 = vld [vmem:[#allocation5 + $0x14c0] sm:$0xf]  ;;  %v11029_v37 = vld [vmem:[#allocation5 + $0x1544] sm:$0xf0]  ;;  %v11575_v52 = vpop.f32.mrf.mxu3 }
 0x155   :  { %5739 = vmatpush.bf16.msrb.mxu2 %v9477_v8  ;;  %v11561_v8 = vor.u32 %v10342_v14, %v6988_v20  ;;  %v9628_v20 = vld [vmem:[#allocation5 + $0x1440] sm:$0xf]  ;;  %v10997_v14 = vld [vmem:[#allocation5 + $0x1444] sm:$0xf0]  ;;  %11902 = vst [vmem:[#allocation49_spill] sm:$0xff] %v11575_v52 }
 0x156   :  { %5753 = vmatpush.bf16.msrb.mxu3 %v9541_v16  ;;  %11895 = vst [vmem:[#allocation42_spill] sm:$0xff] %v11557_v59  ;;  %v9773_v16 = vor.u32 %v11033_v49, %v9772_v61  ;;  %v9820_v27 = vld [vmem:[#allocation5 + $0x15c0] sm:$0xf]  ;;  %v11045_v61 = vld [vmem:[#allocation5 + $0x15c4] sm:$0xf0]  ;;  %v9629_v4 = vor.u32 %v10997_v14, %v9628_v20 }
 0x157   :  { %5712 = vmatpush.bf16.msrb.mxu0 %v9341_v18  ;;  %11897 = vst [vmem:[#allocation44_spill] sm:$0xff] %v11561_v8  ;;  %v11015_v18 = vld [vmem:[#allocation5 + $0x14d4] sm:$0xf0]  ;;  %v10993_v20 = vld [vmem:[#allocation5 + $0x1424] sm:$0xf0] }
 0x158   :  { %5726 = vmatpush.bf16.msrb.mxu1 %v9405_v50  ;;  %v11031_v50 = vld [vmem:[#allocation5 + $0x1554] sm:$0xf0]  ;;  %v5504_v2 = vpop.f32.mrf.mxu1  ;;  %v9676_v14 = vld [vmem:[#allocation5 + $0x14a0] sm:$0xf]  ;;  %v6996_v52 = vld [vmem:[#allocation2 + $0xa0] sm:$0xf] }
 0x159   :  { %5740 = vmatpush.bf16.msrb.mxu2 %v9469_v42  ;;  %v11047_v42 = vld [vmem:[#allocation5 + $0x15d4] sm:$0xf0]  ;;  %v5490_v0 = vpop.f32.mrf.mxu0 }
 0x15a   :  { %5754 = vmatpush.bf16.msrb.mxu3 %v9533_v30  ;;  %5713 = vmatmul.bf16.vlgmr.msrb.gmra.mxu0 %v11557_v59  ;;  %v11573_v30 = vpop.f32.mrf.mxu2  ;;  %v5491_v49 = vadd.f32 %v5490_v0, %v11555_v25 }
 0x15b   :  { %5761 = vmatpush.bf16.msra.mxu0 %v9653_v3  ;;  %5727 = vmatmul.bf16.vlgmr.msrb.gmra.mxu1 %v11563_v45  ;;  %11901 = vst [vmem:[#allocation48_spill] sm:$0xff] %v11573_v30  ;;  %v9829_v3 = vor.u32 %v11047_v42, %v9828_v24  ;;  %v9812_v24 = vld [vmem:[#allocation5 + $0x15b0] sm:$0xf]  ;;  %v11043_v42 = vld [vmem:[#allocation5 + $0x15b4] sm:$0xf0] }
 0x15c   :  { %5775 = vmatpush.bf16.msra.mxu1 %v9717_v12  ;;  %5741 = vmatmul.bf16.vlgmr.msrb.gmra.mxu2 %v11561_v8  ;;  %v9637_v12 = vor.u32 %v10999_v7, %v9636_v6  ;;  %v10995_v6 = vld [vmem:[#allocation5 + $0x1434] sm:$0xf0]  ;;  %v9684_v7 = vld [vmem:[#allocation5 + $0x14b0] sm:$0xf] }
 0x15d   :  { %5789 = vmatpush.bf16.msra.mxu2 %v9781_v23  ;;  %5755 = vmatmul.bf16.vlgmr.msrb.gmra.mxu3 %v11567_v11  ;;  %v9701_v23 = vor.u32 %v11015_v18, %v9700_v21  ;;  %v9821_v21 = vor.u32 %v11045_v61, %v9820_v27  ;;  %v11011_v18 = vld [vmem:[#allocation5 + $0x14b4] sm:$0xf0]  ;;  %v9804_v61 = vld [vmem:[#allocation5 + $0x15a0] sm:$0xf]  ;;  %v10036_v11 = vld [vmem:[#allocation5 + $0x1770] sm:$0xf] }
 0x15e   :  { %5803 = vmatpush.bf16.msra.mxu3 %v9845_v15  ;;  %v9765_v15 = vor.u32 %v11031_v50, %v9764_v5  ;;  %v9748_v5 = vld [vmem:[#allocation5 + $0x1530] sm:$0xf]  ;;  %v11027_v50 = vld [vmem:[#allocation5 + $0x1534] sm:$0xf0]  ;;  %v9685_v25 = vor.u32 %v11011_v18, %v9684_v7 }
 0x15f   :  { %5762 = vmatpush.bf16.msra.mxu0 %v9645_v22  ;;  %v9693_v22 = vor.u32 %v11013_v53, %v9692_v54  ;;  %v9813_v54 = vor.u32 %v11043_v42, %v9812_v24  ;;  %v9668_v7 = vld [vmem:[#allocation5 + $0x1490] sm:$0xf]  ;;  %v11039_v24 = vld [vmem:[#allocation5 + $0x1594] sm:$0xf0]  ;;  %v9596_v42 = vld [vmem:[#allocation5 + $0x1400] sm:$0xf] }
 0x160   :  { %5776 = vmatpush.bf16.msra.mxu1 %v9709_v19  ;;  %v9757_v19 = vor.u32 %v11029_v37, %v9756_v28  ;;  %v9740_v28 = vld [vmem:[#allocation5 + $0x1520] sm:$0xf]  ;;  %v11025_v37 = vld [vmem:[#allocation5 + $0x1524] sm:$0xf0]  ;;  %v5532_v27 = vpop.f32.mrf.mxu3  ;;  %v11099_v8 = vld [vmem:[#allocation5 + $0x1774] sm:$0xf0] }
 0x161   :  { %5790 = vmatpush.bf16.msra.mxu2 %v9773_v16  ;;  %v9620_v16 = vld [vmem:[#allocation5 + $0x1430] sm:$0xf]  ;;  %v10343_v30 = vld [vmem:[#allocation2 + $0x164] sm:$0xf0]  ;;  %v10037_v45 = vor.u32 %v11099_v8, %v10036_v11  ;;  %v11113_v8 = vld [vmem:[#allocation5 + $0x17e4] sm:$0xf0]  ;;  %v11588_v11 = vpop.f32.mrf.mxu1 }
 0x162   :  { %5804 = vmatpush.bf16.msra.mxu3 %v9837_v13  ;;  %v5505_v13 = vadd.f32 %v5504_v2, %v5491_v49  ;;  %v5518_v53 = vpop.f32.mrf.mxu2  ;;  %v11041_v49 = vld [vmem:[#allocation5 + $0x15a4] sm:$0xf0]  ;;  %v9604_v2 = vld [vmem:[#allocation5 + $0x1410] sm:$0xf]  ;;  %11907 = vst [vmem:[#allocation54_spill] sm:$0xff] %v11588_v11 }
 0x163   :  { %5763 = vmatpush.bf16.msra.mxu0 %v9637_v12  ;;  %v9621_v12 = vor.u32 %v10995_v6, %v9620_v16  ;;  %v9741_v16 = vor.u32 %v11025_v37, %v9740_v28  ;;  %v10991_v6 = vld [vmem:[#allocation5 + $0x1414] sm:$0xf0]  ;;  %v9805_v18 = vor.u32 %v11041_v49, %v9804_v61  ;;  %v9788_v28 = vld [vmem:[#allocation5 + $0x1580] sm:$0xf]  ;;  %v11037_v37 = vld [vmem:[#allocation5 + $0x1584] sm:$0xf0] }
 0x164   :  { %5777 = vmatpush.bf16.msra.mxu1 %v9701_v23  ;;  %v9749_v23 = vor.u32 %v11027_v50, %v9748_v5  ;;  %v5519_v0 = vadd.f32 %v5518_v53, %v5505_v13  ;;  %v9732_v5 = vld [vmem:[#allocation5 + $0x1510] sm:$0xf]  ;;  %v11023_v50 = vld [vmem:[#allocation5 + $0x1514] sm:$0xf0]  ;;  %v10989_v53 = vld [vmem:[#allocation5 + $0x1404] sm:$0xf0] }
 0x165   :  { %5791 = vmatpush.bf16.msra.mxu2 %v9765_v15  ;;  %v9612_v15 = vld [vmem:[#allocation5 + $0x1420] sm:$0xf]  ;;  %v9796_v13 = vld [vmem:[#allocation5 + $0x1590] sm:$0xf]  ;;  %v11083_v49 = vld [vmem:[#allocation5 + $0x16f4] sm:$0xf0] }
 0x166   :  { %5805 = vmatpush.bf16.msra.mxu3 %v9829_v3  ;;  %v11009_v3 = vld [vmem:[#allocation5 + $0x14a4] sm:$0xf0]  ;;  %v9972_v61 = vld [vmem:[#allocation5 + $0x16f0] sm:$0xf] }
 0x167   :  { %5764 = vmatpush.bf16.msra.mxu0 %v9629_v4  ;;  %v9613_v4 = vor.u32 %v10993_v20, %v9612_v15  ;;  %v9660_v15 = vld [vmem:[#allocation5 + $0x1480] sm:$0xf]  ;;  %v11021_v20 = vld [vmem:[#allocation5 + $0x1504] sm:$0xf0]  ;;  %v9973_v57 = vor.u32 %v11083_v49, %v9972_v61  ;;  %v11063_v61 = vld [vmem:[#allocation5 + $0x1654] sm:$0xf0] }
 0x168   :  { %5778 = vmatpush.bf16.msra.mxu1 %v9693_v22  ;;  %v11578_v22 = vadd.f32 %v5532_v27, %v5519_v0  ;;  %v9797_v0 = vor.u32 %v11039_v24, %v9796_v13  ;;  %v11067_v27 = vld [vmem:[#allocation5 + $0x1674] sm:$0xf0]  ;;  %v6998_v13 = vld [vmem:[#allocation2 + $0x168] sm:$0xf0]  ;;  %v9956_v49 = vld [vmem:[#allocation5 + $0x16d0] sm:$0xf] }
 0x169   :  { %5792 = vmatpush.bf16.msra.mxu2 %v9757_v19  ;;  %v9677_v19 = vor.u32 %v11009_v3, %v9676_v14  ;;  %v9733_v3 = vor.u32 %v11023_v50, %v9732_v5  ;;  %v10318_v5 = vld [vmem:[#allocation2 + $0xa4] sm:$0xf]  ;;  %v10319_v24 = vld [vmem:[#allocation2 + $0xac] sm:$0xf] }
 0x16a   :  { %5806 = vmatpush.bf16.msra.mxu3 %v9821_v21  ;;  %v11007_v21 = vld [vmem:[#allocation5 + $0x1494] sm:$0xf0] }
 0x16b   :  { %5765 = vmatpush.bf16.msra.mxu0 %v9621_v12  ;;  %v9605_v12 = vor.u32 %v10991_v6, %v9604_v2  ;;  %v9669_v14 = vor.u32 %v11007_v21, %v9668_v7  ;;  %v9597_v2 = vor.u32 %v10989_v53, %v9596_v42  ;;  %v11115_v6 = vld [vmem:[#allocation5 + $0x17f4] sm:$0xf0]  ;;  %v10344_v21 = vld [vmem:[#allocation2 + $0x16c] sm:$0xf0]  ;;  %v11065_v42 = vld [vmem:[#allocation5 + $0x1664] sm:$0xf0] }
 0x16c   :  { %5779 = vmatpush.bf16.msra.mxu1 %v9685_v25  ;;  %v11005_v25 = vld [vmem:[#allocation5 + $0x1484] sm:$0xf0]  ;;  %v7004_v7 = vld [vmem:[#allocation2 + $0xa8] sm:$0xf]  ;;  %v9964_v53 = vld [vmem:[#allocation5 + $0x16e0] sm:$0xf] }
 0x16d   :  { %5793 = vmatpush.bf16.msra.mxu2 %v9749_v23  ;;  %v9724_v23 = vld [vmem:[#allocation5 + $0x1500] sm:$0xf] }
 0x16e   :  { %5807 = vmatpush.bf16.msra.mxu3 %v9813_v54  ;;  %v9908_v54 = vld [vmem:[#allocation5 + $0x1670] sm:$0xf] }
 0x16f   :  { %5766 = vmatpush.bf16.msra.mxu0 %v9613_v4  ;;  %v10100_v4 = vld [vmem:[#allocation5 + $0x17f0] sm:$0xf]  ;;  %v9909_v50 = vor.u32 %v11067_v27, %v9908_v54  ;;  %v11590_v54 = vor.u32 %v10319_v24, %v7006_v9  ;;  %v10012_v24 = vld [vmem:[#allocation5 + $0x1740] sm:$0xf] }
 0x170   :  { %5780 = vmatpush.bf16.msra.mxu1 %v9677_v19  ;;  %v9661_v19 = vor.u32 %v11005_v25, %v9660_v15  ;;  %v10101_v59 = vor.u32 %v11115_v6, %v10100_v4  ;;  %v11081_v15 = vld [vmem:[#allocation5 + $0x16e4] sm:$0xf0]  ;;  %v10028_v25 = vld [vmem:[#allocation5 + $0x1760] sm:$0xf]  ;;  %v9892_v27 = vld [vmem:[#allocation5 + $0x1650] sm:$0xf] }
 0x171   :  { %5794 = vmatpush.bf16.msra.mxu2 %v9741_v16  ;;  %v9725_v16 = vor.u32 %v11021_v20, %v9724_v23  ;;  %v11097_v23 = vld [vmem:[#allocation5 + $0x1764] sm:$0xf0]  ;;  %v11582_v20 = vpop.f32.mrf.mxu0  ;;  %11908 = vst [vmem:[#allocation55_spill] sm:$0xff] %v11590_v54  ;;  %v10020_v6 = vld [vmem:[#allocation5 + $0x1750] sm:$0xf] }
 0x172   :  { %5808 = vmatpush.bf16.msra.mxu3 %v9805_v18  ;;  %v9789_v18 = vor.u32 %v11037_v37, %v9788_v28  ;;  %11904 = vst [vmem:[#allocation51_spill] sm:$0xff] %v11582_v20  ;;  %v11586_v28 = vor.u32 %v10318_v5, %v6998_v13  ;;  %v10092_v37 = vld [vmem:[#allocation5 + $0x17e0] sm:$0xf]  ;;  %v10084_v9 = vld [vmem:[#allocation5 + $0x17d0] sm:$0xf] }
 0x173   :  { %5767 = vmatpush.bf16.msra.mxu0 %v9605_v12  ;;  %v9900_v12 = vld [vmem:[#allocation5 + $0x1660] sm:$0xf]  ;;  %v10093_v4 = vor.u32 %v11113_v8, %v10092_v37  ;;  %v11077_v13 = vld [vmem:[#allocation5 + $0x16c4] sm:$0xf0] }
 0x174   :  { %5781 = vmatpush.bf16.msra.mxu1 %v9669_v14  ;;  %v11580_v14 = vor.u32 %v10343_v30, %v6996_v52  ;;  %11906 = vst [vmem:[#allocation53_spill] sm:$0xff] %v11586_v28  ;;  %v9901_v30 = vor.u32 %v11065_v42, %v9900_v12  ;;  %v9965_v52 = vor.u32 %v11081_v15, %v9964_v53  ;;  %v9948_v5 = vld [vmem:[#allocation5 + $0x16c0] sm:$0xf]  ;;  %v11093_v12 = vld [vmem:[#allocation5 + $0x1744] sm:$0xf0]  ;;  %v11598_v42 = vpop.f32.mrf.mxu3 }
 0x175   :  { %5795 = vmatpush.bf16.msra.mxu2 %v9733_v3  ;;  %v11584_v3 = vor.u32 %v10344_v21, %v7004_v7  ;;  %v9884_v7 = vld [vmem:[#allocation5 + $0x1640] sm:$0xf]  ;;  %v11061_v21 = vld [vmem:[#allocation5 + $0x1644] sm:$0xf0]  ;;  %11910 = vst [vmem:[#allocation57_spill] sm:$0xff] %v11598_v42 }
 0x176   :  { %5809 = vmatpush.bf16.msra.mxu3 %v9797_v0  ;;  %11903 = vst [vmem:[#allocation50_spill] sm:$0xff] %v11580_v14  ;;  %v10029_v0 = vor.u32 %v11097_v23, %v10028_v25  ;;  %v10076_v15 = vld [vmem:[#allocation5 + $0x17c0] sm:$0xf]  ;;  %v11109_v25 = vld [vmem:[#allocation5 + $0x17c4] sm:$0xf0]  ;;  %v9885_v37 = vor.u32 %v11061_v21, %v9884_v7 }
 0x177   :  { %5768 = vmatpush.bf16.msra.mxu0 %v9597_v2  ;;  %11905 = vst [vmem:[#allocation52_spill] sm:$0xff] %v11584_v3  ;;  %v11079_v2 = vld [vmem:[#allocation5 + $0x16d4] sm:$0xf0]  ;;  %v11057_v7 = vld [vmem:[#allocation5 + $0x1624] sm:$0xf0] }
 0x178   :  { %5782 = vmatpush.bf16.msra.mxu1 %v9661_v19  ;;  %v11095_v19 = vld [vmem:[#allocation5 + $0x1754] sm:$0xf0]  ;;  %v5560_v8 = vpop.f32.mrf.mxu1  ;;  %v9932_v21 = vld [vmem:[#allocation5 + $0x16a0] sm:$0xf]  ;;  %v7022_v42 = vld [vmem:[#allocation2 + $0x180] sm:$0xf0] }
 0x179   :  { %5796 = vmatpush.bf16.msra.mxu2 %v9725_v16  ;;  %v11111_v16 = vld [vmem:[#allocation5 + $0x17d4] sm:$0xf0]  ;;  %v5546_v53 = vpop.f32.mrf.mxu0 }
 0x17a   :  { %5810 = vmatpush.bf16.msra.mxu3 %v9789_v18  ;;  %5769 = vmatmul.bf16.vlgmr.msra.gmra.mxu0 %v11580_v14  ;;  %v11596_v18 = vpop.f32.mrf.mxu2  ;;  %v5547_v23 = vadd.f32 %v5546_v53, %v11578_v22  ;;  %v10345_v14 = vld [vmem:[#allocation2 + $0x174] sm:$0xf0] }
 0x17b   :  { %5817 = vmatpush.bf16.msrb.mxu0 %v9909_v50  ;;  %5783 = vmatmul.bf16.vlgmr.msra.gmra.mxu1 %v11586_v28  ;;  %11909 = vst [vmem:[#allocation56_spill] sm:$0xff] %v11596_v18  ;;  %v10085_v50 = vor.u32 %v11111_v16, %v10084_v9  ;;  %v10068_v9 = vld [vmem:[#allocation5 + $0x17b0] sm:$0xf]  ;;  %v11107_v16 = vld [vmem:[#allocation5 + $0x17b4] sm:$0xf0] }
 0x17c   :  { %5831 = vmatpush.bf16.msrb.mxu1 %v9973_v57  ;;  %5797 = vmatmul.bf16.vlgmr.msra.gmra.mxu2 %v11584_v3  ;;  %v9893_v57 = vor.u32 %v11063_v61, %v9892_v27  ;;  %v11059_v27 = vld [vmem:[#allocation5 + $0x1634] sm:$0xf0]  ;;  %v9940_v61 = vld [vmem:[#allocation5 + $0x16b0] sm:$0xf]  ;;  %v7094_v3 = vld [vmem:[#allocation5 + $0x78] sm:$0xf0] }
 0x17d   :  { %5845 = vmatpush.bf16.msrb.mxu2 %v10037_v45  ;;  %5811 = vmatmul.bf16.vlgmr.msra.gmra.mxu3 %v11590_v54  ;;  %v9957_v45 = vor.u32 %v11079_v2, %v9956_v49  ;;  %v10077_v49 = vor.u32 %v11109_v25, %v10076_v15  ;;  %v11075_v2 = vld [vmem:[#allocation5 + $0x16b4] sm:$0xf0]  ;;  %v10060_v25 = vld [vmem:[#allocation5 + $0x17a0] sm:$0xf]  ;;  %v10362_v54 = vld [vmem:[#allocation5 + $0x74] sm:$0xf] }
 0x17e   :  { %5859 = vmatpush.bf16.msrb.mxu3 %v10101_v59  ;;  %v10021_v59 = vor.u32 %v11095_v19, %v10020_v6  ;;  %v10004_v6 = vld [vmem:[#allocation5 + $0x1730] sm:$0xf]  ;;  %v11091_v19 = vld [vmem:[#allocation5 + $0x1734] sm:$0xf0]  ;;  %v9941_v22 = vor.u32 %v11075_v2, %v9940_v61  ;;  %v7012_v28 = vld [vmem:[#allocation2 + $0xb0] sm:$0xf]  ;;  %v7097_v11 = vor.u32 %v10362_v54, %v7094_v3 }
 0x17f   :  { %5818 = vmatpush.bf16.msrb.mxu0 %v9901_v30  ;;  %v9949_v30 = vor.u32 %v11077_v13, %v9948_v5  ;;  %v10069_v5 = vor.u32 %v11107_v16, %v10068_v9  ;;  %v9924_v61 = vld [vmem:[#allocation5 + $0x1690] sm:$0xf]  ;;  %v11103_v9 = vld [vmem:[#allocation5 + $0x1794] sm:$0xf0]  ;;  %v9852_v16 = vld [vmem:[#allocation5 + $0x1600] sm:$0xf] }
 0x180   :  { %5832 = vmatpush.bf16.msrb.mxu1 %v9965_v52  ;;  %v10013_v52 = vor.u32 %v11093_v12, %v10012_v24  ;;  %v9996_v24 = vld [vmem:[#allocation5 + $0x1720] sm:$0xf]  ;;  %v11089_v12 = vld [vmem:[#allocation5 + $0x1724] sm:$0xf0]  ;;  %v5588_v15 = vpop.f32.mrf.mxu3  ;;  %v7150_v3 = vld [vmem:[#allocation5 + $0xe8] sm:$0xf0]  ;;  %v11611_v54 = vpop.f32.mrf.mxu1 }
 0x181   :  { %5846 = vmatpush.bf16.msrb.mxu2 %v10029_v0  ;;  %v9876_v0 = vld [vmem:[#allocation5 + $0x1630] sm:$0xf] }
 0x182   :  { %5860 = vmatpush.bf16.msrb.mxu3 %v10093_v4  ;;  %v5561_v4 = vadd.f32 %v5560_v8, %v5547_v23  ;;  %v5574_v13 = vpop.f32.mrf.mxu2  ;;  %v11105_v23 = vld [vmem:[#allocation5 + $0x17a4] sm:$0xf0]  ;;  %v9860_v8 = vld [vmem:[#allocation5 + $0x1610] sm:$0xf] }
 0x183   :  { %5819 = vmatpush.bf16.msrb.mxu0 %v9893_v57  ;;  %v9877_v57 = vor.u32 %v11059_v27, %v9876_v0  ;;  %v9997_v0 = vor.u32 %v11089_v12, %v9996_v24  ;;  %v11055_v27 = vld [vmem:[#allocation5 + $0x1614] sm:$0xf0]  ;;  %v10061_v2 = vor.u32 %v11105_v23, %v10060_v25  ;;  %v10044_v24 = vld [vmem:[#allocation5 + $0x1780] sm:$0xf]  ;;  %v11101_v12 = vld [vmem:[#allocation5 + $0x1784] sm:$0xf0] }
 0x184   :  { %5833 = vmatpush.bf16.msrb.mxu1 %v9957_v45  ;;  %v10005_v45 = vor.u32 %v11091_v19, %v10004_v6  ;;  %v5575_v53 = vadd.f32 %v5574_v13, %v5561_v4  ;;  %v9988_v6 = vld [vmem:[#allocation5 + $0x1710] sm:$0xf]  ;;  %v11087_v19 = vld [vmem:[#allocation5 + $0x1714] sm:$0xf0]  ;;  %v11053_v13 = vld [vmem:[#allocation5 + $0x1604] sm:$0xf0] }
 0x185   :  { %5847 = vmatpush.bf16.msrb.mxu2 %v10021_v59  ;;  %v9868_v59 = vld [vmem:[#allocation5 + $0x1620] sm:$0xf]  ;;  %v10052_v4 = vld [vmem:[#allocation5 + $0x1790] sm:$0xf]  ;;  %v11147_v23 = vld [vmem:[#allocation5 + $0x18f4] sm:$0xf0] }
 0x186   :  { %5861 = vmatpush.bf16.msrb.mxu3 %v10085_v50  ;;  %v11073_v50 = vld [vmem:[#allocation5 + $0x16a4] sm:$0xf0]  ;;  %v10228_v25 = vld [vmem:[#allocation5 + $0x18f0] sm:$0xf] }
 0x187   :  { %5820 = vmatpush.bf16.msrb.mxu0 %v9885_v37  ;;  %v9869_v37 = vor.u32 %v11057_v7, %v9868_v59  ;;  %v9916_v59 = vld [vmem:[#allocation5 + $0x1680] sm:$0xf]  ;;  %v11085_v7 = vld [vmem:[#allocation5 + $0x1704] sm:$0xf0]  ;;  %v10229_v18 = vor.u32 %v11147_v23, %v10228_v25  ;;  %v11127_v25 = vld [vmem:[#allocation5 + $0x1854] sm:$0xf0] }
 0x188   :  { %5834 = vmatpush.bf16.msrb.mxu1 %v9949_v30  ;;  %v11601_v30 = vadd.f32 %v5588_v15, %v5575_v53  ;;  %v10053_v53 = vor.u32 %v11103_v9, %v10052_v4  ;;  %v11131_v15 = vld [vmem:[#allocation5 + $0x1874] sm:$0xf0]  ;;  %v7014_v4 = vld [vmem:[#allocation2 + $0x178] sm:$0xf0]  ;;  %v10212_v23 = vld [vmem:[#allocation5 + $0x18d0] sm:$0xf] }
 0x189   :  { %5848 = vmatpush.bf16.msrb.mxu2 %v10013_v52  ;;  %v9933_v52 = vor.u32 %v11073_v50, %v9932_v21  ;;  %v9989_v50 = vor.u32 %v11087_v19, %v9988_v6  ;;  %v10320_v6 = vld [vmem:[#allocation2 + $0xb4] sm:$0xf]  ;;  %v10321_v9 = vld [vmem:[#allocation2 + $0xbc] sm:$0xf] }
 0x18a   :  { %5862 = vmatpush.bf16.msrb.mxu3 %v10077_v49  ;;  %v11071_v49 = vld [vmem:[#allocation5 + $0x1694] sm:$0xf0] }
 0x18b   :  { %5821 = vmatpush.bf16.msrb.mxu0 %v9877_v57  ;;  %v9861_v57 = vor.u32 %v11055_v27, %v9860_v8  ;;  %v9925_v21 = vor.u32 %v11071_v49, %v9924_v61  ;;  %v9853_v8 = vor.u32 %v11053_v13, %v9852_v16  ;;  %v7158_v27 = vld [vmem:[#allocation5 + $0xf8] sm:$0xf0]  ;;  %v7020_v61 = vld [vmem:[#allocation2 + $0xb8] sm:$0xf]  ;;  %v10346_v49 = vld [vmem:[#allocation2 + $0x17c] sm:$0xf0] }
 0x18c   :  { %5835 = vmatpush.bf16.msrb.mxu1 %v9941_v22  ;;  %v11069_v22 = vld [vmem:[#allocation5 + $0x1684] sm:$0xf0]  ;;  %v10220_v13 = vld [vmem:[#allocation5 + $0x18e0] sm:$0xf] }
 0x18d   :  { %5849 = vmatpush.bf16.msrb.mxu2 %v10005_v45  ;;  %v9980_v45 = vld [vmem:[#allocation5 + $0x1700] sm:$0xf]  ;;  %v11129_v16 = vld [vmem:[#allocation5 + $0x1864] sm:$0xf0] }
 0x18e   :  { %5863 = vmatpush.bf16.msrb.mxu3 %v10069_v5  ;;  %v10164_v5 = vld [vmem:[#allocation5 + $0x1870] sm:$0xf] }
 0x18f   :  { %5822 = vmatpush.bf16.msrb.mxu0 %v9869_v37  ;;  %v10378_v37 = vld [vmem:[#allocation5 + $0xf4] sm:$0xf]  ;;  %v10165_v19 = vor.u32 %v11131_v15, %v10164_v5  ;;  %v11613_v5 = vor.u32 %v10321_v9, %v7022_v42  ;;  %v10148_v15 = vld [vmem:[#allocation5 + $0x1850] sm:$0xf]  ;;  %v10356_v9 = vld [vmem:[#allocation5 + $0x44] sm:$0xf] }
 0x190   :  { %5836 = vmatpush.bf16.msrb.mxu1 %v9933_v52  ;;  %v9917_v52 = vor.u32 %v11069_v22, %v9916_v59  ;;  %v7161_v20 = vor.u32 %v10378_v37, %v7158_v27  ;;  %v11145_v59 = vld [vmem:[#allocation5 + $0x18e4] sm:$0xf0]  ;;  %v10360_v22 = vld [vmem:[#allocation5 + $0x64] sm:$0xf]  ;;  %v10358_v27 = vld [vmem:[#allocation5 + $0x54] sm:$0xf] }
 0x191   :  { %5850 = vmatpush.bf16.msrb.mxu2 %v9997_v0  ;;  %v9981_v0 = vor.u32 %v11085_v7, %v9980_v45  ;;  %v7086_v45 = vld [vmem:[#allocation5 + $0x68] sm:$0xf0]  ;;  %v11605_v7 = vpop.f32.mrf.mxu0  ;;  %11914 = vst [vmem:[#allocation61_spill] sm:$0xff] %v11613_v5  ;;  %v10374_v42 = vld [vmem:[#allocation5 + $0xd4] sm:$0xf] }
 0x192   :  { %5864 = vmatpush.bf16.msrb.mxu3 %v10061_v2  ;;  %v10045_v2 = vor.u32 %v11101_v12, %v10044_v24  ;;  %v11609_v24 = vor.u32 %v10320_v6, %v7014_v4  ;;  %v10376_v12 = vld [vmem:[#allocation5 + $0xe4] sm:$0xf]  ;;  %v10204_v6 = vld [vmem:[#allocation5 + $0x18c0] sm:$0xf]  ;;  %v11141_v4 = vld [vmem:[#allocation5 + $0x18c4] sm:$0xf0] }
 0x193   :  { %5823 = vmatpush.bf16.msrb.mxu0 %v9861_v57  ;;  %v10156_v57 = vld [vmem:[#allocation5 + $0x1860] sm:$0xf]  ;;  %v7153_v37 = vor.u32 %v10376_v12, %v7150_v3 }
 0x194   :  { %5837 = vmatpush.bf16.msrb.mxu1 %v9925_v21  ;;  %v11603_v21 = vor.u32 %v10345_v14, %v7012_v28  ;;  %11913 = vst [vmem:[#allocation60_spill] sm:$0xff] %v11609_v24  ;;  %v10157_v14 = vor.u32 %v11129_v16, %v10156_v57  ;;  %v10221_v28 = vor.u32 %v11145_v59, %v10220_v13  ;;  %v7070_v57 = vld [vmem:[#allocation5 + $0x48] sm:$0xf0]  ;;  %v11621_v16 = vpop.f32.mrf.mxu3  ;;  %v10372_v59 = vld [vmem:[#allocation5 + $0xc4] sm:$0xf] }
 0x195   :  { %5851 = vmatpush.bf16.msrb.mxu2 %v9989_v50  ;;  %v11607_v50 = vor.u32 %v10346_v49, %v7020_v61  ;;  %v10140_v61 = vld [vmem:[#allocation5 + $0x1840] sm:$0xf]  ;;  %v11125_v49 = vld [vmem:[#allocation5 + $0x1844] sm:$0xf0]  ;;  %11915 = vst [vmem:[#allocation62_spill] sm:$0xff] %v11621_v16 }
 0x196   :  { %5865 = vmatpush.bf16.msrb.mxu3 %v10053_v53  ;;  %11911 = vst [vmem:[#allocation58_spill] sm:$0xff] %v11603_v21  ;;  %v7089_v53 = vor.u32 %v10360_v22, %v7086_v45  ;;  %v7134_v22 = vld [vmem:[#allocation5 + $0xc8] sm:$0xf0]  ;;  %v10141_v12 = vor.u32 %v11125_v49, %v10140_v61  ;;  %v11121_v61 = vld [vmem:[#allocation5 + $0x1824] sm:$0xf0] }
 0x197   :  { %5824 = vmatpush.bf16.msrb.mxu0 %v9853_v8  ;;  %11912 = vst [vmem:[#allocation59_spill] sm:$0xff] %v11607_v50  ;;  %v11143_v8 = vld [vmem:[#allocation5 + $0x18d4] sm:$0xf0]  ;;  %v10188_v49 = vld [vmem:[#allocation5 + $0x18a0] sm:$0xf] }
 0x198   :  { %5838 = vmatpush.bf16.msrb.mxu1 %v9917_v52  ;;  %v7078_v52 = vld [vmem:[#allocation5 + $0x58] sm:$0xf0]  ;;  %v5616_v3 = vpop.f32.mrf.mxu1 }
 0x199   :  { %5852 = vmatpush.bf16.msrb.mxu2 %v9981_v0  ;;  %v7142_v0 = vld [vmem:[#allocation5 + $0xd8] sm:$0xf0]  ;;  %v5602_v13 = vpop.f32.mrf.mxu0 }
 0x19a   :  { %5866 = vmatpush.bf16.msrb.mxu3 %v10045_v2  ;;  %5825 = vmatmul.bf16.vlgmr.msrb.gmra.mxu0 %v11603_v21  ;;  %v11619_v2 = vpop.f32.mrf.mxu2  ;;  %v5603_v45 = vadd.f32 %v5602_v13, %v11601_v30  ;;  %v10392_v21 = vld [vmem:[#allocation5 + $0x164] sm:$0xf] }
 0x19b   :  { %5873 = vmatpush.bf16.msra.mxu0 %v10165_v19  ;;  %5839 = vmatmul.bf16.vlgmr.msrb.gmra.mxu1 %v11609_v24  ;;  %v7145_v19 = vor.u32 %v10374_v42, %v7142_v0  ;;  %v10370_v42 = vld [vmem:[#allocation5 + $0xb4] sm:$0xf]  ;;  %v7126_v0 = vld [vmem:[#allocation5 + $0xb8] sm:$0xf0] }
 0x19c   :  { %5887 = vmatpush.bf16.msra.mxu1 %v10229_v18  ;;  %5853 = vmatmul.bf16.vlgmr.msrb.gmra.mxu2 %v11607_v50  ;;  %v10213_v18 = vor.u32 %v11143_v8, %v10212_v23  ;;  %v7137_v23 = vor.u32 %v10372_v59, %v7134_v22  ;;  %v11139_v8 = vld [vmem:[#allocation5 + $0x18b4] sm:$0xf0]  ;;  %v10368_v22 = vld [vmem:[#allocation5 + $0xa4] sm:$0xf] }
 0x19d   :  { %5901 = vmatpush.bf16.msra.mxu2 %v7097_v11  ;;  %5867 = vmatmul.bf16.vlgmr.msrb.gmra.mxu3 %v11613_v5  ;;  %v10149_v11 = vor.u32 %v11127_v25, %v10148_v15  ;;  %v11123_v15 = vld [vmem:[#allocation5 + $0x1834] sm:$0xf0]  ;;  %v10196_v25 = vld [vmem:[#allocation5 + $0x18b0] sm:$0xf]  ;;  %v10442_v5 = vld [vmem:[#allocation5 + $0x2f4] sm:$0xf] }
 0x19e   :  { %5915 = vmatpush.bf16.msra.mxu3 %v7161_v20  ;;  %v7081_v20 = vor.u32 %v10358_v27, %v7078_v52  ;;  %v10354_v27 = vld [vmem:[#allocation5 + $0x34] sm:$0xf]  ;;  %v7062_v52 = vld [vmem:[#allocation5 + $0x38] sm:$0xf0]  ;;  %v10197_v30 = vor.u32 %v11139_v8, %v10196_v25  ;;  %v10180_v25 = vld [vmem:[#allocation5 + $0x1890] sm:$0xf] }
 0x19f   :  { %5874 = vmatpush.bf16.msra.mxu0 %v10157_v14  ;;  %v10205_v14 = vor.u32 %v11141_v4, %v10204_v6  ;;  %v7129_v6 = vor.u32 %v10370_v42, %v7126_v0  ;;  %v11135_v8 = vld [vmem:[#allocation5 + $0x1894] sm:$0xf0]  ;;  %v7110_v42 = vld [vmem:[#allocation5 + $0x98] sm:$0xf0] }
 0x1a0   :  { %5888 = vmatpush.bf16.msra.mxu1 %v10221_v28  ;;  %v7073_v28 = vor.u32 %v10356_v9, %v7070_v57  ;;  %v10352_v9 = vld [vmem:[#allocation5 + $0x24] sm:$0xf]  ;;  %v7054_v57 = vld [vmem:[#allocation5 + $0x28] sm:$0xf0]  ;;  %v5644_v59 = vpop.f32.mrf.mxu3 }
 0x1a1   :  { %5902 = vmatpush.bf16.msra.mxu2 %v7089_v53  ;;  %v10132_v53 = vld [vmem:[#allocation5 + $0x1830] sm:$0xf] }
 0x1a2   :  { %5916 = vmatpush.bf16.msra.mxu3 %v7153_v37  ;;  %v5617_v37 = vadd.f32 %v5616_v3, %v5603_v45  ;;  %v5630_v4 = vpop.f32.mrf.mxu2  ;;  %v7118_v45 = vld [vmem:[#allocation5 + $0xa8] sm:$0xf0] }
 0x1a3   :  { %5875 = vmatpush.bf16.msra.mxu0 %v10149_v11  ;;  %v10133_v11 = vor.u32 %v11123_v15, %v10132_v53  ;;  %v10116_v53 = vld [vmem:[#allocation5 + $0x1810] sm:$0xf]  ;;  %v11119_v15 = vld [vmem:[#allocation5 + $0x1814] sm:$0xf0] }
 0x1a4   :  { %5889 = vmatpush.bf16.msra.mxu1 %v10213_v18  ;;  %v7065_v18 = vor.u32 %v10354_v27, %v7062_v52  ;;  %v5631_v13 = vadd.f32 %v5630_v4, %v5617_v37  ;;  %v10350_v27 = vld [vmem:[#allocation5 + $0x14] sm:$0xf]  ;;  %v7046_v52 = vld [vmem:[#allocation5 + $0x18] sm:$0xf0]  ;;  %v10117_v0 = vor.u32 %v11119_v15, %v10116_v53  ;;  %v10348_v4 = vld [vmem:[#allocation5 + $0x4] sm:$0xf] }
 0x1a5   :  { %5903 = vmatpush.bf16.msra.mxu2 %v7081_v20  ;;  %v10124_v20 = vld [vmem:[#allocation5 + $0x1820] sm:$0xf]  ;;  %v10366_v37 = vld [vmem:[#allocation5 + $0x94] sm:$0xf]  ;;  %v7350_v15 = vld [vmem:[#allocation5 + $0x278] sm:$0xf0] }
 0x1a6   :  { %5917 = vmatpush.bf16.msra.mxu3 %v7145_v19  ;;  %v11137_v19 = vld [vmem:[#allocation5 + $0x18a4] sm:$0xf0]  ;;  %v11624_v3 = vadd.f32 %v5644_v59, %v5631_v13  ;;  %v10394_v13 = vld [vmem:[#allocation5 + $0x174] sm:$0xf]  ;;  %v7222_v59 = vld [vmem:[#allocation5 + $0x178] sm:$0xf0] }
 0x1a7   :  { %5876 = vmatpush.bf16.msra.mxu0 %v10141_v12  ;;  %v10125_v12 = vor.u32 %v11121_v61, %v10124_v20  ;;  %v11117_v20 = vld [vmem:[#allocation5 + $0x1804] sm:$0xf0]  ;;  %v7049_v61 = vor.u32 %v10350_v27, %v7046_v52  ;;  %v10426_v53 = vld [vmem:[#allocation5 + $0x274] sm:$0xf]  ;;  %v10347_v27 = vld [vmem:[#allocation2 + $0x184] sm:$0xf0]  ;;  %v7225_v52 = vor.u32 %v10394_v13, %v7222_v59 }
 0x1a8   :  { %5890 = vmatpush.bf16.msra.mxu1 %v10205_v14  ;;  %v10189_v14 = vor.u32 %v11137_v19, %v10188_v49  ;;  %v11133_v49 = vld [vmem:[#allocation5 + $0x1884] sm:$0xf0]  ;;  %v7038_v19 = vld [vmem:[#allocation5 + $0x8] sm:$0xf0]  ;;  %v7353_v24 = vor.u32 %v10426_v53, %v7350_v15  ;;  %v10390_v59 = vld [vmem:[#allocation5 + $0x154] sm:$0xf] }
 0x1a9   :  { %5904 = vmatpush.bf16.msra.mxu2 %v7073_v28  ;;  %v7057_v28 = vor.u32 %v10352_v9, %v7054_v57  ;;  %v10364_v9 = vld [vmem:[#allocation5 + $0x84] sm:$0xf]  ;;  %v7102_v57 = vld [vmem:[#allocation5 + $0x88] sm:$0xf0]  ;;  %v7270_v53 = vld [vmem:[#allocation5 + $0x1d8] sm:$0xf0] }
 0x1aa   :  { %5918 = vmatpush.bf16.msra.mxu3 %v7137_v23  ;;  %v7121_v23 = vor.u32 %v10368_v22, %v7118_v45  ;;  %v10410_v22 = vld [vmem:[#allocation5 + $0x1f4] sm:$0xf]  ;;  %v7286_v45 = vld [vmem:[#allocation5 + $0x1f8] sm:$0xf0] }
 0x1ab   :  { %5877 = vmatpush.bf16.msra.mxu0 %v10133_v11  ;;  %v10108_v11 = vld [vmem:[#allocation5 + $0x1800] sm:$0xf]  ;;  %v7289_v50 = vor.u32 %v10410_v22, %v7286_v45  ;;  %v7206_v22 = vld [vmem:[#allocation5 + $0x158] sm:$0xf0]  ;;  %v10406_v45 = vld [vmem:[#allocation5 + $0x1d4] sm:$0xf] }
 0x1ac   :  { %5891 = vmatpush.bf16.msra.mxu1 %v10197_v30  ;;  %v10172_v30 = vld [vmem:[#allocation5 + $0x1880] sm:$0xf]  ;;  %v10422_v15 = vld [vmem:[#allocation5 + $0x254] sm:$0xf] }
 0x1ad   :  { %5905 = vmatpush.bf16.msra.mxu2 %v7065_v18  ;;  %v10181_v18 = vor.u32 %v11135_v8, %v10180_v25  ;;  %v7414_v25 = vld [vmem:[#allocation5 + $0x2f8] sm:$0xf0]  ;;  %v7028_v8 = vld [vmem:[#allocation2 + $0xc0] sm:$0xf] }
 0x1ae   :  { %5919 = vmatpush.bf16.msra.mxu3 %v7129_v6  ;;  %v7113_v6 = vor.u32 %v10366_v37, %v7110_v42  ;;  %v10322_v37 = vld [vmem:[#allocation2 + $0xc4] sm:$0xf]  ;;  %v7030_v42 = vld [vmem:[#allocation2 + $0x188] sm:$0xf0]  ;;  %v11626_v16 = vor.u32 %v10347_v27, %v7028_v8  ;;  %v10388_v8 = vld [vmem:[#allocation5 + $0x144] sm:$0xf] }
 0x1af   :  { %5878 = vmatpush.bf16.msra.mxu0 %v10125_v12  ;;  %v10109_v12 = vor.u32 %v11117_v20, %v10108_v11  ;;  %v10408_v11 = vld [vmem:[#allocation5 + $0x1e4] sm:$0xf]  ;;  %v7417_v20 = vor.u32 %v10442_v5, %v7414_v25  ;;  %v7398_v25 = vld [vmem:[#allocation5 + $0x2d8] sm:$0xf0]  ;;  %v7198_v27 = vld [vmem:[#allocation5 + $0x148] sm:$0xf0] }
 0x1b0   :  { %5892 = vmatpush.bf16.msra.mxu1 %v10189_v14  ;;  %v10173_v14 = vor.u32 %v11133_v49, %v10172_v30  ;;  %11916 = vst [vmem:[#allocation63_spill] sm:$0xff] %v11626_v16  ;;  %v10424_v30 = vld [vmem:[#allocation5 + $0x264] sm:$0xf]  ;;  %v11628_v49 = vpop.f32.mrf.mxu0 }
 0x1b1   :  { %5906 = vmatpush.bf16.msra.mxu2 %v7057_v28  ;;  %v7041_v28 = vor.u32 %v10348_v4, %v7038_v19  ;;  %v11630_v4 = vor.u32 %v10322_v37, %v7030_v42  ;;  %v10440_v19 = vld [vmem:[#allocation5 + $0x2e4] sm:$0xf]  ;;  %v7262_v42 = vld [vmem:[#allocation5 + $0x1c8] sm:$0xf0] }
 0x1b2   :  { %5920 = vmatpush.bf16.msra.mxu3 %v7121_v23  ;;  %v7105_v23 = vor.u32 %v10364_v9, %v7102_v57  ;;  %v11632_v9 = vpop.f32.mrf.mxu1 }
 0x1b3   :  { %5879 = vmatpush.bf16.msra.mxu0 %v10117_v0  ;;  %v7214_v0 = vld [vmem:[#allocation5 + $0x168] sm:$0xf0]  ;;  %11917 = vst [vmem:[#allocation64_spill] sm:$0xff] %v11630_v4 }
 0x1b4   :  { %5893 = vmatpush.bf16.msra.mxu1 %v10181_v18  ;;  %v7278_v18 = vld [vmem:[#allocation5 + $0x1e8] sm:$0xf0]  ;;  %v7217_v57 = vor.u32 %v10392_v21, %v7214_v0  ;;  %v7209_v21 = vor.u32 %v10390_v59, %v7206_v22  ;;  %v10420_v0 = vld [vmem:[#allocation5 + $0x244] sm:$0xf]  ;;  %v10402_v59 = vld [vmem:[#allocation5 + $0x1b4] sm:$0xf] }
 0x1b5   :  { %5907 = vmatpush.bf16.msra.mxu2 %v7049_v61  ;;  %v7342_v61 = vld [vmem:[#allocation5 + $0x268] sm:$0xf0]  ;;  %v7281_v5 = vor.u32 %v10408_v11, %v7278_v18  ;;  %v10436_v18 = vld [vmem:[#allocation5 + $0x2c4] sm:$0xf] }
 0x1b6   :  { %5921 = vmatpush.bf16.msra.mxu3 %v7113_v6  ;;  %v7406_v6 = vld [vmem:[#allocation5 + $0x2e8] sm:$0xf0]  ;;  %v7345_v13 = vor.u32 %v10424_v30, %v7342_v61  ;;  %v7201_v61 = vor.u32 %v10388_v8, %v7198_v27  ;;  %v10400_v8 = vld [vmem:[#allocation5 + $0x1a4] sm:$0xf] }
 0x1b7   :  { %5880 = vmatpush.bf16.msra.mxu0 %v10109_v12  ;;  %v7409_v12 = vor.u32 %v10440_v19, %v7406_v6  ;;  %v7326_v11 = vld [vmem:[#allocation5 + $0x248] sm:$0xf0] }
 0x1b8   :  { %5894 = vmatpush.bf16.msra.mxu1 %v10173_v14  ;;  %v7334_v14 = vld [vmem:[#allocation5 + $0x258] sm:$0xf0]  ;;  %v7390_v30 = vld [vmem:[#allocation5 + $0x2c8] sm:$0xf0] }
 0x1b9   :  { %5908 = vmatpush.bf16.msra.mxu2 %v7041_v28  ;;  %v10438_v28 = vld [vmem:[#allocation5 + $0x2d4] sm:$0xf]  ;;  %v7393_v22 = vor.u32 %v10436_v18, %v7390_v30  ;;  %v10432_v18 = vld [vmem:[#allocation5 + $0x2a4] sm:$0xf]  ;;  %v7374_v30 = vld [vmem:[#allocation5 + $0x2a8] sm:$0xf0] }
 0x1ba   :  { %5922 = vmatpush.bf16.msra.mxu3 %v7105_v23  ;;  %5881 = vmatmul.bf16.vlgmr.msra.gmra.mxu0 %v11626_v16  ;;  %v10404_v23 = vld [vmem:[#allocation5 + $0x1c4] sm:$0xf]  ;;  %v7401_v37 = vor.u32 %v10438_v28, %v7398_v25  ;;  %v5672_v19 = vpop.f32.mrf.mxu1  ;;  %v7382_v28 = vld [vmem:[#allocation5 + $0x2b8] sm:$0xf0]  ;;  %v7598_v16 = vld [vmem:[#allocation5 + $0x468] sm:$0xf0] }
 0x1bb   :  { %5929 = vmatpush.bf16.msrb.mxu0 %v7225_v52  ;;  %5895 = vmatmul.bf16.vlgmr.msra.gmra.mxu1 %v11630_v4  ;;  %v11638_v52 = vpop.f32.mrf.mxu2  ;;  %v7265_v6 = vor.u32 %v10404_v23, %v7262_v42  ;;  %v10416_v42 = vld [vmem:[#allocation5 + $0x224] sm:$0xf] }
 0x1bc   :  { %5943 = vmatpush.bf16.msrb.mxu1 %v7289_v50  ;;  %5909 = vmatmul.bf16.vlgmr.msra.gmra.mxu2 %v11398_v58  ;;  %v7273_v50 = vor.u32 %v10406_v45, %v7270_v53  ;;  %v5658_v58 = vpop.f32.mrf.mxu0  ;;  %v10418_v53 = vld [vmem:[#allocation5 + $0x234] sm:$0xf]  ;;  %v10472_v4 = vld [vmem:[#allocation5 + $0x3e4] sm:$0xf] }
 0x1bd   :  { %5957 = vmatpush.bf16.msrb.mxu2 %v7353_v24  ;;  %5923 = vmatmul.bf16.vlgmr.msra.gmra.mxu3 %v11404_v10  ;;  %v7337_v24 = vor.u32 %v10422_v15, %v7334_v14  ;;  %v5659_v10 = vadd.f32 %v5658_v58, %v11624_v3  ;;  %v7318_v15 = vld [vmem:[#allocation5 + $0x238] sm:$0xf0]  ;;  %v10434_v14 = vld [vmem:[#allocation5 + $0x2b4] sm:$0xf] }
 0x1be   :  { %5971 = vmatpush.bf16.msrb.mxu3 %v7417_v20  ;;  %v11640_v20 = vpop.f32.mrf.mxu3  ;;  %v7385_v27 = vor.u32 %v10434_v14, %v7382_v28  ;;  %v10380_v28 = vld [vmem:[#allocation5 + $0x104] sm:$0xf] }
 0x1bf   :  { %5930 = vmatpush.bf16.msrb.mxu0 %v7217_v57  ;;  %11918 = vst [vmem:[#allocation65_spill] sm:$0xff] %v11640_v20  ;;  %v7329_v57 = vor.u32 %v10420_v0, %v7326_v11  ;;  %v5673_v45 = vadd.f32 %v5672_v19, %v5659_v10  ;;  %v7310_v0 = vld [vmem:[#allocation5 + $0x228] sm:$0xf0] }
 0x1c0   :  { %5944 = vmatpush.bf16.msrb.mxu1 %v7281_v5  ;;  %v10386_v5 = vld [vmem:[#allocation5 + $0x134] sm:$0xf] }
 0x1c1   :  { %5958 = vmatpush.bf16.msrb.mxu2 %v7345_v13  ;;  %v7190_v13 = vld [vmem:[#allocation5 + $0x138] sm:$0xf0] }
 0x1c2   :  { %5972 = vmatpush.bf16.msrb.mxu3 %v7409_v12  ;;  %v7254_v12 = vld [vmem:[#allocation5 + $0x1b8] sm:$0xf0]  ;;  %v7193_v25 = vor.u32 %v10386_v5, %v7190_v13  ;;  %v10398_v13 = vld [vmem:[#allocation5 + $0x194] sm:$0xf] }
 0x1c3   :  { %5931 = vmatpush.bf16.msrb.mxu0 %v7209_v21  ;;  %v7257_v3 = vor.u32 %v10402_v59, %v7254_v12  ;;  %v7321_v21 = vor.u32 %v10418_v53, %v7318_v15  ;;  %v5686_v23 = vpop.f32.mrf.mxu2  ;;  %v7174_v5 = vld [vmem:[#allocation5 + $0x118] sm:$0xf0]  ;;  %v7377_v59 = vor.u32 %v10432_v18, %v7374_v30  ;;  %v10414_v12 = vld [vmem:[#allocation5 + $0x214] sm:$0xf] }
 0x1c4   :  { %5945 = vmatpush.bf16.msrb.mxu1 %v7273_v50  ;;  %v10384_v50 = vld [vmem:[#allocation5 + $0x124] sm:$0xf]  ;;  %v5687_v11 = vadd.f32 %v5686_v23, %v5673_v45  ;;  %v7302_v53 = vld [vmem:[#allocation5 + $0x218] sm:$0xf0]  ;;  %v10430_v45 = vld [vmem:[#allocation5 + $0x294] sm:$0xf]  ;;  %v11645_v20 = vpop.f32.mrf.mxu0 }
 0x1c5   :  { %5959 = vmatpush.bf16.msrb.mxu2 %v7337_v24  ;;  %v7182_v24 = vld [vmem:[#allocation5 + $0x128] sm:$0xf0]  ;;  %v7366_v15 = vld [vmem:[#allocation5 + $0x298] sm:$0xf0] }
 0x1c6   :  { %5973 = vmatpush.bf16.msrb.mxu3 %v7401_v37  ;;  %v7246_v37 = vld [vmem:[#allocation5 + $0x1a8] sm:$0xf0]  ;;  %v5700_v58 = vpop.f32.mrf.mxu3  ;;  %v7185_v10 = vor.u32 %v10384_v50, %v7182_v24  ;;  %v10396_v50 = vld [vmem:[#allocation5 + $0x184] sm:$0xf]  ;;  %v7369_v23 = vor.u32 %v10430_v45, %v7366_v15  ;;  %v7542_v30 = vld [vmem:[#allocation5 + $0x3f8] sm:$0xf0] }
 0x1c7   :  { %5932 = vmatpush.bf16.msrb.mxu0 %v7201_v61  ;;  %v11643_v61 = vadd.f32 %v5700_v58, %v5687_v11  ;;  %v7249_v19 = vor.u32 %v10400_v8, %v7246_v37  ;;  %v7230_v24 = vld [vmem:[#allocation5 + $0x188] sm:$0xf0]  ;;  %v10412_v8 = vld [vmem:[#allocation5 + $0x204] sm:$0xf]  ;;  %v7478_v11 = vld [vmem:[#allocation5 + $0x378] sm:$0xf0] }
 0x1c8   :  { %5946 = vmatpush.bf16.msrb.mxu1 %v7265_v6  ;;  %v7313_v6 = vor.u32 %v10416_v42, %v7310_v0  ;;  %v10428_v37 = vld [vmem:[#allocation5 + $0x284] sm:$0xf]  ;;  %v7358_v42 = vld [vmem:[#allocation5 + $0x288] sm:$0xf0]  ;;  %v10458_v0 = vld [vmem:[#allocation5 + $0x374] sm:$0xf] }
 0x1c9   :  { %5960 = vmatpush.bf16.msrb.mxu2 %v7329_v57  ;;  %v10382_v57 = vld [vmem:[#allocation5 + $0x114] sm:$0xf]  ;;  %v10456_v45 = vld [vmem:[#allocation5 + $0x364] sm:$0xf]  ;;  %v7470_v15 = vld [vmem:[#allocation5 + $0x368] sm:$0xf0] }
 0x1ca   :  { %5974 = vmatpush.bf16.msrb.mxu3 %v7393_v22  ;;  %v7238_v22 = vld [vmem:[#allocation5 + $0x198] sm:$0xf0]  ;;  %v7177_v14 = vor.u32 %v10382_v57, %v7174_v5  ;;  %v10474_v58 = vld [vmem:[#allocation5 + $0x3f4] sm:$0xf] }
 0x1cb   :  { %5933 = vmatpush.bf16.msrb.mxu0 %v7193_v25  ;;  %v7166_v25 = vld [vmem:[#allocation5 + $0x108] sm:$0xf0]  ;;  %v7606_v57 = vld [vmem:[#allocation5 + $0x478] sm:$0xf0]  ;;  %v10506_v5 = vld [vmem:[#allocation5 + $0x4f4] sm:$0xf] }
 0x1cc   :  { %5947 = vmatpush.bf16.msrb.mxu1 %v7257_v3  ;;  %v7241_v3 = vor.u32 %v10398_v13, %v7238_v22  ;;  %v7169_v18 = vor.u32 %v10380_v28, %v7166_v25  ;;  %v7670_v13 = vld [vmem:[#allocation5 + $0x4f8] sm:$0xf0]  ;;  %v7481_v22 = vor.u32 %v10458_v0, %v7478_v11  ;;  %v7534_v28 = vld [vmem:[#allocation5 + $0x3e8] sm:$0xf0]  ;;  %v10488_v25 = vld [vmem:[#allocation5 + $0x464] sm:$0xf] }
 0x1cd   :  { %5961 = vmatpush.bf16.msrb.mxu2 %v7321_v21  ;;  %v7305_v21 = vor.u32 %v10414_v12, %v7302_v53  ;;  %v7545_v12 = vor.u32 %v10474_v58, %v7542_v30  ;;  %v7526_v11 = vld [vmem:[#allocation5 + $0x3d8] sm:$0xf0]  ;;  %v10486_v58 = vld [vmem:[#allocation5 + $0x454] sm:$0xf] }
 0x1ce   :  { %5975 = vmatpush.bf16.msrb.mxu3 %v7385_v27  ;;  %v7294_v27 = vld [vmem:[#allocation5 + $0x208] sm:$0xf0]  ;;  %v10502_v30 = vld [vmem:[#allocation5 + $0x4d4] sm:$0xf] }
 0x1cf   :  { %5934 = vmatpush.bf16.msrb.mxu0 %v7185_v10  ;;  %v10490_v10 = vld [vmem:[#allocation5 + $0x474] sm:$0xf] }
 0x1d0   :  { %5948 = vmatpush.bf16.msrb.mxu1 %v7249_v19  ;;  %v7233_v19 = vor.u32 %v10396_v50, %v7230_v24  ;;  %v7609_v53 = vor.u32 %v10490_v10, %v7606_v57  ;;  %v11647_v50 = vpop.f32.mrf.mxu1  ;;  %v7473_v24 = vor.u32 %v10456_v45, %v7470_v15  ;;  %v7654_v10 = vld [vmem:[#allocation5 + $0x4d8] sm:$0xf0] }
 0x1d1   :  { %5962 = vmatpush.bf16.msrb.mxu2 %v7313_v6  ;;  %v7297_v6 = vor.u32 %v10412_v8, %v7294_v27  ;;  %v7537_v8 = vor.u32 %v10472_v4, %v7534_v28  ;;  %v10454_v27 = vld [vmem:[#allocation5 + $0x354] sm:$0xf] }
 0x1d2   :  { %5976 = vmatpush.bf16.msrb.mxu3 %v7377_v59  ;;  %v7361_v59 = vor.u32 %v10428_v37, %v7358_v42  ;;  %v7462_v37 = vld [vmem:[#allocation5 + $0x358] sm:$0xf0]  ;;  %v10470_v42 = vld [vmem:[#allocation5 + $0x3d4] sm:$0xf] }
 0x1d3   :  { %5935 = vmatpush.bf16.msrb.mxu0 %v7177_v14  ;;  %v7673_v14 = vor.u32 %v10506_v5, %v7670_v13  ;;  %v7529_v4 = vor.u32 %v10470_v42, %v7526_v11  ;;  %v11653_v5 = vpop.f32.mrf.mxu2  ;;  %v7657_v13 = vor.u32 %v10502_v30, %v7654_v10  ;;  %v7574_v42 = vld [vmem:[#allocation5 + $0x438] sm:$0xf0]  ;;  %v10448_v30 = vld [vmem:[#allocation5 + $0x324] sm:$0xf]  ;;  %v7438_v10 = vld [vmem:[#allocation5 + $0x328] sm:$0xf0] }
 0x1d4   :  { %5949 = vmatpush.bf16.msrb.mxu1 %v7241_v3  ;;  %v10504_v3 = vld [vmem:[#allocation5 + $0x4e4] sm:$0xf]  ;;  %v7638_v11 = vld [vmem:[#allocation5 + $0x4b8] sm:$0xf0] }
 0x1d5   :  { %5963 = vmatpush.bf16.msrb.mxu2 %v7305_v21  ;;  %v7662_v21 = vld [vmem:[#allocation5 + $0x4e8] sm:$0xf0] }
 0x1d6   :  { %5977 = vmatpush.bf16.msrb.mxu3 %v7369_v23  ;;  %v7601_v23 = vor.u32 %v10488_v25, %v7598_v16  ;;  %v7665_v0 = vor.u32 %v10504_v3, %v7662_v21  ;;  %v7465_v16 = vor.u32 %v10454_v27, %v7462_v37  ;;  %v10450_v3 = vld [vmem:[#allocation5 + $0x334] sm:$0xf]  ;;  %v7446_v21 = vld [vmem:[#allocation5 + $0x338] sm:$0xf0] }
 0x1d7   :  { %5936 = vmatpush.bf16.msrb.mxu0 %v7169_v18  ;;  %v7590_v18 = vld [vmem:[#allocation5 + $0x458] sm:$0xf0]  ;;  %v10482_v37 = vld [vmem:[#allocation5 + $0x434] sm:$0xf] }
 0x1d8   :  { %5950 = vmatpush.bf16.msrb.mxu1 %v7233_v19  ;;  %v7593_v57 = vor.u32 %v10486_v58, %v7590_v18  ;;  %v10452_v19 = vld [vmem:[#allocation5 + $0x344] sm:$0xf]  ;;  %v7510_v27 = vld [vmem:[#allocation5 + $0x3b8] sm:$0xf0]  ;;  %v7449_v58 = vor.u32 %v10450_v3, %v7446_v21  ;;  %v7577_v18 = vor.u32 %v10482_v37, %v7574_v42  ;;  %v10478_v21 = vld [vmem:[#allocation5 + $0x414] sm:$0xf] }
 0x1d9   :  { %5964 = vmatpush.bf16.msrb.mxu2 %v7297_v6  ;;  %v10468_v6 = vld [vmem:[#allocation5 + $0x3c4] sm:$0xf]  ;;  %v7494_v3 = vld [vmem:[#allocation5 + $0x398] sm:$0xf0]  ;;  %v7422_v42 = vld [vmem:[#allocation5 + $0x308] sm:$0xf0] }
 0x1da   :  { %5978 = vmatpush.bf16.msrb.mxu3 %v7361_v59  ;;  %5937 = vmatmul.bf16.vlgmr.msrb.gmra.mxu0 %v11400_v1  ;;  %v7454_v1 = vld [vmem:[#allocation5 + $0x348] sm:$0xf0]  ;;  %v10484_v59 = vld [vmem:[#allocation5 + $0x444] sm:$0xf] }
 0x1db   :  { %5985 = vmatpush.bf16.msra.mxu0 %v7481_v22  ;;  %5951 = vmatmul.bf16.vlgmr.msrb.gmra.mxu1 %v11406_v17  ;;  %v7582_v17 = vld [vmem:[#allocation5 + $0x448] sm:$0xf0]  ;;  %v11655_v22 = vpop.f32.mrf.mxu3  ;;  %v7457_v15 = vor.u32 %v10452_v19, %v7454_v1  ;;  %v10480_v1 = vld [vmem:[#allocation5 + $0x424] sm:$0xf] }
 0x1dc   :  { %5999 = vmatpush.bf16.msra.mxu1 %v7545_v12  ;;  %5965 = vmatmul.bf16.vlgmr.msrb.gmra.mxu2 %v11410_v39  ;;  %v7518_v39 = vld [vmem:[#allocation5 + $0x3c8] sm:$0xf0]  ;;  %v5714_v12 = vpop.f32.mrf.mxu0  ;;  %v7585_v25 = vor.u32 %v10484_v59, %v7582_v17  ;;  %v10496_v59 = vld [vmem:[#allocation5 + $0x4a4] sm:$0xf] }
 0x1dd   :  { %6013 = vmatpush.bf16.msra.mxu2 %v7609_v53  ;;  %5979 = vmatmul.bf16.vlgmr.msrb.gmra.mxu3 %v11414_v44  ;;  %v10500_v44 = vld [vmem:[#allocation5 + $0x4c4] sm:$0xf]  ;;  %v7646_v53 = vld [vmem:[#allocation5 + $0x4c8] sm:$0xf0]  ;;  %v5715_v45 = vadd.f32 %v5714_v12, %v11643_v61  ;;  %v7521_v28 = vor.u32 %v10468_v6, %v7518_v39  ;;  %v7441_v12 = vor.u32 %v10448_v30, %v7438_v10 }
 0x1de   :  { %6027 = vmatpush.bf16.msra.mxu3 %v7673_v14  ;;  %v5728_v14 = vpop.f32.mrf.mxu1  ;;  %v7502_v19 = vld [vmem:[#allocation5 + $0x3a8] sm:$0xf0]  ;;  %v10444_v37 = vld [vmem:[#allocation5 + $0x304] sm:$0xf] }
 0x1df   :  { %5986 = vmatpush.bf16.msra.mxu0 %v7473_v24  ;;  %v10466_v24 = vld [vmem:[#allocation5 + $0x3b4] sm:$0xf]  ;;  %v7566_v6 = vld [vmem:[#allocation5 + $0x428] sm:$0xf0] }
 0x1e0   :  { %6000 = vmatpush.bf16.msra.mxu1 %v7537_v8  ;;  %v7649_v8 = vor.u32 %v10500_v44, %v7646_v53  ;;  %v7513_v61 = vor.u32 %v10466_v24, %v7510_v27  ;;  %v7630_v17 = vld [vmem:[#allocation5 + $0x4a8] sm:$0xf0]  ;;  %v7558_v24 = vld [vmem:[#allocation5 + $0x418] sm:$0xf0] }
 0x1e1   :  { %6014 = vmatpush.bf16.msra.mxu2 %v7601_v23  ;;  %v5729_v23 = vadd.f32 %v5728_v14, %v5715_v45  ;;  %v7569_v45 = vor.u32 %v10480_v1, %v7566_v6  ;;  %v7430_v14 = vld [vmem:[#allocation5 + $0x318] sm:$0xf0]  ;;  %v7550_v10 = vld [vmem:[#allocation5 + $0x408] sm:$0xf0]  ;;  %v10538_v1 = vld [vmem:[#allocation5 + $0x5f4] sm:$0xf]  ;;  %v7425_v6 = vor.u32 %v10444_v37, %v7422_v42 }
 0x1e2   :  { %6028 = vmatpush.bf16.msra.mxu3 %v7665_v0  ;;  %v10498_v0 = vld [vmem:[#allocation5 + $0x4b4] sm:$0xf]  ;;  %v7854_v37 = vld [vmem:[#allocation5 + $0x668] sm:$0xf0] }
 0x1e3   :  { %5987 = vmatpush.bf16.msra.mxu0 %v7465_v16  ;;  %v10464_v16 = vld [vmem:[#allocation5 + $0x3a4] sm:$0xf]  ;;  %v5756_v39 = vpop.f32.mrf.mxu3 }
 0x1e4   :  { %6001 = vmatpush.bf16.msra.mxu1 %v7529_v4  ;;  %v7641_v4 = vor.u32 %v10498_v0, %v7638_v11  ;;  %v7505_v53 = vor.u32 %v10464_v16, %v7502_v19  ;;  %v7561_v11 = vor.u32 %v10478_v21, %v7558_v24  ;;  %v10492_v16 = vld [vmem:[#allocation5 + $0x484] sm:$0xf]  ;;  %v7734_v19 = vld [vmem:[#allocation5 + $0x578] sm:$0xf0]  ;;  %v7726_v21 = vld [vmem:[#allocation5 + $0x568] sm:$0xf0]  ;;  %v11660_v42 = vpop.f32.mrf.mxu0 }
 0x1e5   :  { %6015 = vmatpush.bf16.msra.mxu2 %v7593_v57  ;;  %v5742_v57 = vpop.f32.mrf.mxu2  ;;  %v10536_v24 = vld [vmem:[#allocation5 + $0x5e4] sm:$0xf] }
 0x1e6   :  { %6029 = vmatpush.bf16.msra.mxu3 %v7657_v13  ;;  %v5743_v13 = vadd.f32 %v5742_v57, %v5729_v23  ;;  %v7622_v23 = vld [vmem:[#allocation5 + $0x498] sm:$0xf0]  ;;  %v10522_v57 = vld [vmem:[#allocation5 + $0x574] sm:$0xf] }
 0x1e7   :  { %5988 = vmatpush.bf16.msra.mxu0 %v7457_v15  ;;  %v10446_v15 = vld [vmem:[#allocation5 + $0x314] sm:$0xf] }
 0x1e8   :  { %6002 = vmatpush.bf16.msra.mxu1 %v7521_v28  ;;  %v11658_v44 = vadd.f32 %v5756_v39, %v5743_v13  ;;  %v10462_v28 = vld [vmem:[#allocation5 + $0x394] sm:$0xf]  ;;  %v7433_v27 = vor.u32 %v10446_v15, %v7430_v14  ;;  %v7798_v13 = vld [vmem:[#allocation5 + $0x5f8] sm:$0xf0]  ;;  %v7737_v14 = vor.u32 %v10522_v57, %v7734_v19 }
 0x1e9   :  { %6016 = vmatpush.bf16.msra.mxu2 %v7585_v25  ;;  %v7633_v25 = vor.u32 %v10496_v59, %v7630_v17  ;;  %v7497_v0 = vor.u32 %v10462_v28, %v7494_v3  ;;  %v10554_v39 = vld [vmem:[#allocation5 + $0x674] sm:$0xf]  ;;  %v7862_v59 = vld [vmem:[#allocation5 + $0x678] sm:$0xf0]  ;;  %v7801_v28 = vor.u32 %v10538_v1, %v7798_v13  ;;  %v10520_v3 = vld [vmem:[#allocation5 + $0x564] sm:$0xf] }
 0x1ea   :  { %6030 = vmatpush.bf16.msra.mxu3 %v7649_v8  ;;  %v10494_v8 = vld [vmem:[#allocation5 + $0x494] sm:$0xf]  ;;  %v7782_v19 = vld [vmem:[#allocation5 + $0x5d8] sm:$0xf0] }
 0x1eb   :  { %5989 = vmatpush.bf16.msra.mxu0 %v7449_v58  ;;  %v10460_v58 = vld [vmem:[#allocation5 + $0x384] sm:$0xf]  ;;  %v7625_v30 = vor.u32 %v10494_v8, %v7622_v23  ;;  %v7790_v23 = vld [vmem:[#allocation5 + $0x5e8] sm:$0xf0]  ;;  %v10550_v1 = vld [vmem:[#allocation5 + $0x654] sm:$0xf] }
 0x1ec   :  { %6003 = vmatpush.bf16.msra.mxu1 %v7513_v61  ;;  %v7486_v61 = vld [vmem:[#allocation5 + $0x388] sm:$0xf0]  ;;  %v10566_v13 = vld [vmem:[#allocation5 + $0x6d4] sm:$0xf] }
 0x1ed   :  { %6017 = vmatpush.bf16.msra.mxu2 %v7577_v18  ;;  %v10476_v18 = vld [vmem:[#allocation5 + $0x404] sm:$0xf]  ;;  %v7489_v17 = vor.u32 %v10460_v58, %v7486_v61  ;;  %v11662_v58 = vpop.f32.mrf.mxu1  ;;  %v7729_v61 = vor.u32 %v10520_v3, %v7726_v21  ;;  %v7902_v21 = vld [vmem:[#allocation5 + $0x6c8] sm:$0xf0] }
 0x1ee   :  { %6031 = vmatpush.bf16.msra.mxu3 %v7641_v4  ;;  %v7614_v4 = vld [vmem:[#allocation5 + $0x488] sm:$0xf0] }
 0x1ef   :  { %5990 = vmatpush.bf16.msra.mxu0 %v7441_v12  ;;  %v7553_v12 = vor.u32 %v10476_v18, %v7550_v10  ;;  %v7617_v15 = vor.u32 %v10492_v16, %v7614_v4  ;;  %v7793_v18 = vor.u32 %v10536_v24, %v7790_v23  ;;  %v10518_v10 = vld [vmem:[#allocation5 + $0x554] sm:$0xf]  ;;  %v7718_v16 = vld [vmem:[#allocation5 + $0x558] sm:$0xf0] }
 0x1f0   :  { %6004 = vmatpush.bf16.msra.mxu1 %v7505_v53  ;;  %v10570_v53 = vld [vmem:[#allocation5 + $0x6f4] sm:$0xf] }
 0x1f1   :  { %6018 = vmatpush.bf16.msra.mxu2 %v7569_v45  ;;  %v7926_v45 = vld [vmem:[#allocation5 + $0x6f8] sm:$0xf0]  ;;  %v10534_v4 = vld [vmem:[#allocation5 + $0x5d4] sm:$0xf] }
 0x1f2   :  { %6032 = vmatpush.bf16.msra.mxu3 %v7633_v25  ;;  %v7865_v25 = vor.u32 %v10554_v39, %v7862_v59  ;;  %v7929_v8 = vor.u32 %v10570_v53, %v7926_v45  ;;  %v7910_v39 = vld [vmem:[#allocation5 + $0x6d8] sm:$0xf0]  ;;  %v7721_v59 = vor.u32 %v10518_v10, %v7718_v16  ;;  %v10516_v53 = vld [vmem:[#allocation5 + $0x544] sm:$0xf]  ;;  %v10546_v16 = vld [vmem:[#allocation5 + $0x634] sm:$0xf] }
 0x1f3   :  { %5991 = vmatpush.bf16.msra.mxu0 %v7433_v27  ;;  %v10552_v27 = vld [vmem:[#allocation5 + $0x664] sm:$0xf]  ;;  %v7766_v10 = vld [vmem:[#allocation5 + $0x5b8] sm:$0xf0] }
 0x1f4   :  { %6005 = vmatpush.bf16.msra.mxu1 %v7497_v0  ;;  %v10568_v0 = vld [vmem:[#allocation5 + $0x6e4] sm:$0xf] }
 0x1f5   :  { %6019 = vmatpush.bf16.msra.mxu2 %v7561_v11  ;;  %v7918_v11 = vld [vmem:[#allocation5 + $0x6e8] sm:$0xf0]  ;;  %v10532_v45 = vld [vmem:[#allocation5 + $0x5c4] sm:$0xf] }
 0x1f6   :  { %6033 = vmatpush.bf16.msra.mxu3 %v7625_v30  ;;  %v7857_v30 = vor.u32 %v10552_v27, %v7854_v37  ;;  %v7921_v57 = vor.u32 %v10568_v0, %v7918_v11  ;;  %v10514_v0 = vld [vmem:[#allocation5 + $0x534] sm:$0xf]  ;;  %v7702_v11 = vld [vmem:[#allocation5 + $0x538] sm:$0xf0] }
 0x1f7   :  { %5992 = vmatpush.bf16.msra.mxu0 %v7425_v6  ;;  %v7846_v6 = vld [vmem:[#allocation5 + $0x658] sm:$0xf0]  ;;  %v5770_v3 = vpop.f32.mrf.mxu0 }
 0x1f8   :  { %6006 = vmatpush.bf16.msra.mxu1 %v7489_v17  ;;  %v7785_v17 = vor.u32 %v10534_v4, %v7782_v19  ;;  %v5771_v24 = vadd.f32 %v5770_v3, %v11658_v44  ;;  %v5784_v23 = vpop.f32.mrf.mxu1  ;;  %v7830_v4 = vld [vmem:[#allocation5 + $0x638] sm:$0xf0] }
 0x1f9   :  { %6020 = vmatpush.bf16.msra.mxu2 %v7553_v12  ;;  %v7849_v12 = vor.u32 %v10550_v1, %v7846_v6  ;;  %v7894_v19 = vld [vmem:[#allocation5 + $0x6b8] sm:$0xf0]  ;;  %v7705_v1 = vor.u32 %v10514_v0, %v7702_v11  ;;  %v7833_v6 = vor.u32 %v10546_v16, %v7830_v4  ;;  %v10542_v11 = vld [vmem:[#allocation5 + $0x614] sm:$0xf]  ;;  %v10508_v16 = vld [vmem:[#allocation5 + $0x504] sm:$0xf] }
 0x1fa   :  { %6034 = vmatpush.bf16.msra.mxu3 %v7617_v15  ;;  %5993 = vmatmul.bf16.vlgmr.msra.gmra.mxu0 %v11412_v43  ;;  %v7710_v43 = vld [vmem:[#allocation5 + $0x548] sm:$0xf0]  ;;  %v11668_v15 = vpop.f32.mrf.mxu2  ;;  %v7750_v0 = vld [vmem:[#allocation5 + $0x598] sm:$0xf0] }
 0x1fb   :  { %6041 = vmatpush.bf16.msrb.mxu0 %v7737_v14  ;;  %6007 = vmatmul.bf16.vlgmr.msra.gmra.mxu1 %v11416_v47  ;;  %v7913_v14 = vor.u32 %v10566_v13, %v7910_v39  ;;  %v7838_v47 = vld [vmem:[#allocation5 + $0x648] sm:$0xf0]  ;;  %v10512_v13 = vld [vmem:[#allocation5 + $0x524] sm:$0xf] }
 0x1fc   :  { %6055 = vmatpush.bf16.msrb.mxu1 %v7801_v28  ;;  %6021 = vmatmul.bf16.vlgmr.msra.gmra.mxu2 %v11422_v31  ;;  %v7774_v31 = vld [vmem:[#allocation5 + $0x5c8] sm:$0xf0]  ;;  %v10548_v28 = vld [vmem:[#allocation5 + $0x644] sm:$0xf] }
 0x1fd   :  { %6069 = vmatpush.bf16.msrb.mxu2 %v7865_v25  ;;  %6035 = vmatmul.bf16.vlgmr.msra.gmra.mxu3 %v11426_v36  ;;  %v11670_v25 = vpop.f32.mrf.mxu3  ;;  %v10564_v36 = vld [vmem:[#allocation5 + $0x6c4] sm:$0xf]  ;;  %v7777_v27 = vor.u32 %v10532_v45, %v7774_v31  ;;  %v7841_v37 = vor.u32 %v10548_v28, %v7838_v47  ;;  %v7694_v39 = vld [vmem:[#allocation5 + $0x528] sm:$0xf0] }
 0x1fe   :  { %6083 = vmatpush.bf16.msrb.mxu3 %v7929_v8  ;;  %v7713_v8 = vor.u32 %v10516_v53, %v7710_v43  ;;  %v7758_v53 = vld [vmem:[#allocation5 + $0x5a8] sm:$0xf0]  ;;  %v10544_v43 = vld [vmem:[#allocation5 + $0x624] sm:$0xf]  ;;  %v7697_v3 = vor.u32 %v10512_v13, %v7694_v39 }
 0x1ff   :  { %6042 = vmatpush.bf16.msrb.mxu0 %v7729_v61  ;;  %v10530_v61 = vld [vmem:[#allocation5 + $0x5b4] sm:$0xf]  ;;  %v7822_v45 = vld [vmem:[#allocation5 + $0x628] sm:$0xf0]  ;;  %v10560_v28 = vld [vmem:[#allocation5 + $0x6a4] sm:$0xf] }
 0x200   :  { %6056 = vmatpush.bf16.msrb.mxu1 %v7793_v18  ;;  %v7905_v18 = vor.u32 %v10564_v36, %v7902_v21  ;;  %v7769_v44 = vor.u32 %v10530_v61, %v7766_v10  ;;  %v7886_v47 = vld [vmem:[#allocation5 + $0x6a8] sm:$0xf0]  ;;  %v7814_v61 = vld [vmem:[#allocation5 + $0x618] sm:$0xf0] }
 0x201   :  { %6070 = vmatpush.bf16.msrb.mxu2 %v7857_v30  ;;  %v5785_v30 = vadd.f32 %v5784_v23, %v5771_v24  ;;  %v7825_v24 = vor.u32 %v10544_v43, %v7822_v45  ;;  %v7686_v23 = vld [vmem:[#allocation5 + $0x518] sm:$0xf0]  ;;  %v7678_v4 = vld [vmem:[#allocation5 + $0x508] sm:$0xf0]  ;;  %v10602_v43 = vld [vmem:[#allocation5 + $0x7f4] sm:$0xf] }
 0x202   :  { %6084 = vmatpush.bf16.msrb.mxu3 %v7921_v57  ;;  %v10562_v57 = vld [vmem:[#allocation5 + $0x6b4] sm:$0xf]  ;;  %v7806_v39 = vld [vmem:[#allocation5 + $0x608] sm:$0xf0]  ;;  %v7681_v45 = vor.u32 %v10508_v16, %v7678_v4  ;;  %v11675_v4 = vpop.f32.mrf.mxu0 }
 0x203   :  { %6043 = vmatpush.bf16.msrb.mxu0 %v7721_v59  ;;  %v10528_v59 = vld [vmem:[#allocation5 + $0x5a4] sm:$0xf]  ;;  %v8110_v16 = vld [vmem:[#allocation5 + $0x868] sm:$0xf0] }
 0x204   :  { %6057 = vmatpush.bf16.msrb.mxu1 %v7785_v17  ;;  %v7897_v17 = vor.u32 %v10562_v57, %v7894_v19  ;;  %v7761_v21 = vor.u32 %v10528_v59, %v7758_v53  ;;  %v7817_v19 = vor.u32 %v10542_v11, %v7814_v61  ;;  %v10556_v59 = vld [vmem:[#allocation5 + $0x684] sm:$0xf]  ;;  %v7990_v53 = vld [vmem:[#allocation5 + $0x778] sm:$0xf0]  ;;  %v7982_v11 = vld [vmem:[#allocation5 + $0x768] sm:$0xf0] }
 0x205   :  { %6071 = vmatpush.bf16.msrb.mxu2 %v7849_v12  ;;  %v5798_v12 = vpop.f32.mrf.mxu2  ;;  %v5812_v31 = vpop.f32.mrf.mxu3  ;;  %v10600_v61 = vld [vmem:[#allocation5 + $0x7e4] sm:$0xf] }
 0x206   :  { %6085 = vmatpush.bf16.msrb.mxu3 %v7913_v14  ;;  %v5799_v14 = vadd.f32 %v5798_v12, %v5785_v30  ;;  %v7878_v30 = vld [vmem:[#allocation5 + $0x698] sm:$0xf0]  ;;  %v10586_v12 = vld [vmem:[#allocation5 + $0x774] sm:$0xf] }
 0x207   :  { %6044 = vmatpush.bf16.msrb.mxu0 %v7713_v8  ;;  %v10510_v8 = vld [vmem:[#allocation5 + $0x514] sm:$0xf] }
 0x208   :  { %6058 = vmatpush.bf16.msrb.mxu1 %v7777_v27  ;;  %v11673_v36 = vadd.f32 %v5812_v31, %v5799_v14  ;;  %v10526_v27 = vld [vmem:[#allocation5 + $0x594] sm:$0xf]  ;;  %v7689_v10 = vor.u32 %v10510_v8, %v7686_v23  ;;  %v8054_v14 = vld [vmem:[#allocation5 + $0x7f8] sm:$0xf0]  ;;  %v7993_v23 = vor.u32 %v10586_v12, %v7990_v53 }
 0x209   :  { %6072 = vmatpush.bf16.msrb.mxu2 %v7841_v37  ;;  %v7889_v37 = vor.u32 %v10560_v28, %v7886_v47  ;;  %v7753_v57 = vor.u32 %v10526_v27, %v7750_v0  ;;  %v10618_v31 = vld [vmem:[#allocation5 + $0x874] sm:$0xf]  ;;  %v8118_v28 = vld [vmem:[#allocation5 + $0x878] sm:$0xf0]  ;;  %v8057_v27 = vor.u32 %v10602_v43, %v8054_v14  ;;  %v10584_v0 = vld [vmem:[#allocation5 + $0x764] sm:$0xf] }
 0x20a   :  { %6086 = vmatpush.bf16.msrb.mxu3 %v7905_v18  ;;  %v10558_v18 = vld [vmem:[#allocation5 + $0x694] sm:$0xf]  ;;  %v8038_v53 = vld [vmem:[#allocation5 + $0x7d8] sm:$0xf0] }
 0x20b   :  { %6045 = vmatpush.bf16.msrb.mxu0 %v7705_v1  ;;  %v10524_v1 = vld [vmem:[#allocation5 + $0x584] sm:$0xf]  ;;  %v7881_v13 = vor.u32 %v10558_v18, %v7878_v30  ;;  %v8046_v30 = vld [vmem:[#allocation5 + $0x7e8] sm:$0xf0]  ;;  %v10614_v43 = vld [vmem:[#allocation5 + $0x854] sm:$0xf] }
 0x20c   :  { %6059 = vmatpush.bf16.msrb.mxu1 %v7769_v44  ;;  %v7742_v44 = vld [vmem:[#allocation5 + $0x588] sm:$0xf0]  ;;  %v10630_v14 = vld [vmem:[#allocation5 + $0x8d4] sm:$0xf] }
 0x20d   :  { %6073 = vmatpush.bf16.msrb.mxu2 %v7833_v6  ;;  %v10540_v6 = vld [vmem:[#allocation5 + $0x604] sm:$0xf]  ;;  %v7745_v47 = vor.u32 %v10524_v1, %v7742_v44  ;;  %v11677_v1 = vpop.f32.mrf.mxu1  ;;  %v7985_v44 = vor.u32 %v10584_v0, %v7982_v11  ;;  %v8158_v11 = vld [vmem:[#allocation5 + $0x8c8] sm:$0xf0] }
 0x20e   :  { %6087 = vmatpush.bf16.msrb.mxu3 %v7897_v17  ;;  %v7870_v17 = vld [vmem:[#allocation5 + $0x688] sm:$0xf0] }
 0x20f   :  { %6046 = vmatpush.bf16.msrb.mxu0 %v7697_v3  ;;  %v7809_v3 = vor.u32 %v10540_v6, %v7806_v39  ;;  %v7873_v8 = vor.u32 %v10556_v59, %v7870_v17  ;;  %v8049_v6 = vor.u32 %v10600_v61, %v8046_v30  ;;  %v10582_v39 = vld [vmem:[#allocation5 + $0x754] sm:$0xf]  ;;  %v7974_v59 = vld [vmem:[#allocation5 + $0x758] sm:$0xf0] }
 0x210   :  { %6060 = vmatpush.bf16.msrb.mxu1 %v7761_v21  ;;  %v10634_v21 = vld [vmem:[#allocation5 + $0x8f4] sm:$0xf] }
 0x211   :  { %6074 = vmatpush.bf16.msrb.mxu2 %v7825_v24  ;;  %v8182_v24 = vld [vmem:[#allocation5 + $0x8f8] sm:$0xf0]  ;;  %v10598_v17 = vld [vmem:[#allocation5 + $0x7d4] sm:$0xf] }
 0x212   :  { %6088 = vmatpush.bf16.msrb.mxu3 %v7889_v37  ;;  %v8121_v37 = vor.u32 %v10618_v31, %v8118_v28  ;;  %v8185_v18 = vor.u32 %v10634_v21, %v8182_v24  ;;  %v8166_v31 = vld [vmem:[#allocation5 + $0x8d8] sm:$0xf0]  ;;  %v7977_v28 = vor.u32 %v10582_v39, %v7974_v59  ;;  %v10580_v21 = vld [vmem:[#allocation5 + $0x744] sm:$0xf]  ;;  %v10610_v59 = vld [vmem:[#allocation5 + $0x834] sm:$0xf] }
 0x213   :  { %6047 = vmatpush.bf16.msrb.mxu0 %v7689_v10  ;;  %v10616_v10 = vld [vmem:[#allocation5 + $0x864] sm:$0xf]  ;;  %v8022_v39 = vld [vmem:[#allocation5 + $0x7b8] sm:$0xf0] }
 0x214   :  { %6061 = vmatpush.bf16.msrb.mxu1 %v7753_v57  ;;  %v10632_v57 = vld [vmem:[#allocation5 + $0x8e4] sm:$0xf] }
 0x215   :  { %6075 = vmatpush.bf16.msrb.mxu2 %v7817_v19  ;;  %v8174_v19 = vld [vmem:[#allocation5 + $0x8e8] sm:$0xf0]  ;;  %v10596_v24 = vld [vmem:[#allocation5 + $0x7c4] sm:$0xf] }
 0x216   :  { %6089 = vmatpush.bf16.msrb.mxu3 %v7881_v13  ;;  %v8113_v13 = vor.u32 %v10616_v10, %v8110_v16  ;;  %v8177_v12 = vor.u32 %v10632_v57, %v8174_v19  ;;  %v10578_v57 = vld [vmem:[#allocation5 + $0x734] sm:$0xf]  ;;  %v7958_v19 = vld [vmem:[#allocation5 + $0x738] sm:$0xf0] }
 0x217   :  { %6048 = vmatpush.bf16.msrb.mxu0 %v7681_v45  ;;  %v8102_v45 = vld [vmem:[#allocation5 + $0x858] sm:$0xf0]  ;;  %v5826_v0 = vpop.f32.mrf.mxu0 }
 0x218   :  { %6062 = vmatpush.bf16.msrb.mxu1 %v7745_v47  ;;  %v8041_v47 = vor.u32 %v10598_v17, %v8038_v53  ;;  %v5827_v61 = vadd.f32 %v5826_v0, %v11673_v36  ;;  %v5840_v30 = vpop.f32.mrf.mxu1  ;;  %v8086_v17 = vld [vmem:[#allocation5 + $0x838] sm:$0xf0] }
 0x219   :  { %6076 = vmatpush.bf16.msrb.mxu2 %v7809_v3  ;;  %v8105_v3 = vor.u32 %v10614_v43, %v8102_v45  ;;  %v8150_v53 = vld [vmem:[#allocation5 + $0x8b8] sm:$0xf0]  ;;  %v7961_v43 = vor.u32 %v10578_v57, %v7958_v19  ;;  %v8089_v45 = vor.u32 %v10610_v59, %v8086_v17  ;;  %v10606_v19 = vld [vmem:[#allocation5 + $0x814] sm:$0xf]  ;;  %v10572_v59 = vld [vmem:[#allocation5 + $0x704] sm:$0xf] }
 0x21a   :  { %6090 = vmatpush.bf16.msrb.mxu3 %v7873_v8  ;;  %6049 = vmatmul.bf16.vlgmr.msrb.gmra.mxu0 %v11424_v35  ;;  %v7966_v35 = vld [vmem:[#allocation5 + $0x748] sm:$0xf0]  ;;  %v11683_v8 = vpop.f32.mrf.mxu2  ;;  %v8006_v57 = vld [vmem:[#allocation5 + $0x798] sm:$0xf0] }
 0x21b   :  { %6097 = vmatpush.bf16.msra.mxu0 %v7993_v23  ;;  %6063 = vmatmul.bf16.vlgmr.msrb.gmra.mxu1 %v11428_v40  ;;  %v8169_v23 = vor.u32 %v10630_v14, %v8166_v31  ;;  %v8094_v40 = vld [vmem:[#allocation5 + $0x848] sm:$0xf0]  ;;  %v10576_v14 = vld [vmem:[#allocation5 + $0x724] sm:$0xf] }
 0x21c   :  { %6111 = vmatpush.bf16.msra.mxu1 %v8057_v27  ;;  %6077 = vmatmul.bf16.vlgmr.msrb.gmra.mxu2 %v11434_v32  ;;  %v8030_v32 = vld [vmem:[#allocation5 + $0x7c8] sm:$0xf0]  ;;  %v10612_v27 = vld [vmem:[#allocation5 + $0x844] sm:$0xf] }
 0x21d   :  { %6125 = vmatpush.bf16.msra.mxu2 %v8121_v37  ;;  %6091 = vmatmul.bf16.vlgmr.msrb.gmra.mxu3 %v11438_v41  ;;  %v11685_v37 = vpop.f32.mrf.mxu3  ;;  %v10628_v41 = vld [vmem:[#allocation5 + $0x8c4] sm:$0xf]  ;;  %v8033_v10 = vor.u32 %v10596_v24, %v8030_v32  ;;  %v8097_v16 = vor.u32 %v10612_v27, %v8094_v40  ;;  %v7950_v31 = vld [vmem:[#allocation5 + $0x728] sm:$0xf0] }
 0x21e   :  { %6139 = vmatpush.bf16.msra.mxu3 %v8185_v18  ;;  %v7969_v18 = vor.u32 %v10580_v21, %v7966_v35  ;;  %v8014_v21 = vld [vmem:[#allocation5 + $0x7a8] sm:$0xf0]  ;;  %v10608_v35 = vld [vmem:[#allocation5 + $0x824] sm:$0xf]  ;;  %v7953_v0 = vor.u32 %v10576_v14, %v7950_v31 }
 0x21f   :  { %6098 = vmatpush.bf16.msra.mxu0 %v7985_v44  ;;  %v10594_v44 = vld [vmem:[#allocation5 + $0x7b4] sm:$0xf]  ;;  %v8078_v24 = vld [vmem:[#allocation5 + $0x828] sm:$0xf0]  ;;  %v10624_v27 = vld [vmem:[#allocation5 + $0x8a4] sm:$0xf] }
 0x220   :  { %6112 = vmatpush.bf16.msra.mxu1 %v8049_v6  ;;  %v8161_v6 = vor.u32 %v10628_v41, %v8158_v11  ;;  %v8025_v36 = vor.u32 %v10594_v44, %v8022_v39  ;;  %v8142_v40 = vld [vmem:[#allocation5 + $0x8a8] sm:$0xf0]  ;;  %v8070_v44 = vld [vmem:[#allocation5 + $0x818] sm:$0xf0] }
 0x221   :  { %6126 = vmatpush.bf16.msra.mxu2 %v8113_v13  ;;  %v5841_v13 = vadd.f32 %v5840_v30, %v5827_v61  ;;  %v8081_v61 = vor.u32 %v10608_v35, %v8078_v24  ;;  %v7942_v30 = vld [vmem:[#allocation5 + $0x718] sm:$0xf0]  ;;  %v7934_v17 = vld [vmem:[#allocation5 + $0x708] sm:$0xf0]  ;;  %v10666_v35 = vld [vmem:[#allocation5 + $0x9f4] sm:$0xf] }
 0x222   :  { %6140 = vmatpush.bf16.msra.mxu3 %v8177_v12  ;;  %v10626_v12 = vld [vmem:[#allocation5 + $0x8b4] sm:$0xf]  ;;  %v8062_v31 = vld [vmem:[#allocation5 + $0x808] sm:$0xf0]  ;;  %v7937_v24 = vor.u32 %v10572_v59, %v7934_v17  ;;  %v11690_v17 = vpop.f32.mrf.mxu0 }
 0x223   :  { %6099 = vmatpush.bf16.msra.mxu0 %v7977_v28  ;;  %v10592_v28 = vld [vmem:[#allocation5 + $0x7a4] sm:$0xf]  ;;  %v8366_v59 = vld [vmem:[#allocation5 + $0xa68] sm:$0xf0] }
 0x224   :  { %6113 = vmatpush.bf16.msra.mxu1 %v8041_v47  ;;  %v8153_v47 = vor.u32 %v10626_v12, %v8150_v53  ;;  %v8017_v11 = vor.u32 %v10592_v28, %v8014_v21  ;;  %v8073_v53 = vor.u32 %v10606_v19, %v8070_v44  ;;  %v10620_v28 = vld [vmem:[#allocation5 + $0x884] sm:$0xf]  ;;  %v8246_v21 = vld [vmem:[#allocation5 + $0x978] sm:$0xf0]  ;;  %v8238_v19 = vld [vmem:[#allocation5 + $0x968] sm:$0xf0] }
 0x225   :  { %6127 = vmatpush.bf16.msra.mxu2 %v8105_v3  ;;  %v5854_v3 = vpop.f32.mrf.mxu2  ;;  %v5868_v32 = vpop.f32.mrf.mxu3  ;;  %v10664_v44 = vld [vmem:[#allocation5 + $0x9e4] sm:$0xf] }
 0x226   :  { %6141 = vmatpush.bf16.msra.mxu3 %v8169_v23  ;;  %v5855_v23 = vadd.f32 %v5854_v3, %v5841_v13  ;;  %v8134_v13 = vld [vmem:[#allocation5 + $0x898] sm:$0xf0]  ;;  %v10650_v3 = vld [vmem:[#allocation5 + $0x974] sm:$0xf] }
 0x227   :  { %6100 = vmatpush.bf16.msra.mxu0 %v7969_v18  ;;  %v10574_v18 = vld [vmem:[#allocation5 + $0x714] sm:$0xf] }
 0x228   :  { %6114 = vmatpush.bf16.msra.mxu1 %v8033_v10  ;;  %v11688_v41 = vadd.f32 %v5868_v32, %v5855_v23  ;;  %v10590_v10 = vld [vmem:[#allocation5 + $0x794] sm:$0xf]  ;;  %v7945_v39 = vor.u32 %v10574_v18, %v7942_v30  ;;  %v8310_v23 = vld [vmem:[#allocation5 + $0x9f8] sm:$0xf0]  ;;  %v8249_v30 = vor.u32 %v10650_v3, %v8246_v21 }
 0x229   :  { %6128 = vmatpush.bf16.msra.mxu2 %v8097_v16  ;;  %v8145_v16 = vor.u32 %v10624_v27, %v8142_v40  ;;  %v8009_v12 = vor.u32 %v10590_v10, %v8006_v57  ;;  %v10682_v32 = vld [vmem:[#allocation5 + $0xa74] sm:$0xf]  ;;  %v8374_v27 = vld [vmem:[#allocation5 + $0xa78] sm:$0xf0]  ;;  %v8313_v10 = vor.u32 %v10666_v35, %v8310_v23  ;;  %v10648_v57 = vld [vmem:[#allocation5 + $0x964] sm:$0xf] }
 0x22a   :  { %6142 = vmatpush.bf16.msra.mxu3 %v8161_v6  ;;  %v10622_v6 = vld [vmem:[#allocation5 + $0x894] sm:$0xf]  ;;  %v8294_v21 = vld [vmem:[#allocation5 + $0x9d8] sm:$0xf0] }
 0x22b   :  { %6101 = vmatpush.bf16.msra.mxu0 %v7961_v43  ;;  %v10588_v43 = vld [vmem:[#allocation5 + $0x784] sm:$0xf]  ;;  %v8137_v14 = vor.u32 %v10622_v6, %v8134_v13  ;;  %v8302_v13 = vld [vmem:[#allocation5 + $0x9e8] sm:$0xf0]  ;;  %v10678_v35 = vld [vmem:[#allocation5 + $0xa54] sm:$0xf] }
 0x22c   :  { %6115 = vmatpush.bf16.msra.mxu1 %v8025_v36  ;;  %v7998_v36 = vld [vmem:[#allocation5 + $0x788] sm:$0xf0]  ;;  %v10694_v23 = vld [vmem:[#allocation5 + $0xad4] sm:$0xf] }
 0x22d   :  { %6129 = vmatpush.bf16.msra.mxu2 %v8089_v45  ;;  %v10604_v45 = vld [vmem:[#allocation5 + $0x804] sm:$0xf]  ;;  %v8001_v40 = vor.u32 %v10588_v43, %v7998_v36  ;;  %v11692_v43 = vpop.f32.mrf.mxu1  ;;  %v8241_v36 = vor.u32 %v10648_v57, %v8238_v19  ;;  %v8414_v19 = vld [vmem:[#allocation5 + $0xac8] sm:$0xf0] }
 0x22e   :  { %6143 = vmatpush.bf16.msra.mxu3 %v8153_v47  ;;  %v8126_v47 = vld [vmem:[#allocation5 + $0x888] sm:$0xf0]  ;;  %v10692_v57 = vld [vmem:[#allocation5 + $0xac4] sm:$0xf] }
 0x22f   :  { %6102 = vmatpush.bf16.msra.mxu0 %v7953_v0  ;;  %v8065_v0 = vor.u32 %v10604_v45, %v8062_v31  ;;  %v8129_v18 = vor.u32 %v10620_v28, %v8126_v47  ;;  %v8305_v45 = vor.u32 %v10664_v44, %v8302_v13  ;;  %v10646_v31 = vld [vmem:[#allocation5 + $0x954] sm:$0xf]  ;;  %v8230_v28 = vld [vmem:[#allocation5 + $0x958] sm:$0xf0] }
 0x230   :  { %6116 = vmatpush.bf16.msra.mxu1 %v8017_v11  ;;  %v10698_v11 = vld [vmem:[#allocation5 + $0xaf4] sm:$0xf] }
 0x231   :  { %6130 = vmatpush.bf16.msra.mxu2 %v8081_v61  ;;  %v8438_v61 = vld [vmem:[#allocation5 + $0xaf8] sm:$0xf0]  ;;  %v10662_v47 = vld [vmem:[#allocation5 + $0x9d4] sm:$0xf] }
 0x232   :  { %6144 = vmatpush.bf16.msra.mxu3 %v8145_v16  ;;  %v8377_v16 = vor.u32 %v10682_v32, %v8374_v27  ;;  %v8441_v6 = vor.u32 %v10698_v11, %v8438_v61  ;;  %v8422_v32 = vld [vmem:[#allocation5 + $0xad8] sm:$0xf0]  ;;  %v8233_v27 = vor.u32 %v10646_v31, %v8230_v28  ;;  %v10644_v11 = vld [vmem:[#allocation5 + $0x944] sm:$0xf]  ;;  %v10674_v28 = vld [vmem:[#allocation5 + $0xa34] sm:$0xf] }
 0x233   :  { %6103 = vmatpush.bf16.msra.mxu0 %v7945_v39  ;;  %v10680_v39 = vld [vmem:[#allocation5 + $0xa64] sm:$0xf]  ;;  %v8278_v31 = vld [vmem:[#allocation5 + $0x9b8] sm:$0xf0] }
 0x234   :  { %6117 = vmatpush.bf16.msra.mxu1 %v8009_v12  ;;  %v10696_v12 = vld [vmem:[#allocation5 + $0xae4] sm:$0xf] }
 0x235   :  { %6131 = vmatpush.bf16.msra.mxu2 %v8073_v53  ;;  %v8430_v53 = vld [vmem:[#allocation5 + $0xae8] sm:$0xf0]  ;;  %v10660_v61 = vld [vmem:[#allocation5 + $0x9c4] sm:$0xf] }
 0x236   :  { %6145 = vmatpush.bf16.msra.mxu3 %v8137_v14  ;;  %v8369_v14 = vor.u32 %v10680_v39, %v8366_v59  ;;  %v8433_v3 = vor.u32 %v10696_v12, %v8430_v53  ;;  %v10642_v12 = vld [vmem:[#allocation5 + $0x934] sm:$0xf]  ;;  %v8214_v53 = vld [vmem:[#allocation5 + $0x938] sm:$0xf0] }
 0x237   :  { %6104 = vmatpush.bf16.msra.mxu0 %v7937_v24  ;;  %v8358_v24 = vld [vmem:[#allocation5 + $0xa58] sm:$0xf0] }
 0x238   :  { %6118 = vmatpush.bf16.msra.mxu1 %v8001_v40  ;;  %v8297_v40 = vor.u32 %v10662_v47, %v8294_v21  ;;  %v5896_v13 = vpop.f32.mrf.mxu1  ;;  %v8342_v47 = vld [vmem:[#allocation5 + $0xa38] sm:$0xf0] }
 0x239   :  { %6132 = vmatpush.bf16.msra.mxu2 %v8065_v0  ;;  %v8361_v0 = vor.u32 %v10678_v35, %v8358_v24  ;;  %v8406_v21 = vld [vmem:[#allocation5 + $0xab8] sm:$0xf0]  ;;  %v11705_v35 = vld [vmem:[#allocation7] sm:$0x3]  ;;  %v8217_v24 = vor.u32 %v10642_v12, %v8214_v53 }
 0x23a   :  { %6146 = vmatpush.bf16.msra.mxu3 %v8129_v18  ;;  %6105 = vmatmul.bf16.vlgmr.msra.gmra.mxu0 %v11436_v38  ;;  %v8222_v38 = vld [vmem:[#allocation5 + $0x948] sm:$0xf0]  ;;  %v11698_v18 = vpop.f32.mrf.mxu2 }
 0x23b   :  { %6153 = vmatpush.bf16.msrb.mxu0 %v8249_v30  ;;  %6119 = vmatmul.bf16.vlgmr.msra.gmra.mxu1 %v11440_v46  ;;  %v8425_v30 = vor.u32 %v10694_v23, %v8422_v32  ;;  %v8350_v46 = vld [vmem:[#allocation5 + $0xa48] sm:$0xf0]  ;;  %v8345_v32 = vor.u32 %v10674_v28, %v8342_v47  ;;  %v10686_v28 = vld [vmem:[#allocation5 + $0xa94] sm:$0xf]  ;;  %v8390_v47 = vld [vmem:[#allocation5 + $0xa98] sm:$0xf0] }
 0x23c   :  { %6167 = vmatpush.bf16.msrb.mxu1 %v8313_v10  ;;  %6133 = vmatmul.bf16.vlgmr.msra.gmra.mxu2 %v11446_v51  ;;  %v8286_v51 = vld [vmem:[#allocation5 + $0x9c8] sm:$0xf0]  ;;  %v10676_v10 = vld [vmem:[#allocation5 + $0xa44] sm:$0xf] }
 0x23d   :  { %6181 = vmatpush.bf16.msrb.mxu2 %v8377_v16  ;;  %6147 = vmatmul.bf16.vlgmr.msra.gmra.mxu3 %v11450_v56  ;;  %v5882_v16 = vpop.f32.mrf.mxu0  ;;  %v11700_v56 = vpop.f32.mrf.mxu3  ;;  %v8289_v39 = vor.u32 %v10660_v61, %v8286_v51  ;;  %v8353_v59 = vor.u32 %v10676_v10, %v8350_v46  ;;  %v10672_v61 = vld [vmem:[#allocation5 + $0xa24] sm:$0xf]  ;;  %v8398_v46 = vld [vmem:[#allocation5 + $0xaa8] sm:$0xf0] }
 0x23e   :  { %6195 = vmatpush.bf16.msrb.mxu3 %v8441_v6  ;;  %11919 = vst [vmem:[#allocation66_spill] sm:$0xff] %v11700_v56  ;;  %v5883_v44 = vadd.f32 %v5882_v16, %v11688_v41  ;;  %v8225_v6 = vor.u32 %v10644_v11, %v8222_v38  ;;  %v11868_v41 = vperm.slane %v11705_v35, 1  ;;  %v8270_v38 = vld [vmem:[#allocation5 + $0x9a8] sm:$0xf0]  ;;  %v10688_v10 = vld [vmem:[#allocation5 + $0xaa4] sm:$0xf] }
 0x23f   :  { %6154 = vmatpush.bf16.msrb.mxu0 %v8241_v36  ;;  %v10658_v36 = vld [vmem:[#allocation5 + $0x9b4] sm:$0xf]  ;;  %v8401_v53 = vor.u32 %v10688_v10, %v8398_v46  ;;  %v8502_v10 = vld [vmem:[#allocation5 + $0xb78] sm:$0xf0] }
 0x240   :  { %6168 = vmatpush.bf16.msrb.mxu1 %v8305_v45  ;;  %v8417_v45 = vor.u32 %v10692_v57, %v8414_v19  ;;  %v8281_v23 = vor.u32 %v10658_v36, %v8278_v31  ;;  %v8262_v36 = vld [vmem:[#allocation5 + $0x998] sm:$0xf0]  ;;  %v10730_v46 = vld [vmem:[#allocation5 + $0xbf4] sm:$0xf] }
 0x241   :  { %6182 = vmatpush.bf16.msrb.mxu2 %v8369_v14  ;;  %v11703_v14 = vadd.f32 %v5896_v13, %v5883_v44  ;;  %v10638_v13 = vld [vmem:[#allocation5 + $0x914] sm:$0xf]  ;;  %v8326_v31 = vld [vmem:[#allocation5 + $0xa18] sm:$0xf0] }
 0x242   :  { %6196 = vmatpush.bf16.msrb.mxu3 %v8433_v3  ;;  %v10690_v3 = vld [vmem:[#allocation5 + $0xab4] sm:$0xf]  ;;  %v5910_v51 = vpop.f32.mrf.mxu2 }
 0x243   :  { %6155 = vmatpush.bf16.msrb.mxu0 %v8233_v27  ;;  %11920 = vst [vmem:[#allocation67_spill] sm:$0xff] %v11703_v14  ;;  %v10640_v27 = vld [vmem:[#allocation5 + $0x924] sm:$0xf]  ;;  %v8409_v11 = vor.u32 %v10690_v3, %v8406_v21  ;;  %v5911_v16 = vadd.f32 %v5910_v51, %v11868_v41  ;;  %v10714_v51 = vld [vmem:[#allocation5 + $0xb74] sm:$0xf] }
 0x244   :  { %6169 = vmatpush.bf16.msrb.mxu1 %v8297_v40  ;;  %v8206_v40 = vld [vmem:[#allocation5 + $0x928] sm:$0xf0]  ;;  %v10636_v21 = vld [vmem:[#allocation5 + $0x904] sm:$0xf] }
 0x245   :  { %6183 = vmatpush.bf16.msrb.mxu2 %v8361_v0  ;;  %v10656_v0 = vld [vmem:[#allocation5 + $0x9a4] sm:$0xf]  ;;  %v8209_v57 = vor.u32 %v10640_v27, %v8206_v40  ;;  %v5924_v19 = vpop.f32.mrf.mxu3  ;;  %v8254_v40 = vld [vmem:[#allocation5 + $0x988] sm:$0xf0]  ;;  %v11712_v56 = vpop.f32.mrf.mxu0 }
 0x246   :  { %6197 = vmatpush.bf16.msrb.mxu3 %v8425_v30  ;;  %v8334_v30 = vld [vmem:[#allocation5 + $0xa28] sm:$0xf0]  ;;  %v8273_v44 = vor.u32 %v10656_v0, %v8270_v38  ;;  %v11710_v12 = vadd.f32 %v5924_v19, %v5911_v16  ;;  %v10652_v27 = vld [vmem:[#allocation5 + $0x984] sm:$0xf]  ;;  %v8393_v38 = vor.u32 %v10686_v28, %v8390_v47  ;;  %v10746_v19 = vld [vmem:[#allocation5 + $0xc74] sm:$0xf] }
 0x247   :  { %6156 = vmatpush.bf16.msrb.mxu0 %v8225_v6  ;;  %v8337_v6 = vor.u32 %v10672_v61, %v8334_v30  ;;  %v10668_v0 = vld [vmem:[#allocation5 + $0xa04] sm:$0xf]  ;;  %v8382_v30 = vld [vmem:[#allocation5 + $0xa88] sm:$0xf0] }
 0x248   :  { %6170 = vmatpush.bf16.msrb.mxu1 %v8289_v39  ;;  %v8198_v39 = vld [vmem:[#allocation5 + $0x918] sm:$0xf0]  ;;  %v10684_v61 = vld [vmem:[#allocation5 + $0xa84] sm:$0xf]  ;;  %v8494_v47 = vld [vmem:[#allocation5 + $0xb68] sm:$0xf0] }
 0x249   :  { %6184 = vmatpush.bf16.msrb.mxu2 %v8353_v59  ;;  %v10654_v59 = vld [vmem:[#allocation5 + $0x994] sm:$0xf]  ;;  %v8201_v3 = vor.u32 %v10638_v13, %v8198_v39  ;;  %v8630_v13 = vld [vmem:[#allocation5 + $0xc78] sm:$0xf0]  ;;  %v10712_v28 = vld [vmem:[#allocation5 + $0xb64] sm:$0xf] }
 0x24a   :  { %6198 = vmatpush.bf16.msrb.mxu3 %v8417_v45  ;;  %v10670_v45 = vld [vmem:[#allocation5 + $0xa14] sm:$0xf]  ;;  %v10728_v41 = vld [vmem:[#allocation5 + $0xbe4] sm:$0xf]  ;;  %v8622_v14 = vld [vmem:[#allocation5 + $0xc68] sm:$0xf0] }
 0x24b   :  { %6157 = vmatpush.bf16.msrb.mxu0 %v8217_v24  ;;  %v8190_v24 = vld [vmem:[#allocation5 + $0x908] sm:$0xf0]  ;;  %v10762_v39 = vld [vmem:[#allocation5 + $0xcf4] sm:$0xf] }
 0x24c   :  { %6171 = vmatpush.bf16.msrb.mxu1 %v8281_v23  ;;  %v8265_v23 = vor.u32 %v10654_v59, %v8262_v36  ;;  %v8193_v16 = vor.u32 %v10636_v21, %v8190_v24  ;;  %v8694_v59 = vld [vmem:[#allocation5 + $0xcf8] sm:$0xf0]  ;;  %v8505_v36 = vor.u32 %v10714_v51, %v8502_v10  ;;  %v8558_v21 = vld [vmem:[#allocation5 + $0xbe8] sm:$0xf0]  ;;  %v10744_v24 = vld [vmem:[#allocation5 + $0xc64] sm:$0xf] }
 0x24d   :  { %6185 = vmatpush.bf16.msrb.mxu2 %v8345_v32  ;;  %v8329_v32 = vor.u32 %v10670_v45, %v8326_v31  ;;  %v8633_v31 = vor.u32 %v10746_v19, %v8630_v13  ;;  %v8550_v10 = vld [vmem:[#allocation5 + $0xbd8] sm:$0xf0] }
 0x24e   :  { %6199 = vmatpush.bf16.msrb.mxu3 %v8409_v11  ;;  %v8318_v11 = vld [vmem:[#allocation5 + $0xa08] sm:$0xf0]  ;;  %v8678_v19 = vld [vmem:[#allocation5 + $0xcd8] sm:$0xf0] }
 0x24f   :  { %6158 = vmatpush.bf16.msrb.mxu0 %v8209_v57  ;;  %v8566_v57 = vld [vmem:[#allocation5 + $0xbf8] sm:$0xf0] }
 0x250   :  { %6172 = vmatpush.bf16.msrb.mxu1 %v8273_v44  ;;  %v8257_v44 = vor.u32 %v10652_v27, %v8254_v40  ;;  %v8569_v45 = vor.u32 %v10730_v46, %v8566_v57  ;;  %v11714_v27 = vpop.f32.mrf.mxu1  ;;  %v8497_v40 = vor.u32 %v10712_v28, %v8494_v47  ;;  %v10742_v46 = vld [vmem:[#allocation5 + $0xc54] sm:$0xf]  ;;  %v8670_v28 = vld [vmem:[#allocation5 + $0xcc8] sm:$0xf0] }
 0x251   :  { %6186 = vmatpush.bf16.msrb.mxu2 %v8337_v6  ;;  %v8321_v6 = vor.u32 %v10668_v0, %v8318_v11  ;;  %v8561_v0 = vor.u32 %v10728_v41, %v8558_v21  ;;  %v10710_v11 = vld [vmem:[#allocation5 + $0xb54] sm:$0xf]  ;;  %v5912_v41 = vpop.f32.mrf.mxu2  ;;  %v11921_v21 = vperm.slane %v11705_v35, 1 }
 0x252   :  { %6200 = vmatpush.bf16.msrb.mxu3 %v8401_v53  ;;  %v8385_v53 = vor.u32 %v10684_v61, %v8382_v30  ;;  %v8486_v61 = vld [vmem:[#allocation5 + $0xb58] sm:$0xf0]  ;;  %v10726_v30 = vld [vmem:[#allocation5 + $0xbd4] sm:$0xf] }
 0x253   :  { %6159 = vmatpush.bf16.msrb.mxu0 %v8201_v3  ;;  %v8697_v3 = vor.u32 %v10762_v39, %v8694_v59  ;;  %v10758_v57 = vld [vmem:[#allocation5 + $0xcd4] sm:$0xf]  ;;  %v8553_v13 = vor.u32 %v10726_v30, %v8550_v10  ;;  %v8478_v39 = vld [vmem:[#allocation5 + $0xb48] sm:$0xf0]  ;;  %v10724_v59 = vld [vmem:[#allocation5 + $0xbc4] sm:$0xf] }
 0x254   :  { %6173 = vmatpush.bf16.msrb.mxu1 %v8265_v23  ;;  %v10760_v23 = vld [vmem:[#allocation5 + $0xce4] sm:$0xf]  ;;  %v8534_v30 = vld [vmem:[#allocation5 + $0xbb8] sm:$0xf0] }
 0x255   :  { %6187 = vmatpush.bf16.msrb.mxu2 %v8329_v32  ;;  %v8686_v32 = vld [vmem:[#allocation5 + $0xce8] sm:$0xf0]  ;;  %v8598_v10 = vld [vmem:[#allocation5 + $0xc38] sm:$0xf0] }
 0x256   :  { %6201 = vmatpush.bf16.msrb.mxu3 %v8393_v38  ;;  %v8625_v38 = vor.u32 %v10744_v24, %v8622_v14  ;;  %v8689_v51 = vor.u32 %v10760_v23, %v8686_v32  ;;  %v8489_v14 = vor.u32 %v10710_v11, %v8486_v61  ;;  %v5913_v24 = vadd.f32 %v5912_v41, %v11921_v21  ;;  %v8462_v41 = vld [vmem:[#allocation5 + $0xb28] sm:$0xf0]  ;;  %v10702_v21 = vld [vmem:[#allocation5 + $0xb14] sm:$0xf] }
 0x257   :  { %6160 = vmatpush.bf16.msrb.mxu0 %v8193_v16  ;;  %v8614_v16 = vld [vmem:[#allocation5 + $0xc58] sm:$0xf0] }
 0x258   :  { %6174 = vmatpush.bf16.msrb.mxu1 %v8257_v44  ;;  %v8617_v44 = vor.u32 %v10742_v46, %v8614_v16  ;;  %v10754_v46 = vld [vmem:[#allocation5 + $0xcb4] sm:$0xf] }
 0x259   :  { %6188 = vmatpush.bf16.msrb.mxu2 %v8321_v6  ;;  %v10708_v6 = vld [vmem:[#allocation5 + $0xb44] sm:$0xf] }
 0x25a   :  { %6202 = vmatpush.bf16.msrb.mxu3 %v8385_v53  ;;  %6161 = vmatmul.bf16.vlgmr.msrb.gmra.mxu0 %v11448_v55  ;;  %v5926_v55 = vpop.f32.mrf.mxu3  ;;  %v8681_v53 = vor.u32 %v10758_v57, %v8678_v19  ;;  %v8481_v47 = vor.u32 %v10708_v6, %v8478_v39  ;;  %v10704_v57 = vld [vmem:[#allocation5 + $0xb24] sm:$0xf] }
 0x25b   :  { %6209 = vmatpush.bf16.msra.mxu0 %v8505_v36  ;;  %6175 = vmatmul.bf16.vlgmr.msrb.gmra.mxu1 %v11452_v60  ;;  %v10740_v36 = vld [vmem:[#allocation5 + $0xc44] sm:$0xf]  ;;  %v8606_v60 = vld [vmem:[#allocation5 + $0xc48] sm:$0xf0]  ;;  %v5927_v19 = vadd.f32 %v5926_v55, %v5913_v24  ;;  %v8454_v24 = vld [vmem:[#allocation5 + $0xb18] sm:$0xf0] }
 0x25c   :  { %6223 = vmatpush.bf16.msra.mxu1 %v8569_v45  ;;  %6189 = vmatmul.bf16.vlgmr.msrb.gmra.mxu2 %v11467_v26  ;;  %v8542_v26 = vld [vmem:[#allocation5 + $0xbc8] sm:$0xf0]  ;;  %v5938_v45 = vpop.f32.mrf.mxu0  ;;  %v8609_v32 = vor.u32 %v10740_v36, %v8606_v60 }
 0x25d   :  { %6237 = vmatpush.bf16.msra.mxu2 %v8633_v31  ;;  %6203 = vmatmul.bf16.vlgmr.msrb.gmra.mxu3 %v11471_v34  ;;  %v10756_v31 = vld [vmem:[#allocation5 + $0xcc4] sm:$0xf]  ;;  %v5939_v34 = vadd.f32 %v5938_v45, %v11710_v12  ;;  %v8545_v23 = vor.u32 %v10724_v59, %v8542_v26  ;;  %v8662_v12 = vld [vmem:[#allocation5 + $0xcb8] sm:$0xf0] }
 0x25e   :  { %6251 = vmatpush.bf16.msra.mxu3 %v8697_v3  ;;  %v5952_v3 = vpop.f32.mrf.mxu1  ;;  %v8673_v11 = vor.u32 %v10756_v31, %v8670_v28  ;;  %v8665_v6 = vor.u32 %v10754_v46, %v8662_v12  ;;  %v10736_v59 = vld [vmem:[#allocation5 + $0xc24] sm:$0xf]  ;;  %v8654_v31 = vld [vmem:[#allocation5 + $0xca8] sm:$0xf0]  ;;  %v8465_v28 = vor.u32 %v10704_v57, %v8462_v41 }
 0x25f   :  { %6210 = vmatpush.bf16.msra.mxu0 %v8497_v40  ;;  %v10706_v40 = vld [vmem:[#allocation5 + $0xb34] sm:$0xf]  ;;  %v5953_v61 = vadd.f32 %v5952_v3, %v5939_v34  ;;  %v5966_v39 = vpop.f32.mrf.mxu2  ;;  %v10752_v45 = vld [vmem:[#allocation5 + $0xca4] sm:$0xf]  ;;  %v8446_v46 = vld [vmem:[#allocation5 + $0xb08] sm:$0xf0] }
 0x260   :  { %6224 = vmatpush.bf16.msra.mxu1 %v8561_v0  ;;  %v8470_v0 = vld [vmem:[#allocation5 + $0xb38] sm:$0xf0] }
 0x261   :  { %6238 = vmatpush.bf16.msra.mxu2 %v8625_v38  ;;  %v10722_v38 = vld [vmem:[#allocation5 + $0xbb4] sm:$0xf]  ;;  %v8473_v16 = vor.u32 %v10706_v40, %v8470_v0  ;;  %v5967_v26 = vadd.f32 %v5966_v39, %v5953_v61  ;;  %v8518_v0 = vld [vmem:[#allocation5 + $0xb98] sm:$0xf0]  ;;  %v8638_v39 = vld [vmem:[#allocation5 + $0xc88] sm:$0xf0] }
 0x262   :  { %6252 = vmatpush.bf16.msra.mxu3 %v8689_v51  ;;  %v10738_v51 = vld [vmem:[#allocation5 + $0xc34] sm:$0xf]  ;;  %v8537_v35 = vor.u32 %v10722_v38, %v8534_v30  ;;  %v5980_v60 = vpop.f32.mrf.mxu3  ;;  %v8646_v30 = vld [vmem:[#allocation5 + $0xc98] sm:$0xf0] }
 0x263   :  { %6211 = vmatpush.bf16.msra.mxu0 %v8489_v14  ;;  %v8601_v14 = vor.u32 %v10738_v51, %v8598_v10  ;;  %v10734_v38 = vld [vmem:[#allocation5 + $0xc14] sm:$0xf]  ;;  %v8457_v51 = vor.u32 %v10702_v21, %v8454_v24  ;;  %v10700_v10 = vld [vmem:[#allocation5 + $0xb04] sm:$0xf] }
 0x264   :  { %6225 = vmatpush.bf16.msra.mxu1 %v8553_v13  ;;  %v10720_v13 = vld [vmem:[#allocation5 + $0xba4] sm:$0xf]  ;;  %v5940_v36 = vpop.f32.mrf.mxu0  ;;  %v10750_v61 = vld [vmem:[#allocation5 + $0xc94] sm:$0xf] }
 0x265   :  { %6239 = vmatpush.bf16.msra.mxu2 %v8617_v44  ;;  %v8526_v44 = vld [vmem:[#allocation5 + $0xba8] sm:$0xf0]  ;;  %v5941_v34 = vadd.f32 %v5940_v36, %v5927_v19  ;;  %v10716_v19 = vld [vmem:[#allocation5 + $0xb84] sm:$0xf]  ;;  %v8649_v41 = vor.u32 %v10750_v61, %v8646_v30  ;;  %v8758_v36 = vld [vmem:[#allocation5 + $0xd78] sm:$0xf0] }
 0x266   :  { %6253 = vmatpush.bf16.msra.mxu3 %v8681_v53  ;;  %v8590_v53 = vld [vmem:[#allocation5 + $0xc28] sm:$0xf0]  ;;  %v8529_v55 = vor.u32 %v10720_v13, %v8526_v44  ;;  %v5954_v40 = vpop.f32.mrf.mxu1  ;;  %v10826_v24 = vld [vmem:[#allocation5 + $0xef4] sm:$0xf]  ;;  %v10792_v30 = vld [vmem:[#allocation5 + $0xde4] sm:$0xf] }
 0x267   :  { %6212 = vmatpush.bf16.msra.mxu0 %v8481_v47  ;;  %v11723_v47 = vadd.f32 %v5980_v60, %v5967_v26  ;;  %v8593_v3 = vor.u32 %v10736_v59, %v8590_v53  ;;  %v5955_v12 = vadd.f32 %v5954_v40, %v5941_v34  ;;  %v5968_v13 = vpop.f32.mrf.mxu2  ;;  %v8574_v44 = vld [vmem:[#allocation5 + $0xc08] sm:$0xf0]  ;;  %v10778_v26 = vld [vmem:[#allocation5 + $0xd74] sm:$0xf] }
 0x268   :  { %6226 = vmatpush.bf16.msra.mxu1 %v8545_v23  ;;  %v10718_v23 = vld [vmem:[#allocation5 + $0xb94] sm:$0xf]  ;;  %v8761_v40 = vor.u32 %v10778_v26, %v8758_v36  ;;  %v8750_v61 = vld [vmem:[#allocation5 + $0xd68] sm:$0xf0]  ;;  %v8934_v36 = vld [vmem:[#allocation5 + $0xed8] sm:$0xf0] }
 0x269   :  { %6240 = vmatpush.bf16.msra.mxu2 %v8609_v32  ;;  %v8657_v32 = vor.u32 %v10752_v45, %v8654_v31  ;;  %v5969_v59 = vadd.f32 %v5968_v13, %v5955_v12  ;;  %v10794_v60 = vld [vmem:[#allocation5 + $0xdf4] sm:$0xf]  ;;  %v8449_v45 = vor.u32 %v10700_v10, %v8446_v46  ;;  %v8822_v31 = vld [vmem:[#allocation5 + $0xdf8] sm:$0xf0]  ;;  %v8814_v10 = vld [vmem:[#allocation5 + $0xde8] sm:$0xf0] }
 0x26a   :  { %6254 = vmatpush.bf16.msra.mxu3 %v8673_v11  ;;  %v8582_v11 = vld [vmem:[#allocation5 + $0xc18] sm:$0xf0]  ;;  %v5982_v53 = vpop.f32.mrf.mxu3  ;;  %v10808_v46 = vld [vmem:[#allocation5 + $0xe64] sm:$0xf]  ;;  %v8878_v12 = vld [vmem:[#allocation5 + $0xe68] sm:$0xf0] }
 0x26b   :  { %6213 = vmatpush.bf16.msra.mxu0 %v8473_v16  ;;  %v8521_v16 = vor.u32 %v10718_v23, %v8518_v0  ;;  %v8585_v57 = vor.u32 %v10734_v38, %v8582_v11  ;;  %v11725_v34 = vadd.f32 %v5982_v53, %v5969_v59  ;;  %v8950_v23 = vld [vmem:[#allocation5 + $0xef8] sm:$0xf0]  ;;  %v8825_v0 = vor.u32 %v10794_v60, %v8822_v31  ;;  %v10776_v11 = vld [vmem:[#allocation5 + $0xd64] sm:$0xf]  ;;  %v10806_v59 = vld [vmem:[#allocation5 + $0xe54] sm:$0xf] }
 0x26c   :  { %6227 = vmatpush.bf16.msra.mxu1 %v8537_v35  ;;  %v8510_v35 = vld [vmem:[#allocation5 + $0xb88] sm:$0xf0]  ;;  %v8742_v13 = vld [vmem:[#allocation5 + $0xd58] sm:$0xf0]  ;;  %v10822_v26 = vld [vmem:[#allocation5 + $0xed4] sm:$0xf] }
 0x26d   :  { %6241 = vmatpush.bf16.msra.mxu2 %v8601_v14  ;;  %v10732_v14 = vld [vmem:[#allocation5 + $0xc04] sm:$0xf]  ;;  %v8870_v53 = vld [vmem:[#allocation5 + $0xe58] sm:$0xf0] }
 0x26e   :  { %6255 = vmatpush.bf16.msra.mxu3 %v8665_v6  ;;  %v10748_v6 = vld [vmem:[#allocation5 + $0xc84] sm:$0xf]  ;;  %v8577_v21 = vor.u32 %v10732_v14, %v8574_v44  ;;  %v8881_v14 = vor.u32 %v10808_v46, %v8878_v12  ;;  %v10790_v44 = vld [vmem:[#allocation5 + $0xdd4] sm:$0xf]  ;;  %v8873_v31 = vor.u32 %v10806_v59, %v8870_v53  ;;  %v8790_v12 = vld [vmem:[#allocation5 + $0xdb8] sm:$0xf0] }
 0x26f   :  { %6214 = vmatpush.bf16.msra.mxu0 %v8465_v28  ;;  %v10810_v28 = vld [vmem:[#allocation5 + $0xe74] sm:$0xf]  ;;  %v8782_v53 = vld [vmem:[#allocation5 + $0xda8] sm:$0xf0] }
 0x270   :  { %6228 = vmatpush.bf16.msra.mxu1 %v8529_v55  ;;  %v8886_v55 = vld [vmem:[#allocation5 + $0xe78] sm:$0xf0] }
 0x271   :  { %6242 = vmatpush.bf16.msra.mxu2 %v8593_v3  ;;  %v8513_v3 = vor.u32 %v10716_v19, %v8510_v35  ;;  %v8889_v38 = vor.u32 %v10810_v28, %v8886_v55  ;;  %v8753_v19 = vor.u32 %v10776_v11, %v8750_v61  ;;  %v8817_v35 = vor.u32 %v10792_v30, %v8814_v10  ;;  %v10772_v28 = vld [vmem:[#allocation5 + $0xd44] sm:$0xf]  ;;  %v10770_v61 = vld [vmem:[#allocation5 + $0xd34] sm:$0xf]  ;;  %v8726_v30 = vld [vmem:[#allocation5 + $0xd38] sm:$0xf0] }
 0x272   :  { %6256 = vmatpush.bf16.msra.mxu3 %v8657_v32  ;;  %v8641_v32 = vor.u32 %v10748_v6, %v8638_v39  ;;  %v8806_v39 = vld [vmem:[#allocation5 + $0xdd8] sm:$0xf0]  ;;  %v10788_v55 = vld [vmem:[#allocation5 + $0xdc4] sm:$0xf] }
 0x273   :  { %6215 = vmatpush.bf16.msra.mxu0 %v8457_v51  ;;  %v8953_v51 = vor.u32 %v10826_v24, %v8950_v23  ;;  %v10804_v24 = vld [vmem:[#allocation5 + $0xe44] sm:$0xf] }
 0x274   :  { %6229 = vmatpush.bf16.msra.mxu1 %v8521_v16  ;;  %v10824_v16 = vld [vmem:[#allocation5 + $0xee4] sm:$0xf] }
 0x275   :  { %6243 = vmatpush.bf16.msra.mxu2 %v8585_v57  ;;  %v8942_v57 = vld [vmem:[#allocation5 + $0xee8] sm:$0xf0] }
 0x276   :  { %6257 = vmatpush.bf16.msra.mxu3 %v8649_v41  ;;  %v10774_v41 = vld [vmem:[#allocation5 + $0xd54] sm:$0xf]  ;;  %v8945_v6 = vor.u32 %v10824_v16, %v8942_v57  ;;  %v8854_v57 = vld [vmem:[#allocation5 + $0xe38] sm:$0xf0] }
 0x277   :  { %6216 = vmatpush.bf16.msra.mxu0 %v8449_v45  ;;  %v8745_v60 = vor.u32 %v10774_v41, %v8742_v13  ;;  %v8809_v45 = vor.u32 %v10790_v44, %v8806_v39  ;;  %v5994_v23 = vpop.f32.mrf.mxu0  ;;  %v10802_v16 = vld [vmem:[#allocation5 + $0xe34] sm:$0xf]  ;;  %v10768_v13 = vld [vmem:[#allocation5 + $0xd24] sm:$0xf]  ;;  %v8718_v44 = vld [vmem:[#allocation5 + $0xd28] sm:$0xf0] }
 0x278   :  { %6230 = vmatpush.bf16.msra.mxu1 %v8513_v3  ;;  %v8937_v3 = vor.u32 %v10822_v26, %v8934_v36  ;;  %v8857_v41 = vor.u32 %v10802_v16, %v8854_v57  ;;  %v10800_v26 = vld [vmem:[#allocation5 + $0xe24] sm:$0xf]  ;;  %v8846_v36 = vld [vmem:[#allocation5 + $0xe28] sm:$0xf0] }
 0x279   :  { %6244 = vmatpush.bf16.msra.mxu2 %v8577_v21  ;;  %v8798_v21 = vld [vmem:[#allocation5 + $0xdc8] sm:$0xf0]  ;;  %v10780_v57 = vld [vmem:[#allocation5 + $0xd84] sm:$0xf] }
 0x27a   :  { %6258 = vmatpush.bf16.msra.mxu3 %v8641_v32  ;;  %6217 = vmatmul.bf16.vlgmr.msra.gmra.mxu0 %v11469_v33  ;;  %v8734_v33 = vld [vmem:[#allocation5 + $0xd48] sm:$0xf0] }
 0x27b   :  { %6265 = vmatpush.bf16.msrb.mxu0 %v8761_v40  ;;  %6231 = vmatmul.bf16.vlgmr.msra.gmra.mxu1 %v11475_v48  ;;  %v10820_v48 = vld [vmem:[#allocation5 + $0xec4] sm:$0xf]  ;;  %v8926_v32 = vld [vmem:[#allocation5 + $0xec8] sm:$0xf0]  ;;  %v8737_v40 = vor.u32 %v10772_v28, %v8734_v33 }
 0x27c   :  { %6279 = vmatpush.bf16.msrb.mxu1 %v8825_v0  ;;  %6245 = vmatmul.bf16.vlgmr.msra.gmra.mxu2 %v11488_v29  ;;  %v8862_v29 = vld [vmem:[#allocation5 + $0xe48] sm:$0xf0]  ;;  %v6008_v0 = vpop.f32.mrf.mxu1  ;;  %v8929_v10 = vor.u32 %v10820_v48, %v8926_v32  ;;  %v10816_v28 = vld [vmem:[#allocation5 + $0xea4] sm:$0xf]  ;;  %v10766_v48 = vld [vmem:[#allocation5 + $0xd14] sm:$0xf] }
 0x27d   :  { %6293 = vmatpush.bf16.msrb.mxu2 %v8889_v38  ;;  %6259 = vmatmul.bf16.vlgmr.msra.gmra.mxu3 %v11494_v63  ;;  %v5995_v63 = vadd.f32 %v5994_v23, %v11723_v47  ;;  %v8801_v38 = vor.u32 %v10788_v55, %v8798_v21  ;;  %v8865_v11 = vor.u32 %v10804_v24, %v8862_v29  ;;  %v8910_v33 = vld [vmem:[#allocation5 + $0xea8] sm:$0xf0]  ;;  %v8710_v32 = vld [vmem:[#allocation5 + $0xd18] sm:$0xf0] }
 0x27e   :  { %6307 = vmatpush.bf16.msrb.mxu3 %v8953_v51  ;;  %v10786_v51 = vld [vmem:[#allocation5 + $0xdb4] sm:$0xf]  ;;  %v8849_v23 = vor.u32 %v10800_v26, %v8846_v36 }
 0x27f   :  { %6266 = vmatpush.bf16.msrb.mxu0 %v8753_v19  ;;  %v6009_v46 = vadd.f32 %v6008_v0, %v5995_v63  ;;  %v10818_v19 = vld [vmem:[#allocation5 + $0xeb4] sm:$0xf]  ;;  %v8793_v47 = vor.u32 %v10786_v51, %v8790_v12  ;;  %v6022_v59 = vpop.f32.mrf.mxu2  ;;  %v8902_v51 = vld [vmem:[#allocation5 + $0xe98] sm:$0xf0] }
 0x280   :  { %6280 = vmatpush.bf16.msrb.mxu1 %v8817_v35  ;;  %v8918_v35 = vld [vmem:[#allocation5 + $0xeb8] sm:$0xf0]  ;;  %v10782_v63 = vld [vmem:[#allocation5 + $0xd94] sm:$0xf] }
 0x281   :  { %6294 = vmatpush.bf16.msrb.mxu2 %v8881_v14  ;;  %v8729_v14 = vor.u32 %v10770_v61, %v8726_v30  ;;  %v8921_v39 = vor.u32 %v10818_v19, %v8918_v35  ;;  %v8838_v61 = vld [vmem:[#allocation5 + $0xe18] sm:$0xf0]  ;;  %v10814_v30 = vld [vmem:[#allocation5 + $0xe94] sm:$0xf]  ;;  %v8766_v19 = vld [vmem:[#allocation5 + $0xd88] sm:$0xf0] }
 0x282   :  { %6308 = vmatpush.bf16.msrb.mxu3 %v8945_v6  ;;  %v10784_v6 = vld [vmem:[#allocation5 + $0xda4] sm:$0xf]  ;;  %v10858_v26 = vld [vmem:[#allocation5 + $0xff4] sm:$0xf] }
 0x283   :  { %6267 = vmatpush.bf16.msrb.mxu0 %v8745_v60  ;;  %v6023_v60 = vadd.f32 %v6022_v59, %v6009_v46  ;;  %v8785_v29 = vor.u32 %v10784_v6, %v8782_v53  ;;  %v8702_v46 = vld [vmem:[#allocation5 + $0xd08] sm:$0xf0]  ;;  %v10796_v35 = vld [vmem:[#allocation5 + $0xe04] sm:$0xf]  ;;  %v10842_v59 = vld [vmem:[#allocation5 + $0xf74] sm:$0xf] }
 0x284   :  { %6281 = vmatpush.bf16.msrb.mxu1 %v8809_v45  ;;  %v5996_v45 = vpop.f32.mrf.mxu0  ;;  %v6010_v21 = vpop.f32.mrf.mxu1  ;;  %v9014_v53 = vld [vmem:[#allocation5 + $0xf78] sm:$0xf0] }
 0x285   :  { %6295 = vmatpush.bf16.msrb.mxu2 %v8873_v31  ;;  %v6036_v31 = vpop.f32.mrf.mxu3  ;;  %v5997_v55 = vadd.f32 %v5996_v45, %v11725_v34  ;;  %v8713_v34 = vor.u32 %v10766_v48, %v8710_v32  ;;  %v10874_v45 = vld [vmem:[#allocation5 + $0x1074] sm:$0xf] }
 0x286   :  { %6309 = vmatpush.bf16.msrb.mxu3 %v8937_v3  ;;  %v8721_v3 = vor.u32 %v10768_v13, %v8718_v44  ;;  %v11733_v24 = vadd.f32 %v6036_v31, %v6023_v60  ;;  %v10812_v13 = vld [vmem:[#allocation5 + $0xe84] sm:$0xf]  ;;  %v8894_v44 = vld [vmem:[#allocation5 + $0xe88] sm:$0xf0]  ;;  %v9078_v60 = vld [vmem:[#allocation5 + $0xff8] sm:$0xf0] }
 0x287   :  { %6268 = vmatpush.bf16.msrb.mxu0 %v8737_v40  ;;  %v8913_v40 = vor.u32 %v10816_v28, %v8910_v33  ;;  %v6011_v0 = vadd.f32 %v6010_v21, %v5997_v55  ;;  %v9142_v31 = vld [vmem:[#allocation5 + $0x1078] sm:$0xf0]  ;;  %v8769_v33 = vor.u32 %v10780_v57, %v8766_v19  ;;  %v9081_v48 = vor.u32 %v10858_v26, %v9078_v60  ;;  %v10854_v19 = vld [vmem:[#allocation5 + $0xfd4] sm:$0xf]  ;;  %v10836_v60 = vld [vmem:[#allocation5 + $0xf44] sm:$0xf] }
 0x288   :  { %6282 = vmatpush.bf16.msrb.mxu1 %v8801_v38  ;;  %v8774_v38 = vld [vmem:[#allocation5 + $0xd98] sm:$0xf0]  ;;  %v9145_v32 = vor.u32 %v10874_v45, %v9142_v31  ;;  %v10852_v45 = vld [vmem:[#allocation5 + $0xfc4] sm:$0xf] }
 0x289   :  { %6296 = vmatpush.bf16.msrb.mxu2 %v8865_v11  ;;  %v10798_v11 = vld [vmem:[#allocation5 + $0xe14] sm:$0xf]  ;;  %v8777_v12 = vor.u32 %v10782_v63, %v8774_v38  ;;  %v9206_v21 = vld [vmem:[#allocation5 + $0x10f8] sm:$0xf0]  ;;  %v10840_v63 = vld [vmem:[#allocation5 + $0xf64] sm:$0xf] }
 0x28a   :  { %6310 = vmatpush.bf16.msrb.mxu3 %v8929_v10  ;;  %v10764_v10 = vld [vmem:[#allocation5 + $0xd04] sm:$0xf]  ;;  %v8841_v16 = vor.u32 %v10798_v11, %v8838_v61  ;;  %v9070_v11 = vld [vmem:[#allocation5 + $0xfe8] sm:$0xf0]  ;;  %v8998_v57 = vld [vmem:[#allocation5 + $0xf58] sm:$0xf0] }
 0x28b   :  { %6269 = vmatpush.bf16.msrb.mxu0 %v8729_v14  ;;  %v8905_v14 = vor.u32 %v10814_v30, %v8902_v51  ;;  %v8705_v36 = vor.u32 %v10764_v10, %v8702_v46  ;;  %v10872_v61 = vld [vmem:[#allocation5 + $0x1064] sm:$0xf]  ;;  %v9134_v30 = vld [vmem:[#allocation5 + $0x1068] sm:$0xf0] }
 0x28c   :  { %6283 = vmatpush.bf16.msrb.mxu1 %v8793_v47  ;;  %v6024_v47 = vpop.f32.mrf.mxu2  ;;  %v10888_v51 = vld [vmem:[#allocation5 + $0x10e4] sm:$0xf] }
 0x28d   :  { %6297 = vmatpush.bf16.msrb.mxu2 %v8857_v41  ;;  %v8830_v41 = vld [vmem:[#allocation5 + $0xe08] sm:$0xf0]  ;;  %v6025_v6 = vadd.f32 %v6024_v47, %v6011_v0  ;;  %v10856_v0 = vld [vmem:[#allocation5 + $0xfe4] sm:$0xf]  ;;  %v10870_v47 = vld [vmem:[#allocation5 + $0x1054] sm:$0xf] }
 0x28e   :  { %6311 = vmatpush.bf16.msrb.mxu3 %v8921_v39  ;;  %v6038_v39 = vpop.f32.mrf.mxu3  ;;  %v8833_v55 = vor.u32 %v10796_v35, %v8830_v41  ;;  %v9073_v46 = vor.u32 %v10856_v0, %v9070_v11  ;;  %v9126_v41 = vld [vmem:[#allocation5 + $0x1058] sm:$0xf0] }
 0x28f   :  { %6270 = vmatpush.bf16.msrb.mxu0 %v8721_v3  ;;  %v11735_v28 = vadd.f32 %v6038_v39, %v6025_v6  ;;  %v10890_v3 = vld [vmem:[#allocation5 + $0x10f4] sm:$0xf]  ;;  %v9190_v39 = vld [vmem:[#allocation5 + $0x10d8] sm:$0xf0] }
 0x290   :  { %6284 = vmatpush.bf16.msrb.mxu1 %v8785_v29  ;;  %v8897_v29 = vor.u32 %v10812_v13, %v8894_v44  ;;  %v9209_v38 = vor.u32 %v10890_v3, %v9206_v21  ;;  %v11922_v13 = vld [vmem:[#allocation26_spill] sm:$0xff]  ;;  %v11923_v44 = vld [vmem:[#allocation23_spill] sm:$0xff]  ;;  %v10886_v6 = vld [vmem:[#allocation5 + $0x10d4] sm:$0xf] }
 0x291   :  { %6298 = vmatpush.bf16.msrb.mxu2 %v8849_v23  ;;  %v9017_v23 = vor.u32 %v10842_v59, %v9014_v53  ;;  %v11924_v59 = vld [vmem:[#allocation29_spill] sm:$0xff]  ;;  %v9193_v31 = vor.u32 %v10886_v6, %v9190_v39  ;;  %v9118_v3 = vld [vmem:[#allocation5 + $0x1048] sm:$0xf0]  ;;  %v10864_v6 = vld [vmem:[#allocation5 + $0x1024] sm:$0xf] }
 0x292   :  { %6312 = vmatpush.bf16.msrb.mxu3 %v8913_v40  ;;  %v9006_v40 = vld [vmem:[#allocation5 + $0xf68] sm:$0xf0]  ;;  %v8982_v11 = vld [vmem:[#allocation5 + $0xf38] sm:$0xf0] }
 0x293   :  { %6271 = vmatpush.bf16.msrb.mxu0 %v8713_v34  ;;  %v9198_v34 = vld [vmem:[#allocation5 + $0x10e8] sm:$0xf0]  ;;  %v9009_v10 = vor.u32 %v10840_v63, %v9006_v40 }
 0x294   :  { %6285 = vmatpush.bf16.msrb.mxu1 %v8777_v12  ;;  %v9137_v12 = vor.u32 %v10872_v61, %v9134_v30  ;;  %v9201_v35 = vor.u32 %v10888_v51, %v9198_v34  ;;  %v10850_v61 = vld [vmem:[#allocation5 + $0xfb4] sm:$0xf]  ;;  %v9046_v34 = vld [vmem:[#allocation5 + $0xfb8] sm:$0xf0]  ;;  %v9102_v39 = vld [vmem:[#allocation5 + $0x1028] sm:$0xf0] }
 0x295   :  { %6299 = vmatpush.bf16.msrb.mxu2 %v8841_v16  ;;  %v10838_v16 = vld [vmem:[#allocation5 + $0xf54] sm:$0xf] }
 0x296   :  { %6313 = vmatpush.bf16.msrb.mxu3 %v8905_v14  ;;  %v9062_v14 = vld [vmem:[#allocation5 + $0xfd8] sm:$0xf0]  ;;  %v9001_v53 = vor.u32 %v10838_v16, %v8998_v57 }
 0x297   :  { %6272 = vmatpush.bf16.msrb.mxu0 %v8705_v36  ;;  %v9065_v26 = vor.u32 %v10854_v19, %v9062_v14  ;;  %v9129_v36 = vor.u32 %v10870_v47, %v9126_v41  ;;  %v6050_v21 = vpop.f32.mrf.mxu0  ;;  %v9174_v16 = vld [vmem:[#allocation5 + $0x10b8] sm:$0xf0]  ;;  %v8974_v14 = vld [vmem:[#allocation5 + $0xf28] sm:$0xf0]  ;;  %v10848_v47 = vld [vmem:[#allocation5 + $0xfa4] sm:$0xf] }
 0x298   :  { %6286 = vmatpush.bf16.msrb.mxu1 %v8769_v33  ;;  %v9054_v33 = vld [vmem:[#allocation5 + $0xfc8] sm:$0xf0]  ;;  %v6064_v63 = vpop.f32.mrf.mxu1 }
 0x299   :  { %6300 = vmatpush.bf16.msrb.mxu2 %v8833_v55  ;;  %v10868_v55 = vld [vmem:[#allocation5 + $0x1044] sm:$0xf]  ;;  %v9057_v40 = vor.u32 %v10852_v45, %v9054_v33 }
 0x29a   :  { %6314 = vmatpush.bf16.msrb.mxu3 %v8897_v29  ;;  %6273 = vmatmul.bf16.vlgmr.msrb.gmra.mxu0 %v11492_v62  ;;  %v8990_v62 = vld [vmem:[#allocation5 + $0xf48] sm:$0xf0]  ;;  %v10884_v29 = vld [vmem:[#allocation5 + $0x10c4] sm:$0xf]  ;;  %v9121_v0 = vor.u32 %v10868_v55, %v9118_v3  ;;  %v9105_v3 = vor.u32 %v10864_v6, %v9102_v39 }
 0x29b   :  { %6321 = vmatpush.bf16.msra.mxu0 %v9017_v23  ;;  %6287 = vmatmul.bf16.vlgmr.msrb.gmra.mxu1 %v11923_v44  ;;  %v9182_v23 = vld [vmem:[#allocation5 + $0x10c8] sm:$0xf0] }
 0x29c   :  { %6335 = vmatpush.bf16.msra.mxu1 %v9081_v48  ;;  %6301 = vmatmul.bf16.vlgmr.msrb.gmra.mxu2 %v11922_v13  ;;  %v6051_v48 = vadd.f32 %v6050_v21, %v11733_v24  ;;  %v9185_v30 = vor.u32 %v10884_v29, %v9182_v23  ;;  %v9049_v24 = vor.u32 %v10850_v61, %v9046_v34  ;;  %v9038_v44 = vld [vmem:[#allocation5 + $0xfa8] sm:$0xf0]  ;;  %v10830_v21 = vld [vmem:[#allocation5 + $0xf14] sm:$0xf]  ;;  %v8966_v29 = vld [vmem:[#allocation5 + $0xf18] sm:$0xf0] }
 0x29d   :  { %6349 = vmatpush.bf16.msra.mxu2 %v9145_v32  ;;  %6315 = vmatmul.bf16.vlgmr.msrb.gmra.mxu3 %v11924_v59  ;;  %v8993_v32 = vor.u32 %v10836_v60, %v8990_v62  ;;  %v9166_v60 = vld [vmem:[#allocation5 + $0x10a8] sm:$0xf0]  ;;  %v9041_v55 = vor.u32 %v10848_v47, %v9038_v44  ;;  %v10846_v23 = vld [vmem:[#allocation5 + $0xf94] sm:$0xf]  ;;  %v9094_v61 = vld [vmem:[#allocation5 + $0x1018] sm:$0xf0]  ;;  %v8969_v34 = vor.u32 %v10830_v21, %v8966_v29 }
 0x29e   :  { %6363 = vmatpush.bf16.msra.mxu3 %v9209_v38  ;;  %v10834_v38 = vld [vmem:[#allocation5 + $0xf34] sm:$0xf]  ;;  %v6065_v51 = vadd.f32 %v6064_v63, %v6051_v48  ;;  %v11927_v63 = vld [vmem:[#allocation17_spill] sm:$0xff]  ;;  %v10876_v44 = vld [vmem:[#allocation5 + $0x1084] sm:$0xf] }
 0x29f   :  { %6322 = vmatpush.bf16.msra.mxu0 %v9009_v10  ;;  %v10866_v10 = vld [vmem:[#allocation5 + $0x1034] sm:$0xf]  ;;  %v8985_v57 = vor.u32 %v10834_v38, %v8982_v11  ;;  %v6078_v13 = vpop.f32.mrf.mxu2  ;;  %v9030_v11 = vld [vmem:[#allocation5 + $0xf98] sm:$0xf0]  ;;  %v9150_v6 = vld [vmem:[#allocation5 + $0x1088] sm:$0xf0] }
 0x2a0   :  { %6336 = vmatpush.bf16.msra.mxu1 %v9073_v46  ;;  %v9110_v46 = vld [vmem:[#allocation5 + $0x1038] sm:$0xf0]  ;;  %v6079_v59 = vadd.f32 %v6078_v13, %v6065_v51  ;;  %v11925_v48 = vld [vmem:[#allocation16_spill] sm:$0xff]  ;;  %v9086_v13 = vld [vmem:[#allocation5 + $0x1008] sm:$0xf0] }
 0x2a1   :  { %6350 = vmatpush.bf16.msra.mxu2 %v9137_v12  ;;  %v10882_v12 = vld [vmem:[#allocation5 + $0x10b4] sm:$0xf]  ;;  %v9113_v19 = vor.u32 %v10866_v10, %v9110_v46  ;;  %v9158_v51 = vld [vmem:[#allocation5 + $0x1098] sm:$0xf0]  ;;  %v10828_v10 = vld [vmem:[#allocation5 + $0xf04] sm:$0xf] }
 0x2a2   :  { %6364 = vmatpush.bf16.msra.mxu3 %v9201_v35  ;;  %v10832_v35 = vld [vmem:[#allocation5 + $0xf24] sm:$0xf]  ;;  %v9177_v41 = vor.u32 %v10882_v12, %v9174_v16  ;;  %v8958_v46 = vld [vmem:[#allocation5 + $0xf08] sm:$0xf0]  ;;  %v9033_v12 = vor.u32 %v10846_v23, %v9030_v11  ;;  %v10954_v29 = vld [vmem:[#allocation5 + $0x12f4] sm:$0xf] }
 0x2a3   :  { %6323 = vmatpush.bf16.msra.mxu0 %v9001_v53  ;;  %v6052_v53 = vpop.f32.mrf.mxu0  ;;  %v8977_v45 = vor.u32 %v10832_v35, %v8974_v14  ;;  %v11928_v35 = vld [vmem:[#allocation18_spill] sm:$0xff]  ;;  %v9462_v23 = vld [vmem:[#allocation5 + $0x12f8] sm:$0xf0] }
 0x2a4   :  { %6337 = vmatpush.bf16.msra.mxu1 %v9065_v26  ;;  %v6092_v26 = vpop.f32.mrf.mxu3  ;;  %v6053_v62 = vadd.f32 %v6052_v53, %v11735_v28  ;;  %v10862_v28 = vld [vmem:[#allocation5 + $0x1014] sm:$0xf]  ;;  %v10904_v11 = vld [vmem:[#allocation5 + $0x1164] sm:$0xf] }
 0x2a5   :  { %6351 = vmatpush.bf16.msra.mxu2 %v9129_v36  ;;  %v10880_v36 = vld [vmem:[#allocation5 + $0x10a4] sm:$0xf]  ;;  %v11743_v33 = vadd.f32 %v6092_v26, %v6079_v59  ;;  %v9097_v16 = vor.u32 %v10862_v28, %v9094_v61  ;;  %v10906_v53 = vld [vmem:[#allocation5 + $0x1174] sm:$0xf]  ;;  %v9270_v26 = vld [vmem:[#allocation5 + $0x1178] sm:$0xf0] }
 0x2a6   :  { %6365 = vmatpush.bf16.msra.mxu3 %v9193_v31  ;;  %v6066_v31 = vpop.f32.mrf.mxu1  ;;  %v9262_v28 = vld [vmem:[#allocation5 + $0x1168] sm:$0xf0]  ;;  %v10920_v61 = vld [vmem:[#allocation5 + $0x11e4] sm:$0xf] }
 0x2a7   :  { %6324 = vmatpush.bf16.msra.mxu0 %v8993_v32  ;;  %v11926_v32 = vperm.slane %v11925_v48, 0  ;;  %v6067_v38 = vadd.f32 %v6066_v31, %v6053_v62  ;;  %v9334_v62 = vld [vmem:[#allocation5 + $0x11f8] sm:$0xf0]  ;;  %v11929_v48 = vld [vmem:[#allocation19_spill] sm:$0xff] }
 0x2a8   :  { %6338 = vmatpush.bf16.msra.mxu1 %v9057_v40  ;;  %v9398_v31 = vld [vmem:[#allocation5 + $0x1278] sm:$0xf0] }
 0x2a9   :  { %6352 = vmatpush.bf16.msra.mxu2 %v9121_v0  ;;  %v5213_v40 = vadd.f32 %v11927_v63, %v11926_v32  ;;  %v9169_v0 = vor.u32 %v10880_v36, %v9166_v60  ;;  %v10922_v36 = vld [vmem:[#allocation5 + $0x11f4] sm:$0xf]  ;;  %v8961_v60 = vor.u32 %v10828_v10, %v8958_v46  ;;  %v9153_v63 = vor.u32 %v10876_v44, %v9150_v6  ;;  %v9390_v10 = vld [vmem:[#allocation5 + $0x1268] sm:$0xf0]  ;;  %v10952_v46 = vld [vmem:[#allocation5 + $0x12e4] sm:$0xf] }
 0x2aa   :  { %6366 = vmatpush.bf16.msra.mxu3 %v9185_v30  ;;  %v10878_v30 = vld [vmem:[#allocation5 + $0x1094] sm:$0xf]  ;;  %v9318_v6 = vld [vmem:[#allocation5 + $0x11d8] sm:$0xf0] }
 0x2ab   :  { %6325 = vmatpush.bf16.msra.mxu0 %v8985_v57  ;;  %v10844_v57 = vld [vmem:[#allocation5 + $0xf84] sm:$0xf]  ;;  %v5227_v14 = vadd.f32 %v11928_v35, %v5213_v40  ;;  %v9161_v47 = vor.u32 %v10878_v30, %v9158_v51  ;;  %v9273_v40 = vor.u32 %v10906_v53, %v9270_v26  ;;  %v9465_v30 = vor.u32 %v10954_v29, %v9462_v23  ;;  %v9326_v51 = vld [vmem:[#allocation5 + $0x11e8] sm:$0xf0] }
 0x2ac   :  { %6339 = vmatpush.bf16.msra.mxu1 %v9049_v24  ;;  %v9022_v24 = vld [vmem:[#allocation5 + $0xf88] sm:$0xf0]  ;;  %v6094_v59 = vpop.f32.mrf.mxu3  ;;  %v11932_v53 = vld [vmem:[#allocation34_spill] sm:$0xff] }
 0x2ad   :  { %6353 = vmatpush.bf16.msra.mxu2 %v9113_v19  ;;  %v10860_v19 = vld [vmem:[#allocation5 + $0x1004] sm:$0xf]  ;;  %v5241_v32 = vadd.f32 %v11929_v48, %v5227_v14  ;;  %v10902_v14 = vld [vmem:[#allocation5 + $0x1154] sm:$0xf]  ;;  %v11933_v26 = vld [vmem:[#allocation31_spill] sm:$0xff] }
 0x2ae   :  { %6367 = vmatpush.bf16.msra.mxu3 %v9177_v41  ;;  %v6080_v41 = vpop.f32.mrf.mxu2  ;;  %v9089_v21 = vor.u32 %v10860_v19, %v9086_v13  ;;  %v9329_v19 = vor.u32 %v10920_v61, %v9326_v51  ;;  %v11931_v13 = vld [vmem:[#allocation28_spill] sm:$0xff]  ;;  %v10900_v23 = vld [vmem:[#allocation5 + $0x1144] sm:$0xf]  ;;  %v9246_v48 = vld [vmem:[#allocation5 + $0x1148] sm:$0xf0] }
 0x2af   :  { %6326 = vmatpush.bf16.msra.mxu0 %v8977_v45  ;;  %v6081_v39 = vadd.f32 %v6080_v41, %v6067_v38  ;;  %v10938_v45 = vld [vmem:[#allocation5 + $0x1274] sm:$0xf]  ;;  %v9438_v61 = vld [vmem:[#allocation5 + $0x12c8] sm:$0xf0] }
 0x2b0   :  { %6340 = vmatpush.bf16.msra.mxu1 %v9041_v55  ;;  %v9401_v38 = vor.u32 %v10938_v45, %v9398_v31  ;;  %v10918_v41 = vld [vmem:[#allocation5 + $0x11d4] sm:$0xf]  ;;  %v11935_v31 = vld [vmem:[#allocation37_spill] sm:$0xff] }
 0x2b1   :  { %6354 = vmatpush.bf16.msra.mxu2 %v9105_v3  ;;  %v11749_v55 = vadd.f32 %v6094_v59, %v6081_v39  ;;  %v9025_v3 = vor.u32 %v10844_v57, %v9022_v24  ;;  %v9265_v24 = vor.u32 %v10904_v11, %v9262_v28  ;;  %v10934_v39 = vld [vmem:[#allocation5 + $0x1254] sm:$0xf]  ;;  %v9382_v59 = vld [vmem:[#allocation5 + $0x1258] sm:$0xf0]  ;;  %v10948_v28 = vld [vmem:[#allocation5 + $0x12c4] sm:$0xf] }
 0x2b2   :  { %6368 = vmatpush.bf16.msra.mxu3 %v9169_v0  ;;  %v9337_v0 = vor.u32 %v10922_v36, %v9334_v62  ;;  %v10950_v36 = vld [vmem:[#allocation5 + $0x12d4] sm:$0xf]  ;;  %v11934_v62 = vld [vmem:[#allocation21_spill] sm:$0xff]  ;;  %v9385_v29 = vor.u32 %v10934_v39, %v9382_v59 }
 0x2b3   :  { %6327 = vmatpush.bf16.msra.mxu0 %v8969_v34  ;;  %v10936_v34 = vld [vmem:[#allocation5 + $0x1264] sm:$0xf]  ;;  %v10946_v39 = vld [vmem:[#allocation5 + $0x12b4] sm:$0xf]  ;;  %v9430_v59 = vld [vmem:[#allocation5 + $0x12b8] sm:$0xf0] }
 0x2b4   :  { %6341 = vmatpush.bf16.msra.mxu1 %v9033_v12  ;;  %v9454_v12 = vld [vmem:[#allocation5 + $0x12e8] sm:$0xf0]  ;;  %v9393_v35 = vor.u32 %v10936_v34, %v9390_v10  ;;  %v9249_v10 = vor.u32 %v10900_v23, %v9246_v48  ;;  %v10928_v23 = vld [vmem:[#allocation5 + $0x1224] sm:$0xf] }
 0x2b5   :  { %6355 = vmatpush.bf16.msra.mxu2 %v9097_v16  ;;  %v11930_v16 = vld [vmem:[#allocation20_spill] sm:$0xff]  ;;  %v9457_v44 = vor.u32 %v10952_v46, %v9454_v12  ;;  %v9358_v48 = vld [vmem:[#allocation5 + $0x1228] sm:$0xf0] }
 0x2b6   :  { %6369 = vmatpush.bf16.msra.mxu3 %v9161_v47  ;;  %v5255_v57 = vadd.f32 %v11930_v16, %v5241_v32  ;;  %v9254_v47 = vld [vmem:[#allocation5 + $0x1158] sm:$0xf0]  ;;  %v10916_v32 = vld [vmem:[#allocation5 + $0x11c4] sm:$0xf] }
 0x2b7   :  { %6328 = vmatpush.bf16.msra.mxu0 %v8961_v60  ;;  %v9446_v60 = vld [vmem:[#allocation5 + $0x12d8] sm:$0xf0]  ;;  %v6106_v11 = vpop.f32.mrf.mxu0 }
 0x2b8   :  { %6342 = vmatpush.bf16.msra.mxu1 %v9025_v3  ;;  %v5269_v45 = vadd.f32 %v11934_v62, %v5255_v57  ;;  %v9257_v3 = vor.u32 %v10902_v14, %v9254_v47  ;;  %v6107_v34 = vadd.f32 %v6106_v11, %v11743_v33  ;;  %v6120_v46 = vpop.f32.mrf.mxu1  ;;  %v10898_v57 = vld [vmem:[#allocation5 + $0x1134] sm:$0xf]  ;;  %v9441_v47 = vor.u32 %v10948_v28, %v9438_v61  ;;  %v10912_v62 = vld [vmem:[#allocation5 + $0x11a4] sm:$0xf]  ;;  %v11939_v11 = vld [vmem:[#allocation27_spill] sm:$0xff] }
 0x2b9   :  { %6356 = vmatpush.bf16.msra.mxu2 %v9089_v21  ;;  %v9321_v21 = vor.u32 %v10918_v41, %v9318_v6  ;;  %v9366_v6 = vld [vmem:[#allocation5 + $0x1238] sm:$0xf0] }
 0x2ba   :  { %6370 = vmatpush.bf16.msra.mxu3 %v9153_v63  ;;  %6329 = vmatmul.bf16.vlgmr.msra.gmra.mxu0 %v11931_v13  ;;  %v9449_v63 = vor.u32 %v10950_v36, %v9446_v60  ;;  %v6121_v41 = vadd.f32 %v6120_v46, %v6107_v34  ;;  %v9302_v13 = vld [vmem:[#allocation5 + $0x11b8] sm:$0xf0]  ;;  %v10896_v36 = vld [vmem:[#allocation5 + $0x1124] sm:$0xf]  ;;  %v9230_v60 = vld [vmem:[#allocation5 + $0x1128] sm:$0xf0]  ;;  %v9361_v46 = vor.u32 %v10928_v23, %v9358_v48 }
 0x2bb   :  { %6377 = vmatpush.bf16.msrb.mxu0 %v9273_v40  ;;  %6343 = vmatmul.bf16.vlgmr.msra.gmra.mxu1 %v11933_v26  ;;  %v9310_v40 = vld [vmem:[#allocation5 + $0x11c8] sm:$0xf0] }
 0x2bc   :  { %6391 = vmatpush.bf16.msrb.mxu1 %v9337_v0  ;;  %6357 = vmatmul.bf16.vlgmr.msra.gmra.mxu2 %v11932_v53  ;;  %v10932_v0 = vld [vmem:[#allocation5 + $0x1244] sm:$0xf]  ;;  %v9313_v12 = vor.u32 %v10916_v32, %v9310_v40  ;;  %v9406_v23 = vld [vmem:[#allocation5 + $0x1288] sm:$0xf0] }
 0x2bd   :  { %6405 = vmatpush.bf16.msrb.mxu2 %v9401_v38  ;;  %6371 = vmatmul.bf16.vlgmr.msra.gmra.mxu3 %v11935_v31  ;;  %v9374_v38 = vld [vmem:[#allocation5 + $0x1248] sm:$0xf0] }
 0x2be   :  { %6419 = vmatpush.bf16.msrb.mxu3 %v9465_v30  ;;  %v11936_v30 = vld [vmem:[#allocation22_spill] sm:$0xff]  ;;  %v9377_v16 = vor.u32 %v10932_v0, %v9374_v38  ;;  %v9422_v38 = vld [vmem:[#allocation5 + $0x12a8] sm:$0xf0] }
 0x2bf   :  { %6378 = vmatpush.bf16.msrb.mxu0 %v9265_v24  ;;  %v5283_v51 = vadd.f32 %v11936_v30, %v5269_v45  ;;  %v9238_v24 = vld [vmem:[#allocation5 + $0x1138] sm:$0xf0]  ;;  %v10944_v0 = vld [vmem:[#allocation5 + $0x12a4] sm:$0xf]  ;;  %v9233_v30 = vor.u32 %v10896_v36, %v9230_v60  ;;  %v9278_v36 = vld [vmem:[#allocation5 + $0x1188] sm:$0xf0] }
 0x2c0   :  { %6392 = vmatpush.bf16.msrb.mxu1 %v9329_v19  ;;  %v10914_v19 = vld [vmem:[#allocation5 + $0x11b4] sm:$0xf]  ;;  %v9241_v33 = vor.u32 %v10898_v57, %v9238_v24  ;;  %v11938_v45 = vld [vmem:[#allocation25_spill] sm:$0xff]  ;;  %v6148_v40 = vpop.f32.mrf.mxu3  ;;  %v9425_v24 = vor.u32 %v10944_v0, %v9422_v38  ;;  %v10924_v60 = vld [vmem:[#allocation5 + $0x1204] sm:$0xf] }
 0x2c1   :  { %6406 = vmatpush.bf16.msrb.mxu2 %v9393_v35  ;;  %v11937_v35 = vld [vmem:[#allocation24_spill] sm:$0xff]  ;;  %v9305_v53 = vor.u32 %v10914_v19, %v9302_v13  ;;  %v9414_v13 = vld [vmem:[#allocation5 + $0x1298] sm:$0xf0] }
 0x2c2   :  { %6420 = vmatpush.bf16.msrb.mxu3 %v9457_v44  ;;  %v5297_v14 = vadd.f32 %v11937_v35, %v5283_v51  ;;  %v10930_v44 = vld [vmem:[#allocation5 + $0x1234] sm:$0xf]  ;;  %v6122_v51 = vpop.f32.mrf.mxu1  ;;  %v9286_v35 = vld [vmem:[#allocation5 + $0x1198] sm:$0xf0] }
 0x2c3   :  { %6379 = vmatpush.bf16.msrb.mxu0 %v9257_v3  ;;  %v9369_v26 = vor.u32 %v10930_v44, %v9366_v6  ;;  %v9433_v3 = vor.u32 %v10946_v39, %v9430_v59  ;;  %v10910_v57 = vld [vmem:[#allocation5 + $0x1194] sm:$0xf]  ;;  %v10892_v39 = vld [vmem:[#allocation5 + $0x1104] sm:$0xf]  ;;  %v9214_v59 = vld [vmem:[#allocation5 + $0x1108] sm:$0xf0] }
 0x2c4   :  { %6393 = vmatpush.bf16.msrb.mxu1 %v9321_v21  ;;  %v5311_v31 = vadd.f32 %v11938_v45, %v5297_v14  ;;  %v6134_v21 = vpop.f32.mrf.mxu2  ;;  %v10926_v14 = vld [vmem:[#allocation5 + $0x1214] sm:$0xf]  ;;  %v9217_v38 = vor.u32 %v10892_v39, %v9214_v59  ;;  %v9582_v39 = vld [vmem:[#allocation5 + $0x13e8] sm:$0xf0]  ;;  %v11000_v59 = vld [vmem:[#allocation5 + $0x1464] sm:$0xf] }
 0x2c5   :  { %6407 = vmatpush.bf16.msrb.mxu2 %v9385_v29  ;;  %v9294_v29 = vld [vmem:[#allocation5 + $0x11a8] sm:$0xf0]  ;;  %v6135_v32 = vadd.f32 %v6134_v21, %v6121_v41  ;;  %v10942_v41 = vld [vmem:[#allocation5 + $0x1294] sm:$0xf] }
 0x2c6   :  { %6421 = vmatpush.bf16.msrb.mxu3 %v9449_v63  ;;  %v6108_v63 = vpop.f32.mrf.mxu0  ;;  %v5325_v28 = vadd.f32 %v11939_v11, %v5311_v31  ;;  %v9417_v31 = vor.u32 %v10942_v41, %v9414_v13  ;;  %v9342_v21 = vld [vmem:[#allocation5 + $0x1208] sm:$0xf0]  ;;  %v10986_v0 = vld [vmem:[#allocation5 + $0x13f4] sm:$0xf]  ;;  %v9590_v11 = vld [vmem:[#allocation5 + $0x13f8] sm:$0xf0] }
 0x2c7   :  { %6380 = vmatpush.bf16.msrb.mxu0 %v9249_v10  ;;  %v6109_v61 = vadd.f32 %v6108_v63, %v11749_v55  ;;  %v11764_v34 = vadd.f32 %v6148_v40, %v6135_v32  ;;  %v9297_v10 = vor.u32 %v10912_v62, %v9294_v29  ;;  %v11940_v55 = vld [vmem:[#allocation30_spill] sm:$0xff]  ;;  %v11941_v62 = vld [vmem:[#allocation32_spill] sm:$0xff]  ;;  %v9526_v40 = vld [vmem:[#allocation5 + $0x1378] sm:$0xf0] }
 0x2c8   :  { %6394 = vmatpush.bf16.msrb.mxu1 %v9313_v12  ;;  %v10894_v12 = vld [vmem:[#allocation5 + $0x1114] sm:$0xf]  ;;  %v5339_v44 = vadd.f32 %v11940_v55, %v5325_v28  ;;  %v10940_v29 = vld [vmem:[#allocation5 + $0x1284] sm:$0xf]  ;;  %v6150_v32 = vpop.f32.mrf.mxu3  ;;  %v9518_v41 = vld [vmem:[#allocation5 + $0x1368] sm:$0xf0] }
 0x2c9   :  { %6408 = vmatpush.bf16.msrb.mxu2 %v9377_v16  ;;  %v9222_v16 = vld [vmem:[#allocation5 + $0x1118] sm:$0xf0]  ;;  %v6123_v19 = vadd.f32 %v6122_v51, %v6109_v61  ;;  %v10970_v63 = vld [vmem:[#allocation5 + $0x1374] sm:$0xf]  ;;  %v10984_v13 = vld [vmem:[#allocation5 + $0x13e4] sm:$0xf] }
 0x2ca   :  { %6422 = vmatpush.bf16.msrb.mxu3 %v9441_v47  ;;  %v9350_v47 = vld [vmem:[#allocation5 + $0x1218] sm:$0xf0]  ;;  %v9225_v6 = vor.u32 %v10894_v12, %v9222_v16  ;;  %v5353_v45 = vadd.f32 %v11941_v62, %v5339_v44  ;;  %v11002_v28 = vld [vmem:[#allocation5 + $0x1474] sm:$0xf]  ;;  %v11943_v55 = vld [vmem:[#allocation35_spill] sm:$0xff] }
 0x2cb   :  { %6381 = vmatpush.bf16.msrb.mxu0 %v9241_v33  ;;  %v9289_v33 = vor.u32 %v10910_v57, %v9286_v35  ;;  %v9654_v61 = vld [vmem:[#allocation5 + $0x1478] sm:$0xf0]  ;;  %v9593_v35 = vor.u32 %v10986_v0, %v9590_v11  ;;  %v11946_v0 = vld [vmem:[#allocation42_spill] sm:$0xff]  ;;  %v11014_v11 = vld [vmem:[#allocation5 + $0x14d4] sm:$0xf] }
 0x2cc   :  { %6395 = vmatpush.bf16.msrb.mxu1 %v9305_v53  ;;  %v9353_v53 = vor.u32 %v10926_v14, %v9350_v47  ;;  %v9718_v12 = vld [vmem:[#allocation5 + $0x14f8] sm:$0xf0]  ;;  %v9657_v14 = vor.u32 %v11002_v28, %v9654_v61  ;;  %v10968_v47 = vld [vmem:[#allocation5 + $0x1364] sm:$0xf]  ;;  %v11948_v61 = vld [vmem:[#allocation40_spill] sm:$0xff] }
 0x2cd   :  { %6409 = vmatpush.bf16.msrb.mxu2 %v9369_v26  ;;  %v10908_v26 = vld [vmem:[#allocation5 + $0x1184] sm:$0xf]  ;;  %v11942_v16 = vld [vmem:[#allocation33_spill] sm:$0xff] }
 0x2ce   :  { %6423 = vmatpush.bf16.msrb.mxu3 %v9433_v3  ;;  %v6136_v3 = vpop.f32.mrf.mxu2  ;;  %v9281_v51 = vor.u32 %v10908_v26, %v9278_v36  ;;  %v5367_v57 = vadd.f32 %v11942_v16, %v5353_v45  ;;  %v9710_v26 = vld [vmem:[#allocation5 + $0x14e8] sm:$0xf0]  ;;  %v9521_v36 = vor.u32 %v10968_v47, %v9518_v41  ;;  %v10966_v45 = vld [vmem:[#allocation5 + $0x1354] sm:$0xf]  ;;  %v9702_v28 = vld [vmem:[#allocation5 + $0x14d8] sm:$0xf0] }
 0x2cf   :  { %6382 = vmatpush.bf16.msrb.mxu0 %v9233_v30  ;;  %v6137_v48 = vadd.f32 %v6136_v3, %v6123_v19  ;;  %v9529_v19 = vor.u32 %v10970_v63, %v9526_v40  ;;  %v10982_v3 = vld [vmem:[#allocation5 + $0x13d4] sm:$0xf]  ;;  %v9638_v40 = vld [vmem:[#allocation5 + $0x1458] sm:$0xf0]  ;;  %v10996_v47 = vld [vmem:[#allocation5 + $0x1444] sm:$0xf] }
 0x2d0   :  { %6396 = vmatpush.bf16.msrb.mxu1 %v9297_v10  ;;  %v9345_v10 = vor.u32 %v10924_v60, %v9342_v21  ;;  %v5381_v44 = vadd.f32 %v11943_v55, %v5367_v57  ;;  %v9585_v60 = vor.u32 %v10984_v13, %v9582_v39  ;;  %v11944_v21 = vld [vmem:[#allocation38_spill] sm:$0xff]  ;;  %v10998_v63 = vld [vmem:[#allocation5 + $0x1454] sm:$0xf]  ;;  %v9630_v41 = vld [vmem:[#allocation5 + $0x1448] sm:$0xf0] }
 0x2d1   :  { %6410 = vmatpush.bf16.msrb.mxu2 %v9361_v46  ;;  %v11768_v30 = vadd.f32 %v6150_v32, %v6137_v48  ;;  %v11018_v46 = vld [vmem:[#allocation5 + $0x14f4] sm:$0xf]  ;;  %v9574_v32 = vld [vmem:[#allocation5 + $0x13d8] sm:$0xf0]  ;;  %v9641_v16 = vor.u32 %v10998_v63, %v9638_v40  ;;  %v10964_v57 = vld [vmem:[#allocation5 + $0x1344] sm:$0xf] }
 0x2d2   :  { %6424 = vmatpush.bf16.msrb.mxu3 %v9425_v24  ;;  %v9409_v24 = vor.u32 %v10940_v29, %v9406_v23  ;;  %v5395_v29 = vadd.f32 %v11944_v21, %v5381_v44  ;;  %v11945_v23 = vld [vmem:[#allocation36_spill] sm:$0xff]  ;;  %v11012_v55 = vld [vmem:[#allocation5 + $0x14c4] sm:$0xf]  ;;  %v9694_v44 = vld [vmem:[#allocation5 + $0x14c8] sm:$0xf0] }
 0x2d3   :  { %6383 = vmatpush.bf16.msrb.mxu0 %v9225_v6  ;;  %v9721_v6 = vor.u32 %v11018_v46, %v9718_v12  ;;  %v9577_v12 = vor.u32 %v10982_v3, %v9574_v32  ;;  %v9697_v21 = vor.u32 %v11012_v55, %v9694_v44  ;;  %v9622_v32 = vld [vmem:[#allocation5 + $0x1438] sm:$0xf0]  ;;  %v11010_v63 = vld [vmem:[#allocation5 + $0x14b4] sm:$0xf] }
 0x2d4   :  { %6397 = vmatpush.bf16.msrb.mxu1 %v9289_v33  ;;  %v9646_v33 = vld [vmem:[#allocation5 + $0x1468] sm:$0xf0]  ;;  %v9686_v40 = vld [vmem:[#allocation5 + $0x14b8] sm:$0xf0] }
 0x2d5   :  { %6411 = vmatpush.bf16.msrb.mxu2 %v9353_v53  ;;  %v11016_v53 = vld [vmem:[#allocation5 + $0x14e4] sm:$0xf]  ;;  %v9649_v62 = vor.u32 %v11000_v59, %v9646_v33 }
 0x2d6   :  { %6425 = vmatpush.bf16.msrb.mxu3 %v9417_v31  ;;  %v9510_v31 = vld [vmem:[#allocation5 + $0x1358] sm:$0xf0]  ;;  %v9713_v48 = vor.u32 %v11016_v53, %v9710_v26 }
 0x2d7   :  { %6384 = vmatpush.bf16.msrb.mxu0 %v9217_v38  ;;  %v11947_v38 = vld [vmem:[#allocation39_spill] sm:$0xff]  ;;  %v9513_v46 = vor.u32 %v10966_v45, %v9510_v31  ;;  %v6162_v13 = vpop.f32.mrf.mxu0  ;;  %v10978_v45 = vld [vmem:[#allocation5 + $0x13b4] sm:$0xf] }
 0x2d8   :  { %6398 = vmatpush.bf16.msrb.mxu1 %v9281_v51  ;;  %v5409_v51 = vadd.f32 %v11948_v61, %v5395_v29  ;;  %v6163_v59 = vadd.f32 %v6162_v13, %v11764_v34  ;;  %v6176_v53 = vpop.f32.mrf.mxu1  ;;  %v11951_v31 = vld [vmem:[#allocation43_spill] sm:$0xff]  ;;  %v10976_v61 = vld [vmem:[#allocation5 + $0x13a4] sm:$0xf] }
 0x2d9   :  { %6412 = vmatpush.bf16.msrb.mxu2 %v9345_v10  ;;  %v11949_v10 = vld [vmem:[#allocation45_spill] sm:$0xff] }
 0x2da   :  { %6426 = vmatpush.bf16.msrb.mxu3 %v9409_v24  ;;  %6385 = vmatmul.bf16.vlgmr.msrb.gmra.mxu0 %v11945_v23  ;;  %v9502_v24 = vld [vmem:[#allocation5 + $0x1348] sm:$0xf0]  ;;  %v6177_v29 = vadd.f32 %v6176_v53, %v6163_v59  ;;  %v9558_v23 = vld [vmem:[#allocation5 + $0x13b8] sm:$0xf0]  ;;  %v10958_v59 = vld [vmem:[#allocation5 + $0x1314] sm:$0xf] }
 0x2db   :  { %6433 = vmatpush.bf16.msra.mxu0 %v9529_v19  ;;  %6399 = vmatmul.bf16.vlgmr.msrb.gmra.mxu1 %v11947_v38  ;;  %v10980_v19 = vld [vmem:[#allocation5 + $0x13c4] sm:$0xf]  ;;  %v9505_v33 = vor.u32 %v10964_v57, %v9502_v24  ;;  %v9614_v24 = vld [vmem:[#allocation5 + $0x1428] sm:$0xf0]  ;;  %v10974_v53 = vld [vmem:[#allocation5 + $0x1394] sm:$0xf] }
 0x2dc   :  { %6447 = vmatpush.bf16.msra.mxu1 %v9593_v35  ;;  %6413 = vmatmul.bf16.vlgmr.msrb.gmra.mxu2 %v11946_v0  ;;  %v9705_v35 = vor.u32 %v11014_v11, %v9702_v28  ;;  %v9561_v0 = vor.u32 %v10978_v45, %v9558_v23  ;;  %v10960_v11 = vld [vmem:[#allocation5 + $0x1324] sm:$0xf]  ;;  %v9486_v28 = vld [vmem:[#allocation5 + $0x1328] sm:$0xf0]  ;;  %v11006_v45 = vld [vmem:[#allocation5 + $0x1494] sm:$0xf] }
 0x2dd   :  { %6461 = vmatpush.bf16.msra.mxu2 %v9657_v14  ;;  %6427 = vmatmul.bf16.vlgmr.msrb.gmra.mxu3 %v11949_v10  ;;  %v9566_v14 = vld [vmem:[#allocation5 + $0x13c8] sm:$0xf0]  ;;  %v10992_v57 = vld [vmem:[#allocation5 + $0x1424] sm:$0xf]  ;;  %v9489_v55 = vor.u32 %v10960_v11, %v9486_v28  ;;  %v11954_v23 = vld [vmem:[#allocation49_spill] sm:$0xff] }
 0x2de   :  { %6475 = vmatpush.bf16.msra.mxu3 %v9721_v6  ;;  %v11950_v6 = vld [vmem:[#allocation41_spill] sm:$0xff]  ;;  %v9569_v26 = vor.u32 %v10980_v19, %v9566_v14  ;;  %v11008_v14 = vld [vmem:[#allocation5 + $0x14a4] sm:$0xf]  ;;  %v9598_v11 = vld [vmem:[#allocation5 + $0x1408] sm:$0xf0] }
 0x2df   :  { %6434 = vmatpush.bf16.msra.mxu0 %v9521_v36  ;;  %v5423_v39 = vadd.f32 %v11950_v6, %v5409_v51  ;;  %v9633_v36 = vor.u32 %v10996_v47, %v9630_v41  ;;  %v11952_v51 = vld [vmem:[#allocation46_spill] sm:$0xff]  ;;  %v9678_v47 = vld [vmem:[#allocation5 + $0x14a8] sm:$0xf0]  ;;  %v11953_v41 = vld [vmem:[#allocation48_spill] sm:$0xff] }
 0x2e0   :  { %6448 = vmatpush.bf16.msra.mxu1 %v9585_v60  ;;  %v10962_v60 = vld [vmem:[#allocation5 + $0x1334] sm:$0xf]  ;;  %v11004_v28 = vld [vmem:[#allocation5 + $0x1484] sm:$0xf] }
 0x2e1   :  { %6462 = vmatpush.bf16.msra.mxu2 %v9649_v62  ;;  %v9494_v62 = vld [vmem:[#allocation5 + $0x1338] sm:$0xf0]  ;;  %v5437_v3 = vadd.f32 %v11951_v31, %v5423_v39  ;;  %v9617_v39 = vor.u32 %v10992_v57, %v9614_v24 }
 0x2e2   :  { %6476 = vmatpush.bf16.msra.mxu3 %v9713_v48  ;;  %v10994_v48 = vld [vmem:[#allocation5 + $0x1434] sm:$0xf]  ;;  %v9497_v34 = vor.u32 %v10962_v60, %v9494_v62  ;;  %v9606_v62 = vld [vmem:[#allocation5 + $0x1418] sm:$0xf0] }
 0x2e3   :  { %6435 = vmatpush.bf16.msra.mxu0 %v9513_v46  ;;  %v9625_v38 = vor.u32 %v10994_v48, %v9622_v32  ;;  %v5451_v10 = vadd.f32 %v11952_v51, %v5437_v3  ;;  %v9689_v46 = vor.u32 %v11010_v63, %v9686_v40  ;;  %v10990_v60 = vld [vmem:[#allocation5 + $0x1414] sm:$0xf]  ;;  %v9670_v31 = vld [vmem:[#allocation5 + $0x1498] sm:$0xf0]  ;;  %v10972_v40 = vld [vmem:[#allocation5 + $0x1384] sm:$0xf] }
 0x2e4   :  { %6449 = vmatpush.bf16.msra.mxu1 %v9577_v12  ;;  %v6190_v12 = vpop.f32.mrf.mxu2  ;;  %v9609_v63 = vor.u32 %v10990_v60, %v9606_v62  ;;  %v11955_v51 = vld [vmem:[#allocation51_spill] sm:$0xff]  ;;  %v9846_v24 = vld [vmem:[#allocation5 + $0x15f8] sm:$0xf0]  ;;  %v11048_v60 = vld [vmem:[#allocation5 + $0x15e4] sm:$0xf] }
 0x2e5   :  { %6463 = vmatpush.bf16.msra.mxu2 %v9641_v16  ;;  %v9550_v16 = vld [vmem:[#allocation5 + $0x13a8] sm:$0xf0]  ;;  %v6191_v19 = vadd.f32 %v6190_v12, %v6177_v29  ;;  %v5465_v13 = vadd.f32 %v11953_v41, %v5451_v10  ;;  %v9782_v12 = vld [vmem:[#allocation5 + $0x1578] sm:$0xf0]  ;;  %v11082_v41 = vld [vmem:[#allocation5 + $0x16f4] sm:$0xf] }
 0x2e6   :  { %6477 = vmatpush.bf16.msra.mxu3 %v9705_v35  ;;  %v6204_v35 = vpop.f32.mrf.mxu3  ;;  %v9553_v6 = vor.u32 %v10976_v61, %v9550_v16  ;;  %v9470_v29 = vld [vmem:[#allocation5 + $0x1308] sm:$0xf0]  ;;  %v11050_v16 = vld [vmem:[#allocation5 + $0x15f4] sm:$0xf] }
 0x2e7   :  { %6436 = vmatpush.bf16.msra.mxu0 %v9505_v33  ;;  %v11783_v44 = vadd.f32 %v6204_v35, %v6191_v19  ;;  %v9478_v33 = vld [vmem:[#allocation5 + $0x1318] sm:$0xf0]  ;;  %v5479_v48 = vadd.f32 %v11954_v23, %v5465_v13  ;;  %v9662_v61 = vld [vmem:[#allocation5 + $0x1488] sm:$0xf0]  ;;  %v11066_v19 = vld [vmem:[#allocation5 + $0x1674] sm:$0xf] }
 0x2e8   :  { %6450 = vmatpush.bf16.msra.mxu1 %v9569_v26  ;;  %v9681_v26 = vor.u32 %v11008_v14, %v9678_v47  ;;  %v9481_v3 = vor.u32 %v10958_v59, %v9478_v33  ;;  %v9910_v35 = vld [vmem:[#allocation5 + $0x1678] sm:$0xf0]  ;;  %v9849_v33 = vor.u32 %v11050_v16, %v9846_v24  ;;  %v11080_v23 = vld [vmem:[#allocation5 + $0x16e4] sm:$0xf]  ;;  %v11078_v24 = vld [vmem:[#allocation5 + $0x16d4] sm:$0xf] }
 0x2e9   :  { %6464 = vmatpush.bf16.msra.mxu2 %v9633_v36  ;;  %v9542_v36 = vld [vmem:[#allocation5 + $0x1398] sm:$0xf0]  ;;  %v5493_v10 = vadd.f32 %v11955_v51, %v5479_v48  ;;  %v9966_v48 = vld [vmem:[#allocation5 + $0x16e8] sm:$0xf0]  ;;  %v11062_v51 = vld [vmem:[#allocation5 + $0x1654] sm:$0xf] }
 0x2ea   :  { %6478 = vmatpush.bf16.msra.mxu3 %v9697_v21  ;;  %v10956_v21 = vld [vmem:[#allocation5 + $0x1304] sm:$0xf]  ;;  %v9545_v32 = vor.u32 %v10974_v53, %v9542_v36  ;;  %v9974_v13 = vld [vmem:[#allocation5 + $0x16f8] sm:$0xf0]  ;;  %v9913_v53 = vor.u32 %v11066_v19, %v9910_v35  ;;  %v9774_v36 = vld [vmem:[#allocation5 + $0x1568] sm:$0xf0] }
 0x2eb   :  { %6437 = vmatpush.bf16.msra.mxu0 %v9497_v34  ;;  %v9534_v34 = vld [vmem:[#allocation5 + $0x1388] sm:$0xf0]  ;;  %v9473_v57 = vor.u32 %v10956_v21, %v9470_v29  ;;  %v9977_v62 = vor.u32 %v11082_v41, %v9974_v13  ;;  %v11957_v21 = vld [vmem:[#allocation56_spill] sm:$0xff]  ;;  %v11960_v16 = vld [vmem:[#allocation50_spill] sm:$0xff] }
 0x2ec   :  { %6451 = vmatpush.bf16.msra.mxu1 %v9561_v0  ;;  %v10988_v0 = vld [vmem:[#allocation5 + $0x1404] sm:$0xf]  ;;  %v9537_v14 = vor.u32 %v10972_v40, %v9534_v34  ;;  %v11030_v34 = vld [vmem:[#allocation5 + $0x1554] sm:$0xf]  ;;  %v9958_v19 = vld [vmem:[#allocation5 + $0x16d8] sm:$0xf0] }
 0x2ed   :  { %6465 = vmatpush.bf16.msra.mxu2 %v9625_v38  ;;  %v9673_v38 = vor.u32 %v11006_v45, %v9670_v31  ;;  %v9601_v47 = vor.u32 %v10988_v0, %v9598_v11  ;;  %v9838_v45 = vld [vmem:[#allocation5 + $0x15e8] sm:$0xf0]  ;;  %v11064_v31 = vld [vmem:[#allocation5 + $0x1664] sm:$0xf]  ;;  %v9766_v0 = vld [vmem:[#allocation5 + $0x1558] sm:$0xf0] }
 0x2ee   :  { %6479 = vmatpush.bf16.msra.mxu3 %v9689_v46  ;;  %v11034_v46 = vld [vmem:[#allocation5 + $0x1574] sm:$0xf]  ;;  %v11962_v35 = vld [vmem:[#allocation53_spill] sm:$0xff] }
 0x2ef   :  { %6438 = vmatpush.bf16.msra.mxu0 %v9489_v55  ;;  %v9665_v55 = vor.u32 %v11004_v28, %v9662_v61  ;;  %v11958_v11 = vld [vmem:[#allocation44_spill] sm:$0xff]  ;;  %v9969_v28 = vor.u32 %v11080_v23, %v9966_v48  ;;  %v9830_v61 = vld [vmem:[#allocation5 + $0x15d8] sm:$0xf0] }
 0x2f0   :  { %6452 = vmatpush.bf16.msra.mxu1 %v9553_v6  ;;  %v9785_v6 = vor.u32 %v11034_v46, %v9782_v12  ;;  %v11959_v46 = vld [vmem:[#allocation57_spill] sm:$0xff] }
 0x2f1   :  { %6466 = vmatpush.bf16.msra.mxu2 %v9617_v39  ;;  %v11956_v39 = vld [vmem:[#allocation54_spill] sm:$0xff]  ;;  %v9814_v48 = vld [vmem:[#allocation5 + $0x15b8] sm:$0xf0] }
 0x2f2   :  { %6480 = vmatpush.bf16.msra.mxu3 %v9681_v26  ;;  %v5507_v59 = vadd.f32 %v11956_v39, %v5493_v10  ;;  %v11032_v26 = vld [vmem:[#allocation5 + $0x1564] sm:$0xf]  ;;  %v9894_v10 = vld [vmem:[#allocation5 + $0x1658] sm:$0xf0] }
 0x2f3   :  { %6439 = vmatpush.bf16.msra.mxu0 %v9481_v3  ;;  %v9902_v3 = vld [vmem:[#allocation5 + $0x1668] sm:$0xf0]  ;;  %v9897_v13 = vor.u32 %v11062_v51, %v9894_v10  ;;  %v11044_v39 = vld [vmem:[#allocation5 + $0x15c4] sm:$0xf] }
 0x2f4   :  { %6453 = vmatpush.bf16.msra.mxu1 %v9545_v32  ;;  %v5521_v29 = vadd.f32 %v11957_v21, %v5507_v59  ;;  %v9777_v32 = vor.u32 %v11032_v26, %v9774_v36  ;;  %v9905_v40 = vor.u32 %v11064_v31, %v9902_v3  ;;  %v9961_v59 = vor.u32 %v11078_v24, %v9958_v19  ;;  %v9886_v26 = vld [vmem:[#allocation5 + $0x1648] sm:$0xf0]  ;;  %v11076_v36 = vld [vmem:[#allocation5 + $0x16c4] sm:$0xf]  ;;  %v11026_v3 = vld [vmem:[#allocation5 + $0x1534] sm:$0xf] }
 0x2f5   :  { %6467 = vmatpush.bf16.msra.mxu2 %v9609_v63  ;;  %v9841_v63 = vor.u32 %v11048_v60, %v9838_v45  ;;  %v9950_v60 = vld [vmem:[#allocation5 + $0x16c8] sm:$0xf0]  ;;  %v9750_v21 = vld [vmem:[#allocation5 + $0x1538] sm:$0xf0]  ;;  %v11040_v51 = vld [vmem:[#allocation5 + $0x15a4] sm:$0xf] }
 0x2f6   :  { %6481 = vmatpush.bf16.msra.mxu3 %v9673_v38  ;;  %v11046_v38 = vld [vmem:[#allocation5 + $0x15d4] sm:$0xf]  ;;  %v5535_v12 = vadd.f32 %v11959_v46, %v5521_v29  ;;  %v9953_v23 = vor.u32 %v11076_v36, %v9950_v60  ;;  %v9806_v46 = vld [vmem:[#allocation5 + $0x15a8] sm:$0xf0]  ;;  %v11072_v19 = vld [vmem:[#allocation5 + $0x16a4] sm:$0xf] }
 0x2f7   :  { %6440 = vmatpush.bf16.msra.mxu0 %v9473_v57  ;;  %v11961_v57 = vld [vmem:[#allocation47_spill] sm:$0xff]  ;;  %v9833_v41 = vor.u32 %v11046_v38, %v9830_v61  ;;  %v11042_v29 = vld [vmem:[#allocation5 + $0x15b4] sm:$0xf]  ;;  %v9753_v38 = vor.u32 %v11026_v3, %v9750_v21  ;;  %v9926_v36 = vld [vmem:[#allocation5 + $0x1698] sm:$0xf0] }
 0x2f8   :  { %6454 = vmatpush.bf16.msra.mxu1 %v9537_v14  ;;  %v9769_v14 = vor.u32 %v11030_v34, %v9766_v0  ;;  %v11074_v34 = vld [vmem:[#allocation5 + $0x16b4] sm:$0xf]  ;;  %v9942_v0 = vld [vmem:[#allocation5 + $0x16b8] sm:$0xf0]  ;;  %v9742_v61 = vld [vmem:[#allocation5 + $0x1528] sm:$0xf0] }
 0x2f9   :  { %6468 = vmatpush.bf16.msra.mxu2 %v9601_v47  ;;  %v5549_v47 = vadd.f32 %v11605_v7, %v5535_v12  ;;  %v9945_v10 = vor.u32 %v11074_v34, %v9942_v0  ;;  %v11056_v12 = vld [vmem:[#allocation5 + $0x1624] sm:$0xf]  ;;  %v9790_v21 = vld [vmem:[#allocation5 + $0x1588] sm:$0xf0]  ;;  %v11098_v34 = vld [vmem:[#allocation5 + $0x1774] sm:$0xf] }
 0x2fa   :  { %6482 = vmatpush.bf16.msra.mxu3 %v9665_v55  ;;  %6441 = vmatmul.bf16.vlgmr.msra.gmra.mxu0 %v11958_v11  ;;  %v11028_v55 = vld [vmem:[#allocation5 + $0x1544] sm:$0xf]  ;;  %v10038_v0 = vld [vmem:[#allocation5 + $0x1778] sm:$0xf0] }
 0x2fb   :  { %6489 = vmatpush.bf16.msrb.mxu0 %v9785_v6  ;;  %6455 = vmatmul.bf16.vlgmr.msra.gmra.mxu1 %v11961_v57  ;;  %v9758_v6 = vld [vmem:[#allocation5 + $0x1548] sm:$0xf0]  ;;  %v5563_v45 = vadd.f32 %v11611_v54, %v5549_v47  ;;  %v9817_v54 = vor.u32 %v11042_v29, %v9814_v48  ;;  %v11963_v57 = vld [vmem:[#allocation62_spill] sm:$0xff]  ;;  %v9809_v47 = vor.u32 %v11040_v51, %v9806_v46  ;;  %v10230_v46 = vld [vmem:[#allocation5 + $0x18f8] sm:$0xf0] }
 0x2fc   :  { %6503 = vmatpush.bf16.msrb.mxu1 %v9849_v33  ;;  %6469 = vmatmul.bf16.vlgmr.msra.gmra.mxu2 %v11960_v16  ;;  %v9822_v33 = vld [vmem:[#allocation5 + $0x15c8] sm:$0xf0]  ;;  %v11036_v3 = vld [vmem:[#allocation5 + $0x1584] sm:$0xf] }
 0x2fd   :  { %6517 = vmatpush.bf16.msrb.mxu2 %v9913_v53  ;;  %6483 = vmatmul.bf16.vlgmr.msra.gmra.mxu3 %v11962_v35  ;;  %v11060_v53 = vld [vmem:[#allocation5 + $0x1644] sm:$0xf]  ;;  %v9825_v7 = vor.u32 %v11044_v39, %v9822_v33  ;;  %v9870_v16 = vld [vmem:[#allocation5 + $0x1628] sm:$0xf0]  ;;  %v11054_v33 = vld [vmem:[#allocation5 + $0x1614] sm:$0xf] }
 0x2fe   :  { %6531 = vmatpush.bf16.msrb.mxu3 %v9977_v62  ;;  %v9761_v62 = vor.u32 %v11028_v55, %v9758_v6  ;;  %v9889_v31 = vor.u32 %v11060_v53, %v9886_v26  ;;  %v9734_v55 = vld [vmem:[#allocation5 + $0x1518] sm:$0xf0]  ;;  %v11038_v6 = vld [vmem:[#allocation5 + $0x1594] sm:$0xf]  ;;  %v11052_v29 = vld [vmem:[#allocation5 + $0x1604] sm:$0xf] }
 0x2ff   :  { %6490 = vmatpush.bf16.msrb.mxu0 %v9777_v32  ;;  %v11058_v32 = vld [vmem:[#allocation5 + $0x1634] sm:$0xf]  ;;  %v9862_v53 = vld [vmem:[#allocation5 + $0x1618] sm:$0xf0]  ;;  %v9854_v48 = vld [vmem:[#allocation5 + $0x1608] sm:$0xf0] }
 0x300   :  { %6504 = vmatpush.bf16.msrb.mxu1 %v9841_v63  ;;  %v9878_v63 = vld [vmem:[#allocation5 + $0x1638] sm:$0xf0]  ;;  %v11070_v26 = vld [vmem:[#allocation5 + $0x1694] sm:$0xf]  ;;  %v9857_v51 = vor.u32 %v11052_v29, %v9854_v48  ;;  %v11967_v29 = vld [vmem:[#allocation55_spill] sm:$0xff] }
 0x301   :  { %6518 = vmatpush.bf16.msrb.mxu2 %v9905_v40  ;;  %v5577_v40 = vadd.f32 %v11619_v2, %v5563_v45  ;;  %v9881_v11 = vor.u32 %v11058_v32, %v9878_v63  ;;  %v9934_v2 = vld [vmem:[#allocation5 + $0x16a8] sm:$0xf0]  ;;  %v11068_v32 = vld [vmem:[#allocation5 + $0x1684] sm:$0xf]  ;;  %v10214_v48 = vld [vmem:[#allocation5 + $0x18d8] sm:$0xf0] }
 0x302   :  { %6532 = vmatpush.bf16.msrb.mxu3 %v9969_v28  ;;  %v11024_v28 = vld [vmem:[#allocation5 + $0x1524] sm:$0xf]  ;;  %v9937_v39 = vor.u32 %v11072_v19, %v9934_v2  ;;  %v9726_v45 = vld [vmem:[#allocation5 + $0x1508] sm:$0xf0] }
 0x303   :  { %6491 = vmatpush.bf16.msrb.mxu0 %v9769_v14  ;;  %v5591_v24 = vadd.f32 %v11963_v57, %v5577_v40  ;;  %v9745_v35 = vor.u32 %v11024_v28, %v9742_v61  ;;  %v9918_v63 = vld [vmem:[#allocation5 + $0x1688] sm:$0xf0]  ;;  %v10166_v28 = vld [vmem:[#allocation5 + $0x1878] sm:$0xf0]  ;;  %v9793_v61 = vor.u32 %v11036_v3, %v9790_v21  ;;  %v11096_v2 = vld [vmem:[#allocation5 + $0x1764] sm:$0xf] }
 0x304   :  { %6505 = vmatpush.bf16.msrb.mxu1 %v9833_v41  ;;  %v9873_v41 = vor.u32 %v11056_v12, %v9870_v16  ;;  %v9921_v12 = vor.u32 %v11068_v32, %v9918_v63  ;;  %v10041_v16 = vor.u32 %v11098_v34, %v10038_v0  ;;  %v11964_v57 = vld [vmem:[#allocation65_spill] sm:$0xff]  ;;  %v11966_v21 = vld [vmem:[#allocation58_spill] sm:$0xff]  ;;  %v11968_v32 = vld [vmem:[#allocation60_spill] sm:$0xff] }
 0x305   :  { %6519 = vmatpush.bf16.msrb.mxu2 %v9897_v13  ;;  %v5605_v14 = vadd.f32 %v11628_v49, %v5591_v24  ;;  %v11022_v13 = vld [vmem:[#allocation5 + $0x1514] sm:$0xf] }
 0x306   :  { %6533 = vmatpush.bf16.msrb.mxu3 %v9961_v59  ;;  %v9798_v59 = vld [vmem:[#allocation5 + $0x1598] sm:$0xf0]  ;;  %v9737_v60 = vor.u32 %v11022_v13, %v9734_v55  ;;  %v11128_v13 = vld [vmem:[#allocation5 + $0x1864] sm:$0xf]  ;;  %v10158_v55 = vld [vmem:[#allocation5 + $0x1868] sm:$0xf0] }
 0x307   :  { %6492 = vmatpush.bf16.msrb.mxu0 %v9761_v62  ;;  %v11020_v62 = vld [vmem:[#allocation5 + $0x1504] sm:$0xf]  ;;  %v5619_v49 = vadd.f32 %v11632_v9, %v5605_v14  ;;  %v10102_v9 = vld [vmem:[#allocation5 + $0x17f8] sm:$0xf0] }
 0x308   :  { %6506 = vmatpush.bf16.msrb.mxu1 %v9825_v7  ;;  %v9801_v7 = vor.u32 %v11038_v6, %v9798_v59  ;;  %v11112_v14 = vld [vmem:[#allocation5 + $0x17e4] sm:$0xf]  ;;  %v10222_v59 = vld [vmem:[#allocation5 + $0x18e8] sm:$0xf0] }
 0x309   :  { %6520 = vmatpush.bf16.msrb.mxu2 %v9889_v31  ;;  %v9865_v31 = vor.u32 %v11054_v33, %v9862_v53  ;;  %v5633_v40 = vadd.f32 %v11638_v52, %v5619_v49 }
 0x30a   :  { %6534 = vmatpush.bf16.msrb.mxu3 %v9953_v23  ;;  %v9929_v23 = vor.u32 %v11070_v26, %v9926_v36  ;;  %v10161_v26 = vor.u32 %v11128_v13, %v10158_v55  ;;  %v11094_v36 = vld [vmem:[#allocation5 + $0x1754] sm:$0xf]  ;;  %v10198_v13 = vld [vmem:[#allocation5 + $0x18b8] sm:$0xf0] }
 0x30b   :  { %6493 = vmatpush.bf16.msrb.mxu0 %v9753_v38  ;;  %v11114_v38 = vld [vmem:[#allocation5 + $0x17f4] sm:$0xf]  ;;  %v5647_v24 = vadd.f32 %v11964_v57, %v5633_v40 }
 0x30c   :  { %6507 = vmatpush.bf16.msrb.mxu1 %v9817_v54  ;;  %v9729_v54 = vor.u32 %v11020_v62, %v9726_v45  ;;  %v10105_v52 = vor.u32 %v11114_v38, %v10102_v9  ;;  %v11110_v62 = vld [vmem:[#allocation5 + $0x17d4] sm:$0xf]  ;;  %v11092_v38 = vld [vmem:[#allocation5 + $0x1744] sm:$0xf] }
 0x30d   :  { %6521 = vmatpush.bf16.msrb.mxu2 %v9881_v11  ;;  %v11130_v11 = vld [vmem:[#allocation5 + $0x1874] sm:$0xf]  ;;  %v5661_v6 = vadd.f32 %v11645_v20, %v5647_v24  ;;  %v11108_v9 = vld [vmem:[#allocation5 + $0x17c4] sm:$0xf]  ;;  %v10006_v24 = vld [vmem:[#allocation5 + $0x1738] sm:$0xf0] }
 0x30e   :  { %6535 = vmatpush.bf16.msrb.mxu3 %v9945_v10  ;;  %v11146_v10 = vld [vmem:[#allocation5 + $0x18f4] sm:$0xf]  ;;  %v10169_v19 = vor.u32 %v11130_v11, %v10166_v28  ;;  %v10078_v11 = vld [vmem:[#allocation5 + $0x17c8] sm:$0xf0]  ;;  %v11124_v28 = vld [vmem:[#allocation5 + $0x1844] sm:$0xf] }
 0x30f   :  { %6494 = vmatpush.bf16.msrb.mxu0 %v9745_v35  ;;  %v10030_v35 = vld [vmem:[#allocation5 + $0x1768] sm:$0xf0]  ;;  %v11965_v45 = vld [vmem:[#allocation52_spill] sm:$0xff]  ;;  %v5675_v3 = vadd.f32 %v11647_v50, %v5661_v6 }
 0x310   :  { %6508 = vmatpush.bf16.msrb.mxu1 %v9809_v47  ;;  %v10233_v47 = vor.u32 %v11146_v10, %v10230_v46  ;;  %v10033_v33 = vor.u32 %v11096_v2, %v10030_v35  ;;  %v11126_v20 = vld [vmem:[#allocation5 + $0x1854] sm:$0xf]  ;;  %v10206_v10 = vld [vmem:[#allocation5 + $0x18c8] sm:$0xf0]  ;;  %v10070_v2 = vld [vmem:[#allocation5 + $0x17b8] sm:$0xf0] }
 0x311   :  { %6522 = vmatpush.bf16.msrb.mxu2 %v9873_v41  ;;  %v10094_v41 = vld [vmem:[#allocation5 + $0x17e8] sm:$0xf0]  ;;  %v5689_v40 = vadd.f32 %v11653_v5, %v5675_v3  ;;  %v10081_v5 = vor.u32 %v11108_v9, %v10078_v11  ;;  %v11090_v57 = vld [vmem:[#allocation5 + $0x1734] sm:$0xf] }
 0x312   :  { %6536 = vmatpush.bf16.msrb.mxu3 %v9937_v39  ;;  %v11144_v39 = vld [vmem:[#allocation5 + $0x18e4] sm:$0xf]  ;;  %v10097_v53 = vor.u32 %v11112_v14, %v10094_v41  ;;  %v11122_v35 = vld [vmem:[#allocation5 + $0x1834] sm:$0xf]  ;;  %v10134_v14 = vld [vmem:[#allocation5 + $0x1838] sm:$0xf0]  ;;  %v10009_v55 = vor.u32 %v11090_v57, %v10006_v24 }
 0x313   :  { %6495 = vmatpush.bf16.msrb.mxu0 %v9737_v60  ;;  %v10022_v60 = vld [vmem:[#allocation5 + $0x1758] sm:$0xf0]  ;;  %v10225_v49 = vor.u32 %v11144_v39, %v10222_v59  ;;  %v11138_v41 = vld [vmem:[#allocation5 + $0x18b4] sm:$0xf]  ;;  %v10137_v6 = vor.u32 %v11122_v35, %v10134_v14  ;;  %v11088_v39 = vld [vmem:[#allocation5 + $0x1724] sm:$0xf] }
 0x314   :  { %6509 = vmatpush.bf16.msrb.mxu1 %v9801_v7  ;;  %v10086_v7 = vld [vmem:[#allocation5 + $0x17d8] sm:$0xf0]  ;;  %v10025_v63 = vor.u32 %v11094_v36, %v10022_v60  ;;  %v9998_v59 = vld [vmem:[#allocation5 + $0x1728] sm:$0xf0]  ;;  %v11120_v36 = vld [vmem:[#allocation5 + $0x1824] sm:$0xf] }
 0x315   :  { %6523 = vmatpush.bf16.msrb.mxu2 %v9865_v31  ;;  %v10150_v31 = vld [vmem:[#allocation5 + $0x1858] sm:$0xf0]  ;;  %v10089_v34 = vor.u32 %v11110_v62, %v10086_v7  ;;  %v10126_v60 = vld [vmem:[#allocation5 + $0x1828] sm:$0xf0]  ;;  %v11086_v3 = vld [vmem:[#allocation5 + $0x1714] sm:$0xf] }
 0x316   :  { %6537 = vmatpush.bf16.msrb.mxu3 %v9929_v23  ;;  %v11142_v23 = vld [vmem:[#allocation5 + $0x18d4] sm:$0xf]  ;;  %v10153_v0 = vor.u32 %v11126_v20, %v10150_v31  ;;  %v10129_v31 = vor.u32 %v11120_v36, %v10126_v60  ;;  %v9982_v9 = vld [vmem:[#allocation5 + $0x1708] sm:$0xf0]  ;;  %v11155_v24 = vld [vmem:[#allocation8 + $0x38] sm:$0xff]  ;;  %v6192_v36 = vpop.f32.mrf.mxu2  ;;  %v6206_v60 = vpop.f32.mrf.mxu3 }
 0x317   :  { %6496 = vmatpush.bf16.msrb.mxu0 %v9729_v54  ;;  %v10014_v54 = vld [vmem:[#allocation5 + $0x1748] sm:$0xf0]  ;;  %v10217_v50 = vor.u32 %v11142_v23, %v10214_v48  ;;  %v10054_v48 = vld [vmem:[#allocation5 + $0x1798] sm:$0xf0] }
 0x318   :  { %6510 = vmatpush.bf16.msrb.mxu1 %v9793_v61  ;;  %v10142_v61 = vld [vmem:[#allocation5 + $0x1848] sm:$0xf0]  ;;  %v10017_v46 = vor.u32 %v11092_v38, %v10014_v54  ;;  %v11084_v54 = vld [vmem:[#allocation5 + $0x1704] sm:$0xf]  ;;  %v11970_v35 = vld [vmem:[#allocation61_spill] sm:$0xff] }
 0x319   :  { %6524 = vmatpush.bf16.msrb.mxu2 %v9857_v51  ;;  %v11140_v51 = vld [vmem:[#allocation5 + $0x18c4] sm:$0xf]  ;;  %v11971_v14 = vld [vmem:[#allocation63_spill] sm:$0xff] }
 0x31a   :  { %6538 = vmatpush.bf16.msrb.mxu3 %v9921_v12  ;;  %6497 = vmatmul.bf16.vlgmr.msrb.gmra.mxu0 %v11965_v45  ;;  %v5703_v12 = vadd.f32 %v11655_v22, %v5689_v40  ;;  %v11136_v45 = vld [vmem:[#allocation5 + $0x18a4] sm:$0xf]  ;;  %v11134_v40 = vld [vmem:[#allocation5 + $0x1894] sm:$0xf] }
 0x31b   :  { %6545 = vmatpush.bf16.msra.mxu0 %v10041_v16  ;;  %6511 = vmatmul.bf16.vlgmr.msrb.gmra.mxu1 %v11967_v29  ;;  %v10145_v16 = vor.u32 %v11124_v28, %v10142_v61  ;;  %v11102_v29 = vld [vmem:[#allocation5 + $0x1794] sm:$0xf]  ;;  %v10046_v28 = vld [vmem:[#allocation5 + $0x1788] sm:$0xf0]  ;;  %v11116_v61 = vld [vmem:[#allocation5 + $0x1804] sm:$0xf] }
 0x31c   :  { %6559 = vmatpush.bf16.msra.mxu1 %v10105_v52  ;;  %6525 = vmatmul.bf16.vlgmr.msrb.gmra.mxu2 %v11966_v21  ;;  %v11106_v52 = vld [vmem:[#allocation5 + $0x17b4] sm:$0xf]  ;;  %v9990_v21 = vld [vmem:[#allocation5 + $0x1718] sm:$0xf0] }
 0x31d   :  { %6573 = vmatpush.bf16.msra.mxu2 %v10169_v19  ;;  %6539 = vmatmul.bf16.vlgmr.msrb.gmra.mxu3 %v11968_v32  ;;  %v10209_v19 = vor.u32 %v11140_v51, %v10206_v10  ;;  %v10073_v22 = vor.u32 %v11106_v52, %v10070_v2  ;;  %v11118_v32 = vld [vmem:[#allocation5 + $0x1814] sm:$0xf]  ;;  %v10110_v51 = vld [vmem:[#allocation5 + $0x1808] sm:$0xf0] }
 0x31e   :  { %6587 = vmatpush.bf16.msra.mxu3 %v10233_v47  ;;  %v5717_v47 = vadd.f32 %v11660_v42, %v5703_v12  ;;  %v10190_v42 = vld [vmem:[#allocation5 + $0x18a8] sm:$0xf0] }
 0x31f   :  { %6546 = vmatpush.bf16.msra.mxu0 %v10033_v33  ;;  %v11104_v33 = vld [vmem:[#allocation5 + $0x17a4] sm:$0xf]  ;;  %v10193_v23 = vor.u32 %v11136_v45, %v10190_v42  ;;  %v10174_v12 = vld [vmem:[#allocation5 + $0x1888] sm:$0xf0] }
 0x320   :  { %6560 = vmatpush.bf16.msra.mxu1 %v10097_v53  ;;  %v10201_v53 = vor.u32 %v11138_v41, %v10198_v13  ;;  %v5731_v62 = vadd.f32 %v11662_v58, %v5717_v47  ;;  %v10182_v58 = vld [vmem:[#allocation5 + $0x1898] sm:$0xf0]  ;;  %v11969_v2 = vld [vmem:[#allocation59_spill] sm:$0xff]  ;;  %v11972_v41 = vld [vmem:[#allocation64_spill] sm:$0xff] }
 0x321   :  { %6574 = vmatpush.bf16.msra.mxu2 %v10161_v26  ;;  %v10062_v26 = vld [vmem:[#allocation5 + $0x17a8] sm:$0xf0]  ;;  %v10185_v11 = vor.u32 %v11134_v40, %v10182_v58  ;;  %v11148_v42 = vld [vmem:[#allocation8] sm:$0xff] }
 0x322   :  { %6588 = vmatpush.bf16.msra.mxu3 %v10225_v49  ;;  %v10001_v49 = vor.u32 %v11088_v39, %v9998_v59  ;;  %v5745_v7 = vadd.f32 %v11668_v15, %v5731_v62  ;;  %v10065_v20 = vor.u32 %v11104_v33, %v10062_v26  ;;  %v10057_v15 = vor.u32 %v11102_v29, %v10054_v48  ;;  %v11151_v39 = vld [vmem:[#allocation8 + $0x18] sm:$0xff]  ;;  %v6178_v59 = vpop.f32.mrf.mxu1  ;;  %v11973_v33 = vld [vmem:[#allocation66_spill] sm:$0xff] }
 0x323   :  { %6547 = vmatpush.bf16.msra.mxu0 %v10025_v63  ;;  %v10118_v63 = vld [vmem:[#allocation5 + $0x1818] sm:$0xf0] }
 0x324   :  { %6561 = vmatpush.bf16.msra.mxu1 %v10089_v34  ;;  %v9993_v34 = vor.u32 %v11086_v3, %v9990_v21  ;;  %v10121_v38 = vor.u32 %v11118_v32, %v10118_v63 }
 0x325   :  { %6575 = vmatpush.bf16.msra.mxu2 %v10153_v0  ;;  %v5759_v0 = vadd.f32 %v11670_v25, %v5745_v7  ;;  %v6260_v7 = vpop.f32.mrf.mxu3 }
 0x326   :  { %6589 = vmatpush.bf16.msra.mxu3 %v10217_v50  ;;  %v11100_v50 = vld [vmem:[#allocation5 + $0x1784] sm:$0xf] }
 0x327   :  { %6548 = vmatpush.bf16.msra.mxu0 %v10017_v46  ;;  %v5773_v10 = vadd.f32 %v11675_v4, %v5759_v0  ;;  %v11132_v46 = vld [vmem:[#allocation5 + $0x1884] sm:$0xf]  ;;  %v10049_v25 = vor.u32 %v11100_v50, %v10046_v28  ;;  %v11154_v4 = vld [vmem:[#allocation8 + $0x30] sm:$0xff] }
 0x328   :  { %6562 = vmatpush.bf16.msra.mxu1 %v10081_v5  ;;  %v9985_v5 = vor.u32 %v11084_v54, %v9982_v9  ;;  %v10177_v57 = vor.u32 %v11132_v46, %v10174_v12 }
 0x329   :  { %6576 = vmatpush.bf16.msra.mxu2 %v10145_v16  ;;  %v10113_v16 = vor.u32 %v11116_v61, %v10110_v51  ;;  %v5787_v52 = vadd.f32 %v11677_v1, %v5773_v10  ;;  %v11153_v1 = vld [vmem:[#allocation8 + $0x28] sm:$0xff] }
 0x32a   :  { %6590 = vmatpush.bf16.msra.mxu3 %v10209_v19 }
 0x32b   :  { %6549 = vmatpush.bf16.msra.mxu0 %v10009_v55  ;;  %v5801_v19 = vadd.f32 %v11683_v8, %v5787_v52  ;;  %v11152_v8 = vld [vmem:[#allocation8 + $0x20] sm:$0xff] }
 0x32c   :  { %6563 = vmatpush.bf16.msra.mxu1 %v10073_v22  ;;  %v6164_v22 = vpop.f32.mrf.mxu0 }
 0x32d   :  { %6577 = vmatpush.bf16.msra.mxu2 %v10137_v6  ;;  %v5815_v47 = vadd.f32 %v11685_v37, %v5801_v19  ;;  %v11150_v37 = vld [vmem:[#allocation8 + $0x10] sm:$0xff] }
 0x32e   :  { %6591 = vmatpush.bf16.msra.mxu3 %v10201_v53 }
 0x32f   :  { %6550 = vmatpush.bf16.msra.mxu0 %v10001_v49  ;;  %v5829_v13 = vadd.f32 %v11690_v17, %v5815_v47  ;;  %v11149_v17 = vld [vmem:[#allocation8 + $0x8] sm:$0xff]  ;;  %v6246_v49 = vpop.f32.mrf.mxu2 }
 0x330   :  { %6564 = vmatpush.bf16.msra.mxu1 %v10065_v20  ;;  %v11974_v20 = vld [vmem:[#allocation67_spill] sm:$0xff] }
 0x331   :  { %6578 = vmatpush.bf16.msra.mxu2 %v10129_v31  ;;  %v5843_v55 = vadd.f32 %v11692_v43, %v5829_v13  ;;  %v6232_v43 = vpop.f32.mrf.mxu1  ;;  %v6601_v31 = vmax.f32 %v11974_v20, 0.0 }
 0x332   :  { %6592 = vmatpush.bf16.msra.mxu3 %v10193_v23  ;;  %v6262_v23 = vpop.f32.mrf.mxu3 }
 0x333   :  { %6551 = vmatpush.bf16.msra.mxu0 %v9993_v34  ;;  %v5857_v6 = vadd.f32 %v11698_v18, %v5843_v55  ;;  %v6165_v34 = vadd.f32 %v6164_v22, %v11768_v30 }
 0x334   :  { %6565 = vmatpush.bf16.msra.mxu1 %v10057_v15  ;;  %v6218_v62 = vpop.f32.mrf.mxu0 }
 0x335   :  { %6579 = vmatpush.bf16.msra.mxu2 %v10121_v38  ;;  %v5871_v53 = vadd.f32 %v11973_v33, %v5857_v6  ;;  %v6179_v54 = vadd.f32 %v6178_v59, %v6165_v34  ;;  %v11163_v6 = vld [vmem:[#allocation8 + $0x78] sm:$0xff]  ;;  %v11162_v33 = vld [vmem:[#allocation8 + $0x70] sm:$0xff] }
 0x336   :  { %6593 = vmatpush.bf16.msra.mxu3 %v10185_v11  ;;  %v6219_v11 = vadd.f32 %v6218_v62, %v11783_v44  ;;  %v11158_v34 = vld [vmem:[#allocation8 + $0x50] sm:$0xff] }
 0x337   :  { %6552 = vmatpush.bf16.msra.mxu0 %v9985_v5  ;;  %v5885_v26 = vadd.f32 %v11712_v56, %v5871_v53  ;;  %v6248_v56 = vpop.f32.mrf.mxu2  ;;  %v6193_v50 = vadd.f32 %v6192_v36, %v6179_v54 }
 0x338   :  { %6566 = vmatpush.bf16.msra.mxu1 %v10049_v25  ;;  %v6233_v10 = vadd.f32 %v6232_v43, %v6219_v11 }
 0x339   :  { %6580 = vmatpush.bf16.msra.mxu2 %v10113_v16  ;;  %v5899_v45 = vadd.f32 %v11714_v27, %v5885_v26  ;;  %v6234_v29 = vpop.f32.mrf.mxu1  ;;  %v6207_v61 = vadd.f32 %v6206_v60, %v6193_v50  ;;  %v11157_v50 = vld [vmem:[#allocation8 + $0x48] sm:$0xff] }
 0x33a   :  { %6594 = vmatpush.bf16.msra.mxu3 %v10177_v57  ;;  %6553 = vmatmul.bf16.vlgmr.msra.gmra.mxu0 %v11969_v2  ;;  %v6316_v40 = vpop.f32.mrf.mxu3  ;;  %v6247_v5 = vadd.f32 %v6246_v49, %v6233_v10  ;;  %v11161_v49 = vld [vmem:[#allocation8 + $0x68] sm:$0xff]  ;;  %v11156_v10 = vld [vmem:[#allocation8 + $0x40] sm:$0xff] }
 0x33b   :  { %6739 = vmatpush.bf16.msrb.mxu0 %v11155_v24  ;;  %6567 = vmatmul.bf16.vlgmr.msra.gmra.mxu1 %v11970_v35  ;;  %v6603_v18 = vmax.f32 %v5899_v45, 0.0 }
 0x33c   :  { %6581 = vmatmul.bf16.vlgmr.msra.gmra.mxu2 %v11971_v14  ;;  %v6220_v3 = vpop.f32.mrf.mxu0  ;;  %v6261_v57 = vadd.f32 %v6260_v7, %v6247_v5  ;;  %6753 = vmatpush.bf16.msrb.mxu1 %v11163_v6 }
 0x33d   :  { %6595 = vmatmul.bf16.vlgmr.msra.gmra.mxu3 %v11972_v41  ;;  %v6605_v21 = vpack.c.bf16 %v6603_v18, %v6601_v31  ;;  %v6221_v46 = vadd.f32 %v6220_v3, %v6207_v61  ;;  %v11160_v31 = vld [vmem:[#allocation8 + $0x60] sm:$0xff] }
 0x33f   :  { %6740 = vmatpush.bf16.msrb.mxu0 %v11154_v4  ;;  %v6302_v63 = vpop.f32.mrf.mxu2  ;;  %v6235_v16 = vadd.f32 %v6234_v29, %v6221_v46 }
 0x340   :  { %6754 = vmatpush.bf16.msrb.mxu1 %v11162_v33 }
 0x341   :  { %v6288_v32 = vpop.f32.mrf.mxu1  ;;  %v6249_v24 = vadd.f32 %v6248_v56, %v6235_v16 }
 0x342   :  { %v6318_v15 = vpop.f32.mrf.mxu3 }
 0x343   :  { %6741 = vmatpush.bf16.msrb.mxu0 %v11153_v1  ;;  %v6263_v2 = vadd.f32 %v6262_v23, %v6249_v24 }
 0x344   :  { %v6274_v48 = vpop.f32.mrf.mxu0  ;;  %6755 = vmatpush.bf16.msrb.mxu1 %v11161_v49 }
 0x345   :  { %v6275_v52 = vadd.f32 %v6274_v48, %v6261_v57 }
 0x347   :  { %6742 = vmatpush.bf16.msrb.mxu0 %v11152_v8  ;;  %v6304_v0 = vpop.f32.mrf.mxu2  ;;  %v6289_v14 = vadd.f32 %v6288_v32, %v6275_v52  ;;  %v11159_v32 = vld [vmem:[#allocation8 + $0x58] sm:$0xff] }
 0x348   :  { %6756 = vmatpush.bf16.msrb.mxu1 %v11160_v31 }
 0x349   :  { %v6290_v58 = vpop.f32.mrf.mxu1  ;;  %v6303_v44 = vadd.f32 %v6302_v63, %v6289_v14 }
 0x34a   :  { %v6372_v51 = vpop.f32.mrf.mxu3 }
 0x34b   :  { %6743 = vmatpush.bf16.msrb.mxu0 %v11151_v39  ;;  %v6317_v8 = vadd.f32 %v6316_v40, %v6303_v44 }
 0x34c   :  { %v6276_v27 = vpop.f32.mrf.mxu0  ;;  %6757 = vmatpush.bf16.msrb.mxu1 %v11159_v32 }
 0x34d   :  { %v6277_v47 = vadd.f32 %v6276_v27, %v6263_v2 }
 0x34f   :  { %6744 = vmatpush.bf16.msrb.mxu0 %v11150_v37  ;;  %v6358_v28 = vpop.f32.mrf.mxu2  ;;  %v6291_v1 = vadd.f32 %v6290_v58, %v6277_v47 }
 0x350   :  { %6758 = vmatpush.bf16.msrb.mxu1 %v11158_v34 }
 0x351   :  { %v6344_v9 = vpop.f32.mrf.mxu1  ;;  %v6305_v55 = vadd.f32 %v6304_v0, %v6291_v1 }
 0x352   :  { %v6374_v19 = vpop.f32.mrf.mxu3 }
 0x353   :  { %6745 = vmatpush.bf16.msrb.mxu0 %v11149_v17  ;;  %v6319_v53 = vadd.f32 %v6318_v15, %v6305_v55 }
 0x354   :  { %v6330_v38 = vpop.f32.mrf.mxu0  ;;  %6759 = vmatpush.bf16.msrb.mxu1 %v11157_v50 }
 0x355   :  { %v6331_v39 = vadd.f32 %v6330_v38, %v6317_v8 }
 0x357   :  { %6746 = vmatpush.bf16.msrb.mxu0 %v11148_v42  ;;  %v6360_v30 = vpop.f32.mrf.mxu2  ;;  %v6345_v37 = vadd.f32 %v6344_v9, %v6331_v39 }
 0x358   :  { %6760 = vmatpush.bf16.msrb.mxu1 %v11156_v10 }
 0x359   :  { %v6346_v25 = vpop.f32.mrf.mxu1  ;;  %v6359_v60 = vadd.f32 %v6358_v28, %v6345_v37 }
 0x35a   :  { %6747 = vmatmul.bf16.vlgmr.msrb.gmra.mxu0 %v6605_v21 }
 0x35b   :  { %v6373_v42 = vadd.f32 %v6372_v51, %v6359_v60 }
 0x35c   :  { %v6332_v12 = vpop.f32.mrf.mxu0 }
 0x35d   :  { %v6333_v26 = vadd.f32 %v6332_v12, %v6319_v53 }
 0x35f   :  { %v6414_v41 = vpop.f32.mrf.mxu2  ;;  %v6347_v45 = vadd.f32 %v6346_v25, %v6333_v26 }
 0x360   :  { %v6428_v13 = vpop.f32.mrf.mxu3 }
 0x361   :  { %v6400_v35 = vpop.f32.mrf.mxu1  ;;  %v6361_v18 = vadd.f32 %v6360_v30, %v6347_v45 }
 0x363   :  { %v6375_v3 = vadd.f32 %v6374_v19, %v6361_v18 }
 0x364   :  { %v6386_v4 = vpop.f32.mrf.mxu0 }
 0x365   :  { %v6387_v7 = vadd.f32 %v6386_v4, %v6373_v42 }
 0x367   :  { %v6416_v36 = vpop.f32.mrf.mxu2  ;;  %v6401_v29 = vadd.f32 %v6400_v35, %v6387_v7  ;;  %v11176_v7 = vld [vmem:[#allocation10] ss:$0 sm:$0xff] }
 0x368   :  { %v6430_v62 = vpop.f32.mrf.mxu3 }
 0x369   :  { %v6402_v59 = vpop.f32.mrf.mxu1  ;;  %v6415_v48 = vadd.f32 %v6414_v41, %v6401_v29 }
 0x36b   :  { %v6429_v27 = vadd.f32 %v6428_v13, %v6415_v48 }
 0x36c   :  { %v6388_v22 = vpop.f32.mrf.mxu0 }
 0x36d   :  { %v6389_v56 = vadd.f32 %v6388_v22, %v6375_v3 }
 0x36f   :  { %v6403_v40 = vadd.f32 %v6402_v59, %v6389_v56 }
 0x371   :  { %v6417_v58 = vadd.f32 %v6416_v36, %v6403_v40 }
 0x373   :  { %v6431_v9 = vadd.f32 %v6430_v62, %v6417_v58 }
 0x377   :  { %v6442_v17 = vpop.f32.mrf.mxu0 }
 0x378   :  { %v6456_v43 = vpop.f32.mrf.mxu1  ;;  %v6443_v15 = vadd.f32 %v6442_v17, %v6429_v27 }
 0x37a   :  { %v6457_v28 = vadd.f32 %v6456_v43, %v6443_v15 }
 0x37f   :  { %v6470_v20 = vpop.f32.mrf.mxu2  ;;  %v6444_v23 = vpop.f32.mrf.mxu0 }
 0x380   :  { %v6484_v21 = vpop.f32.mrf.mxu3  ;;  %v6458_v63 = vpop.f32.mrf.mxu1  ;;  %v6445_v61 = vadd.f32 %v6444_v23, %v6431_v9  ;;  %v6471_v51 = vadd.f32 %v6470_v20, %v6457_v28 }
 0x382   :  { %v6459_v12 = vadd.f32 %v6458_v63, %v6445_v61  ;;  %v6485_v25 = vadd.f32 %v6484_v21, %v6471_v51 }
 0x387   :  { %v6472_v0 = vpop.f32.mrf.mxu2 }
 0x388   :  { %v6486_v38 = vpop.f32.mrf.mxu3  ;;  %v6473_v16 = vadd.f32 %v6472_v0, %v6459_v12 }
 0x38a   :  { %v6487_v52 = vadd.f32 %v6486_v38, %v6473_v16 }
 0x397   :  { %v6498_v54 = vpop.f32.mrf.mxu0 }
 0x398   :  { %v6512_v11 = vpop.f32.mrf.mxu1  ;;  %v6499_v24 = vadd.f32 %v6498_v54, %v6485_v25 }
 0x39a   :  { %v6513_v19 = vadd.f32 %v6512_v11, %v6499_v24 }
 0x39f   :  { %v6526_v46 = vpop.f32.mrf.mxu2  ;;  %v6500_v57 = vpop.f32.mrf.mxu0 }
 0x3a0   :  { %v6540_v5 = vpop.f32.mrf.mxu3  ;;  %v6514_v30 = vpop.f32.mrf.mxu1  ;;  %v6501_v4 = vadd.f32 %v6500_v57, %v6487_v52  ;;  %v6527_v35 = vadd.f32 %v6526_v46, %v6513_v19 }
 0x3a2   :  { %v6515_v44 = vadd.f32 %v6514_v30, %v6501_v4  ;;  %v6541_v1 = vadd.f32 %v6540_v5, %v6527_v35 }
 0x3a7   :  { %v6528_v2 = vpop.f32.mrf.mxu2 }
 0x3a8   :  { %v6542_v14 = vpop.f32.mrf.mxu3  ;;  %v6529_v13 = vadd.f32 %v6528_v2, %v6515_v44 }
 0x3aa   :  { %v6543_v22 = vadd.f32 %v6542_v14, %v6529_v13 }
 0x3b7   :  { %v6554_v47 = vpop.f32.mrf.mxu0 }
 0x3b8   :  { %v6568_v41 = vpop.f32.mrf.mxu1  ;;  %v6555_v8 = vadd.f32 %v6554_v47, %v6541_v1 }
 0x3ba   :  { %v6569_v59 = vadd.f32 %v6568_v41, %v6555_v8 }
 0x3bf   :  { %v6582_v55 = vpop.f32.mrf.mxu2  ;;  %v6556_v39 = vpop.f32.mrf.mxu0 }
 0x3c0   :  { %v6596_v6 = vpop.f32.mrf.mxu3  ;;  %v6557_v33 = vadd.f32 %v6556_v39, %v6543_v22  ;;  %v6583_v53 = vadd.f32 %v6582_v55, %v6569_v59  ;;  %v6570_v37 = vpop.f32.mrf.mxu1 }
 0x3c2   :  { %v6571_v26 = vadd.f32 %v6570_v37, %v6557_v33  ;;  %v6597_v60 = vadd.f32 %v6596_v6, %v6583_v53 }
 0x3c4   :  { %v6602_v43 = vmax.f32 %v6597_v60, 0.0 }
 0x3c7   :  { %v6584_v36 = vpop.f32.mrf.mxu2 }
 0x3c8   :  { %v6585_v62 = vadd.f32 %v6584_v36, %v6571_v26  ;;  %v6598_v17 = vpop.f32.mrf.mxu3 }
 0x3ca   :  { %v6599_v45 = vadd.f32 %v6598_v17, %v6585_v62 }
 0x3cc   :  { %v6604_v42 = vmax.f32 %v6599_v45, 0.0 }
 0x3ce   :  { %v6606_v18 = vpack.c.bf16 %v6604_v42, %v6602_v43 }
 0x3d0   :  { %6761 = vmatmul.bf16.vlgmr.msrb.gmra.mxu1 %v6606_v18 }
 0x3d7   :  { %v6748_v49 = vpop.f32.mrf.mxu0 }
 0x3d8   :  { %v6749_v20 = vadd.f32 %v11176_v7, %v6748_v49 }
 0x3df   :  { %v6750_v21 = vpop.f32.mrf.mxu0 }
 0x3e0   :  { %v6751_v29 = vadd.f32 %v11176_v7, %v6750_v21 }
 0x44d   :  { %v6762_v31 = vpop.f32.mrf.mxu1 }
 0x44e   :  { %v6763_v3 = vadd.f32 %v6762_v31, %v6749_v20 }
 0x450   :  { %6767 = vmax.xlane.f32.xlu0 %v6763_v3 }
 0x455   :  { %v6764_v56 = vpop.f32.mrf.mxu1 }
 0x456   :  { %v6765_v23 = vadd.f32 %v6764_v56, %v6751_v29 }
 0x458   :  { %6769 = vmax.xlane.f32.xlu0 %v6765_v23 }
 0x4c3   :  { %v6768_v48 = vpop.xlane.xlu0 %6767 }
 0x4c4   :  { %v6771_v32 = vsub.f32 %v6763_v3, %v6768_v48 }
 0x4c6   :  { %v6773_v63 = vmul.f32 1.442695, %v6771_v32 }
 0x4c8   :  { %11177 = vpow2.f32 %v6773_v63 }
 0x4cb   :  { %v6770_v40 = vpop.xlane.xlu0 %6769 }
 0x4cc   :  { %v6772_v27 = vsub.f32 %v6765_v23, %v6770_v40 }
 0x4ce   :  { %v11178_v58 = vpop.eup %11177  ;;  %v6775_v34 = vmul.f32 1.442695, %v6772_v27 }
 0x4cf   :  { %6777 = vadd.xlane.f32.xlu1 %v11178_v58 }
 0x4d0   :  { %11179 = vpow2.f32 %v6775_v34 }
 0x4d6   :  { %v11180_v0 = vpop.eup %11179 }
 0x4d7   :  { %6779 = vadd.xlane.f32.xlu1 %v11180_v0 }
 0x542   :  { %v6778_v15 = vpop.xlane.xlu1 %6777 }
 0x543   :  { %11181 = vrcp.f32 %v6778_v15  ;;  %v6792_v11 = vand.u32 2147483648, %v6778_v15  ;;  %v6790_v61 = vand.u32 2147483647, %v6778_v15  ;;  %vm6786_vm1 = vweird.f32 %v6778_v15 }
 0x545   :  { %v6793_v46 = vor.u32 1.1754944e-38, %v6792_v11  ;;  %vm6791_vm3 = vcmp.eq.f32.partialorder %v6790_v61, 8.507059e+37 }
 0x549   :  { %v11182_v38 = vpop.eup %11181 }
 0x54a   :  { %v6782_v54 = vmul.f32 %v11182_v38, %v6778_v15  ;;  %v6780_v9 = vpop.xlane.xlu1 %6779  ;;  %vm6787_vm0 = vweird.f32 %v11182_v38 }
 0x54b   :  { %11183 = vrcp.f32 %v6780_v9  ;;  %vm6788_vm2 = vmor %vm6786_vm1, %vm6787_vm0  ;;  %v6807_v24 = vand.u32 2147483648, %v6780_v9  ;;  %v6805_v52 = vand.u32 2147483647, %v6780_v9  ;;  %vm6801_vm5 = vweird.f32 %v6780_v9 }
 0x54c   :  { %v6783_v50 = vsub.f32 1.0, %v6782_v54 }
 0x54d   :  { %v6808_v4 = vor.u32 1.1754944e-38, %v6807_v24  ;;  %vm6806_vm7 = vcmp.eq.f32.partialorder %v6805_v52, 8.507059e+37 }
 0x54e   :  { %v6784_v28 = vmul.f32 %v11182_v38, %v6783_v50 }
 0x550   :  { %v6785_v51 = vadd.f32 %v11182_v38, %v6784_v28 }
 0x551   :  { %v11184_v10 = vpop.eup %11183 }
 0x552   :  { %v6797_v12 = vmul.f32 %v11184_v10, %v6780_v9  ;;  %v6789_v5 = vsel %vm6788_vm2, %v11182_v38, %v6785_v51  ;;  %vm6802_vm4 = vweird.f32 %v11184_v10 }
 0x553   :  { %v6794_v25 = vsel %vm6791_vm3, %v6793_v46, %v6789_v5  ;;  %vm6803_vm6 = vmor %vm6801_vm5, %vm6802_vm4 }
 0x554   :  { %v6798_v16 = vsub.f32 1.0, %v6797_v12  ;;  %v6795_v57 = vmul.f32 %v11178_v58, %v6794_v25 }
 0x556   :  { %v6799_v30 = vmul.f32 %v11184_v10, %v6798_v16  ;;  %6811 = vst [vmem:[#allocation11] sm:$0xff] %v6795_v57 }
 0x558   :  { %v6800_v19 = vadd.f32 %v11184_v10, %v6799_v30 }
 0x55a   :  { %v6804_v2 = vsel %vm6803_vm6, %v11184_v10, %v6800_v19 }
 0x55b   :  { %v6809_v35 = vsel %vm6806_vm7, %v6808_v4, %v6804_v2 }
 0x55c   :  { %v6810_v14 = vmul.f32 %v11180_v0, %v6809_v35 }
 0x55e   :  { %6812 = vst [vmem:[#allocation11 + $0x8] sm:$0xff] %v6810_v14 }
 0x55f   :  { %6825 = dma.vmem_to_hbm [thread:$0]  %s6818_s4, 256, %s6820_s23, [#allocation4], %s11339_s26, %s11339_s26, %s11340_s27  }
 0x560   :  { %11336 = dma.done.wait [#allocation4], 256  }
 0x561   :  { %11337 = vsyncadd [#allocation4], 4294967040 }
 0x562   :  { %6830 = vsyncpa [#allocation3], 1 }
 0x563   :  { %6831 = vsyncpa [#allocation6], 1 }
 0x564   :  { %6832 = vsyncpa [#allocation9], 1 }
 0x565   :  { %6833 = vsyncpa [#allocation4], 1 }

</bundles_post_ra>
